<compile_context>
chip_gen: v7x
topology: tpu7x:2x2x1
jax: 0.10.0
libtpu: 0.0.40
codegen_flags: <defaults>
</compile_context>

<pallas_src>
import functools

import jax
import jax.numpy as jnp
from jax import lax
from jax.experimental import pallas as pl
from jax.experimental.pallas import tpu as pltpu


def _round_up(x, m):
    return ((x + m - 1) // m) * m


def _pad2d(x, rows, cols):
    return jnp.pad(x, ((0, rows - x.shape[0]), (0, cols - x.shape[1])))


# ----------------------------------------------------------------------------
# Fully fused kernel: projections + depth GINEConv layers + sum-pool readout.
# ----------------------------------------------------------------------------
def _reaction_gin_kernel(src_ref, dst_ref, pool_ref, node_ref, edge_ref,
                         pn_w_ref, pn_b_ref, pe_w_ref, pe_b_ref,
                         w1_ref, b1_ref, w2_ref, b2_ref,
                         h_out_ref, pool_out_ref, *, depth, n_valid):
    f32, bf16 = jnp.float32, jnp.bfloat16
    n_pad = node_ref.shape[0]
    e_pad = edge_ref.shape[0]
    src = src_ref[...]          # (E_pad, 1) int32; padded edges -> out-of-range index
    dst = dst_ref[...]          # (1, E_pad) int32

    # Gather operator  S[e, n] = (src[e] == n)  ->  h_src = S @ h
    src_oh = (lax.broadcasted_iota(jnp.int32, (e_pad, n_pad), 1) == src).astype(bf16)
    # Scatter-add operator D[n, e] = (dst[e] == n)  ->  agg = D @ msg
    dst_oh = (lax.broadcasted_iota(jnp.int32, (n_pad, e_pad), 0) == dst).astype(bf16)

    # project_node_feats: Linear + ReLU ; project_edge_feats: Linear
    h = jnp.maximum(
        jnp.dot(node_ref[...], pn_w_ref[...], preferred_element_type=f32)
        + pn_b_ref[...].astype(f32), 0.0)
    e = (jnp.dot(edge_ref[...], pe_w_ref[...], preferred_element_type=f32)
         + pe_b_ref[...].astype(f32))

    # depth GINEConv layers; h and e stay resident in VMEM/vregs throughout.
    for i in range(depth):
        h_src = jnp.dot(src_oh, h.astype(bf16), preferred_element_type=f32)
        msg = jnp.maximum(h_src + e, 0.0)                          # ReLU(h[src] + e)
        agg = jnp.dot(dst_oh, msg.astype(bf16), preferred_element_type=f32)
        x = h + agg                                                # (1 + eps)*h, eps=0
        x = jnp.maximum(
            jnp.dot(x.astype(bf16), w1_ref[i], preferred_element_type=f32)
            + b1_ref[i].astype(f32), 0.0)
        h = (jnp.dot(x.astype(bf16), w2_ref[i], preferred_element_type=f32)
             + b2_ref[i].astype(f32))
        if i < depth - 1:
            h = jnp.maximum(h, 0.0)
        # dropout: identity (eval mode)
        # TODO(synk): training-mode dropout via pltpu.prng_* not implemented.

    # Fused readout: per-molecule masked sum-pool as one small f32 MXU matmul.
    pool_out_ref[...] = jnp.dot(pool_ref[...], h, preferred_element_type=f32)

    # Zero padded node rows in the returned node features (no ReLU(bias) garbage).
    rows = lax.broadcasted_iota(jnp.int32, h.shape, 0)
    h_out_ref[...] = jnp.where(rows < n_valid, h, 0.0).astype(h_out_ref.dtype)


# ----------------------------------------------------------------------------
# Wrapper: pack all molecules of the batch into one block, call the kernel once.
# ----------------------------------------------------------------------------
def reaction_mpnn_forward(prep, r_graphs, p_graphs):
    """reactionMPNN.forward (rgmols=None): one molecule per reactant/product graph.

    r_graphs / p_graphs: lists (len B) of (node_attr [N,Fn], edge_attr [E,Fe],
    src_idx [E], dst_idx [E]).  Returns (reaction_feat, reactants, products,
    packed node features).  reaction_feat/reactants/products are (B, hid).
    """
    depth, hid = prep["depth"], prep["hid"]
    fn_pad, h_pad = prep["pn_w"].shape
    fe_pad = prep["pe_w"].shape[0]
    assert len(r_graphs) == len(p_graphs)
    batch = len(r_graphs)

    # Interleave molecules [r0, p0, r1, p1, ...] and pack into one block.
    mols = []
    for rg, pg in zip(r_graphs, p_graphs):
        mols.append(rg)
        mols.append(pg)

    n_total = sum(int(m[0].shape[0]) for m in mols)
    e_total = sum(int(m[1].shape[0]) for m in mols)
    n_pad = max(_round_up(n_total, 128), 128)      # lane-dense one-hot operands
    e_pad = max(_round_up(e_total, 128), 128)
    p_pad = max(_round_up(2 * batch, 8), 8)

    node_list, edge_list, src_list, dst_list = [], [], [], []
    pool = jnp.zeros((p_pad, n_pad), jnp.float32)  # row 2b: reactant b, 2b+1: product b
    n_off = 0
    for b, (na, ea, si, di) in enumerate(mols):
        node_list.append(na.astype(jnp.float32))
        edge_list.append(ea.astype(jnp.float32))
        src_list.append(si.astype(jnp.int32) + n_off)
        dst_list.append(di.astype(jnp.int32) + n_off)
        pool = pool.at[b, n_off:n_off + na.shape[0]].set(1.0)
        n_off += na.shape[0]

    node_b = _pad2d(jnp.concatenate(node_list, 0), n_pad, fn_pad).astype(jnp.bfloat16)
    edge_b = _pad2d(jnp.concatenate(edge_list, 0), e_pad, fe_pad).astype(jnp.bfloat16)
    # Padded edges reference node index n_pad (out of range) -> all-zero one-hot.
    src_b = jnp.full((e_pad,), n_pad, jnp.int32).at[:e_total].set(
        jnp.concatenate(src_list, 0)).reshape(e_pad, 1)
    dst_b = jnp.full((e_pad,), n_pad, jnp.int32).at[:e_total].set(
        jnp.concatenate(dst_list, 0)).reshape(1, e_pad)

    flops = 2 * (n_pad * fn_pad * h_pad + e_pad * fe_pad * h_pad
                 + depth * (2 * e_pad * n_pad * h_pad + 2 * n_pad * h_pad * h_pad)
                 + p_pad * n_pad * h_pad)
    bytes_accessed = int(
        2 * (node_b.size + edge_b.size + prep["pn_w"].size + prep["pn_b"].size
             + prep["pe_w"].size + prep["pe_b"].size + prep["w1"].size
             + prep["b1"].size + prep["w2"].size + prep["b2"].size)
        + 4 * (src_b.size + dst_b.size + pool.size + n_pad * h_pad + p_pad * h_pad))

    kernel = functools.partial(_reaction_gin_kernel, depth=depth, n_valid=n_total)
    h_nodes, pooled = pl.pallas_call(
        kernel,
        out_shape=(jax.ShapeDtypeStruct((n_pad, h_pad), jnp.float32),
                   jax.ShapeDtypeStruct((p_pad, h_pad), jnp.float32)),
        grid=(1,),
        in_specs=[
            pl.BlockSpec((e_pad, 1), lambda i: (0, 0)),              # src indices
            pl.BlockSpec((1, e_pad), lambda i: (0, 0)),              # dst indices
            pl.BlockSpec((p_pad, n_pad), lambda i: (0, 0)),          # pool masks (f32)
            pl.BlockSpec((n_pad, fn_pad), lambda i: (0, 0)),         # node feats (bf16)
            pl.BlockSpec((e_pad, fe_pad), lambda i: (0, 0)),         # edge feats (bf16)
            pl.BlockSpec((fn_pad, h_pad), lambda i: (0, 0)),         # proj_node W
            pl.BlockSpec((1, h_pad), lambda i: (0, 0)),              # proj_node b
            pl.BlockSpec((fe_pad, h_pad), lambda i: (0, 0)),         # proj_edge W
            pl.BlockSpec((1, h_pad), lambda i: (0, 0)),              # proj_edge b
            pl.BlockSpec((depth, h_pad, h_pad), lambda i: (0, 0, 0)),  # stacked W1
            pl.BlockSpec((depth, 1, h_pad), lambda i: (0, 0, 0)),      # stacked b1
            pl.BlockSpec((depth, h_pad, h_pad), lambda i: (0, 0, 0)),  # stacked W2
            pl.BlockSpec((depth, 1, h_pad), lambda i: (0, 0, 0)),      # stacked b2
        ],
        out_specs=(pl.BlockSpec((n_pad, h_pad), lambda i: (0, 0)),
                   pl.BlockSpec((p_pad, h_pad), lambda i: (0, 0))),
        compiler_params=pltpu.CompilerParams(dimension_semantics=("arbitrary",)),
        cost_estimate=pl.CostEstimate(flops=int(flops), transcendentals=0,
                                      bytes_accessed=bytes_accessed),
    )(src_b, dst_b, pool, node_b, edge_b,
      prep["pn_w"], prep["pn_b"], prep["pe_w"], prep["pe_b"],
      prep["w1"], prep["b1"], prep["w2"], prep["b2"])

    reactants = pooled[0:2 * batch:2, :hid]
    products = pooled[1:2 * batch:2, :hid]
    reaction_feat = reactants - products          # tiny host-side jnp op
    return reaction_feat, reactants, products, h_nodes


# ----------------------------------------------------------------------------
# Parameters: PyTorch nn.Linear-style init; pad / stack / cast to bf16 ONCE.
# ----------------------------------------------------------------------------
def init_params(key, node_in, edge_in, hid, depth):
    def lin_init(k, fan_in, fan_out):
        kw, kb = jax.random.split(k)
        bound = 1.0 / jnp.sqrt(fan_in)
        w = jax.random.uniform(kw, (fan_in, fan_out), jnp.float32, -bound, bound)
        b = jax.random.uniform(kb, (fan_out,), jnp.float32, -bound, bound)
        return w, b

    keys = jax.random.split(key, 2 + 2 * depth)
    pn_w, pn_b = lin_init(keys[0], node_in, hid)
    pe_w, pe_b = lin_init(keys[1], edge_in, hid)
    w1s, b1s, w2s, b2s = [], [], [], []
    for i in range(depth):
        w1, b1 = lin_init(keys[2 + 2 * i], hid, hid)
        w2, b2 = lin_init(keys[3 + 2 * i], hid, hid)
        w1s.append(w1); b1s.append(b1); w2s.append(w2); b2s.append(b2)
    return {
        "proj_node_w": pn_w, "proj_node_b": pn_b,
        "proj_edge_w": pe_w, "proj_edge_b": pe_b,
        "gnn_w1": w1s, "gnn_b1": b1s,
        "gnn_w2": w2s, "gnn_b2": b2s,
    }


def prepare_params(params, depth):
    node_in, hid = params["proj_node_w"].shape
    edge_in = params["proj_edge_w"].shape[0]
    h_pad = _round_up(hid, 128)       # 300 -> 384 (NOT 512, per review)
    fn_pad = _round_up(node_in, 128)
    fe_pad = _round_up(edge_in, 128)
    bf = jnp.bfloat16
    return {
        "pn_w": _pad2d(params["proj_node_w"], fn_pad, h_pad).astype(bf),
        "pn_b": _pad2d(params["proj_node_b"].reshape(1, -1), 1, h_pad).astype(bf),
        "pe_w": _pad2d(params["proj_edge_w"], fe_pad, h_pad).astype(bf),
        "pe_b": _pad2d(params["proj_edge_b"].reshape(1, -1), 1, h_pad).astype(bf),
        "w1": jnp.stack([_pad2d(w, h_pad, h_pad) for w in params["gnn_w1"]]).astype(bf),
        "b1": jnp.stack([_pad2d(b.reshape(1, -1), 1, h_pad) for b in params["gnn_b1"]]).astype(bf),
        "w2": jnp.stack([_pad2d(w, h_pad, h_pad) for w in params["gnn_w2"]]).astype(bf),
        "b2": jnp.stack([_pad2d(b.reshape(1, -1), 1, h_pad) for b in params["gnn_b2"]]).astype(bf),
        "hid": hid,
        "depth": depth,
    }


# ----------------------------------------------------------------------------
# Pure-JAX reference reproducing the kernel numerics (bf16 operands, f32 accum).
# ----------------------------------------------------------------------------
def gin_reference(params, node_attr, edge_attr, src_idx, dst_idx, depth):
    bf, f32 = jnp.bfloat16, jnp.float32

    def mm(a, w):
        return jnp.dot(a.astype(bf), w.astype(bf), preferred_element_type=f32)

    def bias(b):
        return b.astype(bf).astype(f32)

    h = jax.nn.relu(mm(node_attr, params["proj_node_w"]) + bias(params["proj_node_b"]))
    e = mm(edge_attr, params["proj_edge_w"]) + bias(params["proj_edge_b"])
    n = node_attr.shape[0]
    for i in range(depth):
        msg = jax.nn.relu(h.astype(bf).astype(f32)[src_idx] + e)
        agg = jnp.zeros((n, h.shape[1]), f32).at[dst_idx].add(msg.astype(bf).astype(f32))
        x = h + agg
        x = jax.nn.relu(mm(x, params["gnn_w1"][i]) + bias(params["gnn_b1"][i]))
        h = mm(x, params["gnn_w2"][i]) + bias(params["gnn_b2"][i])
        if i < depth - 1:
            h = jax.nn.relu(h)
    return h


if __name__ == "__main__":
    NODE_IN, EDGE_IN, HID, DEPTH = 16, 8, 300, 3
    N_R, E_R = 14, 30        # reactant molecule graph
    N_P, E_P = 11, 24        # product molecule graph

    key = jax.random.PRNGKey(0)
    (k_param, k_rn, k_re, k_rs, k_rd, k_pn, k_pe, k_ps, k_pd) = jax.random.split(key, 9)

    params = init_params(k_param, NODE_IN, EDGE_IN, HID, DEPTH)
    prep = prepare_params(params, DEPTH)

    r_graph = (
        jax.random.normal(k_rn, (N_R, NODE_IN), jnp.float32),
        jax.random.normal(k_re, (E_R, EDGE_IN), jnp.float32),
        jax.random.randint(k_rs, (E_R,), 0, N_R),
        jax.random.randint(k_rd, (E_R,), 0, N_R),
    )
    p_graph = (
        jax.random.normal(k_pn, (N_P, NODE_IN), jnp.float32),
        jax.random.normal(k_pe, (E_P, EDGE_IN), jnp.float32),
        jax.random.randint(k_ps, (E_P,), 0, N_P),
        jax.random.randint(k_pd, (E_P,), 0, N_P),
    )

    reaction_feat, reactants, products, h_nodes = reaction_mpnn_forward(
        prep, [r_graph], [p_graph])
    jax.block_until_ready((reaction_feat, reactants, products, h_nodes))

    # Correctness check against a pure-JAX reference of the same math / numerics.
    ref_r = gin_reference(params, *r_graph, DEPTH)
    ref_p = gin_reference(params, *p_graph, DEPTH)
    err_r = float(jnp.max(jnp.abs(h_nodes[:N_R, :HID] - ref_r)))
    err_p = float(jnp.max(jnp.abs(h_nodes[N_R:N_R + N_P, :HID] - ref_p)))
    ref_feat = jnp.sum(ref_r, axis=0) - jnp.sum(ref_p, axis=0)
    err_feat = float(jnp.max(jnp.abs(reaction_feat[0] - ref_feat)))
    err_pad = float(jnp.max(jnp.abs(h_nodes[N_R + N_P:, :])))   # pad rows must be zero

    assert reaction_feat.shape == (1, HID)
    assert reactants.shape == (1, HID) and products.shape == (1, HID)
    assert bool(jnp.all(jnp.isfinite(reaction_feat)))
    assert bool(jnp.all(jnp.isfinite(reactants))) and bool(jnp.all(jnp.isfinite(products)))
    assert err_r < 3e-2 and err_p < 3e-2 and err_feat < 1e-1, (err_r, err_p, err_feat)
    assert err_pad < 1e-6, err_pad
    print("KERNEL_OK")
</pallas_src>

<mosaic_0001>
module attributes {stable_mosaic.version = 11 : i64} {
  func.func @_reaction_gin_kernel(%arg0: i32, %arg1: memref<128x1xi32, #tpu.memory_space<vmem>>, %arg2: memref<1x128xi32, #tpu.memory_space<vmem>>, %arg3: memref<8x128xf32, #tpu.memory_space<vmem>>, %arg4: memref<128x128xbf16, #tpu.memory_space<vmem>>, %arg5: memref<128x128xbf16, #tpu.memory_space<vmem>>, %arg6: memref<128x384xbf16, #tpu.memory_space<vmem>>, %arg7: memref<1x384xbf16, #tpu.memory_space<vmem>>, %arg8: memref<128x384xbf16, #tpu.memory_space<vmem>>, %arg9: memref<1x384xbf16, #tpu.memory_space<vmem>>, %arg10: memref<3x384x384xbf16, #tpu.memory_space<vmem>>, %arg11: memref<3x1x384xbf16, #tpu.memory_space<vmem>>, %arg12: memref<3x384x384xbf16, #tpu.memory_space<vmem>>, %arg13: memref<3x1x384xbf16, #tpu.memory_space<vmem>>, %arg14: memref<128x384xf32, #tpu.memory_space<vmem>>, %arg15: memref<8x384xf32, #tpu.memory_space<vmem>>) attributes {dimension_semantics = [#tpu.dimension_semantics<arbitrary>], iteration_bounds = array<i64: 1>, scalar_prefetch = 0 : i64, scratch_operands = 0 : i64, tpu.core_type = #tpu.core_type<tc>, window_params = [{pipeline_mode = #tpu.pipeline_mode<synchronous>, transform_indices = @transform_0, window_bounds = array<i64: 128, 1>}, {pipeline_mode = #tpu.pipeline_mode<synchronous>, transform_indices = @transform_1, window_bounds = array<i64: 1, 128>}, {pipeline_mode = #tpu.pipeline_mode<synchronous>, transform_indices = @transform_2, window_bounds = array<i64: 8, 128>}, {pipeline_mode = #tpu.pipeline_mode<synchronous>, transform_indices = @transform_3, window_bounds = array<i64: 128, 128>}, {pipeline_mode = #tpu.pipeline_mode<synchronous>, transform_indices = @transform_4, window_bounds = array<i64: 128, 128>}, {pipeline_mode = #tpu.pipeline_mode<synchronous>, transform_indices = @transform_5, window_bounds = array<i64: 128, 384>}, {pipeline_mode = #tpu.pipeline_mode<synchronous>, transform_indices = @transform_6, window_bounds = array<i64: 1, 384>}, {pipeline_mode = #tpu.pipeline_mode<synchronous>, transform_indices = @transform_7, window_bounds = array<i64: 128, 384>}, {pipeline_mode = #tpu.pipeline_mode<synchronous>, transform_indices = @transform_8, window_bounds = array<i64: 1, 384>}, {pipeline_mode = #tpu.pipeline_mode<synchronous>, transform_indices = @transform_9, window_bounds = array<i64: 3, 384, 384>}, {pipeline_mode = #tpu.pipeline_mode<synchronous>, transform_indices = @transform_10, window_bounds = array<i64: 3, 1, 384>}, {pipeline_mode = #tpu.pipeline_mode<synchronous>, transform_indices = @transform_11, window_bounds = array<i64: 3, 384, 384>}, {pipeline_mode = #tpu.pipeline_mode<synchronous>, transform_indices = @transform_12, window_bounds = array<i64: 3, 1, 384>}, {pipeline_mode = #tpu.pipeline_mode<synchronous>, transform_indices = @transform_13, window_bounds = array<i64: 128, 384>}, {pipeline_mode = #tpu.pipeline_mode<synchronous>, transform_indices = @transform_14, window_bounds = array<i64: 8, 384>}]} {
    %c0 = arith.constant 0 : index
    %c0_0 = arith.constant 0 : index
    %0 = vector.load %arg1[%c0, %c0_0] : memref<128x1xi32, #tpu.memory_space<vmem>>, vector<128x1xi32>
    %c0_1 = arith.constant 0 : index
    %c0_2 = arith.constant 0 : index
    %1 = vector.load %arg2[%c0_1, %c0_2] : memref<1x128xi32, #tpu.memory_space<vmem>>, vector<1x128xi32>
    %2 = tpu.iota {dimensions = array<i32: 1>} : vector<128x128xi32>
    %3 = vector.broadcast %0 : vector<128x1xi32> to vector<128x128xi32>
    %4 = arith.cmpi eq, %2, %3 : vector<128x128xi32>
    %5 = arith.extui %4 : vector<128x128xi1> to vector<128x128xi32>
    %6 = arith.sitofp %5 : vector<128x128xi32> to vector<128x128xf32>
    %7 = arith.truncf %6 : vector<128x128xf32> to vector<128x128xbf16>
    %8 = tpu.iota {dimensions = array<i32: 0>} : vector<128x128xi32>
    %9 = vector.broadcast %1 : vector<1x128xi32> to vector<128x128xi32>
    %10 = arith.cmpi eq, %8, %9 : vector<128x128xi32>
    %11 = arith.extui %10 : vector<128x128xi1> to vector<128x128xi32>
    %12 = arith.sitofp %11 : vector<128x128xi32> to vector<128x128xf32>
    %13 = arith.truncf %12 : vector<128x128xf32> to vector<128x128xbf16>
    %c0_3 = arith.constant 0 : index
    %c0_4 = arith.constant 0 : index
    %14 = vector.load %arg4[%c0_3, %c0_4] : memref<128x128xbf16, #tpu.memory_space<vmem>>, vector<128x128xbf16>
    %c0_5 = arith.constant 0 : index
    %c0_6 = arith.constant 0 : index
    %15 = vector.load %arg6[%c0_5, %c0_6] : memref<128x384xbf16, #tpu.memory_space<vmem>>, vector<128x384xbf16>
    %cst = arith.constant dense<0.000000e+00> : vector<128x384xf32>
    %16 = tpu.matmul %14, %15, %cst {dimension_numbers = #tpu.dot_dimension_numbers<[1], [0], [0], [1], [0, 0, 1, 1], [], []>} : vector<128x128xbf16>, vector<128x384xbf16>, vector<128x384xf32> -> vector<128x384xf32>
    %c0_7 = arith.constant 0 : index
    %c0_8 = arith.constant 0 : index
    %17 = vector.load %arg7[%c0_7, %c0_8] : memref<1x384xbf16, #tpu.memory_space<vmem>>, vector<1x384xbf16>
    %18 = arith.extf %17 : vector<1x384xbf16> to vector<1x384xf32>
    %19 = vector.broadcast %18 : vector<1x384xf32> to vector<128x384xf32>
    %20 = arith.addf %16, %19 : vector<128x384xf32>
    %cst_9 = arith.constant 0.000000e+00 : f32
    %21 = vector.broadcast %cst_9 : f32 to vector<128x384xf32>
    %22 = arith.maximumf %20, %21 : vector<128x384xf32>
    %c0_10 = arith.constant 0 : index
    %c0_11 = arith.constant 0 : index
    %23 = vector.load %arg5[%c0_10, %c0_11] : memref<128x128xbf16, #tpu.memory_space<vmem>>, vector<128x128xbf16>
    %c0_12 = arith.constant 0 : index
    %c0_13 = arith.constant 0 : index
    %24 = vector.load %arg8[%c0_12, %c0_13] : memref<128x384xbf16, #tpu.memory_space<vmem>>, vector<128x384xbf16>
    %cst_14 = arith.constant dense<0.000000e+00> : vector<128x384xf32>
    %25 = tpu.matmul %23, %24, %cst_14 {dimension_numbers = #tpu.dot_dimension_numbers<[1], [0], [0], [1], [0, 0, 1, 1], [], []>} : vector<128x128xbf16>, vector<128x384xbf16>, vector<128x384xf32> -> vector<128x384xf32>
    %c0_15 = arith.constant 0 : index
    %c0_16 = arith.constant 0 : index
    %26 = vector.load %arg9[%c0_15, %c0_16] : memref<1x384xbf16, #tpu.memory_space<vmem>>, vector<1x384xbf16>
    %27 = arith.extf %26 : vector<1x384xbf16> to vector<1x384xf32>
    %28 = vector.broadcast %27 : vector<1x384xf32> to vector<128x384xf32>
    %29 = arith.addf %25, %28 : vector<128x384xf32>
    %30 = arith.truncf %22 : vector<128x384xf32> to vector<128x384xbf16>
    %cst_17 = arith.constant dense<0.000000e+00> : vector<128x384xf32>
    %31 = tpu.matmul %7, %30, %cst_17 {dimension_numbers = #tpu.dot_dimension_numbers<[1], [0], [0], [1], [0, 0, 1, 1], [], []>} : vector<128x128xbf16>, vector<128x384xbf16>, vector<128x384xf32> -> vector<128x384xf32>
    %32 = arith.addf %31, %29 : vector<128x384xf32>
    %cst_18 = arith.constant 0.000000e+00 : f32
    %33 = vector.broadcast %cst_18 : f32 to vector<128x384xf32>
    %34 = arith.maximumf %32, %33 : vector<128x384xf32>
    %35 = arith.truncf %34 : vector<128x384xf32> to vector<128x384xbf16>
    %cst_19 = arith.constant dense<0.000000e+00> : vector<128x384xf32>
    %36 = tpu.matmul %13, %35, %cst_19 {dimension_numbers = #tpu.dot_dimension_numbers<[1], [0], [0], [1], [0, 0, 1, 1], [], []>} : vector<128x128xbf16>, vector<128x384xbf16>, vector<128x384xf32> -> vector<128x384xf32>
    %37 = arith.addf %22, %36 : vector<128x384xf32>
    %38 = arith.truncf %37 : vector<128x384xf32> to vector<128x384xbf16>
    %c0_20 = arith.constant 0 : index
    %c0_21 = arith.constant 0 : index
    %c0_22 = arith.constant 0 : index
    %39 = vector.load %arg10[%c0_20, %c0_21, %c0_22] : memref<3x384x384xbf16, #tpu.memory_space<vmem>>, vector<1x384x384xbf16>
    %40 = vector.shape_cast %39 : vector<1x384x384xbf16> to vector<384x384xbf16>
    %cst_23 = arith.constant dense<0.000000e+00> : vector<128x384xf32>
    %41 = tpu.matmul %38, %40, %cst_23 {dimension_numbers = #tpu.dot_dimension_numbers<[1], [0], [0], [1], [0, 0, 1, 1], [], []>} : vector<128x384xbf16>, vector<384x384xbf16>, vector<128x384xf32> -> vector<128x384xf32>
    %c0_24 = arith.constant 0 : index
    %c0_25 = arith.constant 0 : index
    %c0_26 = arith.constant 0 : index
    %42 = vector.load %arg11[%c0_24, %c0_25, %c0_26] : memref<3x1x384xbf16, #tpu.memory_space<vmem>>, vector<1x1x384xbf16>
    %43 = vector.shape_cast %42 : vector<1x1x384xbf16> to vector<1x384xbf16>
    %44 = arith.extf %43 : vector<1x384xbf16> to vector<1x384xf32>
    %45 = vector.broadcast %44 : vector<1x384xf32> to vector<128x384xf32>
    %46 = arith.addf %41, %45 : vector<128x384xf32>
    %cst_27 = arith.constant 0.000000e+00 : f32
    %47 = vector.broadcast %cst_27 : f32 to vector<128x384xf32>
    %48 = arith.maximumf %46, %47 : vector<128x384xf32>
    %49 = arith.truncf %48 : vector<128x384xf32> to vector<128x384xbf16>
    %c0_28 = arith.constant 0 : index
    %c0_29 = arith.constant 0 : index
    %c0_30 = arith.constant 0 : index
    %50 = vector.load %arg12[%c0_28, %c0_29, %c0_30] : memref<3x384x384xbf16, #tpu.memory_space<vmem>>, vector<1x384x384xbf16>
    %51 = vector.shape_cast %50 : vector<1x384x384xbf16> to vector<384x384xbf16>
    %cst_31 = arith.constant dense<0.000000e+00> : vector<128x384xf32>
    %52 = tpu.matmul %49, %51, %cst_31 {dimension_numbers = #tpu.dot_dimension_numbers<[1], [0], [0], [1], [0, 0, 1, 1], [], []>} : vector<128x384xbf16>, vector<384x384xbf16>, vector<128x384xf32> -> vector<128x384xf32>
    %c0_32 = arith.constant 0 : index
    %c0_33 = arith.constant 0 : index
    %c0_34 = arith.constant 0 : index
    %53 = vector.load %arg13[%c0_32, %c0_33, %c0_34] : memref<3x1x384xbf16, #tpu.memory_space<vmem>>, vector<1x1x384xbf16>
    %54 = vector.shape_cast %53 : vector<1x1x384xbf16> to vector<1x384xbf16>
    %55 = arith.extf %54 : vector<1x384xbf16> to vector<1x384xf32>
    %56 = vector.broadcast %55 : vector<1x384xf32> to vector<128x384xf32>
    %57 = arith.addf %52, %56 : vector<128x384xf32>
    %cst_35 = arith.constant 0.000000e+00 : f32
    %58 = vector.broadcast %cst_35 : f32 to vector<128x384xf32>
    %59 = arith.maximumf %57, %58 : vector<128x384xf32>
    %60 = arith.truncf %59 : vector<128x384xf32> to vector<128x384xbf16>
    %cst_36 = arith.constant dense<0.000000e+00> : vector<128x384xf32>
    %61 = tpu.matmul %7, %60, %cst_36 {dimension_numbers = #tpu.dot_dimension_numbers<[1], [0], [0], [1], [0, 0, 1, 1], [], []>} : vector<128x128xbf16>, vector<128x384xbf16>, vector<128x384xf32> -> vector<128x384xf32>
    %62 = arith.addf %61, %29 : vector<128x384xf32>
    %cst_37 = arith.constant 0.000000e+00 : f32
    %63 = vector.broadcast %cst_37 : f32 to vector<128x384xf32>
    %64 = arith.maximumf %62, %63 : vector<128x384xf32>
    %65 = arith.truncf %64 : vector<128x384xf32> to vector<128x384xbf16>
    %cst_38 = arith.constant dense<0.000000e+00> : vector<128x384xf32>
    %66 = tpu.matmul %13, %65, %cst_38 {dimension_numbers = #tpu.dot_dimension_numbers<[1], [0], [0], [1], [0, 0, 1, 1], [], []>} : vector<128x128xbf16>, vector<128x384xbf16>, vector<128x384xf32> -> vector<128x384xf32>
    %67 = arith.addf %59, %66 : vector<128x384xf32>
    %68 = arith.truncf %67 : vector<128x384xf32> to vector<128x384xbf16>
    %c1 = arith.constant 1 : index
    %c0_39 = arith.constant 0 : index
    %c0_40 = arith.constant 0 : index
    %69 = vector.load %arg10[%c1, %c0_39, %c0_40] : memref<3x384x384xbf16, #tpu.memory_space<vmem>>, vector<1x384x384xbf16>
    %70 = vector.shape_cast %69 : vector<1x384x384xbf16> to vector<384x384xbf16>
    %cst_41 = arith.constant dense<0.000000e+00> : vector<128x384xf32>
    %71 = tpu.matmul %68, %70, %cst_41 {dimension_numbers = #tpu.dot_dimension_numbers<[1], [0], [0], [1], [0, 0, 1, 1], [], []>} : vector<128x384xbf16>, vector<384x384xbf16>, vector<128x384xf32> -> vector<128x384xf32>
    %c1_42 = arith.constant 1 : index
    %c0_43 = arith.constant 0 : index
    %c0_44 = arith.constant 0 : index
    %72 = vector.load %arg11[%c1_42, %c0_43, %c0_44] : memref<3x1x384xbf16, #tpu.memory_space<vmem>>, vector<1x1x384xbf16>
    %73 = vector.shape_cast %72 : vector<1x1x384xbf16> to vector<1x384xbf16>
    %74 = arith.extf %73 : vector<1x384xbf16> to vector<1x384xf32>
    %75 = vector.broadcast %74 : vector<1x384xf32> to vector<128x384xf32>
    %76 = arith.addf %71, %75 : vector<128x384xf32>
    %cst_45 = arith.constant 0.000000e+00 : f32
    %77 = vector.broadcast %cst_45 : f32 to vector<128x384xf32>
    %78 = arith.maximumf %76, %77 : vector<128x384xf32>
    %79 = arith.truncf %78 : vector<128x384xf32> to vector<128x384xbf16>
    %c1_46 = arith.constant 1 : index
    %c0_47 = arith.constant 0 : index
    %c0_48 = arith.constant 0 : index
    %80 = vector.load %arg12[%c1_46, %c0_47, %c0_48] : memref<3x384x384xbf16, #tpu.memory_space<vmem>>, vector<1x384x384xbf16>
    %81 = vector.shape_cast %80 : vector<1x384x384xbf16> to vector<384x384xbf16>
    %cst_49 = arith.constant dense<0.000000e+00> : vector<128x384xf32>
    %82 = tpu.matmul %79, %81, %cst_49 {dimension_numbers = #tpu.dot_dimension_numbers<[1], [0], [0], [1], [0, 0, 1, 1], [], []>} : vector<128x384xbf16>, vector<384x384xbf16>, vector<128x384xf32> -> vector<128x384xf32>
    %c1_50 = arith.constant 1 : index
    %c0_51 = arith.constant 0 : index
    %c0_52 = arith.constant 0 : index
    %83 = vector.load %arg13[%c1_50, %c0_51, %c0_52] : memref<3x1x384xbf16, #tpu.memory_space<vmem>>, vector<1x1x384xbf16>
    %84 = vector.shape_cast %83 : vector<1x1x384xbf16> to vector<1x384xbf16>
    %85 = arith.extf %84 : vector<1x384xbf16> to vector<1x384xf32>
    %86 = vector.broadcast %85 : vector<1x384xf32> to vector<128x384xf32>
    %87 = arith.addf %82, %86 : vector<128x384xf32>
    %cst_53 = arith.constant 0.000000e+00 : f32
    %88 = vector.broadcast %cst_53 : f32 to vector<128x384xf32>
    %89 = arith.maximumf %87, %88 : vector<128x384xf32>
    %90 = arith.truncf %89 : vector<128x384xf32> to vector<128x384xbf16>
    %cst_54 = arith.constant dense<0.000000e+00> : vector<128x384xf32>
    %91 = tpu.matmul %7, %90, %cst_54 {dimension_numbers = #tpu.dot_dimension_numbers<[1], [0], [0], [1], [0, 0, 1, 1], [], []>} : vector<128x128xbf16>, vector<128x384xbf16>, vector<128x384xf32> -> vector<128x384xf32>
    %92 = arith.addf %91, %29 : vector<128x384xf32>
    %cst_55 = arith.constant 0.000000e+00 : f32
    %93 = vector.broadcast %cst_55 : f32 to vector<128x384xf32>
    %94 = arith.maximumf %92, %93 : vector<128x384xf32>
    %95 = arith.truncf %94 : vector<128x384xf32> to vector<128x384xbf16>
    %cst_56 = arith.constant dense<0.000000e+00> : vector<128x384xf32>
    %96 = tpu.matmul %13, %95, %cst_56 {dimension_numbers = #tpu.dot_dimension_numbers<[1], [0], [0], [1], [0, 0, 1, 1], [], []>} : vector<128x128xbf16>, vector<128x384xbf16>, vector<128x384xf32> -> vector<128x384xf32>
    %97 = arith.addf %89, %96 : vector<128x384xf32>
    %98 = arith.truncf %97 : vector<128x384xf32> to vector<128x384xbf16>
    %c2 = arith.constant 2 : index
    %c0_57 = arith.constant 0 : index
    %c0_58 = arith.constant 0 : index
    %99 = vector.load %arg10[%c2, %c0_57, %c0_58] : memref<3x384x384xbf16, #tpu.memory_space<vmem>>, vector<1x384x384xbf16>
    %100 = vector.shape_cast %99 : vector<1x384x384xbf16> to vector<384x384xbf16>
    %cst_59 = arith.constant dense<0.000000e+00> : vector<128x384xf32>
    %101 = tpu.matmul %98, %100, %cst_59 {dimension_numbers = #tpu.dot_dimension_numbers<[1], [0], [0], [1], [0, 0, 1, 1], [], []>} : vector<128x384xbf16>, vector<384x384xbf16>, vector<128x384xf32> -> vector<128x384xf32>
    %c2_60 = arith.constant 2 : index
    %c0_61 = arith.constant 0 : index
    %c0_62 = arith.constant 0 : index
    %102 = vector.load %arg11[%c2_60, %c0_61, %c0_62] : memref<3x1x384xbf16, #tpu.memory_space<vmem>>, vector<1x1x384xbf16>
    %103 = vector.shape_cast %102 : vector<1x1x384xbf16> to vector<1x384xbf16>
    %104 = arith.extf %103 : vector<1x384xbf16> to vector<1x384xf32>
    %105 = vector.broadcast %104 : vector<1x384xf32> to vector<128x384xf32>
    %106 = arith.addf %101, %105 : vector<128x384xf32>
    %cst_63 = arith.constant 0.000000e+00 : f32
    %107 = vector.broadcast %cst_63 : f32 to vector<128x384xf32>
    %108 = arith.maximumf %106, %107 : vector<128x384xf32>
    %109 = arith.truncf %108 : vector<128x384xf32> to vector<128x384xbf16>
    %c2_64 = arith.constant 2 : index
    %c0_65 = arith.constant 0 : index
    %c0_66 = arith.constant 0 : index
    %110 = vector.load %arg12[%c2_64, %c0_65, %c0_66] : memref<3x384x384xbf16, #tpu.memory_space<vmem>>, vector<1x384x384xbf16>
    %111 = vector.shape_cast %110 : vector<1x384x384xbf16> to vector<384x384xbf16>
    %cst_67 = arith.constant dense<0.000000e+00> : vector<128x384xf32>
    %112 = tpu.matmul %109, %111, %cst_67 {dimension_numbers = #tpu.dot_dimension_numbers<[1], [0], [0], [1], [0, 0, 1, 1], [], []>} : vector<128x384xbf16>, vector<384x384xbf16>, vector<128x384xf32> -> vector<128x384xf32>
    %c2_68 = arith.constant 2 : index
    %c0_69 = arith.constant 0 : index
    %c0_70 = arith.constant 0 : index
    %113 = vector.load %arg13[%c2_68, %c0_69, %c0_70] : memref<3x1x384xbf16, #tpu.memory_space<vmem>>, vector<1x1x384xbf16>
    %114 = vector.shape_cast %113 : vector<1x1x384xbf16> to vector<1x384xbf16>
    %115 = arith.extf %114 : vector<1x384xbf16> to vector<1x384xf32>
    %116 = vector.broadcast %115 : vector<1x384xf32> to vector<128x384xf32>
    %117 = arith.addf %112, %116 : vector<128x384xf32>
    %c0_71 = arith.constant 0 : index
    %c0_72 = arith.constant 0 : index
    %118 = vector.load %arg3[%c0_71, %c0_72] : memref<8x128xf32, #tpu.memory_space<vmem>>, vector<8x128xf32>
    %cst_73 = arith.constant dense<0.000000e+00> : vector<8x384xf32>
    %119 = tpu.matmul %118, %117, %cst_73 {dimension_numbers = #tpu.dot_dimension_numbers<[1], [0], [0], [1], [0, 0, 1, 1], [], []>} : vector<8x128xf32>, vector<128x384xf32>, vector<8x384xf32> -> vector<8x384xf32>
    %c0_74 = arith.constant 0 : index
    %c0_75 = arith.constant 0 : index
    %120 = vector.load %arg15[%c0_74, %c0_75] : memref<8x384xf32, #tpu.memory_space<vmem>>, vector<8x384xf32>
    tpu.vector_store %arg15[%c0_74, %c0_75], %119 {strides = array<i32>} : memref<8x384xf32, #tpu.memory_space<vmem>>, vector<8x384xf32>,
    %121 = tpu.iota {dimensions = array<i32: 0>} : vector<128x384xi32>
    %c25_i32 = arith.constant 25 : i32
    %122 = vector.broadcast %c25_i32 : i32 to vector<128x384xi32>
    %123 = arith.cmpi slt, %121, %122 : vector<128x384xi32>
    %cst_76 = arith.constant 0.000000e+00 : f32
    %124 = vector.broadcast %cst_76 : f32 to vector<128x384xf32>
    %125 = arith.select %123, %117, %124 : vector<128x384xi1>, vector<128x384xf32>
    %c0_77 = arith.constant 0 : index
    %c0_78 = arith.constant 0 : index
    %126 = vector.load %arg14[%c0_77, %c0_78] : memref<128x384xf32, #tpu.memory_space<vmem>>, vector<128x384xf32>
    tpu.vector_store %arg14[%c0_77, %c0_78], %125 {strides = array<i32>} : memref<128x384xf32, #tpu.memory_space<vmem>>, vector<128x384xf32>,
    return
  }
  func.func @transform_0(%arg0: i32) -> (i32, i32) {
    %c0_i32 = arith.constant 0 : i32
    %c0_i32_0 = arith.constant 0 : i32
    %c0_i32_1 = arith.constant 0 : i32
    return %c0_i32, %c0_i32_0 : i32, i32
  }
  func.func @transform_1(%arg0: i32) -> (i32, i32) {
    %c0_i32 = arith.constant 0 : i32
    %c0_i32_0 = arith.constant 0 : i32
    %c0_i32_1 = arith.constant 0 : i32
    return %c0_i32, %c0_i32_0 : i32, i32
  }
  func.func @transform_2(%arg0: i32) -> (i32, i32) {
    %c0_i32 = arith.constant 0 : i32
    %c0_i32_0 = arith.constant 0 : i32
    %c0_i32_1 = arith.constant 0 : i32
    return %c0_i32, %c0_i32_0 : i32, i32
  }
  func.func @transform_3(%arg0: i32) -> (i32, i32) {
    %c0_i32 = arith.constant 0 : i32
    %c0_i32_0 = arith.constant 0 : i32
    %c0_i32_1 = arith.constant 0 : i32
    return %c0_i32, %c0_i32_0 : i32, i32
  }
  func.func @transform_4(%arg0: i32) -> (i32, i32) {
    %c0_i32 = arith.constant 0 : i32
    %c0_i32_0 = arith.constant 0 : i32
    %c0_i32_1 = arith.constant 0 : i32
    return %c0_i32, %c0_i32_0 : i32, i32
  }
  func.func @transform_5(%arg0: i32) -> (i32, i32) {
    %c0_i32 = arith.constant 0 : i32
    %c0_i32_0 = arith.constant 0 : i32
    %c0_i32_1 = arith.constant 0 : i32
    return %c0_i32, %c0_i32_0 : i32, i32
  }
  func.func @transform_6(%arg0: i32) -> (i32, i32) {
    %c0_i32 = arith.constant 0 : i32
    %c0_i32_0 = arith.constant 0 : i32
    %c0_i32_1 = arith.constant 0 : i32
    return %c0_i32, %c0_i32_0 : i32, i32
  }
  func.func @transform_7(%arg0: i32) -> (i32, i32) {
    %c0_i32 = arith.constant 0 : i32
    %c0_i32_0 = arith.constant 0 : i32
    %c0_i32_1 = arith.constant 0 : i32
    return %c0_i32, %c0_i32_0 : i32, i32
  }
  func.func @transform_8(%arg0: i32) -> (i32, i32) {
    %c0_i32 = arith.constant 0 : i32
    %c0_i32_0 = arith.constant 0 : i32
    %c0_i32_1 = arith.constant 0 : i32
    return %c0_i32, %c0_i32_0 : i32, i32
  }
  func.func @transform_9(%arg0: i32) -> (i32, i32, i32) {
    %c0_i32 = arith.constant 0 : i32
    %c0_i32_0 = arith.constant 0 : i32
    %c0_i32_1 = arith.constant 0 : i32
    %c0_i32_2 = arith.constant 0 : i32
    return %c0_i32, %c0_i32_0, %c0_i32_1 : i32, i32, i32
  }
  func.func @transform_10(%arg0: i32) -> (i32, i32, i32) {
    %c0_i32 = arith.constant 0 : i32
    %c0_i32_0 = arith.constant 0 : i32
    %c0_i32_1 = arith.constant 0 : i32
    %c0_i32_2 = arith.constant 0 : i32
    return %c0_i32, %c0_i32_0, %c0_i32_1 : i32, i32, i32
  }
  func.func @transform_11(%arg0: i32) -> (i32, i32, i32) {
    %c0_i32 = arith.constant 0 : i32
    %c0_i32_0 = arith.constant 0 : i32
    %c0_i32_1 = arith.constant 0 : i32
    %c0_i32_2 = arith.constant 0 : i32
    return %c0_i32, %c0_i32_0, %c0_i32_1 : i32, i32, i32
  }
  func.func @transform_12(%arg0: i32) -> (i32, i32, i32) {
    %c0_i32 = arith.constant 0 : i32
    %c0_i32_0 = arith.constant 0 : i32
    %c0_i32_1 = arith.constant 0 : i32
    %c0_i32_2 = arith.constant 0 : i32
    return %c0_i32, %c0_i32_0, %c0_i32_1 : i32, i32, i32
  }
  func.func @transform_13(%arg0: i32) -> (i32, i32) {
    %c0_i32 = arith.constant 0 : i32
    %c0_i32_0 = arith.constant 0 : i32
    %c0_i32_1 = arith.constant 0 : i32
    return %c0_i32, %c0_i32_0 : i32, i32
  }
  func.func @transform_14(%arg0: i32) -> (i32, i32) {
    %c0_i32 = arith.constant 0 : i32
    %c0_i32_0 = arith.constant 0 : i32
    %c0_i32_1 = arith.constant 0 : i32
    return %c0_i32, %c0_i32_0 : i32, i32
  }
}

</mosaic_0001>

<bundles_post_ra>
// kernel: tpu_custom_call.1
= control target key start
LH: loop header
LB: loop body
LE: loop exit
PB: predicated region body
PF: predicated region fallthrough
CT: control target
= control target key end

     0   :  { %20 = vsyncpa [#allocation3], 0  ;;  %s15516_s0 = inlined_call_operand.vmem [shape: s32[128,1], index: 0, kind: input, shape index: {}]   ;;  %s15517_s1 = inlined_call_operand.vmem [shape: s32[1,128], index: 1, kind: input, shape index: {}]   ;;  %s15518_s2 = inlined_call_operand.vmem [shape: f32[8,128], index: 2, kind: input, shape index: {}]   ;;  %s15519_s3 = inlined_call_operand.vmem [shape: bf16[128,128], index: 3, kind: input, shape index: {}]   ;;  %s15520_s4 = inlined_call_operand.vmem [shape: bf16[128,128], index: 4, kind: input, shape index: {}]   ;;  %s15521_s5 = inlined_call_operand.hbm [shape: bf16[128,384], index: 5, kind: input, shape index: {}]   ;;  %s15522_s6 = inlined_call_operand.vmem [shape: bf16[1,384], index: 6, kind: input, shape index: {}]   ;;  %s15523_s7 = inlined_call_operand.hbm [shape: bf16[128,384], index: 7, kind: input, shape index: {}]   ;;  %s15524_s8 = inlined_call_operand.vmem [shape: bf16[1,384], index: 8, kind: input, shape index: {}]   ;;  %s15525_s9 = inlined_call_operand.hbm [shape: bf16[3,384,384], index: 9, kind: input, shape index: {}]   ;;  %s15526_s10 = inlined_call_operand.vmem [shape: bf16[3,1,384], index: 10, kind: input, shape index: {}]   ;;  %s15527_s11 = inlined_call_operand.hbm [shape: bf16[3,384,384], index: 11, kind: input, shape index: {}]   ;;  %s15528_s12 = inlined_call_operand.vmem [shape: bf16[3,1,384], index: 12, kind: input, shape index: {}]   ;;  %s15529_s13 = inlined_call_operand.hbm [shape: f32[128,384], index: 13, kind: output, shape index: {0}]   ;;  %s15530_s14 = inlined_call_operand.hbm [shape: f32[8,384], index: 14, kind: output, shape index: {1}]  }
   0x1   :  { %21 = vsyncpa [#allocation6], 0 }
   0x2   :  { %22 = vsyncpa [#allocation9], 0 }
   0x3   :  { %23 = vsyncpa [#allocation4], 0 }
   0x4   :  { %24 = vsyncpa [#allocation12], 0  ;;  %s12322_s29 = smov [#allocation5]   ;;  %s12323_s15 = smov [#allocation2]  }
   0x5   :  { %s54_s30 = sshll.u32 %s12322_s29, 4  ;;  %s40_s16 = sshll.u32 %s12323_s15, 4  ;;  %s55_s30 = int_to_ptr.vmem [resolvable:$true] %s54_s30  ;;  %s12412_s16 = int_to_ptr.vmem [resolvable:$true] %s40_s16 }
   0x6   :  { %s12180_s19 = scalar_lea.hbm %s15523_s7, 3072 }
   0x7   :  { %p12181_p0 = scmp.ne.s32.totalorder %s15523_s7, %s12180_s19  ;;  %p12184_p1 = scmp.lt.u32.totalorder %s12180_s19, %s15523_s7 }
   0x9   :  { %p12186_p2 = pnand %p12184_p1, %p12181_p0 }
   0xb   :  { %12189 = shalt.err (!%p12186_p2)
}
   0xc   :  { %s12190_s24 = scalar_lea.vmem %s55_s30, 3072  ;;  %p12195_p4 = scmp.lt.s32.totalorder %s55_s30, %s55_s30 }
   0xd   :  { %p12191_p3 = scmp.ne.s32.totalorder %s55_s30, %s12190_s24  ;;  %p12196_p5 = scmp.lt.s32.totalorder %s12190_s24, %s12190_s24 }
   0xf   :  { %p12197_p6 = por %p12196_p5, %p12195_p4 }
  0x11   :  { %p12198_p7 = pnand %p12197_p6, %p12191_p3 }
  0x13   :  { %12201 = shalt.err (!%p12198_p7)
}
  0x14   :  { %s12324_s25 = smov 192   ;;  %s12325_s26 = smov 12  }
  0x15   :  { %60 = dma.hbm_to_vmem [thread:$0]  %s15523_s7, 3072, %s55_s30, [#allocation6], %s12324_s25, %s12324_s25, %s12325_s26  }
  0x16   :  { %s12202_s17 = scalar_lea.hbm %s15521_s5, 3072 }
  0x17   :  { %p12203_p8 = scmp.ne.s32.totalorder %s15521_s5, %s12202_s17  ;;  %p12206_p9 = scmp.lt.u32.totalorder %s12202_s17, %s15521_s5 }
  0x19   :  { %p12208_p10 = pnand %p12206_p9, %p12203_p8 }
  0x1b   :  { %12211 = shalt.err (!%p12208_p10)
}
  0x1c   :  { %s12212_s22 = scalar_lea.vmem %s12412_s16, 3072  ;;  %p12217_p12 = scmp.lt.s32.totalorder %s12412_s16, %s12412_s16 }
  0x1d   :  { %p12213_p11 = scmp.ne.s32.totalorder %s12412_s16, %s12212_s22  ;;  %p12218_p13 = scmp.lt.s32.totalorder %s12212_s22, %s12212_s22 }
  0x1f   :  { %p12219_p0 = por %p12218_p13, %p12217_p12 }
  0x21   :  { %p12220_p1 = pnand %p12219_p0, %p12213_p11 }
  0x23   :  { %12223 = shalt.err (!%p12220_p1)
}
  0x24   :  { %46 = dma.hbm_to_vmem [thread:$0]  %s15521_s5, 3072, %s12412_s16, [#allocation3], %s12324_s25, %s12324_s25, %s12325_s26  }
  0x25   :  { %s12326_s23 = smov [#allocation7]   ;;  %s12327_s27 = smov [#allocation8]  }
  0x26   :  { %s68_s24 = sshll.u32 %s12326_s23, 4  ;;  %s82_s28 = sshll.u32 %s12327_s27, 4  ;;  %s69_s24 = int_to_ptr.vmem [resolvable:$true] %s68_s24  ;;  %s12449_s28 = int_to_ptr.vmem [resolvable:$true] %s82_s28 }
  0x27   :  { %s12224_s17 = scalar_lea.hbm %s15525_s9, 27648 }
  0x28   :  { %p12225_p2 = scmp.ne.s32.totalorder %s15525_s9, %s12224_s17  ;;  %p12228_p3 = scmp.lt.u32.totalorder %s12224_s17, %s15525_s9 }
  0x2a   :  { %p12230_p4 = pnand %p12228_p3, %p12225_p2 }
  0x2c   :  { %12233 = shalt.err (!%p12230_p4)
}
  0x2d   :  { %s12234_s5 = scalar_lea.vmem %s69_s24, 27648  ;;  %p12239_p6 = scmp.lt.s32.totalorder %s69_s24, %s69_s24 }
  0x2e   :  { %p12235_p5 = scmp.ne.s32.totalorder %s69_s24, %s12234_s5  ;;  %p12240_p7 = scmp.lt.s32.totalorder %s12234_s5, %s12234_s5 }
  0x30   :  { %p12241_p8 = por %p12240_p7, %p12239_p6 }
  0x32   :  { %p12242_p9 = pnand %p12241_p8, %p12235_p5 }
  0x34   :  { %12245 = shalt.err (!%p12242_p9)
}
  0x35   :  { %74 = dma.hbm_to_vmem [thread:$0]  %s15525_s9, 27648, %s69_s24, [#allocation6], %s12324_s25, %s12324_s25, %s12325_s26  }
  0x36   :  { %s12246_s23 = scalar_lea.hbm %s15527_s11, 27648 }
  0x37   :  { %p12247_p10 = scmp.ne.s32.totalorder %s15527_s11, %s12246_s23  ;;  %p12250_p11 = scmp.lt.u32.totalorder %s12246_s23, %s15527_s11 }
  0x39   :  { %p12252_p12 = pnand %p12250_p11, %p12247_p10 }
  0x3b   :  { %12255 = shalt.err (!%p12252_p12)
}
  0x3c   :  { %s12256_s18 = scalar_lea.vmem %s12449_s28, 27648  ;;  %p12261_p0 = scmp.lt.s32.totalorder %s12449_s28, %s12449_s28 }
  0x3d   :  { %p12257_p13 = scmp.ne.s32.totalorder %s12449_s28, %s12256_s18  ;;  %p12262_p1 = scmp.lt.s32.totalorder %s12256_s18, %s12256_s18 }
  0x3f   :  { %p12263_p2 = por %p12262_p1, %p12261_p0 }
  0x41   :  { %p12264_p3 = pnand %p12263_p2, %p12257_p13 }
  0x43   :  { %12267 = shalt.err (!%p12264_p3)
}
  0x44   :  { %88 = dma.hbm_to_vmem [thread:$0]  %s15527_s11, 27648, %s12449_s28, [#allocation9], %s12324_s25, %s12324_s25, %s12325_s26  }
  0x45   :  { %12312 = dma.done.wait [#allocation3], 3072  }
  0x46   :  { %12313 = vsyncadd [#allocation3], 4294964224 }
  0x47   :  { %12314 = dma.done.wait [#allocation6], 30720  }
  0x48   :  { %12315 = vsyncadd [#allocation6], 4294936576 }
  0x49   :  { %12316 = dma.done.wait [#allocation9], 27648  }
  0x4a   :  { %12317 = vsyncadd [#allocation9], 4294939648  ;;  %v15563_v0 = vmov 0   ;;  %v11524_v1 = vld [vmem:[#allocation2 + $0x4] ss:$12 sps:$4 sm:$0xff]   ;;  %v105_v28 = vld [vmem:[%s15516_s0 + $0x8] sm:$0xff] }
  0x4b   :  { %590 = vmatprep.mubr.bf16.mxu0 %v15563_v0  ;;  %11522 = vset.pattern.permute.xlu0 %v15563_v0  ;;  %v11526_v2 = vld [vmem:[#allocation2 + $0x8] ss:$12 sps:$4 sm:$0xff]   ;;  %v11527_v3 = vld [vmem:[#allocation2] ss:$12 sps:$4 sm:$0xff]   ;;  %v11531_v6 = vld [vmem:[#allocation2 + $0x18] ss:$12 sps:$4 sm:$0xff]  }
  0x4c   :  { %11523 = vset.pattern.permute.xlu1 %v15563_v0  ;;  %558 = vmatprep.subr.bf16.mxu0 %v11524_v1  ;;  %v11528_v4 = vld [vmem:[#allocation2 + $0x1c] ss:$12 sps:$4 sm:$0xff]   ;;  %v11530_v5 = vld [vmem:[#allocation2 + $0x20] ss:$12 sps:$4 sm:$0xff]   ;;  %v11534_v8 = vld [vmem:[#allocation2 + $0x38] ss:$12 sps:$4 sm:$0xff]  }
  0x4d   :  { %10584 = vmatprep.subr.bf16.mxu1 %v11526_v2  ;;  %559 = vmatpush1.bf16.msra.mxu0 %v11527_v3  ;;  %v11532_v7 = vld [vmem:[#allocation2 + $0x34] ss:$12 sps:$4 sm:$0xff]   ;;  %v11535_v9 = vld [vmem:[#allocation2 + $0x30] ss:$12 sps:$4 sm:$0xff]   ;;  %v11536_v10 = vld [vmem:[#allocation2 + $0x4c] ss:$12 sps:$4 sm:$0xff]  }
  0x4e   :  { %10585 = vmatpush3.bf16.msra.mxu1 %v11526_v2  ;;  %560 = vmatprep.subr.bf16.mxu0 %v11528_v4  ;;  %v11538_v11 = vld [vmem:[#allocation2 + $0x50] ss:$12 sps:$4 sm:$0xff]   ;;  %v11539_v12 = vld [vmem:[#allocation2 + $0x48] ss:$12 sps:$4 sm:$0xff]   ;;  %v11543_v15 = vld [vmem:[#allocation2 + $0x60] ss:$12 sps:$4 sm:$0xff]  }
  0x4f   :  { %10586 = vmatprep.subr.bf16.mxu1 %v11530_v5  ;;  %v11540_v13 = vld [vmem:[#allocation2 + $0x64] ss:$12 sps:$4 sm:$0xff]   ;;  %v11542_v14 = vld [vmem:[#allocation2 + $0x68] ss:$12 sps:$4 sm:$0xff]   ;;  %v11546_v17 = vld [vmem:[#allocation2 + $0x80] ss:$12 sps:$4 sm:$0xff]  }
  0x50   :  { %v11544_v16 = vld [vmem:[#allocation2 + $0x7c] ss:$12 sps:$4 sm:$0xff]   ;;  %v11547_v18 = vld [vmem:[#allocation2 + $0x78] ss:$12 sps:$4 sm:$0xff]   ;;  %v11548_v20 = vld [vmem:[#allocation2 + $0x94] ss:$12 sps:$4 sm:$0xff]  }
  0x51   :  { %561 = vmatpush1.bf16.msra.mxu0 %v11531_v6  ;;  %v11556_v19 = vld [vmem:[%s15519_s3] sm:$0xff]   ;;  %v11551_v22 = vld [vmem:[#allocation2 + $0x90] ss:$12 sps:$4 sm:$0xff]   ;;  %v11552_v23 = vld [vmem:[#allocation2 + $0xac] ss:$12 sps:$4 sm:$0xff]  }
  0x52   :  { %10587 = vmatpush3.bf16.msra.mxu1 %v11530_v5  ;;  %562 = vmatprep.subr.bf16.mxu0 %v11532_v7  ;;  %v11550_v21 = vld [vmem:[#allocation2 + $0x98] ss:$12 sps:$4 sm:$0xff]   ;;  %v11554_v24 = vld [vmem:[#allocation2 + $0xb0] ss:$12 sps:$4 sm:$0xff]   ;;  %v11555_v27 = vld [vmem:[#allocation2 + $0xa8] ss:$12 sps:$4 sm:$0xff]  }
  0x53   :  { %10588 = vmatprep.subr.bf16.mxu1 %v11534_v8  ;;  %10600 = vmatprep.mubr.bf16.mxu1 %v11556_v19  ;;  %v104_v25 = vld [vmem:[%s15516_s0] sm:$0xff]  ;;  %v106_v26 = vld [vmem:[%s15516_s0 + $0x10] sm:$0xff]  ;;  %v11557_v29 = vld [vmem:[%s15519_s3 + $0x8] sm:$0xff]  }
  0x54   :  { %124 = vperm.xlu0 %11522, %v104_v25   ;;  %130 = vperm.xlu1 %11523, %v106_v26   ;;  %v107_v30 = vld [vmem:[%s15516_s0 + $0x18] sm:$0xff]  ;;  %v11558_v31 = vld [vmem:[%s15519_s3 + $0x10] sm:$0xff]   ;;  %v108_v33 = vld [vmem:[%s15516_s0 + $0x20] sm:$0xff] }
  0x55   :  { %563 = vmatpush1.bf16.msra.mxu0 %v11535_v9  ;;  %v11566_v32 = vld [vmem:[#allocation5 + $0x4] ss:$12 sps:$4 sm:$0xff]   ;;  %v11564_v34 = vld [vmem:[#allocation5] ss:$12 sps:$4 sm:$0xff]   ;;  %v11569_v36 = vld [vmem:[#allocation5 + $0x1c] ss:$12 sps:$4 sm:$0xff]  }
  0x56   :  { %10589 = vmatpush3.bf16.msra.mxu1 %v11534_v8  ;;  %564 = vmatprep.subr.bf16.mxu0 %v11536_v10  ;;  %v109_v35 = vld [vmem:[%s15516_s0 + $0x28] sm:$0xff]  ;;  %v12520_v37 = vld [vmem:[%s15519_s3 + $0x18] sm:$0xff]   ;;  %v110_v38 = vld [vmem:[%s15516_s0 + $0x30] sm:$0xff] }
  0x57   :  { %10590 = vmatprep.subr.bf16.mxu1 %v11538_v11  ;;  %v11567_v39 = vld [vmem:[#allocation5 + $0x18] ss:$12 sps:$4 sm:$0xff]   ;;  %v113_v43 = vld [vmem:[%s15516_s0 + $0x48] sm:$0xff]  ;;  %v11572_v44 = vld [vmem:[#allocation5 + $0x34] ss:$12 sps:$4 sm:$0xff]  }
  0x58   :  { %127 = vperm.xlu0 %11522, %v105_v28   ;;  %133 = vperm.xlu1 %11523, %v107_v30   ;;  %v12528_v40 = vld [vmem:[%s15519_s3 + $0x20] sm:$0xff]   ;;  %v111_v41 = vld [vmem:[%s15516_s0 + $0x38] sm:$0xff]  ;;  %v11588_v47 = vld [vmem:[#allocation5 + $0x8] ss:$12 sps:$4 sm:$0xff]  }
  0x59   :  { %565 = vmatpush1.bf16.msra.mxu0 %v11539_v12  ;;  %v112_v42 = vld [vmem:[%s15516_s0 + $0x40] sm:$0xff]  ;;  %v11570_v45 = vld [vmem:[#allocation5 + $0x30] ss:$12 sps:$4 sm:$0xff]   ;;  %v11575_v46 = vld [vmem:[#allocation5 + $0x4c] ss:$12 sps:$4 sm:$0xff]  }
  0x5a   :  { %10591 = vmatpush3.bf16.msra.mxu1 %v11538_v11  ;;  %566 = vmatprep.subr.bf16.mxu0 %v11540_v13  ;;  %v114_v48 = vld [vmem:[%s15516_s0 + $0x50] sm:$0xff]  ;;  %v12548_v49 = vld [vmem:[%s15519_s3 + $0x28] sm:$0xff]   ;;  %v115_v53 = vld [vmem:[%s15516_s0 + $0x58] sm:$0xff] }
  0x5b   :  { %10592 = vmatprep.subr.bf16.mxu1 %v11542_v14  ;;  %v11590_v50 = vld [vmem:[#allocation5 + $0x20] ss:$12 sps:$4 sm:$0xff]   ;;  %v12553_v51 = vld [vmem:[%s15519_s3 + $0x30] sm:$0xff]   ;;  %v11581_v58 = vld [vmem:[#allocation5 + $0x7c] ss:$12 sps:$4 sm:$0xff]  }
  0x5c   :  { %136 = vperm.xlu0 %11522, %v108_v33   ;;  %139 = vperm.xlu1 %11523, %v109_v35   ;;  %v11573_v52 = vld [vmem:[#allocation5 + $0x48] ss:$12 sps:$4 sm:$0xff]   ;;  %v116_v54 = vld [vmem:[%s15516_s0 + $0x60] sm:$0xff]  ;;  %v11563_v62 = vld [vmem:[%s15519_s3 + $0x38] sm:$0xff]  }
  0x5d   :  { %567 = vmatpush1.bf16.msra.mxu0 %v11543_v15  ;;  %v117_v55 = vld [vmem:[%s15516_s0 + $0x68] sm:$0xff]  ;;  %v11578_v56 = vld [vmem:[#allocation5 + $0x64] ss:$12 sps:$4 sm:$0xff]   ;;  %v119_v63 = vld [vmem:[%s15516_s0 + $0x78] sm:$0xff] }
  0x5e   :  { %10593 = vmatpush3.bf16.msra.mxu1 %v11542_v14  ;;  %568 = vmatprep.subr.bf16.mxu0 %v11544_v16  ;;  %v11576_v57 = vld [vmem:[#allocation5 + $0x60] ss:$12 sps:$4 sm:$0xff]   ;;  %v11592_v59 = vld [vmem:[#allocation5 + $0x38] ss:$12 sps:$4 sm:$0xff]   ;;  %v118_v60 = vld [vmem:[%s15516_s0 + $0x70] sm:$0xff] }
  0x5f   :  { %10594 = vmatprep.subr.bf16.mxu1 %v11546_v17  ;;  %v11579_v61 = vld [vmem:[#allocation5 + $0x78] ss:$12 sps:$4 sm:$0xff]   ;;  %v11584_v1 = vld [vmem:[#allocation5 + $0x94] ss:$12 sps:$4 sm:$0xff]   ;;  %v11582_v2 = vld [vmem:[#allocation5 + $0x90] ss:$12 sps:$4 sm:$0xff]  }
  0x60   :  { %142 = vperm.xlu0 %11522, %v110_v38   ;;  %145 = vperm.xlu1 %11523, %v111_v41   ;;  %v11593_v3 = vld [vmem:[#allocation5 + $0x50] ss:$12 sps:$4 sm:$0xff]   ;;  %v11587_v4 = vld [vmem:[#allocation5 + $0xac] ss:$12 sps:$4 sm:$0xff]   ;;  %v11585_v5 = vld [vmem:[#allocation5 + $0xa8] ss:$12 sps:$4 sm:$0xff]  }
  0x61   :  { %569 = vmatpush1.bf16.msra.mxu0 %v11547_v18  ;;  %v11595_v6 = vld [vmem:[#allocation5 + $0x68] ss:$12 sps:$4 sm:$0xff]   ;;  %v11589_v7 = vld [vmem:[%s15520_s4] sm:$0xff]   ;;  %v11597_v11 = vld [vmem:[%s15520_s4 + $0x18] sm:$0xff]   ;;  %v121_v18 = vlaneseq }
  0x62   :  { %10595 = vmatpush3.bf16.msra.mxu1 %v11546_v17  ;;  %570 = vmatprep.subr.bf16.mxu0 %v11548_v20  ;;  %v11596_v8 = vld [vmem:[#allocation5 + $0x80] ss:$12 sps:$4 sm:$0xff]   ;;  %v11594_v10 = vld [vmem:[%s15520_s4 + $0x10] sm:$0xff]   ;;  %v11598_v12 = vld [vmem:[#allocation5 + $0x98] ss:$12 sps:$4 sm:$0xff]  }
  0x63   :  { %10596 = vmatprep.subr.bf16.mxu1 %v11550_v21  ;;  %v11591_v9 = vld [vmem:[%s15520_s4 + $0x8] sm:$0xff]   ;;  %v11599_v13 = vld [vmem:[#allocation5 + $0xb0] ss:$12 sps:$4 sm:$0xff]   ;;  %v11600_v14 = vld [vmem:[%s15520_s4 + $0x20] sm:$0xff]   ;;  %v12617_v20 = vand.u32 127, %v121_v18 }
  0x64   :  { %148 = vperm.xlu0 %11522, %v112_v42   ;;  %151 = vperm.xlu1 %11523, %v113_v43   ;;  %v11601_v15 = vld [vmem:[%s15520_s4 + $0x28] sm:$0xff]   ;;  %v11602_v16 = vld [vmem:[%s15520_s4 + $0x30] sm:$0xff]   ;;  %v11603_v17 = vld [vmem:[%s15520_s4 + $0x38] sm:$0xff]  }
  0x65   :  { %571 = vmatpush1.bf16.msra.mxu0 %v11551_v22  ;;  %v15889_v22 = vmov 0  ;;  %v352_v25 = vld [vmem:[%s15522_s6] sm:$0x7] }
  0x66   :  { %10597 = vmatpush3.bf16.msra.mxu1 %v11550_v21  ;;  %572 = vmatprep.subr.bf16.mxu0 %v11552_v23  ;;  %v15565_v23 = vmov 1.0|1.0  }
  0x67   :  { %10598 = vmatprep.subr.bf16.mxu1 %v11554_v24 }
  0x68   :  { %154 = vperm.xlu0 %11522, %v114_v48   ;;  %157 = vperm.xlu1 %11523, %v115_v53  }
  0x69   :  { %573 = vmatpush1.bf16.msra.mxu0 %v11555_v27  ;;  %v353_v27 = vunpack.c.l.bf16 %v352_v25 }
  0x6a   :  { %10599 = vmatpush3.bf16.msra.mxu1 %v11554_v24  ;;  %10616 = vmatprep.subr.bf16.mxu0 %v11588_v47  ;;  %v12628_v24 = vshrl.u32 %v121_v18, 7 }
  0x6b   :  { %1070 = vmatprep.subr.bf16.mxu1 %v11566_v32 }
  0x6c   :  { %591 = vmatmul.mubr.bf16.vlgmr.msra.gmra.mrb[0].mxu0 %v11556_v19  ;;  %160 = vperm.xlu0 %11522, %v116_v54   ;;  %v12634_v26 = vsub.s32 0, %v12628_v24  ;;  %v12637_v28 = vsub.s32 4, %v12628_v24 }
  0x6d   :  { %10601 = vmatmul.mubr.bf16.vlgmr.msra.gmra.mrb[0].mxu1 %v11557_v29  ;;  %600 = vmatprep.mubr.bf16.mxu0 %v15563_v0 }
  0x6e   :  { %10604 = vmatprep.mubr.bf16.mxu1 %v11558_v31  ;;  %1071 = vmatpush1.bf16.msra.mxu1 %v11564_v34  ;;  %15892 = vst [vmem:[#allocation19_spill] sm:$0xff] %v12634_v26  ;;  %15893 = vst [vmem:[#allocation20_spill] sm:$0xff] %v12637_v28  ;;  %v358_v30 = vrot.slane %v353_v27, %v12634_v26 }
  0x6f   :  { %1072 = vmatprep.subr.bf16.mxu1 %v11569_v36  ;;  %10617 = vmatpush3.bf16.msra.mxu0 %v11588_v47 }
  0x70   :  { %10618 = vmatprep.subr.bf16.mxu0 %v11590_v50  ;;  %163 = vperm.xlu1 %11523, %v117_v55   ;;  %v12646_v33 = vrot.slane %v358_v30, %v12634_v26 }
  0x71   :  { %166 = vperm.xlu0 %11522, %v118_v60  }
  0x72   :  { %1073 = vmatpush1.bf16.msra.mxu1 %v11567_v39 }
  0x73   :  { %1074 = vmatprep.subr.bf16.mxu1 %v11572_v44  ;;  %10619 = vmatpush3.bf16.msra.mxu0 %v11590_v50 }
  0x74   :  { %601 = vmatmul.mubr.bf16.gmra.mrb[4].mxu0 %v11557_v29  ;;  %10620 = vmatprep.subr.bf16.mxu0 %v11592_v59  ;;  %v12640_v29 = vsub.s32 2, %v12628_v24 }
  0x75   :  { %10605 = vmatmul.mubr.bf16.gmra.mrb[4].mxu1 %v12520_v37  ;;  %610 = vmatprep.mubr.bf16.mxu0 %v15563_v0 }
  0x76   :  { %10608 = vmatprep.mubr.bf16.mxu1 %v12528_v40  ;;  %1075 = vmatpush1.bf16.msra.mxu1 %v11570_v45  ;;  %15894 = vst [vmem:[#allocation21_spill] sm:$0xff] %v12640_v29  ;;  %v362_v32 = vrot.slane %v353_v27, %v12640_v29 }
  0x77   :  { %1076 = vmatprep.subr.bf16.mxu1 %v11575_v46  ;;  %169 = vperm.xlu1 %11523, %v119_v63  }
  0x78   :  { %10621 = vmatpush3.bf16.msra.mxu0 %v11592_v59  ;;  %v12652_v35 = vrot.slane %v362_v32, %v12634_v26 }
  0x79   :  { %10622 = vmatprep.subr.bf16.mxu0 %v11593_v3 }
  0x7a   :  { %1077 = vmatpush1.bf16.msra.mxu1 %v11573_v52 }
  0x7b   :  { %1078 = vmatprep.subr.bf16.mxu1 %v11578_v56 }
  0x7c   :  { %611 = vmatmul.mubr.bf16.gmra.mrb[8].mxu0 %v11558_v31  ;;  %v366_v31 = vrot.slane %v353_v27, %v12637_v28 }
  0x7d   :  { %10609 = vmatmul.mubr.bf16.gmra.mrb[8].mxu1 %v12548_v49  ;;  %620 = vmatprep.mubr.bf16.mxu0 %v15563_v0 }
  0x7e   :  { %10612 = vmatprep.mubr.bf16.mxu1 %v12553_v51  ;;  %1079 = vmatpush1.bf16.msra.mxu1 %v11576_v57  ;;  %v12649_v34 = vrot.slane %v366_v31, %v12634_v26 }
  0x7f   :  { %1080 = vmatprep.subr.bf16.mxu1 %v11581_v58  ;;  %10623 = vmatpush3.bf16.msra.mxu0 %v11593_v3 }
  0x80   :  { %10624 = vmatprep.subr.bf16.mxu0 %v11595_v6 }
  0x82   :  { %1081 = vmatpush1.bf16.msra.mxu1 %v11579_v61 }
  0x83   :  { %1082 = vmatprep.subr.bf16.mxu1 %v11584_v1  ;;  %10625 = vmatpush3.bf16.msra.mxu0 %v11595_v6 }
  0x84   :  { %621 = vmatmul.mubr.bf16.gmra.mrb[12].mxu0 %v12520_v37  ;;  %10626 = vmatprep.subr.bf16.mxu0 %v11596_v8 }
  0x85   :  { %10613 = vmatmul.mubr.bf16.gmra.mrb[12].mxu1 %v11563_v62  ;;  %630 = vmatprep.mubr.bf16.mxu0 %v15563_v0 }
  0x86   :  { %1102 = vmatprep.mubr.bf16.mxu1 %v15563_v0  ;;  %1083 = vmatpush1.bf16.msra.mxu1 %v11582_v2 }
  0x87   :  { %1084 = vmatprep.subr.bf16.mxu1 %v11587_v4  ;;  %10627 = vmatpush3.bf16.msra.mxu0 %v11596_v8 }
  0x88   :  { %10628 = vmatprep.subr.bf16.mxu0 %v11598_v12 }
  0x8a   :  { %1085 = vmatpush1.bf16.msra.mxu1 %v11585_v5 }
  0x8b   :  { %10629 = vmatpush3.bf16.msra.mxu0 %v11598_v12 }
  0x8c   :  { %631 = vmatmul.mubr.bf16.gmra.mrb[16].mxu0 %v12528_v40  ;;  %10630 = vmatprep.subr.bf16.mxu0 %v11599_v13 }
  0x8d   :  { %640 = vmatprep.mubr.bf16.mxu0 %v15563_v0  ;;  %1103 = vmatmul.mubr.bf16.vlgmr.msra.gmra.mrb[16].mxu1 %v11589_v7 }
  0x8e   :  { %1112 = vmatprep.mubr.bf16.mxu1 %v15563_v0 }
  0x8f   :  { %10631 = vmatpush3.bf16.msra.mxu0 %v11599_v13 }
  0x94   :  { %641 = vmatmul.mubr.bf16.gmra.mrb[20].mxu0 %v12548_v49 }
  0x95   :  { %650 = vmatprep.mubr.bf16.mxu0 %v15563_v0  ;;  %1113 = vmatmul.mubr.bf16.gmra.mrb[20].mxu1 %v11591_v9 }
  0x96   :  { %1122 = vmatprep.mubr.bf16.mxu1 %v15563_v0 }
  0x9c   :  { %651 = vmatmul.mubr.bf16.gmra.mrb[24].mxu0 %v12553_v51 }
  0x9d   :  { %660 = vmatprep.mubr.bf16.mxu0 %v15563_v0  ;;  %1123 = vmatmul.mubr.bf16.gmra.mrb[24].mxu1 %v11594_v10 }
  0x9e   :  { %1132 = vmatprep.mubr.bf16.mxu1 %v15563_v0 }
  0xa4   :  { %661 = vmatmul.mubr.bf16.gmra.mrb[28].mxu0 %v11563_v62 }
  0xa5   :  { %10632 = vmatprep.mubr.bf16.mxu0 %v11589_v7  ;;  %1133 = vmatmul.mubr.bf16.gmra.mrb[28].mxu1 %v11597_v11 }
  0xa6   :  { %1142 = vmatprep.mubr.bf16.mxu1 %v15563_v0 }
  0xac   :  { %10633 = vmatmul.mubr.bf16.vlgmr.msra.gmra.mrb[32].mxu0 %v11591_v9 }
  0xad   :  { %1143 = vmatmul.mubr.bf16.gmra.mrb[32].mxu1 %v11600_v14  ;;  %10636 = vmatprep.mubr.bf16.mxu0 %v11594_v10 }
  0xae   :  { %1152 = vmatprep.mubr.bf16.mxu1 %v15563_v0 }
  0xb4   :  { %10637 = vmatmul.mubr.bf16.gmra.mrb[36].mxu0 %v11597_v11 }
  0xb5   :  { %1153 = vmatmul.mubr.bf16.gmra.mrb[36].mxu1 %v11601_v15  ;;  %10640 = vmatprep.mubr.bf16.mxu0 %v11600_v14 }
  0xb6   :  { %1162 = vmatprep.mubr.bf16.mxu1 %v15563_v0 }
  0xbc   :  { %10641 = vmatmul.mubr.bf16.gmra.mrb[40].mxu0 %v11601_v15 }
  0xbd   :  { %1163 = vmatmul.mubr.bf16.gmra.mrb[40].mxu1 %v11602_v16  ;;  %10644 = vmatprep.mubr.bf16.mxu0 %v11602_v16 }
  0xbe   :  { %1172 = vmatprep.mubr.bf16.mxu1 %v15563_v0 }
  0xc4   :  { %10645 = vmatmul.mubr.bf16.gmra.mrb[44].mxu0 %v11603_v17 }
  0xc5   :  { %1173 = vmatmul.mubr.bf16.gmra.mrb[44].mxu1 %v11603_v17  ;;  %1336 = vmatprep.mubr.bf16.mxu0 %v15563_v0 }
  0xd3   :  { %v125_v19 = vpop.permute.xlu0 %124  ;;  %v12654_v36 = vpop.permute.xlu1 %130 }
  0xd4   :  { %vm171_vm0 = vcmp.eq.s32.totalorder %v12617_v20, %v125_v19  ;;  %vm173_vm3 = vcmp.eq.s32.totalorder %v12617_v20, %v12654_v36 }
  0xd7   :  { %v128_v21 = vpop.permute.xlu0 %127  ;;  %v12688_v61 = vpop.permute.xlu1 %133 }
  0xd8   :  { %vm172_vm1 = vcmp.eq.s32.totalorder %v12617_v20, %v128_v21  ;;  %vm174_vm4 = vcmp.eq.s32.totalorder %v12617_v20, %v12688_v61  ;;  %v15931_v61 = vmov 0 }
  0xd9   :  { %vm12621_vm2 = vmpackc.low %vm172_vm1, %vm171_vm0 }
  0xda   :  { %v15890_v22 = vsel %vm12621_vm2, 4294967295, %v15889_v22  ;;  %10664 = vmatprep.mubr.msk.bf16.mxu1 %vm12621_vm2, %v15565_v23  ;;  %vm12890_vm7 = vmpackc.low %vm174_vm4, %vm173_vm3 }
  0xdb   :  { %15891 = vst [vmem:[#allocation18_spill] sm:$0xff] %v15890_v22  ;;  %v15932_v61 = vsel %vm12890_vm7, 4294967295, %v15931_v61 }
  0xdc   :  { %15933 = vst [vmem:[#allocation58_spill] sm:$0xff] %v15932_v61 }
 0x13f   :  { %v592_v37 = vpop.f32.mrb[0].mxu0 }
 0x140   :  { %v10602_v38 = vpop.f32.mrb[0].mxu1  ;;  %v12657_v39 = vadd.f32 %v592_v37, %v12646_v33  ;;  %v594_v41 = vpop.f32.mrb[1].mxu0 }
 0x141   :  { %v12660_v40 = vadd.f32 %v10602_v38, %v12649_v34  ;;  %v705_v42 = vpop.f32.mrb[1].mxu1  ;;  %v12663_v43 = vadd.f32 %v594_v41, %v12652_v35  ;;  %v596_v45 = vpop.f32.mrb[2].mxu0 }
 0x142   :  { %15895 = vst [vmem:[#allocation22_spill] sm:$0xff] %v12657_v39  ;;  %v12666_v44 = vadd.f32 %v705_v42, %v12649_v34  ;;  %v10603_v46 = vpop.f32.mrb[2].mxu1  ;;  %v15538_v47 = vmax.f32 %v12657_v39, 0.0  ;;  %v12671_v49 = vadd.f32 %v596_v45, %v12646_v33  ;;  %v598_v51 = vpop.f32.mrb[3].mxu0 }
 0x143   :  { %15896 = vst [vmem:[#allocation23_spill] sm:$0xff] %v12660_v40  ;;  %15897 = vst [vmem:[#allocation24_spill] sm:$0xff] %v12663_v43  ;;  %v15554_v48 = vmax.f32 %v12660_v40, 0.0  ;;  %v12674_v50 = vadd.f32 %v10603_v46, %v12649_v34  ;;  %v708_v52 = vpop.f32.mrb[3].mxu1  ;;  %v15536_v53 = vmax.f32 %v12663_v43, 0.0  ;;  %v12679_v55 = vadd.f32 %v598_v51, %v12652_v35  ;;  %v12738_v38 = vpop.permute.xlu1 %139 }
 0x144   :  { %15898 = vst [vmem:[#allocation25_spill] sm:$0xff] %v12666_v44  ;;  %15899 = vst [vmem:[#allocation26_spill] sm:$0xff] %v12671_v49  ;;  %v15552_v54 = vmax.f32 %v12666_v44, 0.0  ;;  %v12682_v56 = vadd.f32 %v708_v52, %v12649_v34  ;;  %v15537_v57 = vmax.f32 %v12671_v49, 0.0  ;;  %v12740_v41 = vpop.permute.xlu0 %136  ;;  %vm176_vm5 = vcmp.eq.s32.totalorder %v12617_v20, %v12738_v38 }
 0x145   :  { %15900 = vst [vmem:[#allocation27_spill] sm:$0xff] %v12674_v50  ;;  %15901 = vst [vmem:[#allocation28_spill] sm:$0xff] %v12679_v55  ;;  %v15553_v58 = vmax.f32 %v12674_v50, 0.0  ;;  %v15535_v59 = vmax.f32 %v12679_v55, 0.0  ;;  %vm175_vm6 = vcmp.eq.s32.totalorder %v12617_v20, %v12740_v41  ;;  %v15934_v41 = vmov 0 }
 0x146   :  { %15902 = vst [vmem:[#allocation29_spill] sm:$0xff] %v12682_v56  ;;  %v15551_v60 = vmax.f32 %v12682_v56, 0.0  ;;  %v1280_v4 = vpack.c.bf16 %v15537_v57, %v15538_v47  ;;  %vm12898_vm8 = vmpackc.low %vm176_vm5, %vm175_vm6 }
 0x147   :  { %v602_v62 = vpop.f32.mrb[4].mxu0  ;;  %v1281_v1 = vpack.c.bf16 %v15535_v59, %v15536_v53  ;;  %v1285_v3 = vpack.c.bf16 %v15553_v58, %v15554_v48  ;;  %v15935_v41 = vsel %vm12898_vm8, 4294967295, %v15934_v41 }
 0x148   :  { %v10606_v63 = vpop.f32.mrb[4].mxu1  ;;  %v1282_v2 = vpack.c.bf16 %v15551_v60, %v15552_v54  ;;  %v604_v6 = vpop.f32.mrb[5].mxu0  ;;  %v12716_v12 = vadd.f32 %v602_v62, %v12646_v33  ;;  %15936 = vst [vmem:[#allocation59_spill] sm:$0xff] %v15935_v41 }
 0x149   :  { %v12707_v5 = vadd.f32 %v10606_v63, %v12649_v34  ;;  %v721_v7 = vpop.f32.mrb[5].mxu1  ;;  %v12710_v8 = vadd.f32 %v604_v6, %v12652_v35  ;;  %v606_v10 = vpop.f32.mrb[6].mxu0  ;;  %1304 = vmatprep.subr.bf16.mxu0 %v1281_v1 }
 0x14a   :  { %v12713_v9 = vadd.f32 %v721_v7, %v12649_v34  ;;  %v10607_v11 = vpop.f32.mrb[6].mxu1  ;;  %10648 = vmatprep.subr.bf16.mxu1 %v1282_v2  ;;  %15906 = vst [vmem:[#allocation33_spill] sm:$0xff] %v12716_v12  ;;  %v12719_v13 = vadd.f32 %v606_v10, %v12646_v33  ;;  %v608_v15 = vpop.f32.mrb[7].mxu0  ;;  %1305 = vmatpush1.bf16.msra.mxu0 %v1280_v4  ;;  %v15534_v37 = vmax.f32 %v12716_v12, 0.0 }
 0x14b   :  { %15903 = vst [vmem:[#allocation30_spill] sm:$0xff] %v12707_v5  ;;  %15904 = vst [vmem:[#allocation31_spill] sm:$0xff] %v12710_v8  ;;  %v12722_v14 = vadd.f32 %v10607_v11, %v12649_v34  ;;  %v724_v16 = vpop.f32.mrb[7].mxu1  ;;  %10649 = vmatpush3.bf16.msra.mxu1 %v1282_v2  ;;  %v15550_v17 = vmax.f32 %v12707_v5, 0.0  ;;  %v12727_v19 = vadd.f32 %v608_v15, %v12652_v35  ;;  %v15532_v30 = vmax.f32 %v12710_v8, 0.0 }
 0x14c   :  { %15905 = vst [vmem:[#allocation32_spill] sm:$0xff] %v12713_v9  ;;  %15907 = vst [vmem:[#allocation34_spill] sm:$0xff] %v12719_v13  ;;  %v15544_v18 = vmax.f32 %v12713_v9, 0.0  ;;  %v12730_v21 = vadd.f32 %v724_v16, %v12649_v34  ;;  %10650 = vmatprep.subr.bf16.mxu1 %v1285_v3  ;;  %v15533_v25 = vmax.f32 %v12719_v13, 0.0  ;;  %v864_v9 = vld [vmem:[%s15524_s8] sm:$0x7] }
 0x14d   :  { %15908 = vst [vmem:[#allocation35_spill] sm:$0xff] %v12722_v14  ;;  %15909 = vst [vmem:[#allocation36_spill] sm:$0xff] %v12727_v19  ;;  %v15549_v27 = vmax.f32 %v12722_v14, 0.0  ;;  %v15531_v31 = vmax.f32 %v12727_v19, 0.0  ;;  %v13148_v14 = vunpack.c.l.bf16 %v864_v9 }
 0x14e   :  { %15910 = vst [vmem:[#allocation37_spill] sm:$0xff] %v12730_v21  ;;  %v15539_v32 = vmax.f32 %v12730_v21, 0.0  ;;  %v1283_v62 = vpack.c.bf16 %v15533_v25, %v15534_v37  ;;  %v12790_v25 = vpop.permute.xlu1 %145  ;;  %v15974_v21 = vmov 0 }
 0x14f   :  { %10651 = vmatpush3.bf16.msra.mxu1 %v1285_v3  ;;  %v612_v42 = vpop.f32.mrb[8].mxu0  ;;  %v1284_v46 = vpack.c.bf16 %v15531_v31, %v15532_v30  ;;  %v1291_v52 = vpack.c.bf16 %v15549_v27, %v15550_v17  ;;  %vm178_vm9 = vcmp.eq.s32.totalorder %v12617_v20, %v12790_v25  ;;  %v15942_v25 = vmov 0 }
 0x150   :  { %v10610_v45 = vpop.f32.mrb[8].mxu1  ;;  %v1288_v51 = vpack.c.bf16 %v15539_v32, %v15544_v18  ;;  %v614_v1 = vpop.f32.mrb[9].mxu0  ;;  %v12768_v10 = vadd.f32 %v612_v42, %v12646_v33  ;;  %v878_v5 = vrot.slane %v13148_v14, %v12637_v28 }
 0x151   :  { %v12759_v63 = vadd.f32 %v10610_v45, %v12649_v34  ;;  %v737_v2 = vpop.f32.mrb[9].mxu1  ;;  %v12762_v3 = vadd.f32 %v614_v1, %v12652_v35  ;;  %v616_v6 = vpop.f32.mrb[10].mxu0  ;;  %1306 = vmatprep.subr.bf16.mxu0 %v1284_v46 }
 0x152   :  { %v12765_v4 = vadd.f32 %v737_v2, %v12649_v34  ;;  %v10611_v7 = vpop.f32.mrb[10].mxu1  ;;  %10652 = vmatprep.subr.bf16.mxu1 %v1288_v51  ;;  %15914 = vst [vmem:[#allocation41_spill] sm:$0xff] %v12768_v10  ;;  %v12771_v11 = vadd.f32 %v616_v6, %v12646_v33  ;;  %v618_v16 = vpop.f32.mrb[11].mxu0  ;;  %1307 = vmatpush1.bf16.msra.mxu0 %v1283_v62  ;;  %v15547_v30 = vmax.f32 %v12768_v10, 0.0 }
 0x153   :  { %15911 = vst [vmem:[#allocation38_spill] sm:$0xff] %v12759_v63  ;;  %15912 = vst [vmem:[#allocation39_spill] sm:$0xff] %v12762_v3  ;;  %v12774_v15 = vadd.f32 %v10611_v7, %v12649_v34  ;;  %v740_v45 = vpop.f32.mrb[11].mxu1  ;;  %10653 = vmatpush3.bf16.msra.mxu1 %v1288_v51  ;;  %v15548_v1 = vmax.f32 %v12759_v63, 0.0  ;;  %v12779_v46 = vadd.f32 %v618_v16, %v12652_v35  ;;  %v15541_v31 = vmax.f32 %v12762_v3, 0.0  ;;  %v12792_v16 = vpop.permute.xlu0 %142 }
 0x154   :  { %15913 = vst [vmem:[#allocation40_spill] sm:$0xff] %v12765_v4  ;;  %15915 = vst [vmem:[#allocation42_spill] sm:$0xff] %v12771_v11  ;;  %v15543_v2 = vmax.f32 %v12765_v4, 0.0  ;;  %v12782_v42 = vadd.f32 %v740_v45, %v12649_v34  ;;  %10654 = vmatprep.subr.bf16.mxu1 %v1291_v52  ;;  %v15546_v6 = vmax.f32 %v12771_v11, 0.0  ;;  %v152_v48 = vpop.permute.xlu1 %151  ;;  %vm177_vm10 = vcmp.eq.s32.totalorder %v12617_v20, %v12792_v16  ;;  %v13133_v63 = vld [vmem:[%s15517_s1] ss:$0 sm:$0xff] }
 0x155   :  { %15916 = vst [vmem:[#allocation43_spill] sm:$0xff] %v12774_v15  ;;  %15917 = vst [vmem:[#allocation44_spill] sm:$0xff] %v12779_v46  ;;  %v15545_v7 = vmax.f32 %v12774_v15, 0.0  ;;  %v15540_v62 = vmax.f32 %v12779_v46, 0.0  ;;  %vm180_vm11 = vcmp.eq.s32.totalorder %v12617_v20, %v152_v48  ;;  %v13153_v56 = vrot.slane %v878_v5, %v12634_v26 }
 0x156   :  { %15918 = vst [vmem:[#allocation45_spill] sm:$0xff] %v12782_v42  ;;  %v15542_v51 = vmax.f32 %v12782_v42, 0.0  ;;  %v1286_v57 = vpack.c.bf16 %v15546_v6, %v15547_v30  ;;  %vm12942_vm13 = vmpackc.low %vm178_vm9, %vm177_vm10 }
 0x157   :  { %10655 = vmatpush3.bf16.msra.mxu1 %v1291_v52  ;;  %v622_v45 = vpop.f32.mrb[12].mxu0  ;;  %v1287_v59 = vpack.c.bf16 %v15540_v62, %v15541_v31  ;;  %v1297_v52 = vpack.c.bf16 %v15545_v7, %v15548_v1  ;;  %v149_v54 = vpop.permute.xlu0 %148  ;;  %v15943_v25 = vsel %vm12942_vm13, 4294967295, %v15942_v25 }
 0x158   :  { %v10614_v37 = vpop.f32.mrb[12].mxu1  ;;  %v1294_v53 = vpack.c.bf16 %v15542_v51, %v15543_v2  ;;  %v624_v32 = vpop.f32.mrb[13].mxu0  ;;  %v12820_v7 = vadd.f32 %v622_v45, %v12646_v33  ;;  %vm179_vm12 = vcmp.eq.s32.totalorder %v12617_v20, %v149_v54  ;;  %15944 = vst [vmem:[#allocation64_spill] sm:$0xff] %v15943_v25  ;;  %v15945_v54 = vmov 0 }
 0x159   :  { %v12811_v47 = vadd.f32 %v10614_v37, %v12649_v34  ;;  %v753_v62 = vpop.f32.mrb[13].mxu1  ;;  %v12814_v31 = vadd.f32 %v624_v32, %v12652_v35  ;;  %v626_v2 = vpop.f32.mrb[14].mxu0  ;;  %1308 = vmatprep.subr.bf16.mxu0 %v1287_v59  ;;  %vm12950_vm14 = vmpackc.low %vm180_vm11, %vm179_vm12  ;;  %vm248_vm11 = vcmp.eq.s32.totalorder %v12628_v24, %v13133_v63 }
 0x15a   :  { %v12817_v51 = vadd.f32 %v753_v62, %v12649_v34  ;;  %v10615_v18 = vpop.f32.mrb[14].mxu1  ;;  %10656 = vmatprep.subr.bf16.mxu1 %v1294_v53  ;;  %15922 = vst [vmem:[#allocation49_spill] sm:$0xff] %v12820_v7  ;;  %v12823_v6 = vadd.f32 %v626_v2, %v12646_v33  ;;  %v628_v30 = vpop.f32.mrb[15].mxu0  ;;  %1309 = vmatpush1.bf16.msra.mxu0 %v1286_v57  ;;  %v15562_v17 = vmax.f32 %v12820_v7, 0.0  ;;  %v15946_v54 = vsel %vm12950_vm14, 4294967295, %v15945_v54 }
 0x15b   :  { %15919 = vst [vmem:[#allocation46_spill] sm:$0xff] %v12811_v47  ;;  %15920 = vst [vmem:[#allocation47_spill] sm:$0xff] %v12814_v31  ;;  %v12826_v37 = vadd.f32 %v10615_v18, %v12649_v34  ;;  %v756_v1 = vpop.f32.mrb[15].mxu1  ;;  %10657 = vmatpush3.bf16.msra.mxu1 %v1294_v53  ;;  %v15560_v32 = vmax.f32 %v12811_v47, 0.0  ;;  %v12831_v59 = vadd.f32 %v628_v30, %v12652_v35  ;;  %v15556_v27 = vmax.f32 %v12814_v31, 0.0  ;;  %v158_v23 = vpop.permute.xlu1 %157 }
 0x15c   :  { %15921 = vst [vmem:[#allocation48_spill] sm:$0xff] %v12817_v51  ;;  %15923 = vst [vmem:[#allocation50_spill] sm:$0xff] %v12823_v6  ;;  %v15558_v62 = vmax.f32 %v12817_v51, 0.0  ;;  %v12834_v45 = vadd.f32 %v756_v1, %v12649_v34  ;;  %10658 = vmatprep.subr.bf16.mxu1 %v1297_v52  ;;  %v15561_v2 = vmax.f32 %v12823_v6, 0.0  ;;  %vm182_vm15 = vcmp.eq.s32.totalorder %v12617_v20, %v158_v23 }
 0x15d   :  { %15924 = vst [vmem:[#allocation51_spill] sm:$0xff] %v12826_v37  ;;  %15925 = vst [vmem:[#allocation52_spill] sm:$0xff] %v12831_v59  ;;  %v15559_v18 = vmax.f32 %v12826_v37, 0.0  ;;  %v15555_v57 = vmax.f32 %v12831_v59, 0.0  ;;  %v15953_v23 = vmov 0 }
 0x15e   :  { %15926 = vst [vmem:[#allocation53_spill] sm:$0xff] %v12834_v45  ;;  %v15557_v53 = vmax.f32 %v12834_v45, 0.0  ;;  %15947 = vst [vmem:[#allocation65_spill] sm:$0xff] %v15946_v54 }
 0x15f   :  { %10659 = vmatpush3.bf16.msra.mxu1 %v1297_v52  ;;  %v632_v60 = vpop.f32.mrb[16].mxu0  ;;  %v1290_v34 = vpack.c.bf16 %v15555_v57, %v15556_v27  ;;  %v1303_v1 = vpack.c.bf16 %v15559_v18, %v15560_v32  ;;  %v1289_v52 = vpack.c.bf16 %v15561_v2, %v15562_v17  ;;  %v164_v46 = vpop.permute.xlu1 %163 }
 0x160   :  { %v1300_v30 = vpack.c.bf16 %v15557_v53, %v15558_v62  ;;  %v634_v58 = vpop.f32.mrb[17].mxu0  ;;  %v12861_v53 = vpop.f32.mrb[16].mxu1  ;;  %v12864_v62 = vadd.f32 %v632_v60, %v12646_v33  ;;  %vm184_vm1 = vcmp.eq.s32.totalorder %v12617_v20, %v164_v46 }
 0x161   :  { %v12859_v57 = vadd.f32 %v634_v58, %v12652_v35  ;;  %v636_v27 = vpop.f32.mrb[18].mxu0  ;;  %1310 = vmatprep.subr.bf16.mxu0 %v1290_v34  ;;  %v12869_v2 = vpop.f32.mrb[17].mxu1 }
 0x162   :  { %10660 = vmatprep.subr.bf16.mxu1 %v1300_v30  ;;  %15928 = vst [vmem:[#allocation55_spill] sm:$0xff] %v12864_v62  ;;  %v12867_v18 = vadd.f32 %v636_v27, %v12646_v33  ;;  %v638_v32 = vpop.f32.mrb[19].mxu0  ;;  %1311 = vmatpush1.bf16.msra.mxu0 %v1289_v52  ;;  %v12878_v58 = vpop.f32.mrb[18].mxu1  ;;  %v15574_v34 = vmax.f32 %v12864_v62, 0.0 }
 0x163   :  { %15927 = vst [vmem:[#allocation54_spill] sm:$0xff] %v12859_v57  ;;  %10661 = vmatpush3.bf16.msra.mxu1 %v1300_v30  ;;  %v12872_v17 = vadd.f32 %v638_v32, %v12652_v35  ;;  %v12885_v27 = vpop.f32.mrb[19].mxu1  ;;  %v15571_v32 = vmax.f32 %v12859_v57, 0.0  ;;  %v155_v52 = vpop.permute.xlu0 %154  ;;  %v15938_v57 = vmov 1.0|1.0  }
 0x164   :  { %15929 = vst [vmem:[#allocation56_spill] sm:$0xff] %v12867_v18  ;;  %10662 = vmatprep.subr.bf16.mxu1 %v1303_v1  ;;  %v15573_v60 = vmax.f32 %v12867_v18, 0.0  ;;  %vm181_vm0 = vcmp.eq.s32.totalorder %v12617_v20, %v155_v52  ;;  %v170_v19 = vpop.permute.xlu1 %169 }
 0x165   :  { %15930 = vst [vmem:[#allocation57_spill] sm:$0xff] %v12872_v17  ;;  %v15570_v36 = vmax.f32 %v12872_v17, 0.0  ;;  %vm12992_vm4 = vmpackc.low %vm182_vm15, %vm181_vm0  ;;  %vm186_vm6 = vcmp.eq.s32.totalorder %v12617_v20, %v170_v19  ;;  %v15967_v19 = vmov 0  }
 0x166   :  { %v15954_v23 = vsel %vm12992_vm4, 4294967295, %v15953_v23 }
 0x167   :  { %10663 = vmatpush3.bf16.msra.mxu1 %v1303_v1  ;;  %v642_v30 = vpop.f32.mrb[20].mxu0  ;;  %v1293_v38 = vpack.c.bf16 %v15570_v36, %v15571_v32  ;;  %v1292_v1 = vpack.c.bf16 %v15573_v60, %v15574_v34  ;;  %15955 = vst [vmem:[#allocation70_spill] sm:$0xff] %v15954_v23 }
 0x168   :  { %v644_v0 = vpop.f32.mrb[21].mxu0  ;;  %v12912_v36 = vpop.f32.mrb[20].mxu1  ;;  %v12915_v32 = vadd.f32 %v642_v30, %v12646_v33 }
 0x169   :  { %v12907_v59 = vadd.f32 %v644_v0, %v12652_v35  ;;  %v646_v31 = vpop.f32.mrb[22].mxu0  ;;  %1312 = vmatprep.subr.bf16.mxu0 %v1293_v38  ;;  %v12923_v0 = vpop.f32.mrb[21].mxu1 }
 0x16a   :  { %10665 = vmatmul.mubr.msk.bf16.vlgmr.msra.gmra.mrb[48].mxu1 %vm12890_vm7, %v15938_v57  ;;  %15939 = vst [vmem:[#allocation61_spill] sm:$0xff] %v12915_v32  ;;  %v12918_v17 = vadd.f32 %v646_v31, %v12646_v33  ;;  %v648_v60 = vpop.f32.mrb[23].mxu0  ;;  %1313 = vmatpush1.bf16.msra.mxu0 %v1292_v1  ;;  %v12932_v30 = vpop.f32.mrb[22].mxu1  ;;  %v15585_v18 = vmax.f32 %v12915_v32, 0.0 }
 0x16b   :  { %15937 = vst [vmem:[#allocation60_spill] sm:$0xff] %v12907_v59  ;;  %10668 = vmatprep.mubr.msk.bf16.mxu1 %vm12898_vm8, %v15938_v57  ;;  %v12926_v38 = vadd.f32 %v648_v60, %v12652_v35  ;;  %v12937_v1 = vpop.f32.mrb[23].mxu1  ;;  %v15583_v34 = vmax.f32 %v12907_v59, 0.0  ;;  %v161_v31 = vpop.permute.xlu0 %160 }
 0x16c   :  { %15940 = vst [vmem:[#allocation62_spill] sm:$0xff] %v12918_v17  ;;  %v15948_v62 = vmax.f32 %v12918_v17, 0.0  ;;  %vm183_vm3 = vcmp.eq.s32.totalorder %v12617_v20, %v161_v31  ;;  %v15956_v31 = vmov 0 }
 0x16d   :  { %15941 = vst [vmem:[#allocation63_spill] sm:$0xff] %v12926_v38  ;;  %v15582_v60 = vmax.f32 %v12926_v38, 0.0  ;;  %vm13000_vm5 = vmpackc.low %vm184_vm1, %vm183_vm3 }
 0x16e   :  { %v1295_v6 = vpack.c.bf16 %v15948_v62, %v15585_v18  ;;  %v15957_v31 = vsel %vm13000_vm5, 4294967295, %v15956_v31 }
 0x16f   :  { %v652_v16 = vpop.f32.mrb[24].mxu0  ;;  %v1296_v48 = vpack.c.bf16 %v15582_v60, %v15583_v34  ;;  %15958 = vst [vmem:[#allocation71_spill] sm:$0xff] %v15957_v31 }
 0x170   :  { %v654_v7 = vpop.f32.mrb[25].mxu0  ;;  %v12964_v60 = vpop.f32.mrb[24].mxu1  ;;  %v12967_v34 = vadd.f32 %v652_v16, %v12646_v33 }
 0x171   :  { %v12959_v3 = vadd.f32 %v654_v7, %v12652_v35  ;;  %v656_v11 = vpop.f32.mrb[26].mxu0  ;;  %1314 = vmatprep.subr.bf16.mxu0 %v1296_v48  ;;  %v12975_v7 = vpop.f32.mrb[25].mxu1 }
 0x172   :  { %10669 = vmatmul.mubr.msk.bf16.gmra.mrb[52].mxu1 %vm12942_vm13, %v15938_v57  ;;  %15950 = vst [vmem:[#allocation67_spill] sm:$0xff] %v12967_v34  ;;  %v12970_v38 = vadd.f32 %v656_v11, %v12646_v33  ;;  %v658_v62 = vpop.f32.mrb[27].mxu0  ;;  %1315 = vmatpush1.bf16.msra.mxu0 %v1295_v6  ;;  %v12982_v16 = vpop.f32.mrb[26].mxu1 }
 0x173   :  { %15949 = vst [vmem:[#allocation66_spill] sm:$0xff] %v12959_v3  ;;  %10672 = vmatprep.mubr.msk.bf16.mxu1 %vm12950_vm14, %v15938_v57  ;;  %v12978_v48 = vadd.f32 %v658_v62, %v12652_v35  ;;  %v12987_v6 = vpop.f32.mrb[27].mxu1  ;;  %v15594_v18 = vmax.f32 %v12959_v3, 0.0  ;;  %v15600_v62 = vmax.f32 %v12967_v34, 0.0  ;;  %v167_v11 = vpop.permute.xlu0 %166 }
 0x174   :  { %15951 = vst [vmem:[#allocation68_spill] sm:$0xff] %v12970_v38  ;;  %v15959_v17 = vmax.f32 %v12970_v38, 0.0  ;;  %vm185_vm9 = vcmp.eq.s32.totalorder %v12617_v20, %v167_v11 }
 0x175   :  { %15952 = vst [vmem:[#allocation69_spill] sm:$0xff] %v12978_v48  ;;  %v15593_v59 = vmax.f32 %v12978_v48, 0.0  ;;  %vm13032_vm10 = vmpackc.low %vm186_vm6, %vm185_vm9 }
 0x176   :  { %v1298_v32 = vpack.c.bf16 %v15959_v17, %v15600_v62 }
 0x177   :  { %v662_v52 = vpop.f32.mrb[28].mxu0  ;;  %v1299_v46 = vpack.c.bf16 %v15593_v59, %v15594_v18 }
 0x178   :  { %v664_v10 = vpop.f32.mrb[29].mxu0  ;;  %v13015_v59 = vadd.f32 %v662_v52, %v12646_v33 }
 0x179   :  { %v13009_v8 = vadd.f32 %v664_v10, %v12652_v35  ;;  %v666_v13 = vpop.f32.mrb[30].mxu0  ;;  %1316 = vmatprep.subr.bf16.mxu0 %v1299_v46 }
 0x17a   :  { %10673 = vmatmul.mubr.msk.bf16.gmra.mrb[56].mxu1 %vm12992_vm4, %v15938_v57  ;;  %15961 = vst [vmem:[#allocation73_spill] sm:$0xff] %v13015_v59  ;;  %v13018_v18 = vadd.f32 %v666_v13, %v12646_v33  ;;  %v668_v48 = vpop.f32.mrb[31].mxu0  ;;  %1317 = vmatpush1.bf16.msra.mxu0 %v1298_v32  ;;  %v15599_v13 = vmax.f32 %v13015_v59, 0.0  ;;  %v15964_v32 = vmov 0 }
 0x17b   :  { %15960 = vst [vmem:[#allocation72_spill] sm:$0xff] %v13009_v8  ;;  %10676 = vmatprep.mubr.msk.bf16.mxu1 %vm13000_vm5, %v15938_v57  ;;  %v13024_v17 = vadd.f32 %v668_v48, %v12652_v35  ;;  %v15597_v52 = vmax.f32 %v13009_v8, 0.0  ;;  %v15965_v32 = vsel %vm13032_vm10, 4294967295, %v15964_v32  ;;  %v13056_v48 = vpop.f32.mrb[28].mxu1 }
 0x17c   :  { %15962 = vst [vmem:[#allocation74_spill] sm:$0xff] %v13018_v18  ;;  %v15598_v10 = vmax.f32 %v13018_v18, 0.0  ;;  %15966 = vst [vmem:[#allocation76_spill] sm:$0xff] %v15965_v32  ;;  %v13061_v11 = vpop.f32.mrb[29].mxu1  ;;  %v229_v32 = vadd.s32 8, %v12628_v24 }
 0x17d   :  { %15963 = vst [vmem:[#allocation75_spill] sm:$0xff] %v13024_v17  ;;  %v15596_v33 = vmax.f32 %v13024_v17, 0.0  ;;  %v13064_v46 = vpop.f32.mrb[30].mxu1 }
 0x17e   :  { %v1301_v20 = vpack.c.bf16 %v15598_v10, %v15599_v13  ;;  %vm249_vm12 = vcmp.eq.s32.totalorder %v229_v32, %v13133_v63 }
 0x17f   :  { %v1302_v35 = vpack.c.bf16 %v15596_v33, %v15597_v52  ;;  %v10634_v33 = vpop.f32.mrb[32].mxu0  ;;  %vm13138_vm15 = vmpackc.low %vm249_vm12, %vm248_vm11 }
 0x180   :  { %v1217_v10 = vpop.f32.mrb[33].mxu0  ;;  %v15975_v21 = vsel %vm13138_vm15, 4294967295, %v15974_v21  ;;  %v13156_v32 = vadd.f32 %v10634_v33, %v13153_v56 }
 0x181   :  { %1318 = vmatprep.subr.bf16.mxu0 %v1302_v35  ;;  %v13066_v35 = vpop.f32.mrb[31].mxu1  ;;  %v10635_v62 = vpop.f32.mrb[34].mxu0  ;;  %15976 = vst [vmem:[#allocation83_spill] sm:$0xff] %v15975_v21  ;;  %v13159_v44 = vadd.f32 %v1217_v10, %v13153_v56 }
 0x182   :  { %10677 = vmatmul.mubr.msk.bf16.gmra.mrb[60].mxu1 %vm13032_vm10, %v15938_v57  ;;  %1319 = vmatpush1.bf16.msra.mxu0 %v1301_v20  ;;  %v13068_v20 = vpop.f32.mrb[32].mxu1  ;;  %v1220_v61 = vpop.f32.mrb[35].mxu0  ;;  %15977 = vst [vmem:[#allocation84_spill] sm:$0xff] %v13156_v32  ;;  %v13162_v40 = vadd.f32 %v10635_v62, %v13153_v56 }
 0x183   :  { %1618 = vmatprep.mubr.bf16.mxu1 %v15967_v19  ;;  %v13073_v52 = vpop.f32.mrb[33].mxu1  ;;  %v13166_v21 = vadd.f32 %v1220_v61, %v13153_v56 }
 0x184   :  { %v13076_v13 = vpop.f32.mrb[34].mxu1  ;;  %15978 = vst [vmem:[#allocation85_spill] sm:$0xff] %v13162_v40 }
 0x185   :  { %9332 = vmatmul.mubr.msk.bf16.vlgmr.msra.gmra.mrb[48].mxu0 %vm12621_vm2, %v15938_v57  ;;  %v13078_v41 = vpop.f32.mrb[35].mxu1 }
 0x186   :  { %1346 = vmatprep.mubr.bf16.mxu0 %v15967_v19 }
 0x187   :  { %v10638_v55 = vpop.f32.mrb[36].mxu0 }
 0x188   :  { %v13080_v22 = vpop.f32.mrb[36].mxu1  ;;  %v1233_v43 = vpop.f32.mrb[37].mxu0  ;;  %v13172_v62 = vadd.f32 %v10638_v55, %v13153_v56 }
 0x189   :  { %v13085_v17 = vpop.f32.mrb[37].mxu1  ;;  %v10639_v49 = vpop.f32.mrb[38].mxu0 }
 0x18a   :  { %v13088_v25 = vpop.f32.mrb[38].mxu1  ;;  %v1236_v39 = vpop.f32.mrb[39].mxu0 }
 0x18b   :  { %v13090_v8 = vpop.f32.mrb[39].mxu1 }
 0x18d   :  { %9334 = vmatmul.mubr.msk.bf16.gmra.mrb[52].mxu0 %vm12890_vm7, %v15938_v57 }
 0x18e   :  { %1356 = vmatprep.mubr.bf16.mxu0 %v15967_v19 }
 0x18f   :  { %v10642_v45 = vpop.f32.mrb[40].mxu0 }
 0x190   :  { %v13092_v18 = vpop.f32.mrb[40].mxu1  ;;  %v1249_v51 = vpop.f32.mrb[41].mxu0 }
 0x191   :  { %v13097_v59 = vpop.f32.mrb[41].mxu1  ;;  %v10643_v31 = vpop.f32.mrb[42].mxu0 }
 0x192   :  { %v13100_v54 = vpop.f32.mrb[42].mxu1  ;;  %v13119_v37 = vpop.f32.mrb[43].mxu0 }
 0x193   :  { %15968 = vst [vmem:[#allocation77_spill] sm:$0xff] %v13100_v54  ;;  %v13102_v3 = vpop.f32.mrb[43].mxu1 }
 0x194   :  { %15969 = vst [vmem:[#allocation78_spill] sm:$0xff] %v13102_v3 }
 0x195   :  { %9336 = vmatmul.mubr.msk.bf16.gmra.mrb[56].mxu0 %vm12898_vm8, %v15938_v57 }
 0x196   :  { %1366 = vmatprep.mubr.bf16.mxu0 %v15967_v19 }
 0x197   :  { %v13121_v47 = vpop.f32.mrb[44].mxu0 }
 0x198   :  { %v13104_v38 = vpop.f32.mrb[44].mxu1  ;;  %v13123_v42 = vpop.f32.mrb[45].mxu0 }
 0x199   :  { %15970 = vst [vmem:[#allocation79_spill] sm:$0xff] %v13104_v38  ;;  %v13109_v34 = vpop.f32.mrb[45].mxu1  ;;  %v13125_v4 = vpop.f32.mrb[46].mxu0 }
 0x19a   :  { %15971 = vst [vmem:[#allocation80_spill] sm:$0xff] %v13109_v34  ;;  %v13112_v23 = vpop.f32.mrb[46].mxu1  ;;  %v13127_v15 = vpop.f32.mrb[47].mxu0 }
 0x19b   :  { %15972 = vst [vmem:[#allocation81_spill] sm:$0xff] %v13112_v23  ;;  %v13114_v12 = vpop.f32.mrb[47].mxu1 }
 0x19c   :  { %15973 = vst [vmem:[#allocation82_spill] sm:$0xff] %v13114_v12 }
 0x19d   :  { %9338 = vmatmul.mubr.msk.bf16.gmra.mrb[60].mxu0 %vm12942_vm13, %v15938_v57 }
 0x19e   :  { %1376 = vmatprep.mubr.bf16.mxu0 %v15967_v19 }
 0x1a5   :  { %9340 = vmatmul.mubr.msk.bf16.gmra.mrb[64].mxu0 %vm12950_vm14, %v15938_v57 }
 0x1a6   :  { %1386 = vmatprep.mubr.bf16.mxu0 %v15967_v19 }
 0x1ad   :  { %9342 = vmatmul.mubr.msk.bf16.gmra.mrb[68].mxu0 %vm12992_vm4, %v15938_v57 }
 0x1ae   :  { %1396 = vmatprep.mubr.bf16.mxu0 %v15967_v19 }
 0x1b5   :  { %9344 = vmatmul.mubr.msk.bf16.gmra.mrb[72].mxu0 %vm13000_vm5, %v15938_v57 }
 0x1b6   :  { %1406 = vmatprep.mubr.bf16.mxu0 %v15967_v19 }
 0x1bd   :  { %9346 = vmatmul.mubr.msk.bf16.gmra.mrb[76].mxu0 %vm13032_vm10, %v15938_v57 }
 0x1be   :  { %10696 = vmatprep.mubr.msk.bf16.mxu0 %vm13138_vm15, %v15938_v57 }
 0x23d   :  { %v10666_v50 = vpop.f32.mrb[48].mxu1 }
 0x23e   :  { %v1460_v19 = vadd.f32 %v10666_v50, %v13156_v32  ;;  %v1451_v9 = vpop.f32.mrb[49].mxu1  ;;  %v13175_v32 = vadd.f32 %v1233_v43, %v13153_v56 }
 0x23f   :  { %v1452_v28 = vadd.f32 %v1451_v9, %v13159_v44  ;;  %v10667_v5 = vpop.f32.mrb[50].mxu1  ;;  %v13178_v9 = vadd.f32 %v10639_v49, %v13153_v56 }
 0x240   :  { %v1463_v12 = vadd.f32 %v10667_v5, %v13162_v40  ;;  %v1454_v33 = vpop.f32.mrb[51].mxu1  ;;  %v1522_v10 = vmax.f32 %v1460_v19, 0.0  ;;  %15979 = vst [vmem:[#allocation86_spill] sm:$0xff] %v13175_v32  ;;  %v13182_v19 = vadd.f32 %v1236_v39, %v13153_v56 }
 0x241   :  { %v1455_v23 = vadd.f32 %v1454_v33, %v13166_v21  ;;  %v1516_v38 = vmax.f32 %v1452_v28, 0.0  ;;  %v13188_v33 = vadd.f32 %v10642_v45, %v13153_v56  ;;  %v874_v45 = vrot.slane %v13148_v14, %v12640_v29 }
 0x242   :  { %v1525_v34 = vmax.f32 %v1463_v12, 0.0 }
 0x243   :  { %v1519_v3 = vmax.f32 %v1455_v23, 0.0  ;;  %15980 = vst [vmem:[#allocation87_spill] sm:$0xff] %v13188_v33 }
 0x244   :  { %v1567_v50 = vpack.c.bf16 %v1525_v34, %v1522_v10 }
 0x245   :  { %v10670_v61 = vpop.f32.mrb[52].mxu1  ;;  %v1564_v54 = vpack.c.bf16 %v1519_v3, %v1516_v38 }
 0x246   :  { %v1476_v5 = vadd.f32 %v10670_v61, %v13172_v62  ;;  %v1467_v40 = vpop.f32.mrb[53].mxu1 }
 0x247   :  { %v1468_v28 = vadd.f32 %v1467_v40, %v13175_v32  ;;  %v10671_v12 = vpop.f32.mrb[54].mxu1  ;;  %10680 = vmatprep.subr.bf16.mxu0 %v1564_v54  ;;  %v13191_v40 = vadd.f32 %v1249_v51, %v13153_v56 }
 0x248   :  { %v1479_v55 = vadd.f32 %v10671_v12, %v13178_v9  ;;  %v1470_v34 = vpop.f32.mrb[55].mxu1  ;;  %10681 = vmatpush3.bf16.msra.mxu0 %v1564_v54  ;;  %v1534_v3 = vmax.f32 %v1476_v5, 0.0  ;;  %v870_v54 = vrot.slane %v13148_v14, %v12634_v26  ;;  %v13196_v12 = vadd.f32 %v10643_v31, %v13153_v56 }
 0x249   :  { %v1471_v43 = vadd.f32 %v1470_v34, %v13182_v19  ;;  %10682 = vmatprep.subr.bf16.mxu0 %v1567_v50  ;;  %v1528_v38 = vmax.f32 %v1468_v28, 0.0  ;;  %15981 = vst [vmem:[#allocation88_spill] sm:$0xff] %v13191_v40 }
 0x24a   :  { %v1537_v49 = vmax.f32 %v1479_v55, 0.0  ;;  %15982 = vst [vmem:[#allocation89_spill] sm:$0xff] %v13196_v12 }
 0x24b   :  { %v1531_v23 = vmax.f32 %v1471_v43, 0.0 }
 0x24c   :  { %10683 = vmatpush3.bf16.msra.mxu0 %v1567_v50  ;;  %v1573_v39 = vpack.c.bf16 %v1537_v49, %v1534_v3  ;;  %v13203_v50 = vadd.f32 %v13119_v37, %v13153_v56  ;;  %v13209_v3 = vrot.slane %v870_v54, %v12634_v26 }
 0x24d   :  { %v10674_v10 = vpop.f32.mrb[56].mxu1  ;;  %v1570_v61 = vpack.c.bf16 %v1531_v23, %v1528_v38  ;;  %v13212_v38 = vrot.slane %v874_v45, %v12634_v26  ;;  %v13228_v45 = vadd.f32 %v13125_v4, %v13153_v56 }
 0x24e   :  { %v1492_v5 = vadd.f32 %v10674_v10, %v13188_v33  ;;  %v1483_v28 = vpop.f32.mrb[57].mxu1  ;;  %15983 = vst [vmem:[#allocation90_spill] sm:$0xff] %v13203_v50  ;;  %v13216_v10 = vadd.f32 %v13121_v47, %v13153_v56 }
 0x24f   :  { %v1484_v51 = vadd.f32 %v1483_v28, %v13191_v40  ;;  %v10675_v55 = vpop.f32.mrb[58].mxu1  ;;  %10684 = vmatprep.subr.bf16.mxu0 %v1570_v61  ;;  %15987 = vst [vmem:[#allocation94_spill] sm:$0xff] %v13228_v45 }
 0x250   :  { %v1495_v34 = vadd.f32 %v10675_v55, %v13196_v12  ;;  %v1486_v43 = vpop.f32.mrb[59].mxu1  ;;  %10685 = vmatpush3.bf16.msra.mxu0 %v1570_v61  ;;  %v1546_v49 = vmax.f32 %v1492_v5, 0.0  ;;  %15984 = vst [vmem:[#allocation91_spill] sm:$0xff] %v13216_v10  ;;  %v13220_v61 = vadd.f32 %v13123_v42, %v13153_v56  ;;  %v13224_v5 = vadd.f32 %v12861_v53, %v13209_v3 }
 0x251   :  { %v1487_v31 = vadd.f32 %v1486_v43, %v13203_v50  ;;  %10686 = vmatprep.subr.bf16.mxu0 %v1573_v39  ;;  %v1540_v37 = vmax.f32 %v1484_v51, 0.0  ;;  %v13237_v42 = vadd.f32 %v13127_v15, %v13153_v56 }
 0x252   :  { %v1549_v14 = vmax.f32 %v1495_v34, 0.0  ;;  %15985 = vst [vmem:[#allocation92_spill] sm:$0xff] %v13220_v61  ;;  %15986 = vst [vmem:[#allocation93_spill] sm:$0xff] %v13224_v5 }
 0x253   :  { %v1543_v23 = vmax.f32 %v1487_v31, 0.0  ;;  %15989 = vst [vmem:[#allocation96_spill] sm:$0xff] %v13237_v42 }
 0x254   :  { %10687 = vmatpush3.bf16.msra.mxu0 %v1573_v39  ;;  %v1579_v28 = vpack.c.bf16 %v1549_v14, %v1546_v49  ;;  %v13233_v39 = vadd.f32 %v12869_v2, %v13212_v38  ;;  %v13244_v2 = vadd.f32 %v12878_v58, %v13209_v3 }
 0x255   :  { %v10678_v55 = vpop.f32.mrb[60].mxu1  ;;  %v1576_v54 = vpack.c.bf16 %v1543_v23, %v1540_v37  ;;  %v13249_v23 = vadd.f32 %v12885_v27, %v13212_v38  ;;  %v230_v27 = vadd.s32 16, %v12628_v24 }
 0x256   :  { %v1508_v51 = vadd.f32 %v10678_v55, %v13216_v10  ;;  %v1499_v47 = vpop.f32.mrb[61].mxu1  ;;  %15988 = vst [vmem:[#allocation95_spill] sm:$0xff] %v13233_v39  ;;  %15990 = vst [vmem:[#allocation97_spill] sm:$0xff] %v13244_v2 }
 0x257   :  { %v1500_v34 = vadd.f32 %v1499_v47, %v13220_v61  ;;  %v10679_v43 = vpop.f32.mrb[62].mxu1  ;;  %10688 = vmatprep.subr.bf16.mxu0 %v1576_v54  ;;  %15991 = vst [vmem:[#allocation98_spill] sm:$0xff] %v13249_v23  ;;  %vm250_vm0 = vcmp.eq.s32.totalorder %v230_v27, %v13133_v63 }
 0x258   :  { %v1511_v53 = vadd.f32 %v10679_v43, %v13228_v45  ;;  %v1502_v31 = vpop.f32.mrb[63].mxu1  ;;  %10689 = vmatpush3.bf16.msra.mxu0 %v1576_v54  ;;  %v1338_v49 = vpop.f32.mrb[48].mxu0  ;;  %v1558_v14 = vmax.f32 %v1508_v51, 0.0 }
 0x259   :  { %v1503_v4 = vadd.f32 %v1502_v31, %v13237_v42  ;;  %10690 = vmatprep.subr.bf16.mxu0 %v1579_v28  ;;  %v1339_v56 = vadd.f32 %v1338_v49, %v13224_v5  ;;  %v1340_v15 = vpop.f32.mrb[49].mxu0  ;;  %v1552_v55 = vmax.f32 %v1500_v34, 0.0  ;;  %v13254_v31 = vadd.f32 %v12912_v36, %v13209_v3 }
 0x25a   :  { %v1561_v37 = vmax.f32 %v1511_v53, 0.0  ;;  %v1341_v54 = vadd.f32 %v1340_v15, %v13233_v39  ;;  %v1342_v43 = vpop.f32.mrb[50].mxu0  ;;  %v13260_v34 = vadd.s32 24, %v12628_v24  ;;  %v232_v39 = vadd.s32 32, %v12628_v24 }
 0x25b   :  { %v1555_v47 = vmax.f32 %v1503_v4, 0.0  ;;  %15992 = vst [vmem:[#allocation99_spill] sm:$0xff] %v13254_v31  ;;  %v1343_v58 = vadd.f32 %v1342_v43, %v13244_v2  ;;  %v1344_v51 = vpop.f32.mrb[51].mxu0  ;;  %v1514_v4 = vmax.f32 %v1339_v56, 0.0  ;;  %v233_v36 = vadd.s32 40, %v12628_v24 }
 0x25c   :  { %10691 = vmatpush3.bf16.msra.mxu0 %v1579_v28  ;;  %v1585_v53 = vpack.c.bf16 %v1561_v37, %v1558_v14  ;;  %v1345_v49 = vadd.f32 %v1344_v51, %v13249_v23  ;;  %15993 = vst [vmem:[#allocation100_spill] sm:$0xff] %v13260_v34  ;;  %v13266_v43 = vadd.f32 %v12923_v0, %v13212_v38  ;;  %v1515_v28 = vmax.f32 %v1341_v54, 0.0 }
 0x25d   :  { %v1582_v5 = vpack.c.bf16 %v1555_v47, %v1552_v55  ;;  %v1517_v15 = vmax.f32 %v1343_v58, 0.0  ;;  %vm251_vm1 = vcmp.eq.s32.totalorder %v13260_v34, %v13133_v63  ;;  %v13273_v56 = vadd.f32 %v12932_v30, %v13209_v3 }
 0x25e   :  { %15994 = vst [vmem:[#allocation101_spill] sm:$0xff] %v13266_v43  ;;  %v1518_v14 = vmax.f32 %v1345_v49, 0.0  ;;  %vm252_vm3 = vcmp.eq.s32.totalorder %v232_v39, %v13133_v63  ;;  %vm253_vm6 = vcmp.eq.s32.totalorder %v233_v36, %v13133_v63  ;;  %vm13286_vm9 = vmpackc.low %vm251_vm1, %vm250_vm0  ;;  %v15997_v30 = vmov 0 }
 0x25f   :  { %10692 = vmatprep.subr.bf16.mxu0 %v1582_v5  ;;  %v1562_v37 = vpack.c.bf16 %v1517_v15, %v1514_v4  ;;  %15995 = vst [vmem:[#allocation102_spill] sm:$0xff] %v13273_v56  ;;  %v15998_v30 = vsel %vm13286_vm9, 4294967295, %v15997_v30  ;;  %v13292_v39 = vadd.f32 %v12964_v60, %v13209_v3  ;;  %vm13295_vm11 = vmpackc.low %vm253_vm6, %vm252_vm3  ;;  %v16001_v15 = vmov 0 }
 0x260   :  { %10693 = vmatpush3.bf16.msra.mxu0 %v1582_v5  ;;  %v1348_v55 = vpop.f32.mrb[52].mxu0  ;;  %v1563_v47 = vpack.c.bf16 %v1518_v14, %v1515_v28  ;;  %v13280_v5 = vadd.f32 %v12937_v1, %v13212_v38  ;;  %15999 = vst [vmem:[#allocation104_spill] sm:$0xff] %v15998_v30  ;;  %v16002_v15 = vsel %vm13295_vm11, 4294967295, %v16001_v15  ;;  %v234_v36 = vadd.s32 48, %v12628_v24 }
 0x261   :  { %10694 = vmatprep.subr.bf16.mxu0 %v1585_v53  ;;  %v1349_v0 = vadd.f32 %v1348_v55, %v13254_v31  ;;  %v1350_v58 = vpop.f32.mrb[53].mxu0  ;;  %16000 = vst [vmem:[#allocation105_spill] sm:$0xff] %v13292_v39  ;;  %16003 = vst [vmem:[#allocation106_spill] sm:$0xff] %v16002_v15  ;;  %v236_v14 = vadd.s32 64, %v12628_v24  ;;  %v13305_v60 = vadd.f32 %v12975_v7, %v13212_v38 }
 0x262   :  { %15996 = vst [vmem:[#allocation103_spill] sm:$0xff] %v13280_v5  ;;  %v1351_v54 = vadd.f32 %v1350_v58, %v13266_v43  ;;  %v1352_v51 = vpop.f32.mrb[54].mxu0  ;;  %1586 = vmatprep.subr.bf16.mxu1 %v1563_v47  ;;  %vm254_vm12 = vcmp.eq.s32.totalorder %v234_v36, %v13133_v63  ;;  %v13317_v7 = vadd.f32 %v12982_v16, %v13209_v3  ;;  %v16007_v16 = vmov 0 }
 0x263   :  { %v1353_v49 = vadd.f32 %v1352_v51, %v13273_v56  ;;  %v1354_v4 = vpop.f32.mrb[55].mxu0  ;;  %1587 = vmatpush1.bf16.msra.mxu1 %v1562_v37  ;;  %v1520_v28 = vmax.f32 %v1349_v0, 0.0  ;;  %v237_v37 = vadd.s32 72, %v12628_v24  ;;  %16004 = vst [vmem:[#allocation107_spill] sm:$0xff] %v13305_v60  ;;  %vm256_vm1 = vcmp.eq.s32.totalorder %v236_v14, %v13133_v63 }
 0x264   :  { %10695 = vmatpush3.bf16.msra.mxu0 %v1585_v53  ;;  %v1355_v1 = vadd.f32 %v1354_v4, %v13280_v5  ;;  %v235_v53 = vadd.s32 56, %v12628_v24  ;;  %v1521_v55 = vmax.f32 %v1351_v54, 0.0  ;;  %16005 = vst [vmem:[#allocation108_spill] sm:$0xff] %v13317_v7  ;;  %v13324_v4 = vadd.f32 %v12987_v6, %v13212_v38 }
 0x265   :  { %v1523_v27 = vmax.f32 %v1353_v49, 0.0  ;;  %vm257_vm3 = vcmp.eq.s32.totalorder %v237_v37, %v13133_v63  ;;  %v16011_v6 = vmov 0  ;;  %v238_v37 = vadd.s32 80, %v12628_v24 }
 0x266   :  { %v1524_v47 = vmax.f32 %v1355_v1, 0.0  ;;  %vm255_vm0 = vcmp.eq.s32.totalorder %v235_v53, %v13133_v63  ;;  %16006 = vst [vmem:[#allocation109_spill] sm:$0xff] %v13324_v4  ;;  %vm13337_vm10 = vmpackc.low %vm257_vm3, %vm256_vm1 }
 0x267   :  { %10697 = vmatmul.mubr.msk.bf16.vlgmr.msra.gmra.mrb[80].mxu0 %vm13286_vm9, %v15938_v57  ;;  %v1565_v58 = vpack.c.bf16 %v1523_v27, %v1520_v28  ;;  %vm13328_vm6 = vmpackc.low %vm255_vm0, %vm254_vm12  ;;  %v13334_v27 = vadd.f32 %v13056_v48, %v13209_v3  ;;  %v16012_v6 = vsel %vm13337_vm10, 4294967295, %v16011_v6  ;;  %v13347_v48 = vadd.f32 %v13061_v11, %v13212_v38 }
 0x268   :  { %10700 = vmatprep.mubr.msk.bf16.mxu0 %vm13295_vm11, %v15938_v57  ;;  %v1358_v0 = vpop.f32.mrb[56].mxu0  ;;  %v1566_v51 = vpack.c.bf16 %v1524_v47, %v1521_v55  ;;  %v16008_v16 = vsel %vm13328_vm6, 4294967295, %v16007_v16  ;;  %16013 = vst [vmem:[#allocation112_spill] sm:$0xff] %v16012_v6  ;;  %v239_v55 = vadd.s32 88, %v12628_v24  ;;  %vm258_vm12 = vcmp.eq.s32.totalorder %v238_v37, %v13133_v63 }
 0x269   :  { %v1359_v54 = vadd.f32 %v1358_v0, %v13292_v39  ;;  %v1360_v49 = vpop.f32.mrb[57].mxu0  ;;  %16009 = vst [vmem:[#allocation110_spill] sm:$0xff] %v16008_v16  ;;  %16010 = vst [vmem:[#allocation111_spill] sm:$0xff] %v13334_v27  ;;  %v240_v0 = vadd.s32 96, %v12628_v24  ;;  %v13359_v11 = vadd.f32 %v13064_v46, %v13209_v3  ;;  %v16017_v46 = vmov 0 }
 0x26a   :  { %v1361_v1 = vadd.f32 %v1360_v49, %v13305_v60  ;;  %v1362_v36 = vpop.f32.mrb[58].mxu0  ;;  %1588 = vmatprep.subr.bf16.mxu1 %v1566_v51  ;;  %v241_v51 = vadd.s32 104, %v12628_v24  ;;  %16014 = vst [vmem:[#allocation113_spill] sm:$0xff] %v13347_v48  ;;  %vm259_vm0 = vcmp.eq.s32.totalorder %v239_v55, %v13133_v63 }
 0x26b   :  { %v1363_v53 = vadd.f32 %v1362_v36, %v13317_v7  ;;  %v1364_v28 = vpop.f32.mrb[59].mxu0  ;;  %1589 = vmatpush1.bf16.msra.mxu1 %v1565_v58  ;;  %v1526_v47 = vmax.f32 %v1359_v54, 0.0  ;;  %16015 = vst [vmem:[#allocation114_spill] sm:$0xff] %v13359_v11  ;;  %vm260_vm1 = vcmp.eq.s32.totalorder %v240_v0, %v13133_v63  ;;  %vm13370_vm5 = vmpackc.low %vm259_vm0, %vm258_vm12 }
 0x26c   :  { %v1365_v14 = vadd.f32 %v1364_v28, %v13324_v4  ;;  %v1527_v49 = vmax.f32 %v1361_v1, 0.0  ;;  %vm261_vm3 = vcmp.eq.s32.totalorder %v241_v51, %v13133_v63  ;;  %v16018_v46 = vsel %vm13370_vm5, 4294967295, %v16017_v46 }
 0x26d   :  { %v1529_v58 = vmax.f32 %v1363_v53, 0.0  ;;  %16019 = vst [vmem:[#allocation116_spill] sm:$0xff] %v16018_v46  ;;  %vm13375_vm4 = vmpackc.low %vm261_vm3, %vm260_vm1  ;;  %v16020_v51 = vmov 0  ;;  %v16074_v46 = vld [vmem:[#allocation46_spill] sm:$0xff] }
 0x26e   :  { %v1530_v36 = vmax.f32 %v1365_v14, 0.0  ;;  %v16021_v51 = vsel %vm13375_vm4, 4294967295, %v16020_v51 }
 0x26f   :  { %10701 = vmatmul.mubr.msk.bf16.gmra.mrb[84].mxu0 %vm13328_vm6, %v15938_v57  ;;  %v1568_v28 = vpack.c.bf16 %v1529_v58, %v1526_v47  ;;  %v13366_v47 = vadd.f32 %v13066_v35, %v13212_v38  ;;  %16022 = vst [vmem:[#allocation117_spill] sm:$0xff] %v16021_v51  ;;  %v242_v35 = vadd.s32 112, %v12628_v24  ;;  %v16070_v51 = vld [vmem:[#allocation40_spill] sm:$0xff] }
 0x270   :  { %10704 = vmatprep.mubr.msk.bf16.mxu0 %vm13337_vm10, %v15938_v57  ;;  %v1368_v54 = vpop.f32.mrb[60].mxu0  ;;  %v1569_v53 = vpack.c.bf16 %v1530_v36, %v1527_v49  ;;  %v243_v36 = vadd.s32 120, %v12628_v24 }
 0x271   :  { %v1369_v1 = vadd.f32 %v1368_v54, %v13334_v27  ;;  %v1370_v14 = vpop.f32.mrb[61].mxu0  ;;  %16016 = vst [vmem:[#allocation115_spill] sm:$0xff] %v13366_v47  ;;  %v13383_v54 = vadd.f32 %v13068_v20, %v13209_v3  ;;  %vm262_vm12 = vcmp.eq.s32.totalorder %v242_v35, %v13133_v63 }
 0x272   :  { %v1371_v58 = vadd.f32 %v1370_v14, %v13347_v48  ;;  %v1372_v37 = vpop.f32.mrb[62].mxu0  ;;  %1590 = vmatprep.subr.bf16.mxu1 %v1569_v53  ;;  %v13387_v14 = vadd.f32 %v13073_v52, %v13212_v38  ;;  %vm263_vm0 = vcmp.eq.s32.totalorder %v243_v36, %v13133_v63  ;;  %v13399_v52 = vadd.f32 %v13076_v13, %v13209_v3  ;;  %v16086_v48 = vld [vmem:[#allocation24_spill] sm:$0xff] }
 0x273   :  { %v1373_v55 = vadd.f32 %v1372_v37, %v13359_v11  ;;  %v1374_v49 = vpop.f32.mrb[63].mxu0  ;;  %1591 = vmatpush1.bf16.msra.mxu1 %v1568_v28  ;;  %16023 = vst [vmem:[#allocation118_spill] sm:$0xff] %v13383_v54  ;;  %v1532_v53 = vmax.f32 %v1369_v1, 0.0  ;;  %vm13408_vm1 = vmpackc.low %vm263_vm0, %vm262_vm12  ;;  %v16027_v63 = vmov 0  ;;  %v13415_v36 = vadd.f32 %v13080_v22, %v13209_v3  ;;  %v16082_v11 = vld [vmem:[#allocation22_spill] sm:$0xff] }
 0x274   :  { %v1375_v0 = vadd.f32 %v1374_v49, %v13366_v47  ;;  %16024 = vst [vmem:[#allocation119_spill] sm:$0xff] %v13387_v14  ;;  %v1533_v37 = vmax.f32 %v1371_v58, 0.0  ;;  %16025 = vst [vmem:[#allocation120_spill] sm:$0xff] %v13399_v52  ;;  %v16028_v63 = vsel %vm13408_vm1, 4294967295, %v16027_v63  ;;  %v16078_v47 = vld [vmem:[#allocation48_spill] sm:$0xff] }
 0x275   :  { %v1535_v28 = vmax.f32 %v1373_v55, 0.0  ;;  %v13404_v55 = vadd.f32 %v13078_v41, %v13212_v38  ;;  %16029 = vst [vmem:[#allocation122_spill] sm:$0xff] %v16028_v63  ;;  %16030 = vst [vmem:[#allocation123_spill] sm:$0xff] %v13415_v36 }
 0x276   :  { %v1536_v49 = vmax.f32 %v1375_v0, 0.0 }
 0x277   :  { %10705 = vmatmul.mubr.msk.bf16.gmra.mrb[88].mxu0 %vm13370_vm5, %v15938_v57  ;;  %v1571_v34 = vpack.c.bf16 %v1535_v28, %v1532_v53  ;;  %16026 = vst [vmem:[#allocation121_spill] sm:$0xff] %v13404_v55 }
 0x278   :  { %10708 = vmatprep.mubr.msk.bf16.mxu0 %vm13375_vm4, %v15938_v57  ;;  %v1378_v24 = vpop.f32.mrb[64].mxu0  ;;  %v1572_v20 = vpack.c.bf16 %v1536_v49, %v1533_v37  ;;  %v13419_v49 = vadd.f32 %v13085_v17, %v13212_v38  ;;  %v13431_v17 = vadd.f32 %v13090_v8, %v13212_v38  ;;  %v13442_v8 = vadd.f32 %v13097_v59, %v13212_v38 }
 0x279   :  { %v1379_v1 = vadd.f32 %v1378_v24, %v13383_v54  ;;  %v1380_v58 = vpop.f32.mrb[65].mxu0  ;;  %v16066_v54 = vld [vmem:[#allocation38_spill] sm:$0xff] }
 0x27a   :  { %v1381_v0 = vadd.f32 %v1380_v58, %v13387_v14  ;;  %v1382_v53 = vpop.f32.mrb[66].mxu0  ;;  %1592 = vmatprep.subr.bf16.mxu1 %v1572_v20  ;;  %16031 = vst [vmem:[#allocation124_spill] sm:$0xff] %v13419_v49  ;;  %16033 = vst [vmem:[#allocation126_spill] sm:$0xff] %v13431_v17  ;;  %v16062_v14 = vld [vmem:[#allocation32_spill] sm:$0xff] }
 0x27b   :  { %v1383_v28 = vadd.f32 %v1382_v53, %v13399_v52  ;;  %v1384_v35 = vpop.f32.mrb[67].mxu0  ;;  %1593 = vmatpush1.bf16.msra.mxu1 %v1571_v34  ;;  %v1538_v41 = vmax.f32 %v1379_v1, 0.0  ;;  %16035 = vst [vmem:[#allocation128_spill] sm:$0xff] %v13442_v8  ;;  %v16058_v52 = vld [vmem:[#allocation30_spill] sm:$0xff] }
 0x27c   :  { %v1385_v13 = vadd.f32 %v1384_v35, %v13404_v55  ;;  %v1539_v24 = vmax.f32 %v1381_v0, 0.0  ;;  %v13426_v35 = vadd.f32 %v13088_v25, %v13209_v3  ;;  %v13438_v25 = vadd.f32 %v13092_v18, %v13209_v3  ;;  %v16038_v18 = vld [vmem:[#allocation78_spill] sm:$0xff] }
 0x27d   :  { %v1541_v37 = vmax.f32 %v1383_v28, 0.0 }
 0x27e   :  { %v1542_v20 = vmax.f32 %v1385_v13, 0.0  ;;  %16032 = vst [vmem:[#allocation125_spill] sm:$0xff] %v13426_v35  ;;  %16034 = vst [vmem:[#allocation127_spill] sm:$0xff] %v13438_v25 }
 0x27f   :  { %10709 = vmatmul.mubr.msk.bf16.gmra.mrb[92].mxu0 %vm13408_vm1, %v15938_v57  ;;  %v1574_v34 = vpack.c.bf16 %v1541_v37, %v1538_v41 }
 0x280   :  { %v1388_v58 = vpop.f32.mrb[68].mxu0  ;;  %v1575_v53 = vpack.c.bf16 %v1542_v20, %v1539_v24 }
 0x281   :  { %v1389_v22 = vadd.f32 %v1388_v58, %v13415_v36  ;;  %v1390_v1 = vpop.f32.mrb[69].mxu0 }
 0x282   :  { %v1391_v0 = vadd.f32 %v1390_v1, %v13419_v49  ;;  %v1392_v28 = vpop.f32.mrb[70].mxu0  ;;  %1594 = vmatprep.subr.bf16.mxu1 %v1575_v53 }
 0x283   :  { %v1393_v13 = vadd.f32 %v1392_v28, %v13426_v35  ;;  %v1394_v41 = vpop.f32.mrb[71].mxu0  ;;  %1595 = vmatpush1.bf16.msra.mxu1 %v1574_v34  ;;  %v1544_v24 = vmax.f32 %v1389_v22, 0.0  ;;  %v16036_v28 = vld [vmem:[#allocation77_spill] sm:$0xff]  ;;  %v13451_v22 = vadd.f32 %v16038_v18, %v13212_v38 }
 0x284   :  { %v1395_v37 = vadd.f32 %v1394_v41, %v13431_v17  ;;  %v1545_v58 = vmax.f32 %v1391_v0, 0.0  ;;  %v13446_v34 = vadd.f32 %v16036_v28, %v13209_v3  ;;  %v16042_v28 = vld [vmem:[#allocation80_spill] sm:$0xff] }
 0x285   :  { %v1547_v20 = vmax.f32 %v1393_v13, 0.0  ;;  %16039 = vst [vmem:[#allocation78_spill] sm:$0xff] %v13451_v22  ;;  %v13462_v18 = vadd.f32 %v16042_v28, %v13212_v38 }
 0x286   :  { %v1548_v1 = vmax.f32 %v1395_v37, 0.0  ;;  %16037 = vst [vmem:[#allocation77_spill] sm:$0xff] %v13446_v34 }
 0x287   :  { %v1577_v49 = vpack.c.bf16 %v1547_v20, %v1544_v24  ;;  %v16040_v20 = vld [vmem:[#allocation79_spill] sm:$0xff]  ;;  %16043 = vst [vmem:[#allocation80_spill] sm:$0xff] %v13462_v18 }
 0x288   :  { %v1398_v53 = vpop.f32.mrb[72].mxu0  ;;  %v1578_v36 = vpack.c.bf16 %v1548_v1, %v1545_v58  ;;  %v13458_v58 = vadd.f32 %v16040_v20, %v13209_v3  ;;  %v16046_v20 = vld [vmem:[#allocation82_spill] sm:$0xff] }
 0x289   :  { %v1399_v41 = vadd.f32 %v1398_v53, %v13438_v25  ;;  %v1400_v17 = vpop.f32.mrb[73].mxu0 }
 0x28a   :  { %v1401_v13 = vadd.f32 %v1400_v17, %v13442_v8  ;;  %v1402_v59 = vpop.f32.mrb[74].mxu0  ;;  %1596 = vmatprep.subr.bf16.mxu1 %v1578_v36  ;;  %16041 = vst [vmem:[#allocation79_spill] sm:$0xff] %v13458_v58 }
 0x28b   :  { %v1403_v0 = vadd.f32 %v1402_v59, %v13446_v34  ;;  %v1404_v37 = vpop.f32.mrb[75].mxu0  ;;  %1597 = vmatpush1.bf16.msra.mxu1 %v1577_v49  ;;  %v1550_v1 = vmax.f32 %v1399_v41, 0.0  ;;  %v16044_v59 = vld [vmem:[#allocation81_spill] sm:$0xff]  ;;  %v13471_v41 = vadd.f32 %v16046_v20, %v13212_v38  ;;  %v11607_v20 = vld [vmem:[#allocation7 + $0x18] ss:$12 sps:$4 sm:$0xff]  }
 0x28c   :  { %v1405_v24 = vadd.f32 %v1404_v37, %v13451_v22  ;;  %v1551_v25 = vmax.f32 %v1401_v13, 0.0  ;;  %v13466_v49 = vadd.f32 %v16044_v59, %v13209_v3  ;;  %v11990_v38 = vld [vmem:[#allocation7 + $0x484] ss:$12 sps:$4 sm:$0xff]  }
 0x28d   :  { %v1553_v53 = vmax.f32 %v1403_v0, 0.0  ;;  %16047 = vst [vmem:[#allocation82_spill] sm:$0xff] %v13471_v41 }
 0x28e   :  { %v1554_v17 = vmax.f32 %v1405_v24, 0.0  ;;  %16045 = vst [vmem:[#allocation81_spill] sm:$0xff] %v13466_v49 }
 0x28f   :  { %v1580_v8 = vpack.c.bf16 %v1553_v53, %v1550_v1 }
 0x290   :  { %v1408_v36 = vpop.f32.mrb[76].mxu0  ;;  %v1581_v35 = vpack.c.bf16 %v1554_v17, %v1551_v25 }
 0x291   :  { %v1409_v37 = vadd.f32 %v1408_v36, %v13458_v58  ;;  %v1410_v22 = vpop.f32.mrb[77].mxu0 }
 0x292   :  { %v1411_v0 = vadd.f32 %v1410_v22, %v13462_v18  ;;  %v1412_v28 = vpop.f32.mrb[78].mxu0  ;;  %1598 = vmatprep.subr.bf16.mxu1 %v1581_v35  ;;  %v16049_v22 = vmov 0   ;;  %v11606_v35 = vld [vmem:[#allocation7 + $0x4] ss:$12 sps:$4 sm:$0xff]  }
 0x293   :  { %v1413_v13 = vadd.f32 %v1412_v28, %v13466_v49  ;;  %v1414_v24 = vpop.f32.mrb[79].mxu0  ;;  %1599 = vmatpush1.bf16.msra.mxu1 %v1580_v8  ;;  %v1556_v1 = vmax.f32 %v1409_v37, 0.0  ;;  %v11604_v8 = vld [vmem:[#allocation7] ss:$12 sps:$4 sm:$0xff]   ;;  %v11609_v37 = vld [vmem:[#allocation7 + $0x1c] ss:$12 sps:$4 sm:$0xff]  }
 0x294   :  { %v1415_v25 = vadd.f32 %v1414_v24, %v13471_v41  ;;  %v1557_v53 = vmax.f32 %v1411_v0, 0.0  ;;  %v11612_v0 = vld [vmem:[#allocation7 + $0x34] ss:$12 sps:$4 sm:$0xff]   ;;  %v11610_v28 = vld [vmem:[#allocation7 + $0x30] ss:$12 sps:$4 sm:$0xff]  }
 0x295   :  { %v1559_v3 = vmax.f32 %v1413_v13, 0.0  ;;  %v11615_v13 = vld [vmem:[#allocation7 + $0x4c] ss:$12 sps:$4 sm:$0xff]   ;;  %v11613_v24 = vld [vmem:[#allocation7 + $0x48] ss:$12 sps:$4 sm:$0xff]  }
 0x296   :  { %v1560_v17 = vmax.f32 %v1415_v25, 0.0  ;;  %v11618_v25 = vld [vmem:[#allocation7 + $0x64] ss:$12 sps:$4 sm:$0xff]  }
 0x297   :  { %v1583_v36 = vpack.c.bf16 %v1559_v3, %v1556_v1  ;;  %v11616_v1 = vld [vmem:[#allocation7 + $0x60] ss:$12 sps:$4 sm:$0xff]   ;;  %v11621_v3 = vld [vmem:[#allocation7 + $0x7c] ss:$12 sps:$4 sm:$0xff]  }
 0x298   :  { %v1584_v59 = vpack.c.bf16 %v1560_v17, %v1557_v53  ;;  %v11619_v53 = vld [vmem:[#allocation7 + $0x78] ss:$12 sps:$4 sm:$0xff]   ;;  %v11624_v17 = vld [vmem:[#allocation7 + $0x94] ss:$12 sps:$4 sm:$0xff]  }
 0x29a   :  { %1600 = vmatprep.subr.bf16.mxu1 %v1584_v59  ;;  %v11627_v59 = vld [vmem:[#allocation7 + $0xac] ss:$12 sps:$4 sm:$0xff]  }
 0x29b   :  { %1601 = vmatpush1.bf16.msra.mxu1 %v1583_v36  ;;  %v11622_v36 = vld [vmem:[#allocation7 + $0x90] ss:$12 sps:$4 sm:$0xff]  }
 0x29c   :  { %2378 = vmatprep.subr.bf16.mxu1 %v11606_v35  ;;  %v11625_v35 = vld [vmem:[#allocation7 + $0xa8] ss:$12 sps:$4 sm:$0xff]  }
 0x29e   :  { %9364 = vmatmul.mubr.msk.bf16.vlgmr.msra.gmra.mrb[64].mxu1 %vm13138_vm15, %v15938_v57 }
 0x29f   :  { %1628 = vmatprep.mubr.bf16.mxu1 %v16049_v22  ;;  %2379 = vmatpush1.bf16.msra.mxu1 %v11604_v8  ;;  %v11630_v8 = vld [vmem:[#allocation7 + $0xc4] ss:$12 sps:$4 sm:$0xff]  }
 0x2a0   :  { %2380 = vmatprep.subr.bf16.mxu1 %v11609_v37  ;;  %v11631_v37 = vld [vmem:[#allocation7 + $0xc8] ss:$12 sps:$4 sm:$0xff]  }
 0x2a1   :  { %10023 = vmatprep.subr.bf16.mxu0 %v11631_v37  ;;  %v11643_v37 = vld [vmem:[#allocation7 + $0x108] ss:$12 sps:$4 sm:$0xff]  }
 0x2a3   :  { %2381 = vmatpush1.bf16.msra.mxu1 %v11607_v20  ;;  %v11632_v20 = vld [vmem:[#allocation7 + $0x8] ss:$12 sps:$4 sm:$0xff]  }
 0x2a4   :  { %2382 = vmatprep.subr.bf16.mxu1 %v11612_v0  ;;  %v11628_v0 = vld [vmem:[#allocation7 + $0xc0] ss:$12 sps:$4 sm:$0xff]   ;;  %10024 = vmatpush3.bf16.msra.mxu0 %v11632_v20  ;;  %v11650_v20 = vld [vmem:[#allocation7 + $0x124] ss:$12 sps:$4 sm:$0xff]  }
 0x2a6   :  { %9366 = vmatmul.mubr.msk.bf16.gmra.mrb[68].mxu1 %vm13286_vm9, %v15938_v57 }
 0x2a7   :  { %1638 = vmatprep.mubr.bf16.mxu1 %v16049_v22  ;;  %2383 = vmatpush1.bf16.msra.mxu1 %v11610_v28  ;;  %v11636_v28 = vld [vmem:[#allocation7 + $0xe0] ss:$12 sps:$4 sm:$0xff]  }
 0x2a8   :  { %2384 = vmatprep.subr.bf16.mxu1 %v11615_v13  ;;  %v11635_v13 = vld [vmem:[#allocation7 + $0xdc] ss:$12 sps:$4 sm:$0xff]   ;;  %10025 = vmatprep.subr.bf16.mxu0 %v11636_v28  ;;  %v11656_v28 = vld [vmem:[#allocation7 + $0x140] ss:$12 sps:$4 sm:$0xff]  }
 0x2ab   :  { %2385 = vmatpush1.bf16.msra.mxu1 %v11613_v24  ;;  %v11637_v24 = vld [vmem:[#allocation7 + $0x20] ss:$12 sps:$4 sm:$0xff]  }
 0x2ac   :  { %2386 = vmatprep.subr.bf16.mxu1 %v11618_v25  ;;  %v11641_v25 = vld [vmem:[#allocation7 + $0xf8] ss:$12 sps:$4 sm:$0xff]   ;;  %10026 = vmatpush3.bf16.msra.mxu0 %v11637_v24  ;;  %v11655_v24 = vld [vmem:[#allocation7 + $0x13c] ss:$12 sps:$4 sm:$0xff]  }
 0x2ad   :  { %10027 = vmatprep.subr.bf16.mxu0 %v11641_v25  ;;  %v11657_v25 = vld [vmem:[#allocation7 + $0x80] ss:$12 sps:$4 sm:$0xff]  }
 0x2ae   :  { %9368 = vmatmul.mubr.msk.bf16.gmra.mrb[72].mxu1 %vm13295_vm11, %v15938_v57 }
 0x2af   :  { %1648 = vmatprep.mubr.bf16.mxu1 %v16049_v22  ;;  %2387 = vmatpush1.bf16.msra.mxu1 %v11616_v1  ;;  %v11633_v1 = vld [vmem:[#allocation7 + $0xd8] ss:$12 sps:$4 sm:$0xff]  }
 0x2b0   :  { %2388 = vmatprep.subr.bf16.mxu1 %v11621_v3  ;;  %v11640_v3 = vld [vmem:[#allocation7 + $0xf4] ss:$12 sps:$4 sm:$0xff]  }
 0x2b3   :  { %2389 = vmatpush1.bf16.msra.mxu1 %v11619_v53  ;;  %v11642_v53 = vld [vmem:[#allocation7 + $0x38] ss:$12 sps:$4 sm:$0xff]  }
 0x2b4   :  { %2390 = vmatprep.subr.bf16.mxu1 %v11624_v17  ;;  %v11646_v17 = vld [vmem:[#allocation7 + $0x110] ss:$12 sps:$4 sm:$0xff]   ;;  %10028 = vmatpush3.bf16.msra.mxu0 %v11642_v53  ;;  %v11661_v53 = vld [vmem:[#allocation7 + $0x158] ss:$12 sps:$4 sm:$0xff]  }
 0x2b5   :  { %10029 = vmatprep.subr.bf16.mxu0 %v11646_v17  ;;  %v11658_v17 = vld [vmem:[#allocation7 + $0x150] ss:$12 sps:$4 sm:$0xff]  }
 0x2b6   :  { %9370 = vmatmul.mubr.msk.bf16.gmra.mrb[76].mxu1 %vm13328_vm6, %v15938_v57 }
 0x2b7   :  { %1658 = vmatprep.mubr.bf16.mxu1 %v16049_v22  ;;  %2391 = vmatpush1.bf16.msra.mxu1 %v11622_v36  ;;  %v11638_v36 = vld [vmem:[#allocation7 + $0xf0] ss:$12 sps:$4 sm:$0xff]  }
 0x2b8   :  { %2392 = vmatprep.subr.bf16.mxu1 %v11627_v59  ;;  %v11645_v59 = vld [vmem:[#allocation7 + $0x10c] ss:$12 sps:$4 sm:$0xff]  }
 0x2bb   :  { %2393 = vmatpush1.bf16.msra.mxu1 %v11625_v35  ;;  %v11647_v35 = vld [vmem:[#allocation7 + $0x50] ss:$12 sps:$4 sm:$0xff]  }
 0x2bc   :  { %2394 = vmatprep.subr.bf16.mxu1 %v11630_v8  ;;  %v11651_v8 = vld [vmem:[#allocation7 + $0x128] ss:$12 sps:$4 sm:$0xff]   ;;  %10030 = vmatpush3.bf16.msra.mxu0 %v11647_v35  ;;  %v11666_v35 = vld [vmem:[#allocation7 + $0x170] ss:$12 sps:$4 sm:$0xff]  }
 0x2bd   :  { %10031 = vmatprep.subr.bf16.mxu0 %v11651_v8  ;;  %v11663_v8 = vld [vmem:[#allocation7 + $0x168] ss:$12 sps:$4 sm:$0xff]  }
 0x2be   :  { %9372 = vmatmul.mubr.msk.bf16.gmra.mrb[80].mxu1 %vm13337_vm10, %v15938_v57 }
 0x2bf   :  { %1668 = vmatprep.mubr.bf16.mxu1 %v16049_v22  ;;  %2395 = vmatpush1.bf16.msra.mxu1 %v11628_v0  ;;  %v11652_v0 = vld [vmem:[#allocation7 + $0x68] ss:$12 sps:$4 sm:$0xff]  }
 0x2c0   :  { %2396 = vmatprep.subr.bf16.mxu1 %v11635_v13  ;;  %v11648_v13 = vld [vmem:[#allocation7 + $0x120] ss:$12 sps:$4 sm:$0xff]   ;;  %10032 = vmatpush3.bf16.msra.mxu0 %v11652_v0  ;;  %v13507_v0 = vld [vmem:[#allocation7 + $0x188] ss:$12 sps:$4 sm:$0xff]  }
 0x2c1   :  { %10033 = vmatprep.subr.bf16.mxu0 %v11656_v28 }
 0x2c3   :  { %2397 = vmatpush1.bf16.msra.mxu1 %v11633_v1  ;;  %v11653_v1 = vld [vmem:[#allocation7 + $0x138] ss:$12 sps:$4 sm:$0xff]  }
 0x2c4   :  { %2398 = vmatprep.subr.bf16.mxu1 %v11640_v3  ;;  %10034 = vmatpush3.bf16.msra.mxu0 %v11657_v25  ;;  %v11660_v3 = vld [vmem:[#allocation7 + $0x154] ss:$12 sps:$4 sm:$0xff]  }
 0x2c5   :  { %10035 = vmatprep.subr.bf16.mxu0 %v11661_v53  ;;  %v16050_v25 = vld [vmem:[#allocation23_spill] sm:$0xff] }
 0x2c6   :  { %9374 = vmatmul.mubr.msk.bf16.gmra.mrb[84].mxu1 %vm13370_vm5, %v15938_v57  ;;  %v16052_v53 = vld [vmem:[#allocation27_spill] sm:$0xff] }
 0x2c7   :  { %1678 = vmatprep.mubr.bf16.mxu1 %v16049_v22  ;;  %2399 = vmatpush1.bf16.msra.mxu1 %v11638_v36  ;;  %v11662_v36 = vld [vmem:[#allocation7 + $0x98] ss:$12 sps:$4 sm:$0xff]  }
 0x2c8   :  { %2400 = vmatprep.subr.bf16.mxu1 %v11645_v59  ;;  %10036 = vmatpush3.bf16.msra.mxu0 %v11662_v36  ;;  %v11665_v59 = vld [vmem:[#allocation7 + $0x16c] ss:$12 sps:$4 sm:$0xff]  }
 0x2c9   :  { %10037 = vmatprep.subr.bf16.mxu0 %v11666_v35 }
 0x2cb   :  { %2401 = vmatpush1.bf16.msra.mxu1 %v11643_v37  ;;  %v11667_v37 = vld [vmem:[#allocation7 + $0xb0] ss:$12 sps:$4 sm:$0xff]  }
 0x2cc   :  { %2402 = vmatprep.subr.bf16.mxu1 %v11650_v20  ;;  %10038 = vmatpush3.bf16.msra.mxu0 %v11667_v37  ;;  %v11670_v20 = vld [vmem:[#allocation7 + $0x184] ss:$12 sps:$4 sm:$0xff]  }
 0x2cd   :  { %10712 = vmatprep.subr.bf16.mxu0 %v13507_v0  ;;  %v16056_v37 = vld [vmem:[#allocation29_spill] sm:$0xff] }
 0x2ce   :  { %9376 = vmatmul.mubr.msk.bf16.gmra.mrb[88].mxu1 %vm13375_vm4, %v15938_v57  ;;  %v16057_v49 = vmax.f32 %v16056_v37, 0.0 }
 0x2cf   :  { %1688 = vmatprep.mubr.bf16.mxu1 %v16049_v22  ;;  %2403 = vmatpush1.bf16.msra.mxu1 %v11648_v13 }
 0x2d0   :  { %2404 = vmatprep.subr.bf16.mxu1 %v11655_v24 }
 0x2d3   :  { %2405 = vmatpush1.bf16.msra.mxu1 %v11653_v1  ;;  %v16051_v1 = vmax.f32 %v16050_v25, 0.0  ;;  %v16059_v25 = vmax.f32 %v16058_v52, 0.0  ;;  %v16067_v52 = vmax.f32 %v16066_v54, 0.0  ;;  %v16075_v54 = vmax.f32 %v16074_v46, 0.0 }
 0x2d4   :  { %2406 = vmatprep.subr.bf16.mxu1 %v11660_v3  ;;  %v16083_v46 = vmax.f32 %v16082_v11, 0.0 }
 0x2d6   :  { %9378 = vmatmul.mubr.msk.bf16.gmra.mrb[92].mxu1 %vm13408_vm1, %v15938_v57 }
 0x2d7   :  { %2407 = vmatpush1.bf16.msra.mxu1 %v11658_v17  ;;  %v16053_v17 = vmax.f32 %v16052_v53, 0.0 }
 0x2d8   :  { %2408 = vmatprep.subr.bf16.mxu1 %v11665_v59  ;;  %v16054_v59 = vld [vmem:[#allocation25_spill] sm:$0xff] }
 0x2d9   :  { %v16055_v35 = vmax.f32 %v16054_v59, 0.0  ;;  %v16063_v59 = vmax.f32 %v16062_v14, 0.0  ;;  %v16071_v14 = vmax.f32 %v16070_v51, 0.0  ;;  %v16079_v51 = vmax.f32 %v16078_v47, 0.0 }
 0x2da   :  { %v16087_v47 = vmax.f32 %v16086_v48, 0.0  ;;  %v16090_v48 = vld [vmem:[#allocation33_spill] sm:$0xff] }
 0x2db   :  { %2409 = vmatpush1.bf16.msra.mxu1 %v11663_v8 }
 0x2dc   :  { %2491 = vmatprep.subr.bf16.mxu1 %v11670_v20 }
 0x33a   :  { %v10698_v28 = vpop.f32.mrb[80].mxu0 }
 0x33b   :  { %v1733_v13 = vpop.f32.mrb[81].mxu0  ;;  %v1804_v3 = vadd.f32 %v10698_v28, %v16051_v1  ;;  %v16060_v1 = vld [vmem:[#allocation35_spill] sm:$0xff] }
 0x33c   :  { %v10699_v24 = vpop.f32.mrb[82].mxu0  ;;  %v1798_v8 = vadd.f32 %v1733_v13, %v16055_v35  ;;  %v16061_v53 = vmax.f32 %v16060_v1, 0.0  ;;  %v16064_v35 = vld [vmem:[#allocation37_spill] sm:$0xff] }
 0x33d   :  { %v1807_v36 = vadd.f32 %v10699_v24, %v16053_v17  ;;  %v1736_v41 = vpop.f32.mrb[83].mxu0  ;;  %v16065_v37 = vmax.f32 %v16064_v35, 0.0 }
 0x33e   :  { %v1801_v20 = vadd.f32 %v1736_v41, %v16057_v49 }
 0x33f   :  { %v13518_v18 = vpack.c.bf16 %v1807_v36, %v1804_v3 }
 0x340   :  { %v13520_v58 = vpack.c.bf16 %v1801_v20, %v1798_v8 }
 0x342   :  { %v10702_v34 = vpop.f32.mrb[84].mxu0 }
 0x343   :  { %v1749_v63 = vpop.f32.mrb[85].mxu0  ;;  %v1816_v28 = vadd.f32 %v10702_v34, %v16059_v25  ;;  %v16068_v25 = vld [vmem:[#allocation43_spill] sm:$0xff] }
 0x344   :  { %v10703_v55 = vpop.f32.mrb[86].mxu0  ;;  %v1810_v13 = vadd.f32 %v1749_v63, %v16063_v59  ;;  %v16069_v1 = vmax.f32 %v16068_v25, 0.0  ;;  %v16072_v59 = vld [vmem:[#allocation45_spill] sm:$0xff] }
 0x345   :  { %v1819_v24 = vadd.f32 %v10703_v55, %v16061_v53  ;;  %v1752_v17 = vpop.f32.mrb[87].mxu0  ;;  %v16073_v35 = vmax.f32 %v16072_v59, 0.0 }
 0x346   :  { %v1813_v49 = vadd.f32 %v1752_v17, %v16065_v37 }
 0x347   :  { %v13530_v41 = vpack.c.bf16 %v1819_v24, %v1816_v28 }
 0x348   :  { %v13532_v3 = vpack.c.bf16 %v1813_v49, %v1810_v13 }
 0x34a   :  { %v10706_v36 = vpop.f32.mrb[88].mxu0 }
 0x34b   :  { %v1765_v8 = vpop.f32.mrb[89].mxu0  ;;  %v1828_v34 = vadd.f32 %v10706_v36, %v16067_v52  ;;  %v16076_v52 = vld [vmem:[#allocation51_spill] sm:$0xff] }
 0x34c   :  { %v10707_v20 = vpop.f32.mrb[90].mxu0  ;;  %v1822_v63 = vadd.f32 %v1765_v8, %v16071_v14  ;;  %v16077_v25 = vmax.f32 %v16076_v52, 0.0  ;;  %v16080_v14 = vld [vmem:[#allocation53_spill] sm:$0xff] }
 0x34d   :  { %v1831_v55 = vadd.f32 %v10707_v20, %v16069_v1  ;;  %v1768_v53 = vpop.f32.mrb[91].mxu0  ;;  %v16081_v59 = vmax.f32 %v16080_v14, 0.0 }
 0x34e   :  { %v1825_v17 = vadd.f32 %v1768_v53, %v16073_v35 }
 0x34f   :  { %v13542_v28 = vpack.c.bf16 %v1831_v55, %v1828_v34 }
 0x350   :  { %v13544_v24 = vpack.c.bf16 %v1825_v17, %v1822_v63 }
 0x352   :  { %v10710_v13 = vpop.f32.mrb[92].mxu0 }
 0x353   :  { %v1781_v37 = vpop.f32.mrb[93].mxu0  ;;  %v1840_v36 = vadd.f32 %v10710_v13, %v16075_v54  ;;  %v16084_v54 = vld [vmem:[#allocation26_spill] sm:$0xff] }
 0x354   :  { %v10711_v49 = vpop.f32.mrb[94].mxu0  ;;  %v1834_v8 = vadd.f32 %v1781_v37, %v16079_v51  ;;  %v16085_v52 = vmax.f32 %v16084_v54, 0.0  ;;  %v16088_v51 = vld [vmem:[#allocation28_spill] sm:$0xff]  ;;  %v16092_v54 = vld [vmem:[#allocation34_spill] sm:$0xff] }
 0x355   :  { %v1843_v20 = vadd.f32 %v10711_v49, %v16077_v25  ;;  %v1784_v1 = vpop.f32.mrb[95].mxu0  ;;  %v16089_v14 = vmax.f32 %v16088_v51, 0.0 }
 0x356   :  { %v1837_v53 = vadd.f32 %v1784_v1, %v16081_v59  ;;  %v11673_v59 = vld [vmem:[#allocation7 + $0x19c] ss:$12 sps:$4 sm:$0xff]  }
 0x357   :  { %v13554_v34 = vpack.c.bf16 %v1843_v20, %v1840_v36 }
 0x358   :  { %v13556_v55 = vpack.c.bf16 %v1837_v53, %v1834_v8  ;;  %v11668_v8 = vld [vmem:[#allocation7 + $0x180] ss:$12 sps:$4 sm:$0xff]  }
 0x359   :  { %v11684_v53 = vld [vmem:[#allocation7 + $0x1a0] ss:$12 sps:$4 sm:$0xff]  }
 0x371   :  { %v1620_v63 = vpop.f32.mrb[64].mxu1 }
 0x372   :  { %v1622_v35 = vpop.f32.mrb[65].mxu1  ;;  %v1796_v13 = vadd.f32 %v1620_v63, %v16083_v46 }
 0x373   :  { %v1624_v17 = vpop.f32.mrb[66].mxu1  ;;  %v1797_v37 = vadd.f32 %v1622_v35, %v16087_v47  ;;  %v16091_v35 = vmax.f32 %v16090_v48, 0.0  ;;  %v11685_v47 = vld [vmem:[#allocation7 + $0x1b8] ss:$12 sps:$4 sm:$0xff]  }
 0x374   :  { %v1799_v49 = vadd.f32 %v1624_v17, %v16085_v52  ;;  %v1626_v25 = vpop.f32.mrb[67].mxu1  ;;  %v11671_v17 = vld [vmem:[#allocation7 + $0x198] ss:$12 sps:$4 sm:$0xff]  }
 0x375   :  { %v1800_v1 = vadd.f32 %v1626_v25, %v16089_v14  ;;  %v11676_v25 = vld [vmem:[#allocation7 + $0x1b4] ss:$12 sps:$4 sm:$0xff]  }
 0x376   :  { %v1844_v36 = vpack.c.bf16 %v1799_v49, %v1796_v13  ;;  %v16093_v13 = vmax.f32 %v16092_v54, 0.0  ;;  %v16098_v54 = vld [vmem:[#allocation41_spill] sm:$0xff] }
 0x377   :  { %v1845_v20 = vpack.c.bf16 %v1800_v1, %v1797_v37  ;;  %v16094_v37 = vld [vmem:[#allocation31_spill] sm:$0xff]  ;;  %v16096_v1 = vld [vmem:[#allocation36_spill] sm:$0xff] }
 0x378   :  { %v16095_v51 = vmax.f32 %v16094_v37, 0.0  ;;  %v11690_v37 = vld [vmem:[#allocation7 + $0x1e8] ss:$12 sps:$4 sm:$0xff]  }
 0x379   :  { %v1630_v27 = vpop.f32.mrb[68].mxu1  ;;  %2410 = vmatprep.mubr.bf16.mxu1 %v1845_v20  ;;  %2636 = vmatprep.mubr.bf16.mxu0 %v1845_v20 }
 0x37a   :  { %v1632_v11 = vpop.f32.mrb[69].mxu1  ;;  %2411 = vmatmul.mubr.bf16.vlgmr.msra.gmra.mrb[96].mxu1 %v1844_v36  ;;  %2637 = vmatmul.mubr.bf16.vlgmr.msra.gmra.mrb[96].mxu0 %v1844_v36  ;;  %v1802_v46 = vadd.f32 %v1630_v27, %v16091_v35  ;;  %v16097_v36 = vmax.f32 %v16096_v1, 0.0  ;;  %v11679_v27 = vld [vmem:[#allocation7 + $0x1cc] ss:$12 sps:$4 sm:$0xff]  }
 0x37b   :  { %v1634_v63 = vpop.f32.mrb[70].mxu1  ;;  %2492 = vmatpush1.bf16.msra.mxu1 %v11668_v8  ;;  %10713 = vmatpush3.bf16.msra.mxu0 %v13507_v0  ;;  %v1803_v14 = vadd.f32 %v1632_v11, %v16095_v51  ;;  %v11674_v0 = vld [vmem:[#allocation7 + $0x1b0] ss:$12 sps:$4 sm:$0xff]   ;;  %v11677_v11 = vld [vmem:[#allocation7 + $0x1c8] ss:$12 sps:$4 sm:$0xff]   ;;  %v16102_v51 = vld [vmem:[#allocation39_spill] sm:$0xff] }
 0x37c   :  { %v1805_v52 = vadd.f32 %v1634_v63, %v16093_v13  ;;  %v1636_v49 = vpop.f32.mrb[71].mxu1  ;;  %2493 = vmatprep.subr.bf16.mxu1 %v11673_v59  ;;  %10714 = vmatprep.subr.bf16.mxu0 %v11684_v53  ;;  %v11689_v63 = vld [vmem:[#allocation7 + $0x1d0] ss:$12 sps:$4 sm:$0xff]   ;;  %v16104_v1 = vld [vmem:[#allocation44_spill] sm:$0xff] }
 0x37d   :  { %v1806_v20 = vadd.f32 %v1636_v49, %v16097_v36  ;;  %v16105_v36 = vmax.f32 %v16104_v1, 0.0 }
 0x37e   :  { %v1847_v8 = vpack.c.bf16 %v1805_v52, %v1802_v46  ;;  %v16099_v46 = vmax.f32 %v16098_v54, 0.0 }
 0x37f   :  { %v1848_v6 = vpack.c.bf16 %v1806_v20, %v1803_v14  ;;  %2494 = vmatpush1.bf16.msra.mxu1 %v11671_v17  ;;  %10715 = vmatpush3.bf16.msra.mxu0 %v11684_v53  ;;  %v16100_v17 = vld [vmem:[#allocation42_spill] sm:$0xff] }
 0x380   :  { %2495 = vmatprep.subr.bf16.mxu1 %v11676_v25  ;;  %10716 = vmatprep.subr.bf16.mxu0 %v11685_v47  ;;  %v16101_v52 = vmax.f32 %v16100_v17, 0.0  ;;  %v11683_v25 = vld [vmem:[#allocation7 + $0x1e4] ss:$12 sps:$4 sm:$0xff]  }
 0x381   :  { %v1640_v48 = vpop.f32.mrb[72].mxu1  ;;  %2420 = vmatprep.mubr.bf16.mxu1 %v1848_v6  ;;  %2644 = vmatprep.mubr.bf16.mxu0 %v1848_v6  ;;  %v16103_v6 = vmax.f32 %v16102_v51, 0.0  ;;  %v16106_v17 = vld [vmem:[#allocation49_spill] sm:$0xff]  ;;  %v11695_v51 = vld [vmem:[#allocation7 + $0x218] ss:$12 sps:$4 sm:$0xff]  }
 0x382   :  { %v1642_v59 = vpop.f32.mrb[73].mxu1  ;;  %2421 = vmatmul.mubr.bf16.gmra.mrb[100].mxu1 %v1847_v8  ;;  %2645 = vmatmul.mubr.bf16.gmra.mrb[100].mxu0 %v1847_v8  ;;  %v1808_v13 = vadd.f32 %v1640_v48, %v16099_v46  ;;  %v11688_v48 = vld [vmem:[#allocation7 + $0x1fc] ss:$12 sps:$4 sm:$0xff]  }
 0x383   :  { %v1644_v35 = vpop.f32.mrb[74].mxu1  ;;  %2496 = vmatpush1.bf16.msra.mxu1 %v11674_v0  ;;  %10717 = vmatpush3.bf16.msra.mxu0 %v11685_v47  ;;  %v1809_v14 = vadd.f32 %v1642_v59, %v16103_v6  ;;  %v11681_v47 = vld [vmem:[#allocation7 + $0x1e0] ss:$12 sps:$4 sm:$0xff]   ;;  %v11686_v59 = vld [vmem:[#allocation7 + $0x1f8] ss:$12 sps:$4 sm:$0xff]  }
 0x384   :  { %v1811_v53 = vadd.f32 %v1644_v35, %v16101_v52  ;;  %v1646_v49 = vpop.f32.mrb[75].mxu1  ;;  %2497 = vmatprep.subr.bf16.mxu1 %v11679_v27  ;;  %10718 = vmatprep.subr.bf16.mxu0 %v11689_v63  ;;  %v11694_v35 = vld [vmem:[#allocation7 + $0x200] ss:$12 sps:$4 sm:$0xff]  }
 0x385   :  { %v1812_v20 = vadd.f32 %v1646_v49, %v16105_v36  ;;  %v16110_v6 = vld [vmem:[#allocation47_spill] sm:$0xff]  ;;  %v16112_v36 = vld [vmem:[#allocation52_spill] sm:$0xff] }
 0x386   :  { %v1850_v8 = vpack.c.bf16 %v1811_v53, %v1808_v13  ;;  %v16107_v13 = vmax.f32 %v16106_v17, 0.0 }
 0x387   :  { %v1851_v0 = vpack.c.bf16 %v1812_v20, %v1809_v14  ;;  %2498 = vmatpush1.bf16.msra.mxu1 %v11677_v11  ;;  %10719 = vmatpush3.bf16.msra.mxu0 %v11689_v63  ;;  %v16108_v11 = vld [vmem:[#allocation50_spill] sm:$0xff]  ;;  %v16111_v14 = vmax.f32 %v16110_v6, 0.0  ;;  %v16113_v20 = vmax.f32 %v16112_v36, 0.0 }
 0x388   :  { %2499 = vmatprep.subr.bf16.mxu1 %v11683_v25  ;;  %10720 = vmatprep.subr.bf16.mxu0 %v11690_v37  ;;  %v16109_v53 = vmax.f32 %v16108_v11, 0.0  ;;  %v11693_v25 = vld [vmem:[#allocation7 + $0x214] ss:$12 sps:$4 sm:$0xff]  }
 0x389   :  { %v1650_v54 = vpop.f32.mrb[76].mxu1  ;;  %2430 = vmatprep.mubr.bf16.mxu1 %v1851_v0  ;;  %2652 = vmatprep.mubr.bf16.mxu0 %v1851_v0  ;;  %v16114_v11 = vld [vmem:[#allocation55_spill] sm:$0xff] }
 0x38a   :  { %v1652_v27 = vpop.f32.mrb[77].mxu1  ;;  %2431 = vmatmul.mubr.bf16.gmra.mrb[104].mxu1 %v1850_v8  ;;  %2653 = vmatmul.mubr.bf16.gmra.mrb[104].mxu0 %v1850_v8  ;;  %v1814_v52 = vadd.f32 %v1650_v54, %v16107_v13  ;;  %v11698_v54 = vld [vmem:[#allocation7 + $0x22c] ss:$12 sps:$4 sm:$0xff]  }
 0x38b   :  { %v1654_v46 = vpop.f32.mrb[78].mxu1  ;;  %2500 = vmatpush1.bf16.msra.mxu1 %v11681_v47  ;;  %10721 = vmatpush3.bf16.msra.mxu0 %v11690_v37  ;;  %v1815_v1 = vadd.f32 %v1652_v27, %v16111_v14  ;;  %v11691_v37 = vld [vmem:[#allocation7 + $0x210] ss:$12 sps:$4 sm:$0xff]   ;;  %v11696_v27 = vld [vmem:[#allocation7 + $0x228] ss:$12 sps:$4 sm:$0xff]  }
 0x38c   :  { %v1817_v63 = vadd.f32 %v1654_v46, %v16109_v53  ;;  %v1656_v49 = vpop.f32.mrb[79].mxu1  ;;  %2501 = vmatprep.subr.bf16.mxu1 %v11688_v48  ;;  %10722 = vmatprep.subr.bf16.mxu0 %v11694_v35  ;;  %v11699_v46 = vld [vmem:[#allocation7 + $0x230] ss:$12 sps:$4 sm:$0xff]  }
 0x38d   :  { %v1818_v8 = vadd.f32 %v1656_v49, %v16113_v20 }
 0x38e   :  { %v1853_v0 = vpack.c.bf16 %v1817_v63, %v1814_v52  ;;  %v16115_v52 = vmax.f32 %v16114_v11, 0.0  ;;  %v16124_v11 = vld [vmem:[#allocation62_spill] sm:$0xff] }
 0x38f   :  { %v1854_v47 = vpack.c.bf16 %v1818_v8, %v1815_v1  ;;  %2502 = vmatpush1.bf16.msra.mxu1 %v11686_v59  ;;  %10723 = vmatpush3.bf16.msra.mxu0 %v11694_v35  ;;  %v16116_v59 = vld [vmem:[#allocation56_spill] sm:$0xff]  ;;  %v16120_v1 = vld [vmem:[#allocation57_spill] sm:$0xff] }
 0x390   :  { %2503 = vmatprep.subr.bf16.mxu1 %v11693_v25  ;;  %10724 = vmatprep.subr.bf16.mxu0 %v11695_v51  ;;  %v16117_v63 = vmax.f32 %v16116_v59, 0.0  ;;  %v16118_v25 = vld [vmem:[#allocation54_spill] sm:$0xff]  ;;  %v16121_v36 = vmax.f32 %v16120_v1, 0.0 }
 0x391   :  { %v1660_v17 = vpop.f32.mrb[80].mxu1  ;;  %2440 = vmatprep.mubr.bf16.mxu1 %v1854_v47  ;;  %2660 = vmatprep.mubr.bf16.mxu0 %v1854_v47  ;;  %v16119_v6 = vmax.f32 %v16118_v25, 0.0 }
 0x392   :  { %v1662_v48 = vpop.f32.mrb[81].mxu1  ;;  %2441 = vmatmul.mubr.bf16.gmra.mrb[108].mxu1 %v1853_v0  ;;  %2661 = vmatmul.mubr.bf16.gmra.mrb[108].mxu0 %v1853_v0  ;;  %v1820_v53 = vadd.f32 %v1660_v17, %v16115_v52  ;;  %v16122_v17 = vld [vmem:[#allocation61_spill] sm:$0xff]  ;;  %v16125_v52 = vmax.f32 %v16124_v11, 0.0 }
 0x393   :  { %v1664_v13 = vpop.f32.mrb[82].mxu1  ;;  %2504 = vmatpush1.bf16.msra.mxu1 %v11691_v37  ;;  %10725 = vmatpush3.bf16.msra.mxu0 %v11695_v51  ;;  %v1821_v14 = vadd.f32 %v1662_v48, %v16119_v6 }
 0x394   :  { %v1823_v35 = vadd.f32 %v1664_v13, %v16117_v63  ;;  %v1666_v49 = vpop.f32.mrb[83].mxu1  ;;  %2505 = vmatprep.subr.bf16.mxu1 %v11698_v54  ;;  %10726 = vmatprep.subr.bf16.mxu0 %v11699_v46  ;;  %v16123_v54 = vmax.f32 %v16122_v17, 0.0  ;;  %v16126_v63 = vld [vmem:[#allocation60_spill] sm:$0xff] }
 0x395   :  { %v1824_v20 = vadd.f32 %v1666_v49, %v16121_v36  ;;  %v16127_v49 = vmax.f32 %v16126_v63, 0.0 }
 0x396   :  { %v1856_v8 = vpack.c.bf16 %v1823_v35, %v1820_v53  ;;  %v16128_v35 = vld [vmem:[#allocation63_spill] sm:$0xff] }
 0x397   :  { %v1857_v0 = vpack.c.bf16 %v1824_v20, %v1821_v14  ;;  %2506 = vmatpush1.bf16.msra.mxu1 %v11696_v27  ;;  %10727 = vmatpush3.bf16.msra.mxu0 %v11699_v46  ;;  %v16129_v27 = vmax.f32 %v16128_v35, 0.0  ;;  %v16130_v20 = vld [vmem:[#allocation67_spill] sm:$0xff] }
 0x399   :  { %v1670_v51 = vpop.f32.mrb[84].mxu1  ;;  %2450 = vmatprep.mubr.bf16.mxu1 %v1857_v0  ;;  %2668 = vmatprep.mubr.bf16.mxu0 %v1857_v0 }
 0x39a   :  { %v1672_v47 = vpop.f32.mrb[85].mxu1  ;;  %2451 = vmatmul.mubr.bf16.gmra.mrb[112].mxu1 %v1856_v8  ;;  %2669 = vmatmul.mubr.bf16.gmra.mrb[112].mxu0 %v1856_v8  ;;  %v1826_v13 = vadd.f32 %v1670_v51, %v16123_v54  ;;  %v16131_v8 = vmax.f32 %v16130_v20, 0.0  ;;  %v16132_v51 = vld [vmem:[#allocation68_spill] sm:$0xff] }
 0x39b   :  { %v1674_v37 = vpop.f32.mrb[86].mxu1  ;;  %v1827_v53 = vadd.f32 %v1672_v47, %v16127_v49  ;;  %v16134_v47 = vld [vmem:[#allocation66_spill] sm:$0xff] }
 0x39c   :  { %v1829_v48 = vadd.f32 %v1674_v37, %v16125_v52  ;;  %v1676_v59 = vpop.f32.mrb[87].mxu1  ;;  %v16133_v37 = vmax.f32 %v16132_v51, 0.0  ;;  %v16135_v11 = vmax.f32 %v16134_v47, 0.0 }
 0x39d   :  { %v1830_v46 = vadd.f32 %v1676_v59, %v16129_v27  ;;  %v16136_v59 = vld [vmem:[#allocation69_spill] sm:$0xff] }
 0x39e   :  { %v1859_v25 = vpack.c.bf16 %v1829_v48, %v1826_v13  ;;  %v16137_v13 = vmax.f32 %v16136_v59, 0.0  ;;  %v11705_v59 = vld [vmem:[#allocation8 + $0x1c] ss:$12 sps:$4 sm:$0xff]  }
 0x39f   :  { %v1860_v6 = vpack.c.bf16 %v1830_v46, %v1827_v53  ;;  %v16138_v46 = vld [vmem:[#allocation73_spill] sm:$0xff] }
 0x3a1   :  { %v1680_v14 = vpop.f32.mrb[88].mxu1  ;;  %2460 = vmatprep.mubr.bf16.mxu1 %v1860_v6  ;;  %2676 = vmatprep.mubr.bf16.mxu0 %v1860_v6 }
 0x3a2   :  { %v1682_v1 = vpop.f32.mrb[89].mxu1  ;;  %2461 = vmatmul.mubr.bf16.gmra.mrb[116].mxu1 %v1859_v25  ;;  %2677 = vmatmul.mubr.bf16.gmra.mrb[116].mxu0 %v1859_v25  ;;  %v1832_v0 = vadd.f32 %v1680_v14, %v16131_v8  ;;  %v16139_v25 = vmax.f32 %v16138_v46, 0.0  ;;  %v16140_v14 = vld [vmem:[#allocation74_spill] sm:$0xff] }
 0x3a3   :  { %v1684_v36 = vpop.f32.mrb[90].mxu1  ;;  %v1833_v52 = vadd.f32 %v1682_v1, %v16135_v11  ;;  %v16142_v1 = vld [vmem:[#allocation72_spill] sm:$0xff] }
 0x3a4   :  { %v1835_v17 = vadd.f32 %v1684_v36, %v16133_v37  ;;  %v1686_v54 = vpop.f32.mrb[91].mxu1  ;;  %v16141_v36 = vmax.f32 %v16140_v14, 0.0  ;;  %v16143_v51 = vmax.f32 %v16142_v1, 0.0  ;;  %v11723_v46 = vld [vmem:[#allocation8 + $0xac] ss:$12 sps:$4 sm:$0xff]  }
 0x3a5   :  { %v1836_v48 = vadd.f32 %v1686_v54, %v16137_v13  ;;  %v16144_v54 = vld [vmem:[#allocation75_spill] sm:$0xff]  ;;  %v11706_v13 = vld [vmem:[#allocation8 + $0x30] ss:$12 sps:$4 sm:$0xff]  }
 0x3a6   :  { %v1862_v63 = vpack.c.bf16 %v1835_v17, %v1832_v0  ;;  %v16145_v0 = vmax.f32 %v16144_v54, 0.0  ;;  %v11724_v14 = vld [vmem:[#allocation8 + $0xc0] ss:$12 sps:$4 sm:$0xff]   ;;  %v11738_v54 = vld [vmem:[#allocation8 + $0x38] ss:$12 sps:$4 sm:$0xff]  }
 0x3a7   :  { %v1863_v49 = vpack.c.bf16 %v1836_v48, %v1833_v52  ;;  %v11703_v52 = vld [vmem:[#allocation8 + $0x18] ss:$12 sps:$4 sm:$0xff]   ;;  %v11733_v1 = vld [vmem:[#allocation8 + $0x20] ss:$12 sps:$4 sm:$0xff]  }
 0x3a8   :  { %v11711_v48 = vld [vmem:[#allocation8 + $0x4c] ss:$12 sps:$4 sm:$0xff]  }
 0x3a9   :  { %v1690_v53 = vpop.f32.mrb[92].mxu1  ;;  %2470 = vmatprep.mubr.bf16.mxu1 %v1863_v49  ;;  %2684 = vmatprep.mubr.bf16.mxu0 %v1863_v49  ;;  %v11712_v49 = vld [vmem:[#allocation8 + $0x60] ss:$12 sps:$4 sm:$0xff]  }
 0x3aa   :  { %v1692_v35 = vpop.f32.mrb[93].mxu1  ;;  %2471 = vmatmul.mubr.bf16.gmra.mrb[120].mxu1 %v1862_v63  ;;  %2685 = vmatmul.mubr.bf16.gmra.mrb[120].mxu0 %v1862_v63  ;;  %v1838_v6 = vadd.f32 %v1690_v53, %v16139_v25  ;;  %v11714_v63 = vld [vmem:[#allocation8 + $0x64] ss:$12 sps:$4 sm:$0xff]   ;;  %v11717_v53 = vld [vmem:[#allocation8 + $0x7c] ss:$12 sps:$4 sm:$0xff]  }
 0x3ab   :  { %v1694_v27 = vpop.f32.mrb[94].mxu1  ;;  %v1839_v37 = vadd.f32 %v1692_v35, %v16143_v51  ;;  %v11720_v35 = vld [vmem:[#allocation8 + $0x94] ss:$12 sps:$4 sm:$0xff]   ;;  %v11726_v25 = vld [vmem:[#allocation8 + $0xc4] ss:$12 sps:$4 sm:$0xff]  }
 0x3ac   :  { %v1841_v20 = vadd.f32 %v1694_v27, %v16141_v36  ;;  %v1696_v8 = vpop.f32.mrb[95].mxu1  ;;  %v11718_v27 = vld [vmem:[#allocation8 + $0x90] ss:$12 sps:$4 sm:$0xff]   ;;  %v11728_v36 = vld [vmem:[#allocation8 + $0x8] ss:$12 sps:$4 sm:$0xff]  }
 0x3ad   :  { %v1842_v17 = vadd.f32 %v1696_v8, %v16145_v0  ;;  %v11732_v8 = vld [vmem:[#allocation8 + $0xe0] ss:$12 sps:$4 sm:$0xff]   ;;  %v11739_v0 = vld [vmem:[#allocation8 + $0x108] ss:$12 sps:$4 sm:$0xff]  }
 0x3ae   :  { %v1865_v47 = vpack.c.bf16 %v1841_v20, %v1838_v6  ;;  %v11727_v6 = vld [vmem:[#allocation8 + $0xc8] ss:$12 sps:$4 sm:$0xff]  }
 0x3af   :  { %v1866_v11 = vpack.c.bf16 %v1842_v17, %v1839_v37  ;;  %10103 = vmatprep.subr.bf16.mxu1 %v11727_v6  ;;  %v11731_v20 = vld [vmem:[#allocation8 + $0xdc] ss:$12 sps:$4 sm:$0xff]   ;;  %v11736_v51 = vld [vmem:[#allocation8 + $0xf4] ss:$12 sps:$4 sm:$0xff]   ;;  %v11741_v17 = vld [vmem:[#allocation8 + $0x10c] ss:$12 sps:$4 sm:$0xff]  }
 0x3b0   :  { %v11734_v37 = vld [vmem:[#allocation8 + $0xf0] ss:$12 sps:$4 sm:$0xff]   ;;  %v13647_v6 = vld [vmem:[#allocation8 + $0x188] ss:$12 sps:$4 sm:$0xff]  }
 0x3b1   :  { %2480 = vmatprep.mubr.bf16.mxu1 %v1866_v11  ;;  %2692 = vmatprep.mubr.bf16.mxu0 %v1866_v11  ;;  %v11743_v11 = vld [vmem:[#allocation8 + $0x50] ss:$12 sps:$4 sm:$0xff]  }
 0x3b2   :  { %2481 = vmatmul.mubr.bf16.gmra.mrb[124].mxu1 %v1865_v47  ;;  %2693 = vmatmul.mubr.bf16.gmra.mrb[124].mxu0 %v1865_v47  ;;  %v11742_v47 = vld [vmem:[#allocation8 + $0x110] ss:$12 sps:$4 sm:$0xff]  }
 0x3b3   :  { %10728 = vmatprep.mubr.bf16.mxu0 %v13520_v58  ;;  %2523 = vmatprep.mubr.bf16.mxu1 %v16049_v22 }
 0x3ba   :  { %2524 = vmatmul.mubr.bf16.vlgmr.msra.gmra.mrb[96].mxu1 %v13520_v58  ;;  %10729 = vmatmul.mubr.bf16.vlgmr.msra.gmra.mrb[128].mxu0 %v13518_v18  ;;  %v11702_v58 = vld [vmem:[#allocation8 + $0x4] ss:$12 sps:$4 sm:$0xff]  }
 0x3bb   :  { %10732 = vmatprep.mubr.bf16.mxu0 %v13532_v3  ;;  %2533 = vmatprep.mubr.bf16.mxu1 %v16049_v22 }
 0x3bc   :  { %3380 = vmatprep.subr.bf16.mxu0 %v11702_v58  ;;  %10104 = vmatpush3.bf16.msra.mxu1 %v11728_v36  ;;  %v11746_v58 = vld [vmem:[#allocation8 + $0x124] ss:$12 sps:$4 sm:$0xff]  }
 0x3bd   :  { %10105 = vmatprep.subr.bf16.mxu1 %v11732_v8 }
 0x3c0   :  { %10106 = vmatpush3.bf16.msra.mxu1 %v11733_v1 }
 0x3c2   :  { %2534 = vmatmul.mubr.bf16.gmra.mrb[100].mxu1 %v13518_v18  ;;  %10733 = vmatmul.mubr.bf16.gmra.mrb[132].mxu0 %v13530_v41  ;;  %v11700_v18 = vld [vmem:[#allocation8] ss:$12 sps:$4 sm:$0xff]  }
 0x3c3   :  { %10736 = vmatprep.mubr.bf16.mxu0 %v13544_v24  ;;  %2543 = vmatprep.mubr.bf16.mxu1 %v16049_v22 }
 0x3c4   :  { %3381 = vmatpush1.bf16.msra.mxu0 %v11700_v18  ;;  %v11747_v18 = vld [vmem:[#allocation8 + $0x128] ss:$12 sps:$4 sm:$0xff]  }
 0x3c5   :  { %3382 = vmatprep.subr.bf16.mxu0 %v11705_v59  ;;  %v11748_v59 = vld [vmem:[#allocation8 + $0x68] ss:$12 sps:$4 sm:$0xff]  }
 0x3c8   :  { %3383 = vmatpush1.bf16.msra.mxu0 %v11703_v52  ;;  %v11744_v52 = vld [vmem:[#allocation8 + $0x120] ss:$12 sps:$4 sm:$0xff]  }
 0x3ca   :  { %2544 = vmatmul.mubr.bf16.gmra.mrb[104].mxu1 %v13532_v3  ;;  %10737 = vmatmul.mubr.bf16.gmra.mrb[136].mxu0 %v13542_v28  ;;  %v11708_v3 = vld [vmem:[#allocation8 + $0x34] ss:$12 sps:$4 sm:$0xff]  }
 0x3cb   :  { %10740 = vmatprep.mubr.bf16.mxu0 %v13556_v55  ;;  %2553 = vmatprep.mubr.bf16.mxu1 %v16049_v22 }
 0x3cc   :  { %3384 = vmatprep.subr.bf16.mxu0 %v11708_v3  ;;  %v11749_v3 = vld [vmem:[#allocation8 + $0x138] ss:$12 sps:$4 sm:$0xff]  }
 0x3cd   :  { %3385 = vmatpush1.bf16.msra.mxu0 %v11706_v13  ;;  %v11751_v13 = vld [vmem:[#allocation8 + $0x13c] ss:$12 sps:$4 sm:$0xff]  }
 0x3ce   :  { %3386 = vmatprep.subr.bf16.mxu0 %v11711_v48  ;;  %v11753_v48 = vld [vmem:[#allocation8 + $0x80] ss:$12 sps:$4 sm:$0xff]  }
 0x3d2   :  { %2554 = vmatmul.mubr.bf16.gmra.mrb[108].mxu1 %v13530_v41  ;;  %10741 = vmatmul.mubr.bf16.gmra.mrb[140].mxu0 %v13554_v34  ;;  %v11709_v41 = vld [vmem:[#allocation8 + $0x48] ss:$12 sps:$4 sm:$0xff]  }
 0x3d3   :  { %2563 = vmatprep.mubr.bf16.mxu1 %v16049_v22  ;;  %3387 = vmatpush1.bf16.msra.mxu0 %v11709_v41  ;;  %v11752_v41 = vld [vmem:[#allocation8 + $0x140] ss:$12 sps:$4 sm:$0xff]  }
 0x3d4   :  { %3388 = vmatprep.subr.bf16.mxu0 %v11714_v63  ;;  %v11756_v63 = vld [vmem:[#allocation8 + $0x154] ss:$12 sps:$4 sm:$0xff]  }
 0x3d7   :  { %3389 = vmatpush1.bf16.msra.mxu0 %v11712_v49  ;;  %v11757_v49 = vld [vmem:[#allocation8 + $0x158] ss:$12 sps:$4 sm:$0xff]  }
 0x3d8   :  { %3390 = vmatprep.subr.bf16.mxu0 %v11717_v53  ;;  %v11758_v53 = vld [vmem:[#allocation8 + $0x98] ss:$12 sps:$4 sm:$0xff]  }
 0x3da   :  { %2564 = vmatmul.mubr.bf16.gmra.mrb[112].mxu1 %v13544_v24  ;;  %v11715_v24 = vld [vmem:[#allocation8 + $0x78] ss:$12 sps:$4 sm:$0xff]  }
 0x3db   :  { %2573 = vmatprep.mubr.bf16.mxu1 %v16049_v22  ;;  %3391 = vmatpush1.bf16.msra.mxu0 %v11715_v24  ;;  %v11754_v24 = vld [vmem:[#allocation8 + $0x150] ss:$12 sps:$4 sm:$0xff]  }
 0x3dc   :  { %3392 = vmatprep.subr.bf16.mxu0 %v11720_v35  ;;  %v11761_v35 = vld [vmem:[#allocation8 + $0x16c] ss:$12 sps:$4 sm:$0xff]  }
 0x3df   :  { %3393 = vmatpush1.bf16.msra.mxu0 %v11718_v27  ;;  %v11762_v27 = vld [vmem:[#allocation8 + $0x170] ss:$12 sps:$4 sm:$0xff]  }
 0x3e0   :  { %3394 = vmatprep.subr.bf16.mxu0 %v11723_v46  ;;  %v11763_v46 = vld [vmem:[#allocation8 + $0xb0] ss:$12 sps:$4 sm:$0xff]  }
 0x3e2   :  { %2574 = vmatmul.mubr.bf16.gmra.mrb[116].mxu1 %v13542_v28  ;;  %v11721_v28 = vld [vmem:[#allocation8 + $0xa8] ss:$12 sps:$4 sm:$0xff]  }
 0x3e3   :  { %2583 = vmatprep.mubr.bf16.mxu1 %v16049_v22  ;;  %3395 = vmatpush1.bf16.msra.mxu0 %v11721_v28  ;;  %v11759_v28 = vld [vmem:[#allocation8 + $0x168] ss:$12 sps:$4 sm:$0xff]  }
 0x3e4   :  { %3396 = vmatprep.subr.bf16.mxu0 %v11726_v25  ;;  %v11766_v25 = vld [vmem:[#allocation8 + $0x184] ss:$12 sps:$4 sm:$0xff]  }
 0x3e7   :  { %3397 = vmatpush1.bf16.msra.mxu0 %v11724_v14 }
 0x3e8   :  { %3398 = vmatprep.subr.bf16.mxu0 %v11731_v20 }
 0x3ea   :  { %2584 = vmatmul.mubr.bf16.gmra.mrb[120].mxu1 %v13556_v55  ;;  %v11729_v55 = vld [vmem:[#allocation8 + $0xd8] ss:$12 sps:$4 sm:$0xff]  }
 0x3eb   :  { %2593 = vmatprep.mubr.bf16.mxu1 %v16049_v22  ;;  %3399 = vmatpush1.bf16.msra.mxu0 %v11729_v55 }
 0x3ec   :  { %3400 = vmatprep.subr.bf16.mxu0 %v11736_v51 }
 0x3ef   :  { %3401 = vmatpush1.bf16.msra.mxu0 %v11734_v37 }
 0x3f0   :  { %3402 = vmatprep.subr.bf16.mxu0 %v11741_v17 }
 0x3f2   :  { %2594 = vmatmul.mubr.bf16.gmra.mrb[124].mxu1 %v13554_v34  ;;  %v11737_v34 = vld [vmem:[#allocation8 + $0xf8] ss:$12 sps:$4 sm:$0xff]  }
 0x3f3   :  { %10107 = vmatprep.subr.bf16.mxu1 %v11737_v34  ;;  %3403 = vmatpush1.bf16.msra.mxu0 %v11739_v0 }
 0x3f4   :  { %10108 = vmatpush3.bf16.msra.mxu1 %v11738_v54  ;;  %3404 = vmatprep.subr.bf16.mxu0 %v11746_v58 }
 0x3f5   :  { %10109 = vmatprep.subr.bf16.mxu1 %v11742_v47 }
 0x3f7   :  { %3405 = vmatpush1.bf16.msra.mxu0 %v11744_v52 }
 0x3f8   :  { %10110 = vmatpush3.bf16.msra.mxu1 %v11743_v11  ;;  %3406 = vmatprep.subr.bf16.mxu0 %v11751_v13 }
 0x3f9   :  { %10111 = vmatprep.subr.bf16.mxu1 %v11747_v18 }
 0x3fb   :  { %3407 = vmatpush1.bf16.msra.mxu0 %v11749_v3 }
 0x3fc   :  { %10112 = vmatpush3.bf16.msra.mxu1 %v11748_v59  ;;  %3408 = vmatprep.subr.bf16.mxu0 %v11756_v63 }
 0x3fd   :  { %10113 = vmatprep.subr.bf16.mxu1 %v11752_v41 }
 0x3ff   :  { %3409 = vmatpush1.bf16.msra.mxu0 %v11754_v24 }
 0x400   :  { %10114 = vmatpush3.bf16.msra.mxu1 %v11753_v48  ;;  %3410 = vmatprep.subr.bf16.mxu0 %v11761_v35 }
 0x401   :  { %10115 = vmatprep.subr.bf16.mxu1 %v11757_v49 }
 0x403   :  { %3411 = vmatpush1.bf16.msra.mxu0 %v11759_v28 }
 0x404   :  { %10116 = vmatpush3.bf16.msra.mxu1 %v11758_v53  ;;  %3493 = vmatprep.subr.bf16.mxu0 %v11766_v25 }
 0x405   :  { %10117 = vmatprep.subr.bf16.mxu1 %v11762_v27 }
 0x408   :  { %10118 = vmatpush3.bf16.msra.mxu1 %v11763_v46 }
 0x409   :  { %10744 = vmatprep.subr.bf16.mxu1 %v13647_v6 }
 0x44d   :  { %v10039_v14 = vpop.f32.mrb[96].mxu0 }
 0x44e   :  { %v10040_v36 = vpop.f32.mrb[97].mxu0 }
 0x44f   :  { %v10041_v55 = vadd.f32 %v10040_v36, %v10039_v14  ;;  %v10042_v20 = vpop.f32.mrb[98].mxu0 }
 0x450   :  { %v10043_v8 = vpop.f32.mrb[99].mxu0 }
 0x451   :  { %v13650_v1 = vadd.f32 %v10043_v8, %v10042_v20 }
 0x455   :  { %v10045_v51 = vpop.f32.mrb[100].mxu0 }
 0x456   :  { %v10046_v34 = vpop.f32.mrb[101].mxu0 }
 0x457   :  { %v10047_v37 = vadd.f32 %v10046_v34, %v10045_v51  ;;  %v10048_v54 = vpop.f32.mrb[102].mxu0 }
 0x458   :  { %v10049_v0 = vpop.f32.mrb[103].mxu0 }
 0x459   :  { %v10050_v17 = vadd.f32 %v10049_v0, %v10048_v54  ;;  %v1964_v0 = vld [vmem:[%s15526_s10] sm:$0x7] }
 0x45d   :  { %v10051_v47 = vpop.f32.mrb[104].mxu0 }
 0x45e   :  { %v10052_v11 = vpop.f32.mrb[105].mxu0 }
 0x45f   :  { %v13652_v58 = vadd.f32 %v10052_v11, %v10051_v47  ;;  %v10054_v18 = vpop.f32.mrb[106].mxu0 }
 0x460   :  { %v10055_v52 = vpop.f32.mrb[107].mxu0 }
 0x461   :  { %v13654_v59 = vadd.f32 %v10055_v52, %v10054_v18 }
 0x465   :  { %v10057_v3 = vpop.f32.mrb[108].mxu0 }
 0x466   :  { %v10058_v13 = vpop.f32.mrb[109].mxu0 }
 0x467   :  { %v13656_v41 = vadd.f32 %v10058_v13, %v10057_v3  ;;  %v10060_v48 = vpop.f32.mrb[110].mxu0  ;;  %v1965_v3 = vunpack.c.l.bf16 %v1964_v0 }
 0x468   :  { %v10061_v63 = vpop.f32.mrb[111].mxu0 }
 0x469   :  { %v13658_v49 = vadd.f32 %v10061_v63, %v10060_v48  ;;  %v16146_v48 = vld [vmem:[#allocation20_spill] sm:$0xff] }
 0x46a   :  { %v1978_v63 = vrot.slane %v1965_v3, %v16146_v48 }
 0x46d   :  { %v10063_v24 = vpop.f32.mrb[112].mxu0 }
 0x46e   :  { %v10064_v53 = vpop.f32.mrb[113].mxu0 }
 0x46f   :  { %v13660_v35 = vadd.f32 %v10064_v53, %v10063_v24  ;;  %v10066_v27 = vpop.f32.mrb[114].mxu0  ;;  %v1970_v53 = vrot.slane %v1965_v3, %v12634_v26 }
 0x470   :  { %v10067_v28 = vpop.f32.mrb[115].mxu0 }
 0x471   :  { %v13662_v46 = vadd.f32 %v10067_v28, %v10066_v27 }
 0x475   :  { %v10069_v25 = vpop.f32.mrb[116].mxu0 }
 0x476   :  { %v10070_v14 = vpop.f32.mrb[117].mxu0 }
 0x477   :  { %v13664_v36 = vadd.f32 %v10070_v14, %v10069_v25  ;;  %v10072_v20 = vpop.f32.mrb[118].mxu0  ;;  %v1974_v25 = vrot.slane %v1965_v3, %v12640_v29 }
 0x478   :  { %v10073_v8 = vpop.f32.mrb[119].mxu0 }
 0x479   :  { %v13666_v51 = vadd.f32 %v10073_v8, %v10072_v20  ;;  %v13683_v8 = vrot.slane %v1978_v63, %v12634_v26 }
 0x47b   :  { %v2647_v0 = vadd.f32 %v10047_v37, %v13683_v8  ;;  %v2650_v63 = vadd.f32 %v10050_v17, %v13683_v8 }
 0x47d   :  { %v10075_v34 = vpop.f32.mrb[120].mxu0 }
 0x47e   :  { %v10076_v54 = vpop.f32.mrb[121].mxu0 }
 0x47f   :  { %v13671_v47 = vadd.f32 %v10076_v54, %v10075_v34  ;;  %v10078_v11 = vpop.f32.mrb[122].mxu0  ;;  %v13686_v34 = vrot.slane %v1970_v53, %v12634_v26  ;;  %v13689_v54 = vrot.slane %v1974_v25, %v12634_v26  ;;  %v2642_v25 = vadd.f32 %v13650_v1, %v13683_v8 }
 0x480   :  { %v10079_v18 = vpop.f32.mrb[123].mxu0 }
 0x481   :  { %v13673_v52 = vadd.f32 %v10079_v18, %v10078_v11 }
 0x485   :  { %v10081_v13 = vpop.f32.mrb[124].mxu0 }
 0x486   :  { %v10082_v24 = vpop.f32.mrb[125].mxu0 }
 0x487   :  { %v13677_v27 = vadd.f32 %v10082_v24, %v10081_v13  ;;  %v10084_v28 = vpop.f32.mrb[126].mxu0  ;;  %v2639_v13 = vadd.f32 %v10041_v55, %v13683_v8 }
 0x488   :  { %v10085_v14 = vpop.f32.mrb[127].mxu0 }
 0x489   :  { %v13680_v20 = vadd.f32 %v10085_v14, %v10084_v28 }
 0x48d   :  { %v2525_v11 = vpop.f32.mrb[96].mxu1  ;;  %v10730_v18 = vpop.f32.mrb[128].mxu0 }
 0x48e   :  { %v11123_v3 = vadd.f32 %v2525_v11, %v13686_v34  ;;  %v2744_v24 = vadd.f32 %v10730_v18, %v2647_v0  ;;  %v2527_v28 = vpop.f32.mrb[97].mxu1  ;;  %v2735_v14 = vpop.f32.mrb[129].mxu0 }
 0x48f   :  { %v11124_v16 = vadd.f32 %v2527_v28, %v13689_v54  ;;  %v2736_v53 = vadd.f32 %v2735_v14, %v2639_v13  ;;  %v2529_v4 = vpop.f32.mrb[98].mxu1  ;;  %v10731_v7 = vpop.f32.mrb[130].mxu0 }
 0x490   :  { %v11125_v37 = vadd.f32 %v2529_v4, %v13686_v34  ;;  %v2747_v60 = vadd.f32 %v10731_v7, %v2650_v63  ;;  %v2531_v39 = vpop.f32.mrb[99].mxu1  ;;  %v2738_v55 = vpop.f32.mrb[131].mxu0  ;;  %v2798_v18 = vmax.f32 %v11123_v3, 0.0  ;;  %v2806_v15 = vmax.f32 %v2744_v24, 0.0  ;;  %v11764_v3 = vld [vmem:[#allocation8 + $0x180] ss:$12 sps:$4 sm:$0xff]  }
 0x491   :  { %v11126_v11 = vadd.f32 %v2531_v39, %v13689_v54  ;;  %v2739_v0 = vadd.f32 %v2738_v55, %v2642_v25  ;;  %v2800_v5 = vmax.f32 %v2736_v53, 0.0  ;;  %v2799_v13 = vmax.f32 %v11124_v16, 0.0 }
 0x492   :  { %v2801_v30 = vmax.f32 %v11125_v37, 0.0  ;;  %v2809_v17 = vmax.f32 %v2747_v60, 0.0  ;;  %v2663_v4 = vadd.f32 %v13656_v41, %v13683_v8  ;;  %v2655_v39 = vadd.f32 %v13652_v58, %v13683_v8  ;;  %v11780_v37 = vld [vmem:[#allocation8 + $0x1a0] ss:$12 sps:$4 sm:$0xff]  }
 0x493   :  { %v2803_v28 = vmax.f32 %v2739_v0, 0.0  ;;  %v2802_v14 = vmax.f32 %v11126_v11, 0.0 }
 0x494   :  { %v2846_v56 = vpack.c.bf16 %v2801_v30, %v2798_v18  ;;  %v13700_v43 = vpack.c.bf16 %v2809_v17, %v2806_v15  ;;  %v2666_v30 = vadd.f32 %v13658_v49, %v13683_v8  ;;  %v11769_v15 = vld [vmem:[#allocation8 + $0x19c] ss:$12 sps:$4 sm:$0xff]  }
 0x495   :  { %v2535_v7 = vpop.f32.mrb[100].mxu1  ;;  %v10734_v1 = vpop.f32.mrb[132].mxu0  ;;  %v2847_v63 = vpack.c.bf16 %v2802_v14, %v2799_v13  ;;  %v13706_v24 = vpack.c.bf16 %v2803_v28, %v2800_v5  ;;  %v2658_v5 = vadd.f32 %v13654_v59, %v13683_v8  ;;  %v11767_v14 = vld [vmem:[#allocation8 + $0x198] ss:$12 sps:$4 sm:$0xff]  }
 0x496   :  { %v11127_v60 = vadd.f32 %v2535_v7, %v13686_v34  ;;  %v2760_v53 = vadd.f32 %v10734_v1, %v2663_v4  ;;  %v2537_v16 = vpop.f32.mrb[101].mxu1  ;;  %v2751_v25 = vpop.f32.mrb[133].mxu0  ;;  %v11772_v4 = vld [vmem:[#allocation8 + $0x1b4] ss:$12 sps:$4 sm:$0xff]   ;;  %v11781_v59 = vld [vmem:[#allocation8 + $0x1b8] ss:$12 sps:$4 sm:$0xff]  }
 0x497   :  { %v11128_v41 = vadd.f32 %v2537_v16, %v13689_v54  ;;  %v2752_v55 = vadd.f32 %v2751_v25, %v2655_v39  ;;  %v2539_v11 = vpop.f32.mrb[102].mxu1  ;;  %v10735_v0 = vpop.f32.mrb[134].mxu0  ;;  %3412 = vmatprep.mubr.bf16.mxu0 %v2847_v63  ;;  %3638 = vmatprep.mubr.bf16.mxu1 %v2847_v63 }
 0x498   :  { %v11129_v58 = vadd.f32 %v2539_v11, %v13686_v34  ;;  %v2763_v18 = vadd.f32 %v10735_v0, %v2666_v30  ;;  %v2541_v17 = vpop.f32.mrb[103].mxu1  ;;  %v2754_v28 = vpop.f32.mrb[135].mxu0  ;;  %3413 = vmatmul.mubr.bf16.vlgmr.msra.gmra.mrb[144].mxu0 %v2846_v56  ;;  %3639 = vmatmul.mubr.bf16.vlgmr.msra.gmra.mrb[128].mxu1 %v2846_v56  ;;  %v2818_v7 = vmax.f32 %v2760_v53, 0.0  ;;  %v2804_v39 = vmax.f32 %v11127_v60, 0.0  ;;  %v11770_v53 = vld [vmem:[#allocation8 + $0x1b0] ss:$12 sps:$4 sm:$0xff]  }
 0x499   :  { %v11130_v49 = vadd.f32 %v2541_v17, %v13689_v54  ;;  %v2755_v13 = vadd.f32 %v2754_v28, %v2658_v5  ;;  %3494 = vmatpush1.bf16.msra.mxu0 %v11764_v3  ;;  %10745 = vmatpush3.bf16.msra.mxu1 %v13647_v6  ;;  %v2812_v16 = vmax.f32 %v2752_v55, 0.0  ;;  %v2805_v30 = vmax.f32 %v11128_v41, 0.0  ;;  %v11775_v28 = vld [vmem:[#allocation8 + $0x1cc] ss:$12 sps:$4 sm:$0xff]  }
 0x49a   :  { %v2821_v1 = vmax.f32 %v2763_v18, 0.0  ;;  %v2807_v63 = vmax.f32 %v11129_v58, 0.0  ;;  %3495 = vmatprep.subr.bf16.mxu0 %v11769_v15  ;;  %10746 = vmatprep.subr.bf16.mxu1 %v11780_v37  ;;  %v2679_v56 = vadd.f32 %v13664_v36, %v13683_v8  ;;  %v2671_v6 = vadd.f32 %v13660_v35, %v13683_v8 }
 0x49b   :  { %v2815_v25 = vmax.f32 %v2755_v13, 0.0  ;;  %v2808_v11 = vmax.f32 %v11130_v49, 0.0  ;;  %v2682_v36 = vadd.f32 %v13666_v51, %v13683_v8  ;;  %v11785_v49 = vld [vmem:[#allocation8 + $0x1d0] ss:$12 sps:$4 sm:$0xff]  }
 0x49c   :  { %v2849_v0 = vpack.c.bf16 %v2807_v63, %v2804_v39  ;;  %v13719_v3 = vpack.c.bf16 %v2821_v1, %v2818_v7 }
 0x49d   :  { %v2545_v5 = vpop.f32.mrb[104].mxu1  ;;  %v10738_v17 = vpop.f32.mrb[136].mxu0  ;;  %v2850_v60 = vpack.c.bf16 %v2808_v11, %v2805_v30  ;;  %3496 = vmatpush1.bf16.msra.mxu0 %v11767_v14  ;;  %10747 = vmatpush3.bf16.msra.mxu1 %v11780_v37  ;;  %v13723_v15 = vpack.c.bf16 %v2815_v25, %v2812_v16  ;;  %v2674_v37 = vadd.f32 %v13662_v46, %v13683_v8  ;;  %v11773_v25 = vld [vmem:[#allocation8 + $0x1c8] ss:$12 sps:$4 sm:$0xff]   ;;  %v11779_v30 = vld [vmem:[#allocation8 + $0x1e4] ss:$12 sps:$4 sm:$0xff]  }
 0x49e   :  { %v11131_v41 = vadd.f32 %v2545_v5, %v13686_v34  ;;  %v2776_v55 = vadd.f32 %v10738_v17, %v2679_v56  ;;  %v2547_v58 = vpop.f32.mrb[105].mxu1  ;;  %v2767_v18 = vpop.f32.mrb[137].mxu0  ;;  %3497 = vmatprep.subr.bf16.mxu0 %v11772_v4  ;;  %10748 = vmatprep.subr.bf16.mxu1 %v11781_v59  ;;  %v11786_v46 = vld [vmem:[#allocation8 + $0x1e8] ss:$12 sps:$4 sm:$0xff]  }
 0x49f   :  { %v11132_v35 = vadd.f32 %v2547_v58, %v13689_v54  ;;  %v2768_v13 = vadd.f32 %v2767_v18, %v2671_v6  ;;  %v2549_v14 = vpop.f32.mrb[106].mxu1  ;;  %v10739_v7 = vpop.f32.mrb[138].mxu0  ;;  %3422 = vmatprep.mubr.bf16.mxu0 %v2850_v60  ;;  %3646 = vmatprep.mubr.bf16.mxu1 %v2850_v60 }
 0x4a0   :  { %v11133_v1 = vadd.f32 %v2549_v14, %v13686_v34  ;;  %v2779_v39 = vadd.f32 %v10739_v7, %v2682_v36  ;;  %v2551_v63 = vpop.f32.mrb[107].mxu1  ;;  %v2770_v16 = vpop.f32.mrb[139].mxu0  ;;  %3423 = vmatmul.mubr.bf16.gmra.mrb[148].mxu0 %v2849_v0  ;;  %3647 = vmatmul.mubr.bf16.gmra.mrb[132].mxu1 %v2849_v0  ;;  %v2830_v11 = vmax.f32 %v2776_v55, 0.0  ;;  %v2810_v5 = vmax.f32 %v11131_v41, 0.0  ;;  %v11777_v55 = vld [vmem:[#allocation8 + $0x1e0] ss:$12 sps:$4 sm:$0xff]  }
 0x4a1   :  { %v11134_v51 = vadd.f32 %v2551_v63, %v13689_v54  ;;  %v2771_v4 = vadd.f32 %v2770_v16, %v2674_v37  ;;  %3498 = vmatpush1.bf16.msra.mxu0 %v11770_v53  ;;  %10749 = vmatpush3.bf16.msra.mxu1 %v11781_v59  ;;  %v2824_v6 = vmax.f32 %v2768_v13, 0.0  ;;  %v2811_v58 = vmax.f32 %v11132_v35, 0.0  ;;  %v11790_v63 = vld [vmem:[#allocation8 + $0x200] ss:$12 sps:$4 sm:$0xff]  }
 0x4a2   :  { %v2833_v56 = vmax.f32 %v2779_v39, 0.0  ;;  %v2813_v17 = vmax.f32 %v11133_v1, 0.0  ;;  %3499 = vmatprep.subr.bf16.mxu0 %v11775_v28  ;;  %10750 = vmatprep.subr.bf16.mxu1 %v11785_v49  ;;  %v2695_v0 = vadd.f32 %v13677_v27, %v13683_v8  ;;  %v2687_v59 = vadd.f32 %v13671_v47, %v13683_v8  ;;  %v11784_v39 = vld [vmem:[#allocation8 + $0x1fc] ss:$12 sps:$4 sm:$0xff]  }
 0x4a3   :  { %v2827_v60 = vmax.f32 %v2771_v4, 0.0  ;;  %v2814_v18 = vmax.f32 %v11134_v51, 0.0  ;;  %v2698_v27 = vadd.f32 %v13680_v20, %v13683_v8 }
 0x4a4   :  { %v2852_v36 = vpack.c.bf16 %v2813_v17, %v2810_v5  ;;  %v13735_v14 = vpack.c.bf16 %v2833_v56, %v2830_v11  ;;  %v11782_v17 = vld [vmem:[#allocation8 + $0x1f8] ss:$12 sps:$4 sm:$0xff]  }
 0x4a5   :  { %v2555_v53 = vpop.f32.mrb[108].mxu1  ;;  %v10742_v7 = vpop.f32.mrb[140].mxu0  ;;  %v2853_v41 = vpack.c.bf16 %v2814_v18, %v2811_v58  ;;  %3500 = vmatpush1.bf16.msra.mxu0 %v11773_v25  ;;  %10751 = vmatpush3.bf16.msra.mxu1 %v11785_v49  ;;  %v13739_v28 = vpack.c.bf16 %v2827_v60, %v2824_v6  ;;  %v2690_v49 = vadd.f32 %v13673_v52, %v13683_v8  ;;  %v11789_v6 = vld [vmem:[#allocation8 + $0x214] ss:$12 sps:$4 sm:$0xff]   ;;  %v11791_v52 = vld [vmem:[#allocation8 + $0x218] ss:$12 sps:$4 sm:$0xff]  }
 0x4a6   :  { %v11135_v35 = vadd.f32 %v2555_v53, %v13686_v34  ;;  %v2792_v13 = vadd.f32 %v10742_v7, %v2695_v0  ;;  %v2557_v37 = vpop.f32.mrb[109].mxu1  ;;  %v2783_v1 = vpop.f32.mrb[141].mxu0  ;;  %3501 = vmatprep.subr.bf16.mxu0 %v11779_v30  ;;  %10752 = vmatprep.subr.bf16.mxu1 %v11786_v46 }
 0x4a7   :  { %v11136_v47 = vadd.f32 %v2557_v37, %v13689_v54  ;;  %v2784_v16 = vadd.f32 %v2783_v1, %v2687_v59  ;;  %v2559_v51 = vpop.f32.mrb[110].mxu1  ;;  %v10743_v4 = vpop.f32.mrb[142].mxu0  ;;  %3432 = vmatprep.mubr.bf16.mxu0 %v2853_v41  ;;  %3654 = vmatprep.mubr.bf16.mxu1 %v2853_v41 }
 0x4a8   :  { %v11137_v25 = vadd.f32 %v2559_v51, %v13686_v34  ;;  %v2795_v11 = vadd.f32 %v10743_v4, %v2698_v27  ;;  %v2561_v56 = vpop.f32.mrb[111].mxu1  ;;  %v2786_v5 = vpop.f32.mrb[143].mxu0  ;;  %3433 = vmatmul.mubr.bf16.gmra.mrb[152].mxu0 %v2852_v36  ;;  %3655 = vmatmul.mubr.bf16.gmra.mrb[136].mxu1 %v2852_v36  ;;  %v2842_v60 = vmax.f32 %v2792_v13, 0.0  ;;  %v2816_v18 = vmax.f32 %v11135_v35, 0.0  ;;  %v11794_v27 = vld [vmem:[#allocation8 + $0x22c] ss:$12 sps:$4 sm:$0xff]  }
 0x4a9   :  { %v11138_v20 = vadd.f32 %v2561_v56, %v13689_v54  ;;  %v2787_v30 = vadd.f32 %v2786_v5, %v2690_v49  ;;  %3502 = vmatpush1.bf16.msra.mxu0 %v11777_v55  ;;  %10753 = vmatpush3.bf16.msra.mxu1 %v11786_v46  ;;  %v2836_v8 = vmax.f32 %v2784_v16, 0.0  ;;  %v2817_v7 = vmax.f32 %v11136_v47, 0.0  ;;  %v11787_v55 = vld [vmem:[#allocation8 + $0x210] ss:$12 sps:$4 sm:$0xff]   ;;  %v11792_v49 = vld [vmem:[#allocation8 + $0x228] ss:$12 sps:$4 sm:$0xff]  }
 0x4aa   :  { %v2845_v58 = vmax.f32 %v2795_v11, 0.0  ;;  %v2819_v0 = vmax.f32 %v11137_v25, 0.0  ;;  %3503 = vmatprep.subr.bf16.mxu0 %v11784_v39  ;;  %10754 = vmatprep.subr.bf16.mxu1 %v11790_v63  ;;  %v11795_v39 = vld [vmem:[#allocation8 + $0x230] ss:$12 sps:$4 sm:$0xff]  }
 0x4ab   :  { %v2839_v53 = vmax.f32 %v2787_v30, 0.0  ;;  %v2820_v59 = vmax.f32 %v11138_v20, 0.0 }
 0x4ac   :  { %v2855_v41 = vpack.c.bf16 %v2819_v0, %v2816_v18  ;;  %v13749_v36 = vpack.c.bf16 %v2845_v58, %v2842_v60 }
 0x4ad   :  { %v2565_v37 = vpop.f32.mrb[112].mxu1  ;;  %v2856_v1 = vpack.c.bf16 %v2820_v59, %v2817_v7  ;;  %3504 = vmatpush1.bf16.msra.mxu0 %v11782_v17  ;;  %10755 = vmatpush3.bf16.msra.mxu1 %v11790_v63  ;;  %v13751_v46 = vpack.c.bf16 %v2839_v53, %v2836_v8 }
 0x4ae   :  { %v11139_v35 = vadd.f32 %v2565_v37, %v13686_v34  ;;  %v2567_v13 = vpop.f32.mrb[113].mxu1  ;;  %3505 = vmatprep.subr.bf16.mxu0 %v11789_v6  ;;  %10756 = vmatprep.subr.bf16.mxu1 %v11791_v52 }
 0x4af   :  { %v11140_v47 = vadd.f32 %v2567_v13, %v13689_v54  ;;  %v2569_v16 = vpop.f32.mrb[114].mxu1  ;;  %3442 = vmatprep.mubr.bf16.mxu0 %v2856_v1  ;;  %3662 = vmatprep.mubr.bf16.mxu1 %v2856_v1 }
 0x4b0   :  { %v11141_v51 = vadd.f32 %v2569_v16, %v13686_v34  ;;  %v2571_v4 = vpop.f32.mrb[115].mxu1  ;;  %3443 = vmatmul.mubr.bf16.gmra.mrb[156].mxu0 %v2855_v41  ;;  %3663 = vmatmul.mubr.bf16.gmra.mrb[140].mxu1 %v2855_v41  ;;  %v2822_v25 = vmax.f32 %v11139_v35, 0.0 }
 0x4b1   :  { %v11142_v63 = vadd.f32 %v2571_v4, %v13689_v54  ;;  %3506 = vmatpush1.bf16.msra.mxu0 %v11787_v55  ;;  %10757 = vmatpush3.bf16.msra.mxu1 %v11791_v52  ;;  %v2823_v56 = vmax.f32 %v11140_v47, 0.0 }
 0x4b2   :  { %v2825_v11 = vmax.f32 %v11141_v51, 0.0  ;;  %3507 = vmatprep.subr.bf16.mxu0 %v11794_v27  ;;  %10758 = vmatprep.subr.bf16.mxu1 %v11795_v39 }
 0x4b3   :  { %v2826_v5 = vmax.f32 %v11142_v63, 0.0 }
 0x4b4   :  { %v2858_v20 = vpack.c.bf16 %v2825_v11, %v2822_v25 }
 0x4b5   :  { %v2575_v30 = vpop.f32.mrb[116].mxu1  ;;  %v2859_v17 = vpack.c.bf16 %v2826_v5, %v2823_v56  ;;  %3508 = vmatpush1.bf16.msra.mxu0 %v11792_v49  ;;  %10759 = vmatpush3.bf16.msra.mxu1 %v11795_v39 }
 0x4b6   :  { %v11143_v6 = vadd.f32 %v2575_v30, %v13686_v34  ;;  %v2577_v60 = vpop.f32.mrb[117].mxu1 }
 0x4b7   :  { %v11144_v58 = vadd.f32 %v2577_v60, %v13689_v54  ;;  %v2579_v18 = vpop.f32.mrb[118].mxu1  ;;  %3452 = vmatprep.mubr.bf16.mxu0 %v2859_v17  ;;  %3670 = vmatprep.mubr.bf16.mxu1 %v2859_v17 }
 0x4b8   :  { %v11145_v0 = vadd.f32 %v2579_v18, %v13686_v34  ;;  %v2581_v52 = vpop.f32.mrb[119].mxu1  ;;  %3453 = vmatmul.mubr.bf16.gmra.mrb[160].mxu0 %v2858_v20  ;;  %3671 = vmatmul.mubr.bf16.gmra.mrb[144].mxu1 %v2858_v20  ;;  %v2828_v53 = vmax.f32 %v11143_v6, 0.0 }
 0x4b9   :  { %v11146_v8 = vadd.f32 %v2581_v52, %v13689_v54  ;;  %v2829_v59 = vmax.f32 %v11144_v58, 0.0 }
 0x4ba   :  { %v2831_v7 = vmax.f32 %v11145_v0, 0.0 }
 0x4bb   :  { %v2832_v41 = vmax.f32 %v11146_v8, 0.0 }
 0x4bc   :  { %v2861_v37 = vpack.c.bf16 %v2831_v7, %v2828_v53 }
 0x4bd   :  { %v2585_v1 = vpop.f32.mrb[120].mxu1  ;;  %v2862_v55 = vpack.c.bf16 %v2832_v41, %v2829_v59 }
 0x4be   :  { %v11147_v35 = vadd.f32 %v2585_v1, %v13686_v34  ;;  %v2587_v13 = vpop.f32.mrb[121].mxu1 }
 0x4bf   :  { %v11148_v27 = vadd.f32 %v2587_v13, %v13689_v54  ;;  %v2589_v39 = vpop.f32.mrb[122].mxu1  ;;  %3462 = vmatprep.mubr.bf16.mxu0 %v2862_v55  ;;  %3678 = vmatprep.mubr.bf16.mxu1 %v2862_v55 }
 0x4c0   :  { %v11149_v47 = vadd.f32 %v2589_v39, %v13686_v34  ;;  %v2591_v16 = vpop.f32.mrb[123].mxu1  ;;  %3463 = vmatmul.mubr.bf16.gmra.mrb[164].mxu0 %v2861_v37  ;;  %3679 = vmatmul.mubr.bf16.gmra.mrb[148].mxu1 %v2861_v37  ;;  %v2834_v4 = vmax.f32 %v11147_v35, 0.0 }
 0x4c1   :  { %v11150_v51 = vadd.f32 %v2591_v16, %v13689_v54  ;;  %v2835_v49 = vmax.f32 %v11148_v27, 0.0 }
 0x4c2   :  { %v2837_v63 = vmax.f32 %v11149_v47, 0.0 }
 0x4c3   :  { %v2838_v25 = vmax.f32 %v11150_v51, 0.0 }
 0x4c4   :  { %v2864_v11 = vpack.c.bf16 %v2837_v63, %v2834_v4 }
 0x4c5   :  { %v2595_v56 = vpop.f32.mrb[124].mxu1  ;;  %v2865_v5 = vpack.c.bf16 %v2838_v25, %v2835_v49 }
 0x4c6   :  { %v11151_v20 = vadd.f32 %v2595_v56, %v13686_v34  ;;  %v2597_v30 = vpop.f32.mrb[125].mxu1 }
 0x4c7   :  { %v11152_v17 = vadd.f32 %v2597_v30, %v13689_v54  ;;  %v2599_v6 = vpop.f32.mrb[126].mxu1  ;;  %3472 = vmatprep.mubr.bf16.mxu0 %v2865_v5  ;;  %3686 = vmatprep.mubr.bf16.mxu1 %v2865_v5 }
 0x4c8   :  { %v11153_v60 = vadd.f32 %v2599_v6, %v13686_v34  ;;  %v2601_v58 = vpop.f32.mrb[127].mxu1  ;;  %3473 = vmatmul.mubr.bf16.gmra.mrb[168].mxu0 %v2864_v11  ;;  %3687 = vmatmul.mubr.bf16.gmra.mrb[152].mxu1 %v2864_v11  ;;  %v2840_v0 = vmax.f32 %v11151_v20, 0.0 }
 0x4c9   :  { %v11154_v18 = vadd.f32 %v2601_v58, %v13689_v54  ;;  %v2841_v8 = vmax.f32 %v11152_v17, 0.0 }
 0x4ca   :  { %v2843_v52 = vmax.f32 %v11153_v60, 0.0 }
 0x4cb   :  { %v2844_v53 = vmax.f32 %v11154_v18, 0.0 }
 0x4cc   :  { %v2867_v7 = vpack.c.bf16 %v2843_v52, %v2840_v0 }
 0x4cd   :  { %v2868_v59 = vpack.c.bf16 %v2844_v53, %v2841_v8 }
 0x4cf   :  { %3482 = vmatprep.mubr.bf16.mxu0 %v2868_v59  ;;  %3694 = vmatprep.mubr.bf16.mxu1 %v2868_v59 }
 0x4d0   :  { %3483 = vmatmul.mubr.bf16.gmra.mrb[172].mxu0 %v2867_v7  ;;  %3695 = vmatmul.mubr.bf16.gmra.mrb[156].mxu1 %v2867_v7  ;;  %v2966_v7 = vld [vmem:[%s15528_s12] sm:$0x7] }
 0x4d1   :  { %10760 = vmatprep.mubr.bf16.mxu1 %v13706_v24  ;;  %3525 = vmatprep.mubr.bf16.mxu0 %v16049_v22 }
 0x4d8   :  { %3526 = vmatmul.mubr.bf16.vlgmr.msra.gmra.mrb[144].mxu0 %v13706_v24  ;;  %10761 = vmatmul.mubr.bf16.vlgmr.msra.gmra.mrb[160].mxu1 %v13700_v43 }
 0x4d9   :  { %10764 = vmatprep.mubr.bf16.mxu1 %v13723_v15  ;;  %3535 = vmatprep.mubr.bf16.mxu0 %v16049_v22 }
 0x4e0   :  { %3536 = vmatmul.mubr.bf16.gmra.mrb[148].mxu0 %v13700_v43  ;;  %10765 = vmatmul.mubr.bf16.gmra.mrb[164].mxu1 %v13719_v3 }
 0x4e1   :  { %10768 = vmatprep.mubr.bf16.mxu1 %v13739_v28  ;;  %3545 = vmatprep.mubr.bf16.mxu0 %v16049_v22 }
 0x4e8   :  { %3546 = vmatmul.mubr.bf16.gmra.mrb[152].mxu0 %v13723_v15  ;;  %10769 = vmatmul.mubr.bf16.gmra.mrb[168].mxu1 %v13735_v14 }
 0x4e9   :  { %10772 = vmatprep.mubr.bf16.mxu1 %v13751_v46  ;;  %3555 = vmatprep.mubr.bf16.mxu0 %v16049_v22 }
 0x4f0   :  { %3556 = vmatmul.mubr.bf16.gmra.mrb[156].mxu0 %v13719_v3  ;;  %10773 = vmatmul.mubr.bf16.gmra.mrb[172].mxu1 %v13749_v36 }
 0x4f1   :  { %3565 = vmatprep.mubr.bf16.mxu0 %v16049_v22  ;;  %3904 = vmatprep.mubr.bf16.mxu1 %v16049_v22 }
 0x4f8   :  { %3566 = vmatmul.mubr.bf16.gmra.mrb[160].mxu0 %v13739_v28 }
 0x4f9   :  { %3575 = vmatprep.mubr.bf16.mxu0 %v16049_v22 }
 0x500   :  { %3576 = vmatmul.mubr.bf16.gmra.mrb[164].mxu0 %v13735_v14 }
 0x501   :  { %3585 = vmatprep.mubr.bf16.mxu0 %v16049_v22 }
 0x508   :  { %3586 = vmatmul.mubr.bf16.gmra.mrb[168].mxu0 %v13751_v46 }
 0x509   :  { %3595 = vmatprep.mubr.bf16.mxu0 %v16049_v22 }
 0x510   :  { %3596 = vmatmul.mubr.bf16.gmra.mrb[172].mxu0 %v13749_v36 }
 0x511   :  { %10792 = vmatprep.mubr.msk.bf16.mxu0 %vm12621_vm2, %v15938_v57 }
 0x56b   :  { %v10119_v34 = vpop.f32.mrb[128].mxu1 }
 0x56c   :  { %v10120_v54 = vpop.f32.mrb[129].mxu1 }
 0x56d   :  { %v10121_v24 = vadd.f32 %v10120_v54, %v10119_v34  ;;  %v10122_v3 = vpop.f32.mrb[130].mxu1 }
 0x56e   :  { %v10123_v15 = vpop.f32.mrb[131].mxu1 }
 0x56f   :  { %v13797_v28 = vadd.f32 %v10123_v15, %v10122_v3  ;;  %v2967_v15 = vunpack.c.l.bf16 %v2966_v7 }
 0x573   :  { %v10125_v14 = vpop.f32.mrb[132].mxu1 }
 0x574   :  { %v10126_v41 = vpop.f32.mrb[133].mxu1 }
 0x575   :  { %v10127_v37 = vadd.f32 %v10126_v41, %v10125_v14  ;;  %v10128_v1 = vpop.f32.mrb[134].mxu1  ;;  %v2980_v41 = vrot.slane %v2967_v15, %v16146_v48 }
 0x576   :  { %v10129_v46 = vpop.f32.mrb[135].mxu1 }
 0x577   :  { %v10130_v55 = vadd.f32 %v10129_v46, %v10128_v1 }
 0x57b   :  { %v10131_v35 = vpop.f32.mrb[136].mxu1 }
 0x57c   :  { %v10132_v13 = vpop.f32.mrb[137].mxu1 }
 0x57d   :  { %v13799_v36 = vadd.f32 %v10132_v13, %v10131_v35  ;;  %v10134_v27 = vpop.f32.mrb[138].mxu1  ;;  %v2976_v13 = vrot.slane %v2967_v15, %v12640_v29 }
 0x57e   :  { %v10135_v39 = vpop.f32.mrb[139].mxu1 }
 0x57f   :  { %v13801_v47 = vadd.f32 %v10135_v39, %v10134_v27  ;;  %v2972_v39 = vrot.slane %v2967_v15, %v12634_v26 }
 0x583   :  { %v10137_v16 = vpop.f32.mrb[140].mxu1 }
 0x584   :  { %v10138_v51 = vpop.f32.mrb[141].mxu1 }
 0x585   :  { %v13803_v4 = vadd.f32 %v10138_v51, %v10137_v16  ;;  %v10140_v63 = vpop.f32.mrb[142].mxu1  ;;  %v13830_v51 = vrot.slane %v2980_v41, %v12634_v26 }
 0x586   :  { %v10141_v49 = vpop.f32.mrb[143].mxu1 }
 0x587   :  { %v13805_v25 = vadd.f32 %v10141_v49, %v10140_v63  ;;  %v13833_v63 = vrot.slane %v2976_v13, %v12634_v26  ;;  %v13836_v49 = vrot.slane %v2972_v39, %v12634_v26 }
 0x58b   :  { %v10143_v11 = vpop.f32.mrb[144].mxu1 }
 0x58c   :  { %v10144_v56 = vpop.f32.mrb[145].mxu1 }
 0x58d   :  { %v13807_v5 = vadd.f32 %v10144_v56, %v10143_v11  ;;  %v10146_v20 = vpop.f32.mrb[146].mxu1  ;;  %v3649_v11 = vadd.f32 %v10127_v37, %v13830_v51  ;;  %v3644_v37 = vadd.f32 %v13797_v28, %v13830_v51 }
 0x58e   :  { %v10147_v30 = vpop.f32.mrb[147].mxu1 }
 0x58f   :  { %v13809_v17 = vadd.f32 %v10147_v30, %v10146_v20  ;;  %v3641_v30 = vadd.f32 %v10121_v24, %v13830_v51 }
 0x593   :  { %v10149_v6 = vpop.f32.mrb[148].mxu1 }
 0x594   :  { %v10150_v60 = vpop.f32.mrb[149].mxu1 }
 0x595   :  { %v13811_v58 = vadd.f32 %v10150_v60, %v10149_v6  ;;  %v10152_v18 = vpop.f32.mrb[150].mxu1 }
 0x596   :  { %v10153_v0 = vpop.f32.mrb[151].mxu1 }
 0x597   :  { %v13813_v52 = vadd.f32 %v10153_v0, %v10152_v18  ;;  %v3652_v0 = vadd.f32 %v10130_v55, %v13830_v51 }
 0x59b   :  { %v10155_v8 = vpop.f32.mrb[152].mxu1 }
 0x59c   :  { %v10156_v53 = vpop.f32.mrb[153].mxu1 }
 0x59d   :  { %v13818_v59 = vadd.f32 %v10156_v53, %v10155_v8  ;;  %v10158_v34 = vpop.f32.mrb[154].mxu1 }
 0x59e   :  { %v10159_v54 = vpop.f32.mrb[155].mxu1 }
 0x59f   :  { %v13820_v3 = vadd.f32 %v10159_v54, %v10158_v34 }
 0x5a3   :  { %v10161_v14 = vpop.f32.mrb[156].mxu1 }
 0x5a4   :  { %v10162_v1 = vpop.f32.mrb[157].mxu1 }
 0x5a5   :  { %v13823_v46 = vadd.f32 %v10162_v1, %v10161_v14  ;;  %v10164_v35 = vpop.f32.mrb[158].mxu1 }
 0x5a6   :  { %v10165_v27 = vpop.f32.mrb[159].mxu1 }
 0x5a7   :  { %v13827_v16 = vadd.f32 %v10165_v27, %v10164_v35 }
 0x5ab   :  { %v3527_v56 = vpop.f32.mrb[144].mxu0  ;;  %v10762_v20 = vpop.f32.mrb[160].mxu1 }
 0x5ac   :  { %v13840_v6 = vadd.f32 %v10762_v20, %v3649_v11  ;;  %v3529_v60 = vpop.f32.mrb[145].mxu0  ;;  %v3737_v18 = vpop.f32.mrb[161].mxu1  ;;  %v13851_v54 = vadd.f32 %v3527_v56, %v13836_v49  ;;  %v3665_v20 = vadd.f32 %v13803_v4, %v13830_v51 }
 0x5ad   :  { %v13844_v8 = vadd.f32 %v3529_v60, %v13833_v63  ;;  %v13846_v53 = vadd.f32 %v3737_v18, %v3641_v30  ;;  %v3531_v7 = vpop.f32.mrb[146].mxu0  ;;  %v10763_v34 = vpop.f32.mrb[162].mxu1 }
 0x5ae   :  { %v13854_v24 = vadd.f32 %v3531_v7, %v13836_v49  ;;  %v13856_v15 = vadd.f32 %v10763_v34, %v3652_v0  ;;  %v3533_v14 = vpop.f32.mrb[147].mxu0  ;;  %v3740_v55 = vpop.f32.mrb[163].mxu1  ;;  %v15739_v56 = vmax.f32 %v13851_v54, 0.0  ;;  %v15740_v30 = vmax.f32 %v13840_v6, 0.0 }
 0x5af   :  { %v13859_v41 = vadd.f32 %v3533_v14, %v13833_v63  ;;  %v13861_v1 = vadd.f32 %v3740_v55, %v3644_v37  ;;  %v15737_v35 = vmax.f32 %v13846_v53, 0.0  ;;  %v15735_v39 = vmax.f32 %v13844_v8, 0.0 }
 0x5b0   :  { %v15738_v13 = vmax.f32 %v13854_v24, 0.0  ;;  %v3657_v0 = vadd.f32 %v13799_v36, %v13830_v51  ;;  %v3668_v55 = vadd.f32 %v13805_v25, %v13830_v51  ;;  %v3660_v36 = vadd.f32 %v13801_v47, %v13830_v51 }
 0x5b1   :  { %v15736_v27 = vmax.f32 %v13861_v1, 0.0  ;;  %v15734_v11 = vmax.f32 %v13859_v41, 0.0  ;;  %v16149_v25 = vmax.f32 %v13856_v15, 0.0 }
 0x5b3   :  { %v3537_v60 = vpop.f32.mrb[148].mxu0  ;;  %v10766_v18 = vpop.f32.mrb[164].mxu1  ;;  %v3849_v7 = vpack.c.bf16 %v15734_v11, %v15735_v39  ;;  %v3850_v34 = vpack.c.bf16 %v15736_v27, %v15737_v35  ;;  %v3848_v11 = vpack.c.bf16 %v15738_v13, %v15739_v56  ;;  %v3853_v27 = vpack.c.bf16 %v16149_v25, %v15740_v30 }
 0x5b4   :  { %v13883_v37 = vadd.f32 %v10766_v18, %v3665_v20  ;;  %v3539_v4 = vpop.f32.mrb[149].mxu0  ;;  %v3753_v14 = vpop.f32.mrb[165].mxu1  ;;  %v13903_v47 = vadd.f32 %v3537_v60, %v13836_v49  ;;  %v3673_v30 = vadd.f32 %v13807_v5, %v13830_v51  ;;  %v3676_v5 = vadd.f32 %v13809_v17, %v13830_v51 }
 0x5b5   :  { %v13894_v39 = vadd.f32 %v3539_v4, %v13833_v63  ;;  %v13896_v28 = vadd.f32 %v3753_v14, %v3657_v0  ;;  %v3541_v20 = vpop.f32.mrb[150].mxu0  ;;  %v10767_v18 = vpop.f32.mrb[166].mxu1  ;;  %3872 = vmatprep.subr.bf16.mxu1 %v3849_v7  ;;  %10776 = vmatprep.subr.bf16.mxu0 %v3850_v34 }
 0x5b6   :  { %v13906_v35 = vadd.f32 %v3541_v20, %v13836_v49  ;;  %v13908_v13 = vadd.f32 %v10767_v18, %v3668_v55  ;;  %v3543_v4 = vpop.f32.mrb[151].mxu0  ;;  %v3756_v0 = vpop.f32.mrb[167].mxu1  ;;  %3873 = vmatpush1.bf16.msra.mxu1 %v3848_v11  ;;  %10777 = vmatpush3.bf16.msra.mxu0 %v3850_v34  ;;  %v3681_v34 = vadd.f32 %v13811_v58, %v13830_v51  ;;  %v16151_v29 = vmax.f32 %v13903_v47, 0.0 }
 0x5b7   :  { %16148 = vst [vmem:[#allocation83_spill] sm:$0xff] %v13894_v39  ;;  %v13911_v7 = vadd.f32 %v3543_v4, %v13833_v63  ;;  %v13913_v14 = vadd.f32 %v3756_v0, %v3660_v36  ;;  %10778 = vmatprep.subr.bf16.mxu0 %v3853_v27  ;;  %v15749_v25 = vmax.f32 %v13896_v28, 0.0  ;;  %v15746_v55 = vmax.f32 %v13894_v39, 0.0 }
 0x5b8   :  { %v3684_v36 = vadd.f32 %v13813_v52, %v13830_v51  ;;  %v16152_v26 = vmax.f32 %v13906_v35, 0.0  ;;  %v16155_v52 = vmax.f32 %v13908_v13, 0.0 }
 0x5b9   :  { %16150 = vst [vmem:[#allocation23_spill] sm:$0xff] %v13911_v7  ;;  %v15748_v20 = vmax.f32 %v13913_v14, 0.0  ;;  %v15745_v18 = vmax.f32 %v13911_v7, 0.0 }
 0x5ba   :  { %10779 = vmatpush3.bf16.msra.mxu0 %v3853_v27 }
 0x5bb   :  { %v3547_v4 = vpop.f32.mrb[152].mxu0  ;;  %v10770_v0 = vpop.f32.mrb[168].mxu1  ;;  %v3852_v56 = vpack.c.bf16 %v15745_v18, %v15746_v55  ;;  %v3856_v27 = vpack.c.bf16 %v15748_v20, %v15749_v25  ;;  %v3851_v18 = vpack.c.bf16 %v16152_v26, %v16151_v29  ;;  %v16154_v20 = vmax.f32 %v13883_v37, 0.0 }
 0x5bc   :  { %v13935_v60 = vadd.f32 %v10770_v0, %v3681_v34  ;;  %v3549_v58 = vpop.f32.mrb[153].mxu0  ;;  %v3769_v11 = vpop.f32.mrb[169].mxu1  ;;  %v13955_v17 = vadd.f32 %v3547_v4, %v13836_v49 }
 0x5bd   :  { %v13946_v55 = vadd.f32 %v3549_v58, %v13833_v63  ;;  %v13948_v48 = vadd.f32 %v3769_v11, %v3673_v30  ;;  %v3551_v34 = vpop.f32.mrb[154].mxu0  ;;  %v10771_v0 = vpop.f32.mrb[170].mxu1  ;;  %3874 = vmatprep.subr.bf16.mxu1 %v3852_v56  ;;  %10780 = vmatprep.subr.bf16.mxu0 %v3856_v27  ;;  %v3859_v25 = vpack.c.bf16 %v16155_v52, %v16154_v20 }
 0x5be   :  { %16156 = vst [vmem:[#allocation25_spill] sm:$0xff] %v13955_v17  ;;  %v13958_v7 = vadd.f32 %v3551_v34, %v13836_v49  ;;  %v13960_v26 = vadd.f32 %v10771_v0, %v3684_v36  ;;  %v3553_v29 = vpop.f32.mrb[155].mxu0  ;;  %v3772_v30 = vpop.f32.mrb[171].mxu1  ;;  %3875 = vmatpush1.bf16.msra.mxu1 %v3851_v18  ;;  %10781 = vmatpush3.bf16.msra.mxu0 %v3856_v27 }
 0x5bf   :  { %16153 = vst [vmem:[#allocation27_spill] sm:$0xff] %v13946_v55  ;;  %v13963_v56 = vadd.f32 %v3553_v29, %v13833_v63  ;;  %v13965_v11 = vadd.f32 %v3772_v30, %v3676_v5  ;;  %10782 = vmatprep.subr.bf16.mxu0 %v3859_v25  ;;  %v15757_v20 = vmax.f32 %v13948_v48, 0.0  ;;  %v15754_v36 = vmax.f32 %v13946_v55, 0.0 }
 0x5c0   :  { %16157 = vst [vmem:[#allocation29_spill] sm:$0xff] %v13958_v7  ;;  %v3697_v27 = vadd.f32 %v13823_v46, %v13830_v51  ;;  %v3689_v30 = vadd.f32 %v13818_v59, %v13830_v51  ;;  %v3700_v5 = vadd.f32 %v13827_v16, %v13830_v51  ;;  %v3692_v59 = vadd.f32 %v13820_v3, %v13830_v51 }
 0x5c1   :  { %16158 = vst [vmem:[#allocation30_spill] sm:$0xff] %v13963_v56  ;;  %v15756_v34 = vmax.f32 %v13965_v11, 0.0  ;;  %v15753_v0 = vmax.f32 %v13963_v56, 0.0  ;;  %v16159_v55 = vmax.f32 %v13955_v17, 0.0  ;;  %v16160_v56 = vmax.f32 %v13958_v7, 0.0  ;;  %v16184_v17 = vld [vmem:[#allocation70_spill] sm:$0xff] }
 0x5c2   :  { %10783 = vmatpush3.bf16.msra.mxu0 %v3859_v25  ;;  %v16163_v16 = vmax.f32 %v13960_v26, 0.0  ;;  %vm16185_vm3 = vnez %v16184_v17 }
 0x5c3   :  { %v3557_v52 = vpop.f32.mrb[156].mxu0  ;;  %v10774_v29 = vpop.f32.mrb[172].mxu1  ;;  %v3855_v58 = vpack.c.bf16 %v15753_v0, %v15754_v36  ;;  %v3862_v25 = vpack.c.bf16 %v15756_v34, %v15757_v20  ;;  %v3854_v0 = vpack.c.bf16 %v16160_v56, %v16159_v55  ;;  %v16162_v34 = vmax.f32 %v13935_v60, 0.0 }
 0x5c4   :  { %v13987_v4 = vadd.f32 %v10774_v29, %v3697_v27  ;;  %v3559_v46 = vpop.f32.mrb[157].mxu0  ;;  %v3785_v18 = vpop.f32.mrb[173].mxu1  ;;  %v14007_v3 = vadd.f32 %v3557_v52, %v13836_v49 }
 0x5c5   :  { %v13998_v36 = vadd.f32 %v3559_v46, %v13833_v63  ;;  %v14000_v39 = vadd.f32 %v3785_v18, %v3689_v30  ;;  %v3561_v27 = vpop.f32.mrb[158].mxu0  ;;  %v10775_v29 = vpop.f32.mrb[174].mxu1  ;;  %3876 = vmatprep.subr.bf16.mxu1 %v3855_v58  ;;  %10784 = vmatprep.subr.bf16.mxu0 %v3862_v25  ;;  %v3865_v20 = vpack.c.bf16 %v16163_v16, %v16162_v34 }
 0x5c6   :  { %16164 = vst [vmem:[#allocation32_spill] sm:$0xff] %v14007_v3  ;;  %v14010_v51 = vadd.f32 %v3561_v27, %v13836_v49  ;;  %v14012_v55 = vadd.f32 %v10775_v29, %v3700_v5  ;;  %v3563_v56 = vpop.f32.mrb[159].mxu0  ;;  %v3788_v18 = vpop.f32.mrb[175].mxu1  ;;  %3877 = vmatpush1.bf16.msra.mxu1 %v3854_v0  ;;  %10785 = vmatpush3.bf16.msra.mxu0 %v3862_v25  ;;  %v15765_v0 = vmax.f32 %v14007_v3, 0.0 }
 0x5c7   :  { %16161 = vst [vmem:[#allocation35_spill] sm:$0xff] %v13998_v36  ;;  %v14015_v58 = vadd.f32 %v3563_v56, %v13833_v63  ;;  %v14017_v30 = vadd.f32 %v3788_v18, %v3692_v59  ;;  %10786 = vmatprep.subr.bf16.mxu0 %v3865_v20  ;;  %v15763_v34 = vmax.f32 %v14000_v39, 0.0  ;;  %v15760_v5 = vmax.f32 %v13998_v36, 0.0 }
 0x5c8   :  { %16165 = vst [vmem:[#allocation37_spill] sm:$0xff] %v14010_v51  ;;  %v15764_v52 = vmax.f32 %v14010_v51, 0.0 }
 0x5c9   :  { %16166 = vst [vmem:[#allocation38_spill] sm:$0xff] %v14015_v58  ;;  %v15762_v27 = vmax.f32 %v14017_v30, 0.0  ;;  %v15759_v29 = vmax.f32 %v14015_v58, 0.0  ;;  %v16168_v58 = vmax.f32 %v13987_v4, 0.0 }
 0x5ca   :  { %10787 = vmatpush3.bf16.msra.mxu0 %v3865_v20  ;;  %v3857_v46 = vpack.c.bf16 %v15764_v52, %v15765_v0 }
 0x5cb   :  { %v3567_v59 = vpop.f32.mrb[160].mxu0  ;;  %v3858_v16 = vpack.c.bf16 %v15759_v29, %v15760_v5  ;;  %v3868_v56 = vpack.c.bf16 %v15762_v27, %v15763_v34  ;;  %v16169_v29 = vmax.f32 %v14012_v55, 0.0 }
 0x5cc   :  { %v3569_v18 = vpop.f32.mrb[161].mxu0  ;;  %v14047_v36 = vadd.f32 %v3567_v59, %v13836_v49 }
 0x5cd   :  { %v14040_v20 = vadd.f32 %v3569_v18, %v13833_v63  ;;  %v3571_v25 = vpop.f32.mrb[162].mxu0  ;;  %3878 = vmatprep.subr.bf16.mxu1 %v3858_v16  ;;  %10788 = vmatprep.subr.bf16.mxu0 %v3868_v56  ;;  %v3871_v5 = vpack.c.bf16 %v16169_v29, %v16168_v58 }
 0x5ce   :  { %16170 = vst [vmem:[#allocation40_spill] sm:$0xff] %v14047_v36  ;;  %v14050_v27 = vadd.f32 %v3571_v25, %v13836_v49  ;;  %v3573_v34 = vpop.f32.mrb[163].mxu0  ;;  %3879 = vmatpush1.bf16.msra.mxu1 %v3857_v46  ;;  %10789 = vmatpush3.bf16.msra.mxu0 %v3868_v56  ;;  %v15771_v58 = vmax.f32 %v14047_v36, 0.0 }
 0x5cf   :  { %16167 = vst [vmem:[#allocation43_spill] sm:$0xff] %v14040_v20  ;;  %v14053_v18 = vadd.f32 %v3573_v34, %v13833_v63  ;;  %10790 = vmatprep.subr.bf16.mxu0 %v3871_v5  ;;  %v15768_v52 = vmax.f32 %v14040_v20, 0.0 }
 0x5d0   :  { %16171 = vst [vmem:[#allocation45_spill] sm:$0xff] %v14050_v27  ;;  %v15770_v16 = vmax.f32 %v14050_v27, 0.0 }
 0x5d1   :  { %16172 = vst [vmem:[#allocation46_spill] sm:$0xff] %v14053_v18  ;;  %v15767_v0 = vmax.f32 %v14053_v18, 0.0 }
 0x5d2   :  { %10791 = vmatpush3.bf16.msra.mxu0 %v3871_v5  ;;  %v3860_v34 = vpack.c.bf16 %v15770_v16, %v15771_v58 }
 0x5d3   :  { %v3577_v29 = vpop.f32.mrb[164].mxu0  ;;  %v3861_v46 = vpack.c.bf16 %v15767_v0, %v15768_v52 }
 0x5d4   :  { %v3579_v25 = vpop.f32.mrb[165].mxu0  ;;  %v14074_v5 = vadd.f32 %v3577_v29, %v13836_v49 }
 0x5d5   :  { %v14068_v59 = vadd.f32 %v3579_v25, %v13833_v63  ;;  %v3581_v56 = vpop.f32.mrb[166].mxu0  ;;  %3880 = vmatprep.subr.bf16.mxu1 %v3861_v46  ;;  %10793 = vmatmul.mubr.msk.bf16.vlgmr.msra.gmra.mrb[176].mxu0 %vm12890_vm7, %v15938_v57 }
 0x5d6   :  { %16175 = vst [vmem:[#allocation48_spill] sm:$0xff] %v14074_v5  ;;  %v14077_v0 = vadd.f32 %v3581_v56, %v13836_v49  ;;  %v3583_v52 = vpop.f32.mrb[167].mxu0  ;;  %3881 = vmatpush1.bf16.msra.mxu1 %v3860_v34  ;;  %10796 = vmatprep.mubr.msk.bf16.mxu0 %vm12898_vm8, %v15938_v57  ;;  %v15781_v29 = vmax.f32 %v14074_v5, 0.0 }
 0x5d7   :  { %16173 = vst [vmem:[#allocation51_spill] sm:$0xff] %v14068_v59  ;;  %v14083_v25 = vadd.f32 %v3583_v52, %v13833_v63  ;;  %v15778_v16 = vmax.f32 %v14068_v59, 0.0 }
 0x5d8   :  { %16176 = vst [vmem:[#allocation53_spill] sm:$0xff] %v14077_v0  ;;  %v15780_v46 = vmax.f32 %v14077_v0, 0.0 }
 0x5d9   :  { %16178 = vst [vmem:[#allocation22_spill] sm:$0xff] %v14083_v25  ;;  %v15777_v58 = vmax.f32 %v14083_v25, 0.0 }
 0x5da   :  { %v3863_v52 = vpack.c.bf16 %v15780_v46, %v15781_v29 }
 0x5db   :  { %v3587_v20 = vpop.f32.mrb[168].mxu0  ;;  %v3864_v34 = vpack.c.bf16 %v15777_v58, %v15778_v16 }
 0x5dc   :  { %v3589_v56 = vpop.f32.mrb[169].mxu0  ;;  %v14104_v59 = vadd.f32 %v3587_v20, %v13836_v49 }
 0x5dd   :  { %v14098_v27 = vadd.f32 %v3589_v56, %v13833_v63  ;;  %v3591_v36 = vpop.f32.mrb[170].mxu0  ;;  %3882 = vmatprep.subr.bf16.mxu1 %v3864_v34  ;;  %10797 = vmatmul.mubr.msk.bf16.gmra.mrb[180].mxu0 %vm12942_vm13, %v15938_v57 }
 0x5de   :  { %v14107_v58 = vadd.f32 %v3591_v36, %v13836_v49  ;;  %v3593_v16 = vpop.f32.mrb[171].mxu0  ;;  %3883 = vmatpush1.bf16.msra.mxu1 %v3863_v52  ;;  %10800 = vmatprep.mubr.msk.bf16.mxu0 %vm12950_vm14, %v15938_v57  ;;  %v15791_v20 = vmax.f32 %v14104_v59, 0.0 }
 0x5df   :  { %16179 = vst [vmem:[#allocation26_spill] sm:$0xff] %v14098_v27  ;;  %v14113_v56 = vadd.f32 %v3593_v16, %v13833_v63  ;;  %v15788_v46 = vmax.f32 %v14098_v27, 0.0 }
 0x5e0   :  { %v15790_v34 = vmax.f32 %v14107_v58, 0.0 }
 0x5e1   :  { %16182 = vst [vmem:[#allocation24_spill] sm:$0xff] %v14113_v56  ;;  %v15787_v29 = vmax.f32 %v14113_v56, 0.0  ;;  %v16187_v56 = vld [vmem:[#allocation71_spill] sm:$0xff] }
 0x5e2   :  { %v3866_v16 = vpack.c.bf16 %v15790_v34, %v15791_v20  ;;  %vm16188_vm12 = vnez %v16187_v56 }
 0x5e3   :  { %v3597_v0 = vpop.f32.mrb[172].mxu0  ;;  %v3867_v36 = vpack.c.bf16 %v15787_v29, %v15788_v46 }
 0x5e4   :  { %v3599_v52 = vpop.f32.mrb[173].mxu0  ;;  %v14134_v27 = vadd.f32 %v3597_v0, %v13836_v49 }
 0x5e5   :  { %v14128_v5 = vadd.f32 %v3599_v52, %v13833_v63  ;;  %v3601_v7 = vpop.f32.mrb[174].mxu0  ;;  %3884 = vmatprep.subr.bf16.mxu1 %v3867_v36  ;;  %10801 = vmatmul.mubr.msk.bf16.gmra.mrb[184].mxu0 %vm16185_vm3, %v15938_v57 }
 0x5e6   :  { %v14137_v29 = vadd.f32 %v3601_v7, %v13836_v49  ;;  %v3603_v46 = vpop.f32.mrb[175].mxu0  ;;  %3885 = vmatpush1.bf16.msra.mxu1 %v3866_v16  ;;  %10804 = vmatprep.mubr.msk.bf16.mxu0 %vm16188_vm12, %v15938_v57  ;;  %v15795_v0 = vmax.f32 %v14134_v27, 0.0  ;;  %v16192_v16 = vld [vmem:[#allocation84_spill] sm:$0xff] }
 0x5e7   :  { %16183 = vst [vmem:[#allocation28_spill] sm:$0xff] %v14128_v5  ;;  %v14143_v52 = vadd.f32 %v3603_v46, %v13833_v63  ;;  %v15793_v34 = vmax.f32 %v14128_v5, 0.0  ;;  %v16190_v63 = vld [vmem:[#allocation76_spill] sm:$0xff] }
 0x5e8   :  { %16186 = vst [vmem:[#allocation33_spill] sm:$0xff] %v14137_v29  ;;  %v15794_v36 = vmax.f32 %v14137_v29, 0.0  ;;  %vm16191_vm0 = vnez %v16190_v63 }
 0x5e9   :  { %16189 = vst [vmem:[#allocation34_spill] sm:$0xff] %v14143_v52  ;;  %v15792_v20 = vmax.f32 %v14143_v52, 0.0 }
 0x5ea   :  { %v3869_v7 = vpack.c.bf16 %v15794_v36, %v15795_v0  ;;  %v16193_v36 = vld [vmem:[#allocation85_spill] sm:$0xff] }
 0x5eb   :  { %v3870_v49 = vpack.c.bf16 %v15792_v20, %v15793_v34 }
 0x5ed   :  { %3886 = vmatprep.subr.bf16.mxu1 %v3870_v49  ;;  %10805 = vmatmul.mubr.msk.bf16.gmra.mrb[188].mxu0 %vm16191_vm0, %v15938_v57 }
 0x5ee   :  { %3887 = vmatpush1.bf16.msra.mxu1 %v3869_v7  ;;  %4186 = vmatprep.mubr.bf16.mxu0 %v16049_v22 }
 0x5f1   :  { %9540 = vmatmul.mubr.msk.bf16.vlgmr.msra.gmra.mrb[176].mxu1 %vm12621_vm2, %v15938_v57 }
 0x5f2   :  { %3914 = vmatprep.mubr.bf16.mxu1 %v16049_v22 }
 0x5f9   :  { %9542 = vmatmul.mubr.msk.bf16.gmra.mrb[180].mxu1 %vm12890_vm7, %v15938_v57 }
 0x5fa   :  { %3924 = vmatprep.mubr.bf16.mxu1 %v16049_v22 }
 0x601   :  { %9544 = vmatmul.mubr.msk.bf16.gmra.mrb[184].mxu1 %vm12898_vm8, %v15938_v57 }
 0x602   :  { %3934 = vmatprep.mubr.bf16.mxu1 %v16049_v22 }
 0x609   :  { %9546 = vmatmul.mubr.msk.bf16.gmra.mrb[188].mxu1 %vm12942_vm13, %v15938_v57 }
 0x60a   :  { %3944 = vmatprep.mubr.bf16.mxu1 %v16049_v22 }
 0x611   :  { %9548 = vmatmul.mubr.msk.bf16.gmra.mrb[192].mxu1 %vm12950_vm14, %v15938_v57 }
 0x612   :  { %3954 = vmatprep.mubr.bf16.mxu1 %v16049_v22 }
 0x619   :  { %9550 = vmatmul.mubr.msk.bf16.gmra.mrb[196].mxu1 %vm16185_vm3, %v15938_v57 }
 0x61a   :  { %3964 = vmatprep.mubr.bf16.mxu1 %v16049_v22 }
 0x621   :  { %9552 = vmatmul.mubr.msk.bf16.gmra.mrb[200].mxu1 %vm16188_vm12, %v15938_v57 }
 0x622   :  { %3974 = vmatprep.mubr.bf16.mxu1 %v16049_v22 }
 0x629   :  { %9554 = vmatmul.mubr.msk.bf16.gmra.mrb[204].mxu1 %vm16191_vm0, %v15938_v57 }
 0x62a   :  { %10824 = vmatprep.mubr.msk.bf16.mxu1 %vm13138_vm15, %v15938_v57 }
 0x6a8   :  { %v10794_v46 = vpop.f32.mrb[176].mxu0 }
 0x6a9   :  { %v4028_v49 = vadd.f32 %v10794_v46, %v16192_v16  ;;  %v4019_v7 = vpop.f32.mrb[177].mxu0 }
 0x6aa   :  { %v4020_v20 = vadd.f32 %v4019_v7, %v13159_v44  ;;  %v10795_v34 = vpop.f32.mrb[178].mxu0 }
 0x6ab   :  { %v4031_v0 = vadd.f32 %v10795_v34, %v16193_v36  ;;  %v4022_v56 = vpop.f32.mrb[179].mxu0  ;;  %v4090_v25 = vmax.f32 %v4028_v49, 0.0 }
 0x6ac   :  { %v4023_v17 = vadd.f32 %v4022_v56, %v13166_v21  ;;  %v4084_v63 = vmax.f32 %v4020_v20, 0.0 }
 0x6ad   :  { %v4093_v3 = vmax.f32 %v4031_v0, 0.0 }
 0x6ae   :  { %v4087_v18 = vmax.f32 %v4023_v17, 0.0 }
 0x6af   :  { %v4135_v51 = vpack.c.bf16 %v4093_v3, %v4090_v25 }
 0x6b0   :  { %v4132_v43 = vpack.c.bf16 %v4087_v18, %v4084_v63  ;;  %v10798_v52 = vpop.f32.mrb[180].mxu0 }
 0x6b1   :  { %v4044_v5 = vadd.f32 %v10798_v52, %v13172_v62  ;;  %v4035_v29 = vpop.f32.mrb[181].mxu0 }
 0x6b2   :  { %v4036_v46 = vadd.f32 %v4035_v29, %v13175_v32  ;;  %v10799_v16 = vpop.f32.mrb[182].mxu0  ;;  %10808 = vmatprep.subr.bf16.mxu1 %v4132_v43 }
 0x6b3   :  { %v4047_v7 = vadd.f32 %v10799_v16, %v13178_v9  ;;  %v4038_v34 = vpop.f32.mrb[183].mxu0  ;;  %10809 = vmatpush3.bf16.msra.mxu1 %v4132_v43  ;;  %v4102_v0 = vmax.f32 %v4044_v5, 0.0 }
 0x6b4   :  { %v4039_v56 = vadd.f32 %v4038_v34, %v13182_v19  ;;  %10810 = vmatprep.subr.bf16.mxu1 %v4135_v51  ;;  %v4096_v17 = vmax.f32 %v4036_v46, 0.0 }
 0x6b5   :  { %v4105_v20 = vmax.f32 %v4047_v7, 0.0 }
 0x6b6   :  { %v4099_v3 = vmax.f32 %v4039_v56, 0.0 }
 0x6b7   :  { %v4141_v18 = vpack.c.bf16 %v4105_v20, %v4102_v0  ;;  %10811 = vmatpush3.bf16.msra.mxu1 %v4135_v51 }
 0x6b8   :  { %v4138_v25 = vpack.c.bf16 %v4099_v3, %v4096_v17  ;;  %v10802_v52 = vpop.f32.mrb[184].mxu0 }
 0x6b9   :  { %v4060_v63 = vadd.f32 %v10802_v52, %v13188_v33  ;;  %v4051_v29 = vpop.f32.mrb[185].mxu0  ;;  %v16223_v33 = vld [vmem:[#allocation128_spill] sm:$0xff] }
 0x6ba   :  { %v4052_v49 = vadd.f32 %v4051_v29, %v13191_v40  ;;  %v10803_v32 = vpop.f32.mrb[186].mxu0  ;;  %10812 = vmatprep.subr.bf16.mxu1 %v4138_v25 }
 0x6bb   :  { %v4063_v43 = vadd.f32 %v10803_v32, %v13196_v12  ;;  %v4054_v16 = vpop.f32.mrb[187].mxu0  ;;  %10813 = vmatpush3.bf16.msra.mxu1 %v4138_v25  ;;  %v4114_v46 = vmax.f32 %v4060_v63, 0.0 }
 0x6bc   :  { %v4055_v5 = vadd.f32 %v4054_v16, %v13203_v50  ;;  %10814 = vmatprep.subr.bf16.mxu1 %v4141_v18  ;;  %v4108_v34 = vmax.f32 %v4052_v49, 0.0  ;;  %v16219_v50 = vld [vmem:[#allocation124_spill] sm:$0xff] }
 0x6bd   :  { %v4117_v7 = vmax.f32 %v4063_v43, 0.0 }
 0x6be   :  { %v4111_v51 = vmax.f32 %v4055_v5, 0.0 }
 0x6bf   :  { %v4147_v56 = vpack.c.bf16 %v4117_v7, %v4114_v46  ;;  %10815 = vmatpush3.bf16.msra.mxu1 %v4141_v18  ;;  %v16194_v18 = vld [vmem:[#allocation93_spill] sm:$0xff] }
 0x6c0   :  { %v4144_v0 = vpack.c.bf16 %v4111_v51, %v4108_v34  ;;  %v10806_v20 = vpop.f32.mrb[188].mxu0  ;;  %v16195_v51 = vld [vmem:[#allocation95_spill] sm:$0xff] }
 0x6c1   :  { %v4076_v17 = vadd.f32 %v10806_v20, %v13216_v10  ;;  %v4067_v3 = vpop.f32.mrb[189].mxu0 }
 0x6c2   :  { %v4068_v52 = vadd.f32 %v4067_v3, %v13220_v61  ;;  %v10807_v29 = vpop.f32.mrb[190].mxu0  ;;  %10816 = vmatprep.subr.bf16.mxu1 %v4144_v0 }
 0x6c3   :  { %v4079_v32 = vadd.f32 %v10807_v29, %v13228_v45  ;;  %v4070_v25 = vpop.f32.mrb[191].mxu0  ;;  %10817 = vmatpush3.bf16.msra.mxu1 %v4144_v0  ;;  %v4126_v49 = vmax.f32 %v4076_v17, 0.0 }
 0x6c4   :  { %v4071_v63 = vadd.f32 %v4070_v25, %v13237_v42  ;;  %v3906_v43 = vpop.f32.mrb[176].mxu1  ;;  %10818 = vmatprep.subr.bf16.mxu1 %v4147_v56  ;;  %v4120_v7 = vmax.f32 %v4068_v52, 0.0 }
 0x6c5   :  { %v4129_v16 = vmax.f32 %v4079_v32, 0.0  ;;  %v3907_v5 = vadd.f32 %v3906_v43, %v16194_v18  ;;  %v3908_v46 = vpop.f32.mrb[177].mxu1 }
 0x6c6   :  { %v4123_v34 = vmax.f32 %v4071_v63, 0.0  ;;  %v3909_v20 = vadd.f32 %v3908_v46, %v16195_v51  ;;  %v3910_v3 = vpop.f32.mrb[178].mxu1 }
 0x6c7   :  { %v4153_v61 = vpack.c.bf16 %v4129_v16, %v4126_v49  ;;  %v3911_v10 = vadd.f32 %v3910_v3, %v13244_v2  ;;  %v3912_v29 = vpop.f32.mrb[179].mxu1  ;;  %10819 = vmatpush3.bf16.msra.mxu1 %v4147_v56  ;;  %v4082_v42 = vmax.f32 %v3907_v5, 0.0  ;;  %v16196_v16 = vld [vmem:[#allocation101_spill] sm:$0xff]  ;;  %v16197_v56 = vld [vmem:[#allocation102_spill] sm:$0xff] }
 0x6c8   :  { %v4150_v0 = vpack.c.bf16 %v4123_v34, %v4120_v7  ;;  %v3913_v25 = vadd.f32 %v3912_v29, %v13249_v23  ;;  %v4083_v17 = vmax.f32 %v3909_v20, 0.0 }
 0x6c9   :  { %v4085_v45 = vmax.f32 %v3911_v10, 0.0  ;;  %v16198_v10 = vld [vmem:[#allocation103_spill] sm:$0xff] }
 0x6ca   :  { %v4086_v32 = vmax.f32 %v3913_v25, 0.0  ;;  %10820 = vmatprep.subr.bf16.mxu1 %v4150_v0 }
 0x6cb   :  { %v4130_v43 = vpack.c.bf16 %v4085_v45, %v4082_v42  ;;  %10821 = vmatpush3.bf16.msra.mxu1 %v4150_v0  ;;  %v11993_v0 = vld [vmem:[#allocation7 + $0x49c] ss:$12 sps:$4 sm:$0xff]  }
 0x6cc   :  { %v4131_v52 = vpack.c.bf16 %v4086_v32, %v4083_v17  ;;  %v3916_v63 = vpop.f32.mrb[180].mxu1  ;;  %10822 = vmatprep.subr.bf16.mxu1 %v4153_v61  ;;  %v11996_v17 = vld [vmem:[#allocation7 + $0x4b4] ss:$12 sps:$4 sm:$0xff]  }
 0x6cd   :  { %v3917_v46 = vadd.f32 %v3916_v63, %v13254_v31  ;;  %v3918_v49 = vpop.f32.mrb[181].mxu1  ;;  %v16202_v63 = vld [vmem:[#allocation107_spill] sm:$0xff] }
 0x6ce   :  { %v3919_v3 = vadd.f32 %v3918_v49, %v16196_v16  ;;  %v3920_v2 = vpop.f32.mrb[182].mxu1  ;;  %4154 = vmatprep.subr.bf16.mxu0 %v4131_v52  ;;  %v16201_v52 = vld [vmem:[#allocation105_spill] sm:$0xff] }
 0x6cf   :  { %v3921_v7 = vadd.f32 %v3920_v2, %v16197_v56  ;;  %v3922_v34 = vpop.f32.mrb[183].mxu1  ;;  %4155 = vmatpush1.bf16.msra.mxu0 %v4130_v43  ;;  %10823 = vmatpush3.bf16.msra.mxu1 %v4153_v61  ;;  %v4088_v20 = vmax.f32 %v3917_v46, 0.0 }
 0x6d0   :  { %v3923_v5 = vadd.f32 %v3922_v34, %v16198_v10  ;;  %v4089_v42 = vmax.f32 %v3919_v3, 0.0  ;;  %v16203_v3 = vld [vmem:[#allocation108_spill] sm:$0xff] }
 0x6d1   :  { %v4091_v45 = vmax.f32 %v3921_v7, 0.0 }
 0x6d2   :  { %v4092_v29 = vmax.f32 %v3923_v5, 0.0  ;;  %10825 = vmatmul.mubr.msk.bf16.vlgmr.msra.gmra.mrb[208].mxu1 %vm13286_vm9, %v15938_v57  ;;  %v16204_v5 = vld [vmem:[#allocation109_spill] sm:$0xff] }
 0x6d3   :  { %v4133_v25 = vpack.c.bf16 %v4091_v45, %v4088_v20  ;;  %10828 = vmatprep.mubr.msk.bf16.mxu1 %vm13295_vm11, %v15938_v57 }
 0x6d4   :  { %v4134_v32 = vpack.c.bf16 %v4092_v29, %v4089_v42  ;;  %v3926_v2 = vpop.f32.mrb[184].mxu1  ;;  %v11999_v42 = vld [vmem:[#allocation7 + $0x4cc] ss:$12 sps:$4 sm:$0xff]  }
 0x6d5   :  { %v3927_v43 = vadd.f32 %v3926_v2, %v16201_v52  ;;  %v3928_v61 = vpop.f32.mrb[185].mxu1  ;;  %v12002_v2 = vld [vmem:[#allocation7 + $0x4e4] ss:$12 sps:$4 sm:$0xff]  }
 0x6d6   :  { %v3929_v49 = vadd.f32 %v3928_v61, %v16202_v63  ;;  %v3930_v46 = vpop.f32.mrb[186].mxu1  ;;  %4156 = vmatprep.subr.bf16.mxu0 %v4134_v32  ;;  %v16208_v63 = vld [vmem:[#allocation113_spill] sm:$0xff] }
 0x6d7   :  { %v3931_v7 = vadd.f32 %v3930_v46, %v16203_v3  ;;  %v3932_v34 = vpop.f32.mrb[187].mxu1  ;;  %4157 = vmatpush1.bf16.msra.mxu0 %v4133_v25  ;;  %v4094_v20 = vmax.f32 %v3927_v43, 0.0  ;;  %v16207_v46 = vld [vmem:[#allocation111_spill] sm:$0xff] }
 0x6d8   :  { %v3933_v10 = vadd.f32 %v3932_v34, %v16204_v5  ;;  %v4095_v56 = vmax.f32 %v3929_v49, 0.0  ;;  %v16209_v49 = vld [vmem:[#allocation114_spill] sm:$0xff]  ;;  %v16210_v5 = vld [vmem:[#allocation115_spill] sm:$0xff] }
 0x6d9   :  { %v4097_v45 = vmax.f32 %v3931_v7, 0.0 }
 0x6da   :  { %v4098_v16 = vmax.f32 %v3933_v10, 0.0  ;;  %10829 = vmatmul.mubr.msk.bf16.gmra.mrb[212].mxu1 %vm13328_vm6, %v15938_v57 }
 0x6db   :  { %v4136_v29 = vpack.c.bf16 %v4097_v45, %v4094_v20  ;;  %10832 = vmatprep.mubr.msk.bf16.mxu1 %vm13337_vm10, %v15938_v57 }
 0x6dc   :  { %v4137_v32 = vpack.c.bf16 %v4098_v16, %v4095_v56  ;;  %v3936_v61 = vpop.f32.mrb[188].mxu1  ;;  %v12008_v16 = vld [vmem:[#allocation7 + $0x514] ss:$12 sps:$4 sm:$0xff]  }
 0x6dd   :  { %v3937_v3 = vadd.f32 %v3936_v61, %v16207_v46  ;;  %v3938_v25 = vpop.f32.mrb[189].mxu1  ;;  %v12015_v61 = vld [vmem:[#allocation7 + $0x548] ss:$12 sps:$4 sm:$0xff]  }
 0x6de   :  { %v3939_v34 = vadd.f32 %v3938_v25, %v16208_v63  ;;  %v3940_v43 = vpop.f32.mrb[190].mxu1  ;;  %4158 = vmatprep.subr.bf16.mxu0 %v4137_v32  ;;  %v16214_v63 = vld [vmem:[#allocation119_spill] sm:$0xff] }
 0x6df   :  { %v3941_v10 = vadd.f32 %v3940_v43, %v16209_v49  ;;  %v3942_v7 = vpop.f32.mrb[191].mxu1  ;;  %4159 = vmatpush1.bf16.msra.mxu0 %v4136_v29  ;;  %v4100_v20 = vmax.f32 %v3937_v3, 0.0  ;;  %v16213_v43 = vld [vmem:[#allocation118_spill] sm:$0xff] }
 0x6e0   :  { %v3943_v52 = vadd.f32 %v3942_v7, %v16210_v5  ;;  %v4101_v31 = vmax.f32 %v3939_v34, 0.0  ;;  %v16215_v34 = vld [vmem:[#allocation120_spill] sm:$0xff]  ;;  %v16216_v5 = vld [vmem:[#allocation121_spill] sm:$0xff] }
 0x6e1   :  { %v4103_v45 = vmax.f32 %v3941_v10, 0.0 }
 0x6e2   :  { %v4104_v23 = vmax.f32 %v3943_v52, 0.0  ;;  %10833 = vmatmul.mubr.msk.bf16.gmra.mrb[216].mxu1 %vm13370_vm5, %v15938_v57 }
 0x6e3   :  { %v4139_v56 = vpack.c.bf16 %v4103_v45, %v4100_v20  ;;  %10836 = vmatprep.mubr.msk.bf16.mxu1 %vm13375_vm4, %v15938_v57 }
 0x6e4   :  { %v4140_v32 = vpack.c.bf16 %v4104_v23, %v4101_v31  ;;  %v3946_v25 = vpop.f32.mrb[192].mxu1  ;;  %v12022_v23 = vld [vmem:[#allocation7 + $0x570] ss:$12 sps:$4 sm:$0xff]  }
 0x6e5   :  { %v3947_v49 = vadd.f32 %v3946_v25, %v16213_v43  ;;  %v3948_v29 = vpop.f32.mrb[193].mxu1 }
 0x6e6   :  { %v3949_v7 = vadd.f32 %v3948_v29, %v16214_v63  ;;  %v3950_v3 = vpop.f32.mrb[194].mxu1  ;;  %4160 = vmatprep.subr.bf16.mxu0 %v4140_v32  ;;  %v16218_v29 = vld [vmem:[#allocation123_spill] sm:$0xff] }
 0x6e7   :  { %v3951_v52 = vadd.f32 %v3950_v3, %v16215_v34  ;;  %v3952_v10 = vpop.f32.mrb[195].mxu1  ;;  %4161 = vmatpush1.bf16.msra.mxu0 %v4139_v56  ;;  %v4106_v20 = vmax.f32 %v3947_v49, 0.0  ;;  %v16220_v56 = vld [vmem:[#allocation125_spill] sm:$0xff] }
 0x6e8   :  { %v3953_v46 = vadd.f32 %v3952_v10, %v16216_v5  ;;  %v4107_v51 = vmax.f32 %v3949_v7, 0.0  ;;  %v16221_v7 = vld [vmem:[#allocation126_spill] sm:$0xff] }
 0x6e9   :  { %v4109_v45 = vmax.f32 %v3951_v52, 0.0 }
 0x6ea   :  { %v4110_v18 = vmax.f32 %v3953_v46, 0.0  ;;  %10837 = vmatmul.mubr.msk.bf16.gmra.mrb[220].mxu1 %vm13408_vm1, %v15938_v57 }
 0x6eb   :  { %v4142_v31 = vpack.c.bf16 %v4109_v45, %v4106_v20  ;;  %v16222_v45 = vld [vmem:[#allocation127_spill] sm:$0xff] }
 0x6ec   :  { %v4143_v25 = vpack.c.bf16 %v4110_v18, %v4107_v51  ;;  %v3956_v43 = vpop.f32.mrb[196].mxu1 }
 0x6ed   :  { %v3957_v63 = vadd.f32 %v3956_v43, %v16218_v29  ;;  %v3958_v32 = vpop.f32.mrb[197].mxu1 }
 0x6ee   :  { %v3959_v3 = vadd.f32 %v3958_v32, %v16219_v50  ;;  %v3960_v34 = vpop.f32.mrb[198].mxu1  ;;  %4162 = vmatprep.subr.bf16.mxu0 %v4143_v25  ;;  %v16224_v25 = vld [vmem:[#allocation77_spill] sm:$0xff] }
 0x6ef   :  { %v3961_v10 = vadd.f32 %v3960_v34, %v16220_v56  ;;  %v3962_v49 = vpop.f32.mrb[199].mxu1  ;;  %4163 = vmatpush1.bf16.msra.mxu0 %v4142_v31  ;;  %v4112_v52 = vmax.f32 %v3957_v63, 0.0  ;;  %v16225_v31 = vld [vmem:[#allocation78_spill] sm:$0xff] }
 0x6f0   :  { %v3963_v46 = vadd.f32 %v3962_v49, %v16221_v7  ;;  %v4113_v12 = vmax.f32 %v3959_v3, 0.0  ;;  %v16227_v7 = vld [vmem:[#allocation80_spill] sm:$0xff] }
 0x6f1   :  { %v4115_v5 = vmax.f32 %v3961_v10, 0.0 }
 0x6f2   :  { %v4116_v40 = vmax.f32 %v3963_v46, 0.0 }
 0x6f3   :  { %v4145_v20 = vpack.c.bf16 %v4115_v5, %v4112_v52  ;;  %v16226_v52 = vld [vmem:[#allocation79_spill] sm:$0xff] }
 0x6f4   :  { %v4146_v18 = vpack.c.bf16 %v4116_v40, %v4113_v12  ;;  %v3966_v51 = vpop.f32.mrb[200].mxu1 }
 0x6f5   :  { %v3967_v43 = vadd.f32 %v3966_v51, %v16222_v45  ;;  %v3968_v29 = vpop.f32.mrb[201].mxu1 }
 0x6f6   :  { %v3969_v32 = vadd.f32 %v3968_v29, %v16223_v33  ;;  %v3970_v50 = vpop.f32.mrb[202].mxu1  ;;  %4164 = vmatprep.subr.bf16.mxu0 %v4146_v18  ;;  %v16228_v18 = vld [vmem:[#allocation81_spill] sm:$0xff] }
 0x6f7   :  { %v3971_v34 = vadd.f32 %v3970_v50, %v16224_v25  ;;  %v3972_v56 = vpop.f32.mrb[203].mxu1  ;;  %4165 = vmatpush1.bf16.msra.mxu0 %v4145_v20  ;;  %v4118_v63 = vmax.f32 %v3967_v43, 0.0  ;;  %v16229_v20 = vld [vmem:[#allocation82_spill] sm:$0xff] }
 0x6f8   :  { %v3973_v49 = vadd.f32 %v3972_v56, %v16225_v31  ;;  %v4119_v3 = vmax.f32 %v3969_v32, 0.0 }
 0x6f9   :  { %v4121_v10 = vmax.f32 %v3971_v34, 0.0 }
 0x6fa   :  { %v4122_v46 = vmax.f32 %v3973_v49, 0.0 }
 0x6fb   :  { %v4148_v5 = vpack.c.bf16 %v4121_v10, %v4118_v63 }
 0x6fc   :  { %v4149_v40 = vpack.c.bf16 %v4122_v46, %v4119_v3  ;;  %v3976_v12 = vpop.f32.mrb[204].mxu1  ;;  %v11799_v3 = vld [vmem:[#allocation7 + $0x258] ss:$12 sps:$4 sm:$0xff]   ;;  %v11804_v46 = vld [vmem:[#allocation7 + $0x274] ss:$12 sps:$4 sm:$0xff]  }
 0x6fd   :  { %v3977_v51 = vadd.f32 %v3976_v12, %v16226_v52  ;;  %v3978_v45 = vpop.f32.mrb[205].mxu1  ;;  %v11805_v12 = vld [vmem:[#allocation7 + $0x288] ss:$12 sps:$4 sm:$0xff]  }
 0x6fe   :  { %v3979_v29 = vadd.f32 %v3978_v45, %v16227_v7  ;;  %v3980_v33 = vpop.f32.mrb[206].mxu1  ;;  %4166 = vmatprep.subr.bf16.mxu0 %v4149_v40  ;;  %v11796_v45 = vld [vmem:[#allocation7 + $0x240] ss:$12 sps:$4 sm:$0xff]  }
 0x6ff   :  { %v3981_v50 = vadd.f32 %v3980_v33, %v16228_v18  ;;  %v3982_v25 = vpop.f32.mrb[207].mxu1  ;;  %4167 = vmatpush1.bf16.msra.mxu0 %v4148_v5  ;;  %v4124_v43 = vmax.f32 %v3977_v51, 0.0  ;;  %v11798_v33 = vld [vmem:[#allocation7 + $0x244] ss:$12 sps:$4 sm:$0xff]   ;;  %v11807_v40 = vld [vmem:[#allocation7 + $0x28c] ss:$12 sps:$4 sm:$0xff]  }
 0x700   :  { %v3983_v56 = vadd.f32 %v3982_v25, %v16229_v20  ;;  %v4125_v32 = vmax.f32 %v3979_v29, 0.0  ;;  %v11801_v25 = vld [vmem:[#allocation7 + $0x25c] ss:$12 sps:$4 sm:$0xff]   ;;  %v11810_v51 = vld [vmem:[#allocation7 + $0x2a4] ss:$12 sps:$4 sm:$0xff]  }
 0x701   :  { %v4127_v34 = vmax.f32 %v3981_v50, 0.0  ;;  %v11802_v5 = vld [vmem:[#allocation7 + $0x270] ss:$12 sps:$4 sm:$0xff]   ;;  %v11808_v29 = vld [vmem:[#allocation7 + $0x2a0] ss:$12 sps:$4 sm:$0xff]  }
 0x702   :  { %v4128_v49 = vmax.f32 %v3983_v56, 0.0  ;;  %v11813_v50 = vld [vmem:[#allocation7 + $0x2bc] ss:$12 sps:$4 sm:$0xff]   ;;  %v11811_v56 = vld [vmem:[#allocation7 + $0x2b8] ss:$12 sps:$4 sm:$0xff]  }
 0x703   :  { %v4151_v63 = vpack.c.bf16 %v4127_v34, %v4124_v43  ;;  %v11816_v43 = vld [vmem:[#allocation7 + $0x2d4] ss:$12 sps:$4 sm:$0xff]   ;;  %v11814_v34 = vld [vmem:[#allocation7 + $0x2d0] ss:$12 sps:$4 sm:$0xff]  }
 0x704   :  { %v4152_v10 = vpack.c.bf16 %v4128_v49, %v4125_v32  ;;  %v11819_v32 = vld [vmem:[#allocation7 + $0x2ec] ss:$12 sps:$4 sm:$0xff]   ;;  %v11817_v49 = vld [vmem:[#allocation7 + $0x2e8] ss:$12 sps:$4 sm:$0xff]  }
 0x706   :  { %4168 = vmatprep.subr.bf16.mxu0 %v4152_v10  ;;  %v11822_v10 = vld [vmem:[#allocation7 + $0x304] ss:$12 sps:$4 sm:$0xff]  }
 0x707   :  { %4169 = vmatpush1.bf16.msra.mxu0 %v4151_v63  ;;  %v11820_v63 = vld [vmem:[#allocation7 + $0x300] ss:$12 sps:$4 sm:$0xff]  }
 0x708   :  { %4948 = vmatprep.subr.bf16.mxu0 %v11798_v33  ;;  %v11823_v33 = vld [vmem:[#allocation7 + $0x308] ss:$12 sps:$4 sm:$0xff]  }
 0x709   :  { %10215 = vmatprep.subr.bf16.mxu1 %v11823_v33  ;;  %v11848_v33 = vld [vmem:[#allocation7 + $0x380] ss:$12 sps:$4 sm:$0xff]  }
 0x70a   :  { %9572 = vmatmul.mubr.msk.bf16.vlgmr.msra.gmra.mrb[192].mxu0 %vm13138_vm15, %v15938_v57 }
 0x70b   :  { %4196 = vmatprep.mubr.bf16.mxu0 %v16049_v22  ;;  %4949 = vmatpush1.bf16.msra.mxu0 %v11796_v45  ;;  %v11824_v45 = vld [vmem:[#allocation7 + $0x248] ss:$12 sps:$4 sm:$0xff]  }
 0x70c   :  { %4950 = vmatprep.subr.bf16.mxu0 %v11801_v25  ;;  %v11827_v25 = vld [vmem:[#allocation7 + $0x31c] ss:$12 sps:$4 sm:$0xff]   ;;  %10216 = vmatpush3.bf16.msra.mxu1 %v11824_v45 }
 0x70d   :  { %v11847_v45 = vld [vmem:[#allocation7 + $0x37c] ss:$12 sps:$4 sm:$0xff]  }
 0x70f   :  { %4951 = vmatpush1.bf16.msra.mxu0 %v11799_v3  ;;  %v11828_v3 = vld [vmem:[#allocation7 + $0x320] ss:$12 sps:$4 sm:$0xff]  }
 0x710   :  { %4952 = vmatprep.subr.bf16.mxu0 %v11804_v46  ;;  %v11829_v46 = vld [vmem:[#allocation7 + $0x260] ss:$12 sps:$4 sm:$0xff]   ;;  %10217 = vmatprep.subr.bf16.mxu1 %v11828_v3  ;;  %v11845_v3 = vld [vmem:[#allocation7 + $0x378] ss:$12 sps:$4 sm:$0xff]  }
 0x711   :  { %10218 = vmatpush3.bf16.msra.mxu1 %v11829_v46  ;;  %v11852_v46 = vld [vmem:[#allocation7 + $0x394] ss:$12 sps:$4 sm:$0xff]  }
 0x712   :  { %9574 = vmatmul.mubr.msk.bf16.gmra.mrb[196].mxu0 %vm13286_vm9, %v15938_v57 }
 0x713   :  { %4206 = vmatprep.mubr.bf16.mxu0 %v16049_v22  ;;  %4953 = vmatpush1.bf16.msra.mxu0 %v11802_v5  ;;  %v11825_v5 = vld [vmem:[#allocation7 + $0x318] ss:$12 sps:$4 sm:$0xff]  }
 0x714   :  { %4954 = vmatprep.subr.bf16.mxu0 %v11807_v40  ;;  %v11833_v40 = vld [vmem:[#allocation7 + $0x338] ss:$12 sps:$4 sm:$0xff]  }
 0x715   :  { %10219 = vmatprep.subr.bf16.mxu1 %v11833_v40  ;;  %v11850_v40 = vld [vmem:[#allocation7 + $0x390] ss:$12 sps:$4 sm:$0xff]  }
 0x717   :  { %4955 = vmatpush1.bf16.msra.mxu0 %v11805_v12  ;;  %v11832_v12 = vld [vmem:[#allocation7 + $0x334] ss:$12 sps:$4 sm:$0xff]  }
 0x718   :  { %4956 = vmatprep.subr.bf16.mxu0 %v11810_v51  ;;  %v11834_v51 = vld [vmem:[#allocation7 + $0x278] ss:$12 sps:$4 sm:$0xff]  }
 0x719   :  { %10220 = vmatpush3.bf16.msra.mxu1 %v11834_v51  ;;  %v11857_v51 = vld [vmem:[#allocation7 + $0x3ac] ss:$12 sps:$4 sm:$0xff]  }
 0x71a   :  { %9576 = vmatmul.mubr.msk.bf16.gmra.mrb[200].mxu0 %vm13295_vm11, %v15938_v57 }
 0x71b   :  { %4216 = vmatprep.mubr.bf16.mxu0 %v16049_v22  ;;  %4957 = vmatpush1.bf16.msra.mxu0 %v11808_v29  ;;  %v11830_v29 = vld [vmem:[#allocation7 + $0x330] ss:$12 sps:$4 sm:$0xff]  }
 0x71c   :  { %4958 = vmatprep.subr.bf16.mxu0 %v11813_v50  ;;  %v11838_v50 = vld [vmem:[#allocation7 + $0x350] ss:$12 sps:$4 sm:$0xff]  }
 0x71d   :  { %10221 = vmatprep.subr.bf16.mxu1 %v11838_v50  ;;  %v11855_v50 = vld [vmem:[#allocation7 + $0x3a8] ss:$12 sps:$4 sm:$0xff]  }
 0x71f   :  { %4959 = vmatpush1.bf16.msra.mxu0 %v11811_v56  ;;  %v11837_v56 = vld [vmem:[#allocation7 + $0x34c] ss:$12 sps:$4 sm:$0xff]  }
 0x720   :  { %4960 = vmatprep.subr.bf16.mxu0 %v11816_v43  ;;  %v11839_v43 = vld [vmem:[#allocation7 + $0x290] ss:$12 sps:$4 sm:$0xff]  }
 0x721   :  { %10222 = vmatpush3.bf16.msra.mxu1 %v11839_v43  ;;  %v11862_v43 = vld [vmem:[#allocation7 + $0x3c4] ss:$12 sps:$4 sm:$0xff]  }
 0x722   :  { %9578 = vmatmul.mubr.msk.bf16.gmra.mrb[204].mxu0 %vm13328_vm6, %v15938_v57 }
 0x723   :  { %4226 = vmatprep.mubr.bf16.mxu0 %v16049_v22  ;;  %4961 = vmatpush1.bf16.msra.mxu0 %v11814_v34  ;;  %v11835_v34 = vld [vmem:[#allocation7 + $0x348] ss:$12 sps:$4 sm:$0xff]  }
 0x724   :  { %4962 = vmatprep.subr.bf16.mxu0 %v11819_v32  ;;  %v11843_v32 = vld [vmem:[#allocation7 + $0x368] ss:$12 sps:$4 sm:$0xff]  }
 0x725   :  { %10223 = vmatprep.subr.bf16.mxu1 %v11843_v32 }
 0x727   :  { %4963 = vmatpush1.bf16.msra.mxu0 %v11817_v49  ;;  %v11842_v49 = vld [vmem:[#allocation7 + $0x364] ss:$12 sps:$4 sm:$0xff]  }
 0x728   :  { %4964 = vmatprep.subr.bf16.mxu0 %v11822_v10  ;;  %v11840_v10 = vld [vmem:[#allocation7 + $0x360] ss:$12 sps:$4 sm:$0xff]  }
 0x72a   :  { %9580 = vmatmul.mubr.msk.bf16.gmra.mrb[208].mxu0 %vm13337_vm10, %v15938_v57 }
 0x72b   :  { %4236 = vmatprep.mubr.bf16.mxu0 %v16049_v22  ;;  %4965 = vmatpush1.bf16.msra.mxu0 %v11820_v63  ;;  %v11844_v63 = vld [vmem:[#allocation7 + $0x2a8] ss:$12 sps:$4 sm:$0xff]  }
 0x72c   :  { %4966 = vmatprep.subr.bf16.mxu0 %v11827_v25  ;;  %10224 = vmatpush3.bf16.msra.mxu1 %v11844_v63  ;;  %v11849_v25 = vld [vmem:[#allocation7 + $0x2c0] ss:$12 sps:$4 sm:$0xff]  }
 0x72d   :  { %10225 = vmatprep.subr.bf16.mxu1 %v11848_v33 }
 0x72f   :  { %4967 = vmatpush1.bf16.msra.mxu0 %v11825_v5  ;;  %v11853_v5 = vld [vmem:[#allocation7 + $0x398] ss:$12 sps:$4 sm:$0xff]  }
 0x730   :  { %4968 = vmatprep.subr.bf16.mxu0 %v11832_v12  ;;  %10226 = vmatpush3.bf16.msra.mxu1 %v11849_v25  ;;  %v11854_v12 = vld [vmem:[#allocation7 + $0x2d8] ss:$12 sps:$4 sm:$0xff]  }
 0x731   :  { %10227 = vmatprep.subr.bf16.mxu1 %v11853_v5 }
 0x732   :  { %9582 = vmatmul.mubr.msk.bf16.gmra.mrb[212].mxu0 %vm13370_vm5, %v15938_v57 }
 0x733   :  { %4246 = vmatprep.mubr.bf16.mxu0 %v16049_v22  ;;  %4969 = vmatpush1.bf16.msra.mxu0 %v11830_v29  ;;  %v11858_v29 = vld [vmem:[#allocation7 + $0x3b0] ss:$12 sps:$4 sm:$0xff]  }
 0x734   :  { %4970 = vmatprep.subr.bf16.mxu0 %v11837_v56  ;;  %10228 = vmatpush3.bf16.msra.mxu1 %v11854_v12  ;;  %v11859_v56 = vld [vmem:[#allocation7 + $0x2f0] ss:$12 sps:$4 sm:$0xff]  }
 0x735   :  { %10229 = vmatprep.subr.bf16.mxu1 %v11858_v29 }
 0x737   :  { %4971 = vmatpush1.bf16.msra.mxu0 %v11835_v34  ;;  %v14295_v34 = vld [vmem:[#allocation7 + $0x3c8] ss:$12 sps:$4 sm:$0xff]  }
 0x738   :  { %4972 = vmatprep.subr.bf16.mxu0 %v11842_v49  ;;  %10230 = vmatpush3.bf16.msra.mxu1 %v11859_v56 }
 0x739   :  { %10840 = vmatprep.subr.bf16.mxu1 %v14295_v34 }
 0x73a   :  { %9584 = vmatmul.mubr.msk.bf16.gmra.mrb[216].mxu0 %vm13375_vm4, %v15938_v57 }
 0x73b   :  { %4256 = vmatprep.mubr.bf16.mxu0 %v16049_v22  ;;  %4973 = vmatpush1.bf16.msra.mxu0 %v11840_v10  ;;  %v16230_v10 = vmax.f32 %v13840_v6, 0.0  ;;  %v16234_v6 = vmax.f32 %v13883_v37, 0.0  ;;  %v16238_v37 = vmax.f32 %v13935_v60, 0.0  ;;  %v16242_v60 = vmax.f32 %v13987_v4, 0.0 }
 0x73c   :  { %4974 = vmatprep.subr.bf16.mxu0 %v11847_v45  ;;  %v16231_v45 = vmax.f32 %v13856_v15, 0.0  ;;  %v16235_v15 = vmax.f32 %v13908_v13, 0.0  ;;  %v16239_v13 = vmax.f32 %v13960_v26, 0.0  ;;  %v16243_v26 = vmax.f32 %v14012_v55, 0.0 }
 0x73d   :  { %v16246_v4 = vmax.f32 %v13851_v54, 0.0  ;;  %v16247_v55 = vmax.f32 %v13854_v24, 0.0 }
 0x73f   :  { %4975 = vmatpush1.bf16.msra.mxu0 %v11845_v3 }
 0x740   :  { %4976 = vmatprep.subr.bf16.mxu0 %v11852_v46  ;;  %v16232_v46 = vmax.f32 %v13846_v53, 0.0  ;;  %v16236_v53 = vmax.f32 %v13896_v28, 0.0  ;;  %v16240_v28 = vmax.f32 %v13948_v48, 0.0  ;;  %v16244_v48 = vmax.f32 %v14000_v39, 0.0 }
 0x741   :  { %v16248_v39 = vmax.f32 %v13844_v8, 0.0  ;;  %v16250_v8 = vmax.f32 %v13903_v47, 0.0  ;;  %v11871_v47 = vld [vmem:[#allocation7 + $0x40c] ss:$12 sps:$4 sm:$0xff]  }
 0x742   :  { %9586 = vmatmul.mubr.msk.bf16.gmra.mrb[220].mxu0 %vm13408_vm1, %v15938_v57 }
 0x743   :  { %4977 = vmatpush1.bf16.msra.mxu0 %v11850_v40  ;;  %v16233_v40 = vmax.f32 %v13861_v1, 0.0  ;;  %v16237_v1 = vmax.f32 %v13913_v14, 0.0  ;;  %v16241_v14 = vmax.f32 %v13965_v11, 0.0  ;;  %v16245_v11 = vmax.f32 %v14017_v30, 0.0 }
 0x744   :  { %4978 = vmatprep.subr.bf16.mxu0 %v11857_v51  ;;  %v16249_v30 = vmax.f32 %v13859_v41, 0.0 }
 0x747   :  { %4979 = vmatpush1.bf16.msra.mxu0 %v11855_v50 }
 0x748   :  { %5061 = vmatprep.subr.bf16.mxu0 %v11862_v43 }
 0x7a5   :  { %v10826_v32 = vpop.f32.mrb[208].mxu1 }
 0x7a6   :  { %v4301_v49 = vpop.f32.mrb[209].mxu1  ;;  %v4372_v33 = vadd.f32 %v10826_v32, %v16230_v10 }
 0x7a7   :  { %v10827_v63 = vpop.f32.mrb[210].mxu1  ;;  %v4366_v5 = vadd.f32 %v4301_v49, %v16232_v46 }
 0x7a8   :  { %v4375_v25 = vadd.f32 %v10827_v63, %v16231_v45  ;;  %v4304_v3 = vpop.f32.mrb[211].mxu1 }
 0x7a9   :  { %v4369_v12 = vadd.f32 %v4304_v3, %v16233_v40 }
 0x7aa   :  { %v14306_v51 = vpack.c.bf16 %v4375_v25, %v4372_v33 }
 0x7ab   :  { %v14308_v29 = vpack.c.bf16 %v4369_v12, %v4366_v5 }
 0x7ad   :  { %v10830_v50 = vpop.f32.mrb[212].mxu1 }
 0x7ae   :  { %v4317_v56 = vpop.f32.mrb[213].mxu1  ;;  %v4384_v32 = vadd.f32 %v10830_v50, %v16234_v6 }
 0x7af   :  { %v10831_v43 = vpop.f32.mrb[214].mxu1  ;;  %v4378_v49 = vadd.f32 %v4317_v56, %v16236_v53 }
 0x7b0   :  { %v4387_v63 = vadd.f32 %v10831_v43, %v16235_v15  ;;  %v4320_v10 = vpop.f32.mrb[215].mxu1 }
 0x7b1   :  { %v4381_v45 = vadd.f32 %v4320_v10, %v16237_v1 }
 0x7b2   :  { %v14318_v33 = vpack.c.bf16 %v4387_v63, %v4384_v32 }
 0x7b3   :  { %v14320_v25 = vpack.c.bf16 %v4381_v45, %v4378_v49 }
 0x7b5   :  { %v10834_v3 = vpop.f32.mrb[216].mxu1 }
 0x7b6   :  { %v4333_v46 = vpop.f32.mrb[217].mxu1  ;;  %v4396_v40 = vadd.f32 %v10834_v3, %v16238_v37 }
 0x7b7   :  { %v10835_v5 = vpop.f32.mrb[218].mxu1  ;;  %v4390_v56 = vadd.f32 %v4333_v46, %v16240_v28 }
 0x7b8   :  { %v4399_v12 = vadd.f32 %v10835_v5, %v16239_v13  ;;  %v4336_v50 = vpop.f32.mrb[219].mxu1 }
 0x7b9   :  { %v4393_v43 = vadd.f32 %v4336_v50, %v16241_v14 }
 0x7ba   :  { %v14330_v6 = vpack.c.bf16 %v4399_v12, %v4396_v40 }
 0x7bb   :  { %v14332_v32 = vpack.c.bf16 %v4393_v43, %v4390_v56 }
 0x7bd   :  { %v10838_v15 = vpop.f32.mrb[220].mxu1 }
 0x7be   :  { %v4349_v63 = vpop.f32.mrb[221].mxu1  ;;  %v4408_v53 = vadd.f32 %v10838_v15, %v16242_v60  ;;  %v11876_v60 = vld [vmem:[#allocation7 + $0x3e0] ss:$12 sps:$4 sm:$0xff]  }
 0x7bf   :  { %v10839_v10 = vpop.f32.mrb[222].mxu1  ;;  %v4402_v45 = vadd.f32 %v4349_v63, %v16244_v48  ;;  %v11860_v63 = vld [vmem:[#allocation7 + $0x3c0] ss:$12 sps:$4 sm:$0xff]  }
 0x7c0   :  { %v4411_v49 = vadd.f32 %v10839_v10, %v16243_v26  ;;  %v4352_v1 = vpop.f32.mrb[223].mxu1  ;;  %v11865_v10 = vld [vmem:[#allocation7 + $0x3dc] ss:$12 sps:$4 sm:$0xff]   ;;  %v11863_v26 = vld [vmem:[#allocation7 + $0x3d8] ss:$12 sps:$4 sm:$0xff]  }
 0x7c1   :  { %v4405_v3 = vadd.f32 %v4352_v1, %v16245_v11  ;;  %v11877_v11 = vld [vmem:[#allocation7 + $0x3f8] ss:$12 sps:$4 sm:$0xff]  }
 0x7c2   :  { %v14342_v46 = vpack.c.bf16 %v4411_v49, %v4408_v53  ;;  %v16251_v49 = vmax.f32 %v13906_v35, 0.0  ;;  %v11881_v35 = vld [vmem:[#allocation7 + $0x410] ss:$12 sps:$4 sm:$0xff]  }
 0x7c3   :  { %v14344_v5 = vpack.c.bf16 %v4405_v3, %v4402_v45  ;;  %v11868_v45 = vld [vmem:[#allocation7 + $0x3f4] ss:$12 sps:$4 sm:$0xff]  }
 0x7c4   :  { %v16252_v3 = vld [vmem:[#allocation83_spill] sm:$0xff] }
 0x7dd   :  { %v4188_v37 = vpop.f32.mrb[192].mxu0 }
 0x7de   :  { %v4190_v40 = vpop.f32.mrb[193].mxu0  ;;  %v4364_v12 = vadd.f32 %v4188_v37, %v16246_v4  ;;  %v16253_v37 = vmax.f32 %v16252_v3, 0.0 }
 0x7df   :  { %v4192_v13 = vpop.f32.mrb[194].mxu0  ;;  %v4365_v56 = vadd.f32 %v4190_v40, %v16248_v39 }
 0x7e0   :  { %v4367_v50 = vadd.f32 %v4192_v13, %v16247_v55  ;;  %v4194_v28 = vpop.f32.mrb[195].mxu0  ;;  %v16254_v13 = vld [vmem:[#allocation23_spill] sm:$0xff] }
 0x7e1   :  { %v4368_v14 = vadd.f32 %v4194_v28, %v16249_v30  ;;  %v16255_v4 = vmax.f32 %v16254_v13, 0.0  ;;  %v11869_v30 = vld [vmem:[#allocation7 + $0x408] ss:$12 sps:$4 sm:$0xff]  }
 0x7e2   :  { %v4412_v43 = vpack.c.bf16 %v4367_v50, %v4364_v12 }
 0x7e3   :  { %v4413_v15 = vpack.c.bf16 %v4368_v14, %v4365_v56  ;;  %v16256_v14 = vld [vmem:[#allocation25_spill] sm:$0xff] }
 0x7e5   :  { %v4198_v53 = vpop.f32.mrb[196].mxu0  ;;  %4980 = vmatprep.mubr.bf16.mxu0 %v4413_v15  ;;  %5206 = vmatprep.mubr.bf16.mxu1 %v4413_v15 }
 0x7e6   :  { %v4200_v54 = vpop.f32.mrb[197].mxu0  ;;  %4981 = vmatmul.mubr.bf16.vlgmr.msra.gmra.mrb[224].mxu0 %v4412_v43  ;;  %5207 = vmatmul.mubr.bf16.vlgmr.msra.gmra.mrb[224].mxu1 %v4412_v43  ;;  %v4370_v41 = vadd.f32 %v4198_v53, %v16250_v8  ;;  %v16257_v43 = vmax.f32 %v16256_v14, 0.0  ;;  %v11887_v14 = vld [vmem:[#allocation7 + $0x458] ss:$12 sps:$4 sm:$0xff]  }
 0x7e7   :  { %v4202_v24 = vpop.f32.mrb[198].mxu0  ;;  %5062 = vmatpush1.bf16.msra.mxu0 %v11860_v63  ;;  %10841 = vmatpush3.bf16.msra.mxu1 %v14295_v34  ;;  %v4371_v40 = vadd.f32 %v4200_v54, %v16253_v37  ;;  %v11866_v34 = vld [vmem:[#allocation7 + $0x3f0] ss:$12 sps:$4 sm:$0xff]  }
 0x7e8   :  { %v4373_v1 = vadd.f32 %v4202_v24, %v16251_v49  ;;  %v4204_v48 = vpop.f32.mrb[199].mxu0  ;;  %5063 = vmatprep.subr.bf16.mxu0 %v11865_v10  ;;  %10842 = vmatprep.subr.bf16.mxu1 %v11876_v60  ;;  %v16258_v63 = vld [vmem:[#allocation29_spill] sm:$0xff]  ;;  %v16262_v49 = vld [vmem:[#allocation30_spill] sm:$0xff] }
 0x7e9   :  { %v4374_v12 = vadd.f32 %v4204_v48, %v16255_v4  ;;  %v16259_v10 = vmax.f32 %v16258_v63, 0.0  ;;  %v11875_v54 = vld [vmem:[#allocation7 + $0x424] ss:$12 sps:$4 sm:$0xff]   ;;  %v11882_v24 = vld [vmem:[#allocation7 + $0x428] ss:$12 sps:$4 sm:$0xff]  }
 0x7ea   :  { %v4415_v55 = vpack.c.bf16 %v4373_v1, %v4370_v41  ;;  %v16263_v1 = vmax.f32 %v16262_v49, 0.0  ;;  %v11880_v37 = vld [vmem:[#allocation7 + $0x43c] ss:$12 sps:$4 sm:$0xff]  }
 0x7eb   :  { %v4416_v50 = vpack.c.bf16 %v4374_v12, %v4371_v40  ;;  %5064 = vmatpush1.bf16.msra.mxu0 %v11863_v26  ;;  %10843 = vmatpush3.bf16.msra.mxu1 %v11876_v60  ;;  %v16260_v26 = vld [vmem:[#allocation27_spill] sm:$0xff] }
 0x7ec   :  { %5065 = vmatprep.subr.bf16.mxu0 %v11868_v45  ;;  %10844 = vmatprep.subr.bf16.mxu1 %v11877_v11  ;;  %v16261_v8 = vmax.f32 %v16260_v26, 0.0  ;;  %v11886_v40 = vld [vmem:[#allocation7 + $0x440] ss:$12 sps:$4 sm:$0xff]  }
 0x7ed   :  { %v4208_v28 = vpop.f32.mrb[200].mxu0  ;;  %4990 = vmatprep.mubr.bf16.mxu0 %v4416_v50  ;;  %5214 = vmatprep.mubr.bf16.mxu1 %v4416_v50  ;;  %v16264_v50 = vld [vmem:[#allocation32_spill] sm:$0xff] }
 0x7ee   :  { %v4210_v39 = vpop.f32.mrb[201].mxu0  ;;  %4991 = vmatmul.mubr.bf16.gmra.mrb[228].mxu0 %v4415_v55  ;;  %5215 = vmatmul.mubr.bf16.gmra.mrb[228].mxu1 %v4415_v55  ;;  %v4376_v15 = vadd.f32 %v4208_v28, %v16257_v43  ;;  %v11878_v55 = vld [vmem:[#allocation7 + $0x438] ss:$12 sps:$4 sm:$0xff]   ;;  %v16266_v28 = vld [vmem:[#allocation37_spill] sm:$0xff] }
 0x7ef   :  { %v4212_v56 = vpop.f32.mrb[202].mxu0  ;;  %5066 = vmatpush1.bf16.msra.mxu0 %v11866_v34  ;;  %10845 = vmatpush3.bf16.msra.mxu1 %v11877_v11  ;;  %v4377_v41 = vadd.f32 %v4210_v39, %v16261_v8  ;;  %v11873_v11 = vld [vmem:[#allocation7 + $0x420] ss:$12 sps:$4 sm:$0xff]   ;;  %v16265_v34 = vmax.f32 %v16264_v50, 0.0  ;;  %v16267_v39 = vmax.f32 %v16266_v28, 0.0 }
 0x7f0   :  { %v4379_v60 = vadd.f32 %v4212_v56, %v16259_v10  ;;  %v4214_v53 = vpop.f32.mrb[203].mxu0  ;;  %5067 = vmatprep.subr.bf16.mxu0 %v11871_v47  ;;  %10846 = vmatprep.subr.bf16.mxu1 %v11881_v35  ;;  %v16268_v43 = vld [vmem:[#allocation35_spill] sm:$0xff]  ;;  %v16270_v10 = vld [vmem:[#allocation38_spill] sm:$0xff] }
 0x7f1   :  { %v4380_v48 = vadd.f32 %v4214_v53, %v16263_v1  ;;  %v11890_v8 = vld [vmem:[#allocation7 + $0x46c] ss:$12 sps:$4 sm:$0xff]  }
 0x7f2   :  { %v4418_v45 = vpack.c.bf16 %v4379_v60, %v4376_v15  ;;  %v16269_v15 = vmax.f32 %v16268_v43, 0.0  ;;  %v16271_v60 = vmax.f32 %v16270_v10, 0.0 }
 0x7f3   :  { %v4419_v3 = vpack.c.bf16 %v4380_v48, %v4377_v41  ;;  %5068 = vmatpush1.bf16.msra.mxu0 %v11869_v30  ;;  %10847 = vmatpush3.bf16.msra.mxu1 %v11881_v35  ;;  %v11885_v30 = vld [vmem:[#allocation7 + $0x454] ss:$12 sps:$4 sm:$0xff]   ;;  %v11891_v41 = vld [vmem:[#allocation7 + $0x470] ss:$12 sps:$4 sm:$0xff]  }
 0x7f4   :  { %5069 = vmatprep.subr.bf16.mxu0 %v11875_v54  ;;  %10848 = vmatprep.subr.bf16.mxu1 %v11882_v24 }
 0x7f5   :  { %v4218_v13 = vpop.f32.mrb[204].mxu0  ;;  %5000 = vmatprep.mubr.bf16.mxu0 %v4419_v3  ;;  %5222 = vmatprep.mubr.bf16.mxu1 %v4419_v3  ;;  %v16272_v3 = vld [vmem:[#allocation40_spill] sm:$0xff] }
 0x7f6   :  { %v4220_v4 = vpop.f32.mrb[205].mxu0  ;;  %5001 = vmatmul.mubr.bf16.gmra.mrb[232].mxu0 %v4418_v45  ;;  %5223 = vmatmul.mubr.bf16.gmra.mrb[232].mxu1 %v4418_v45  ;;  %v4382_v47 = vadd.f32 %v4218_v13, %v16265_v34  ;;  %v11888_v45 = vld [vmem:[#allocation7 + $0x468] ss:$12 sps:$4 sm:$0xff]  }
 0x7f7   :  { %v4222_v12 = vpop.f32.mrb[206].mxu0  ;;  %5070 = vmatpush1.bf16.msra.mxu0 %v11873_v11  ;;  %10849 = vmatpush3.bf16.msra.mxu1 %v11882_v24  ;;  %v4383_v63 = vadd.f32 %v4220_v4, %v16269_v15  ;;  %v11883_v24 = vld [vmem:[#allocation7 + $0x450] ss:$12 sps:$4 sm:$0xff]   ;;  %v16273_v11 = vmax.f32 %v16272_v3, 0.0  ;;  %v16280_v15 = vld [vmem:[#allocation48_spill] sm:$0xff] }
 0x7f8   :  { %v4385_v35 = vadd.f32 %v4222_v12, %v16267_v39  ;;  %v4224_v56 = vpop.f32.mrb[207].mxu0  ;;  %5071 = vmatprep.subr.bf16.mxu0 %v11880_v37  ;;  %10850 = vmatprep.subr.bf16.mxu1 %v11886_v40  ;;  %v16274_v13 = vld [vmem:[#allocation45_spill] sm:$0xff] }
 0x7f9   :  { %v4386_v53 = vadd.f32 %v4224_v56, %v16271_v60  ;;  %v16275_v4 = vmax.f32 %v16274_v13, 0.0  ;;  %v16282_v60 = vld [vmem:[#allocation53_spill] sm:$0xff] }
 0x7fa   :  { %v4421_v54 = vpack.c.bf16 %v4385_v35, %v4382_v47  ;;  %v16278_v47 = vld [vmem:[#allocation46_spill] sm:$0xff] }
 0x7fb   :  { %v4422_v26 = vpack.c.bf16 %v4386_v53, %v4383_v63  ;;  %5072 = vmatpush1.bf16.msra.mxu0 %v11878_v55  ;;  %10851 = vmatpush3.bf16.msra.mxu1 %v11886_v40  ;;  %v16276_v55 = vld [vmem:[#allocation43_spill] sm:$0xff]  ;;  %v16279_v28 = vmax.f32 %v16278_v47, 0.0  ;;  %v16281_v63 = vmax.f32 %v16280_v15, 0.0  ;;  %v16283_v53 = vmax.f32 %v16282_v60, 0.0 }
 0x7fc   :  { %5073 = vmatprep.subr.bf16.mxu0 %v11885_v30  ;;  %10852 = vmatprep.subr.bf16.mxu1 %v11887_v14  ;;  %v16277_v50 = vmax.f32 %v16276_v55, 0.0 }
 0x7fd   :  { %v4228_v49 = vpop.f32.mrb[208].mxu0  ;;  %5010 = vmatprep.mubr.bf16.mxu0 %v4422_v26  ;;  %5230 = vmatprep.mubr.bf16.mxu1 %v4422_v26 }
 0x7fe   :  { %v4230_v1 = vpop.f32.mrb[209].mxu0  ;;  %5011 = vmatmul.mubr.bf16.gmra.mrb[236].mxu0 %v4421_v54  ;;  %5231 = vmatmul.mubr.bf16.gmra.mrb[236].mxu1 %v4421_v54  ;;  %v4388_v37 = vadd.f32 %v4228_v49, %v16273_v11 }
 0x7ff   :  { %v4232_v48 = vpop.f32.mrb[210].mxu0  ;;  %5074 = vmatpush1.bf16.msra.mxu0 %v11883_v24  ;;  %10853 = vmatpush3.bf16.msra.mxu1 %v11887_v14  ;;  %v4389_v34 = vadd.f32 %v4230_v1, %v16277_v50  ;;  %v16284_v24 = vld [vmem:[#allocation51_spill] sm:$0xff]  ;;  %v16286_v1 = vld [vmem:[#allocation22_spill] sm:$0xff] }
 0x800   :  { %v4391_v40 = vadd.f32 %v4232_v48, %v16275_v4  ;;  %v4234_v12 = vpop.f32.mrb[211].mxu0  ;;  %5075 = vmatprep.subr.bf16.mxu0 %v11890_v8  ;;  %10854 = vmatprep.subr.bf16.mxu1 %v11891_v41  ;;  %v16285_v8 = vmax.f32 %v16284_v24, 0.0  ;;  %v16287_v48 = vmax.f32 %v16286_v1, 0.0  ;;  %v16288_v4 = vmax.f32 %v14104_v59, 0.0 }
 0x801   :  { %v4392_v39 = vadd.f32 %v4234_v12, %v16279_v28  ;;  %v16289_v12 = vmax.f32 %v14107_v58, 0.0 }
 0x802   :  { %v4424_v35 = vpack.c.bf16 %v4391_v40, %v4388_v37 }
 0x803   :  { %v4425_v56 = vpack.c.bf16 %v4392_v39, %v4389_v34  ;;  %5076 = vmatpush1.bf16.msra.mxu0 %v11888_v45  ;;  %10855 = vmatpush3.bf16.msra.mxu1 %v11891_v41  ;;  %v16290_v34 = vld [vmem:[#allocation26_spill] sm:$0xff]  ;;  %v16292_v39 = vld [vmem:[#allocation24_spill] sm:$0xff] }
 0x804   :  { %v16291_v47 = vmax.f32 %v16290_v34, 0.0  ;;  %v11918_v34 = vld [vmem:[#allocation8 + $0x304] ss:$12 sps:$4 sm:$0xff]  }
 0x805   :  { %v4238_v30 = vpop.f32.mrb[212].mxu0  ;;  %5020 = vmatprep.mubr.bf16.mxu0 %v4425_v56  ;;  %5238 = vmatprep.mubr.bf16.mxu1 %v4425_v56 }
 0x806   :  { %v4240_v14 = vpop.f32.mrb[213].mxu0  ;;  %5021 = vmatmul.mubr.bf16.gmra.mrb[240].mxu0 %v4424_v35  ;;  %5239 = vmatmul.mubr.bf16.gmra.mrb[240].mxu1 %v4424_v35  ;;  %v4394_v10 = vadd.f32 %v4238_v30, %v16281_v63  ;;  %v16293_v35 = vmax.f32 %v16292_v39, 0.0  ;;  %v16294_v63 = vmax.f32 %v14134_v27, 0.0  ;;  %v11894_v27 = vld [vmem:[#allocation8 + $0x244] ss:$12 sps:$4 sm:$0xff]  }
 0x807   :  { %v4242_v43 = vpop.f32.mrb[214].mxu0  ;;  %v4395_v49 = vadd.f32 %v4240_v14, %v16285_v8  ;;  %5952 = vmatprep.subr.bf16.mxu1 %v11894_v27  ;;  %v11920_v39 = vld [vmem:[#allocation8 + $0x248] ss:$12 sps:$4 sm:$0xff]   ;;  %v11950_v27 = vld [vmem:[#allocation8 + $0x2d8] ss:$12 sps:$4 sm:$0xff]  }
 0x808   :  { %v4397_v54 = vadd.f32 %v4242_v43, %v16283_v53  ;;  %v4244_v26 = vpop.f32.mrb[215].mxu0 }
 0x809   :  { %v4398_v41 = vadd.f32 %v4244_v26, %v16287_v48  ;;  %v16297_v26 = vld [vmem:[#allocation28_spill] sm:$0xff] }
 0x80a   :  { %v4427_v45 = vpack.c.bf16 %v4397_v54, %v4394_v10  ;;  %v16295_v10 = vld [vmem:[#allocation33_spill] sm:$0xff]  ;;  %v16298_v24 = vmax.f32 %v16297_v26, 0.0 }
 0x80b   :  { %v4428_v3 = vpack.c.bf16 %v4398_v41, %v4395_v49  ;;  %v16296_v60 = vmax.f32 %v16295_v10, 0.0  ;;  %v16299_v49 = vld [vmem:[#allocation34_spill] sm:$0xff]  ;;  %v11940_v26 = vld [vmem:[#allocation8 + $0x2a8] ss:$12 sps:$4 sm:$0xff]  }
 0x80c   :  { %v16300_v1 = vmax.f32 %v16299_v49, 0.0  ;;  %v11935_v10 = vld [vmem:[#allocation8 + $0x290] ss:$12 sps:$4 sm:$0xff]   ;;  %v11944_v49 = vld [vmem:[#allocation8 + $0x380] ss:$12 sps:$4 sm:$0xff]  }
 0x80d   :  { %v4248_v11 = vpop.f32.mrb[216].mxu0  ;;  %5030 = vmatprep.mubr.bf16.mxu0 %v4428_v3  ;;  %5246 = vmatprep.mubr.bf16.mxu1 %v4428_v3  ;;  %v11897_v3 = vld [vmem:[#allocation8 + $0x25c] ss:$12 sps:$4 sm:$0xff]  }
 0x80e   :  { %v4250_v37 = vpop.f32.mrb[217].mxu0  ;;  %5031 = vmatmul.mubr.bf16.gmra.mrb[244].mxu0 %v4427_v45  ;;  %5247 = vmatmul.mubr.bf16.gmra.mrb[244].mxu1 %v4427_v45  ;;  %v4400_v40 = vadd.f32 %v4248_v11, %v16288_v4  ;;  %v11898_v11 = vld [vmem:[#allocation8 + $0x270] ss:$12 sps:$4 sm:$0xff]   ;;  %v11904_v4 = vld [vmem:[#allocation8 + $0x2a0] ss:$12 sps:$4 sm:$0xff]  }
 0x80f   :  { %v4252_v13 = vpop.f32.mrb[218].mxu0  ;;  %v4401_v28 = vadd.f32 %v4250_v37, %v16291_v47  ;;  %v11903_v37 = vld [vmem:[#allocation8 + $0x28c] ss:$12 sps:$4 sm:$0xff]   ;;  %v11919_v47 = vld [vmem:[#allocation8 + $0x308] ss:$12 sps:$4 sm:$0xff]  }
 0x810   :  { %v4403_v55 = vadd.f32 %v4252_v13, %v16289_v12  ;;  %v4254_v50 = vpop.f32.mrb[219].mxu0  ;;  %v11906_v13 = vld [vmem:[#allocation8 + $0x2a4] ss:$12 sps:$4 sm:$0xff]   ;;  %v11912_v12 = vld [vmem:[#allocation8 + $0x2d4] ss:$12 sps:$4 sm:$0xff]   ;;  %10295 = vmatprep.subr.bf16.mxu0 %v11919_v47 }
 0x811   :  { %v4404_v56 = vadd.f32 %v4254_v50, %v16293_v35  ;;  %v11915_v50 = vld [vmem:[#allocation8 + $0x2ec] ss:$12 sps:$4 sm:$0xff]   ;;  %v11923_v35 = vld [vmem:[#allocation8 + $0x31c] ss:$12 sps:$4 sm:$0xff]  }
 0x812   :  { %v4430_v30 = vpack.c.bf16 %v4403_v55, %v4400_v40  ;;  %v11909_v40 = vld [vmem:[#allocation8 + $0x2bc] ss:$12 sps:$4 sm:$0xff]  }
 0x813   :  { %v4431_v14 = vpack.c.bf16 %v4404_v56, %v4401_v28  ;;  %v11910_v55 = vld [vmem:[#allocation8 + $0x2d0] ss:$12 sps:$4 sm:$0xff]   ;;  %v11916_v28 = vld [vmem:[#allocation8 + $0x300] ss:$12 sps:$4 sm:$0xff]  }
 0x814   :  { %v11924_v56 = vld [vmem:[#allocation8 + $0x320] ss:$12 sps:$4 sm:$0xff]  }
 0x815   :  { %v4258_v43 = vpop.f32.mrb[220].mxu0  ;;  %5040 = vmatprep.mubr.bf16.mxu0 %v4431_v14  ;;  %5254 = vmatprep.mubr.bf16.mxu1 %v4431_v14  ;;  %v11928_v14 = vld [vmem:[#allocation8 + $0x334] ss:$12 sps:$4 sm:$0xff]  }
 0x816   :  { %v4260_v15 = vpop.f32.mrb[221].mxu0  ;;  %5041 = vmatmul.mubr.bf16.gmra.mrb[248].mxu0 %v4430_v30  ;;  %5255 = vmatmul.mubr.bf16.gmra.mrb[248].mxu1 %v4430_v30  ;;  %v4406_v58 = vadd.f32 %v4258_v43, %v16294_v63  ;;  %v11925_v30 = vld [vmem:[#allocation8 + $0x260] ss:$12 sps:$4 sm:$0xff]   ;;  %v11926_v43 = vld [vmem:[#allocation8 + $0x330] ss:$12 sps:$4 sm:$0xff]  }
 0x817   :  { %v4262_v59 = vpop.f32.mrb[222].mxu0  ;;  %v4407_v8 = vadd.f32 %v4260_v15, %v16298_v24  ;;  %v11930_v15 = vld [vmem:[#allocation8 + $0x278] ss:$12 sps:$4 sm:$0xff]  }
 0x818   :  { %v4409_v53 = vadd.f32 %v4262_v59, %v16296_v60  ;;  %v4264_v54 = vpop.f32.mrb[223].mxu0  ;;  %v11931_v59 = vld [vmem:[#allocation8 + $0x348] ss:$12 sps:$4 sm:$0xff]   ;;  %v11933_v63 = vld [vmem:[#allocation8 + $0x34c] ss:$12 sps:$4 sm:$0xff]  }
 0x819   :  { %v4410_v48 = vadd.f32 %v4264_v54, %v16300_v1  ;;  %v11938_v60 = vld [vmem:[#allocation8 + $0x364] ss:$12 sps:$4 sm:$0xff]   ;;  %v11936_v54 = vld [vmem:[#allocation8 + $0x360] ss:$12 sps:$4 sm:$0xff]  }
 0x81a   :  { %v4433_v41 = vpack.c.bf16 %v4409_v53, %v4406_v58  ;;  %v11934_v58 = vld [vmem:[#allocation8 + $0x350] ss:$12 sps:$4 sm:$0xff]   ;;  %v11939_v53 = vld [vmem:[#allocation8 + $0x368] ss:$12 sps:$4 sm:$0xff]   ;;  %v11941_v24 = vld [vmem:[#allocation8 + $0x378] ss:$12 sps:$4 sm:$0xff]  }
 0x81b   :  { %v4434_v45 = vpack.c.bf16 %v4410_v48, %v4407_v8  ;;  %v11943_v8 = vld [vmem:[#allocation8 + $0x37c] ss:$12 sps:$4 sm:$0xff]   ;;  %v11945_v1 = vld [vmem:[#allocation8 + $0x2c0] ss:$12 sps:$4 sm:$0xff]  }
 0x81c   :  { %v11948_v48 = vld [vmem:[#allocation8 + $0x394] ss:$12 sps:$4 sm:$0xff]  }
 0x81d   :  { %5050 = vmatprep.mubr.bf16.mxu0 %v4434_v45  ;;  %5262 = vmatprep.mubr.bf16.mxu1 %v4434_v45  ;;  %v11946_v45 = vld [vmem:[#allocation8 + $0x390] ss:$12 sps:$4 sm:$0xff]  }
 0x81e   :  { %5051 = vmatmul.mubr.bf16.gmra.mrb[252].mxu0 %v4433_v41  ;;  %5263 = vmatmul.mubr.bf16.gmra.mrb[252].mxu1 %v4433_v41  ;;  %v11949_v41 = vld [vmem:[#allocation8 + $0x398] ss:$12 sps:$4 sm:$0xff]  }
 0x81f   :  { %10856 = vmatprep.mubr.bf16.mxu1 %v14308_v29  ;;  %5093 = vmatprep.mubr.bf16.mxu0 %v16049_v22 }
 0x826   :  { %5094 = vmatmul.mubr.bf16.vlgmr.msra.gmra.mrb[224].mxu0 %v14308_v29  ;;  %10857 = vmatmul.mubr.bf16.vlgmr.msra.gmra.mrb[0].mxu1 %v14306_v51  ;;  %v11895_v29 = vld [vmem:[#allocation8 + $0x258] ss:$12 sps:$4 sm:$0xff]  }
 0x827   :  { %10860 = vmatprep.mubr.bf16.mxu1 %v14320_v25  ;;  %5103 = vmatprep.mubr.bf16.mxu0 %v16049_v22 }
 0x828   :  { %10296 = vmatpush3.bf16.msra.mxu0 %v11920_v39 }
 0x829   :  { %10297 = vmatprep.subr.bf16.mxu0 %v11924_v56 }
 0x82c   :  { %10298 = vmatpush3.bf16.msra.mxu0 %v11925_v30 }
 0x82e   :  { %5104 = vmatmul.mubr.bf16.gmra.mrb[228].mxu0 %v14306_v51  ;;  %10861 = vmatmul.mubr.bf16.gmra.mrb[4].mxu1 %v14318_v33  ;;  %v11892_v51 = vld [vmem:[#allocation8 + $0x240] ss:$12 sps:$4 sm:$0xff]  }
 0x82f   :  { %10864 = vmatprep.mubr.bf16.mxu1 %v14332_v32  ;;  %5113 = vmatprep.mubr.bf16.mxu0 %v16049_v22 }
 0x830   :  { %5953 = vmatpush1.bf16.msra.mxu1 %v11892_v51  ;;  %v11953_v51 = vld [vmem:[#allocation8 + $0x3ac] ss:$12 sps:$4 sm:$0xff]  }
 0x831   :  { %5954 = vmatprep.subr.bf16.mxu1 %v11897_v3  ;;  %v11951_v3 = vld [vmem:[#allocation8 + $0x3a8] ss:$12 sps:$4 sm:$0xff]  }
 0x834   :  { %5955 = vmatpush1.bf16.msra.mxu1 %v11895_v29  ;;  %v11954_v29 = vld [vmem:[#allocation8 + $0x3b0] ss:$12 sps:$4 sm:$0xff]  }
 0x836   :  { %5114 = vmatmul.mubr.bf16.gmra.mrb[232].mxu0 %v14320_v25  ;;  %10865 = vmatmul.mubr.bf16.gmra.mrb[8].mxu1 %v14330_v6  ;;  %v11900_v25 = vld [vmem:[#allocation8 + $0x274] ss:$12 sps:$4 sm:$0xff]  }
 0x837   :  { %10868 = vmatprep.mubr.bf16.mxu1 %v14344_v5  ;;  %5123 = vmatprep.mubr.bf16.mxu0 %v16049_v22 }
 0x838   :  { %5956 = vmatprep.subr.bf16.mxu1 %v11900_v25  ;;  %v11955_v25 = vld [vmem:[#allocation8 + $0x2f0] ss:$12 sps:$4 sm:$0xff]  }
 0x839   :  { %5957 = vmatpush1.bf16.msra.mxu1 %v11898_v11  ;;  %v11958_v11 = vld [vmem:[#allocation8 + $0x3c4] ss:$12 sps:$4 sm:$0xff]  }
 0x83a   :  { %5958 = vmatprep.subr.bf16.mxu1 %v11903_v37 }
 0x83e   :  { %5124 = vmatmul.mubr.bf16.gmra.mrb[236].mxu0 %v14318_v33  ;;  %10869 = vmatmul.mubr.bf16.gmra.mrb[12].mxu1 %v14342_v46  ;;  %v11901_v33 = vld [vmem:[#allocation8 + $0x288] ss:$12 sps:$4 sm:$0xff]  }
 0x83f   :  { %5133 = vmatprep.mubr.bf16.mxu0 %v16049_v22  ;;  %5959 = vmatpush1.bf16.msra.mxu1 %v11901_v33  ;;  %v14435_v33 = vld [vmem:[#allocation8 + $0x3c8] ss:$12 sps:$4 sm:$0xff]  }
 0x840   :  { %5960 = vmatprep.subr.bf16.mxu1 %v11906_v13 }
 0x843   :  { %5961 = vmatpush1.bf16.msra.mxu1 %v11904_v4 }
 0x844   :  { %5962 = vmatprep.subr.bf16.mxu1 %v11909_v40 }
 0x846   :  { %5134 = vmatmul.mubr.bf16.gmra.mrb[240].mxu0 %v14332_v32  ;;  %v11907_v32 = vld [vmem:[#allocation8 + $0x2b8] ss:$12 sps:$4 sm:$0xff]  }
 0x847   :  { %5143 = vmatprep.mubr.bf16.mxu0 %v16049_v22  ;;  %5963 = vmatpush1.bf16.msra.mxu1 %v11907_v32 }
 0x848   :  { %5964 = vmatprep.subr.bf16.mxu1 %v11912_v12 }
 0x84b   :  { %5965 = vmatpush1.bf16.msra.mxu1 %v11910_v55 }
 0x84c   :  { %5966 = vmatprep.subr.bf16.mxu1 %v11915_v50 }
 0x84e   :  { %5144 = vmatmul.mubr.bf16.gmra.mrb[244].mxu0 %v14330_v6  ;;  %v11913_v6 = vld [vmem:[#allocation8 + $0x2e8] ss:$12 sps:$4 sm:$0xff]  }
 0x84f   :  { %5153 = vmatprep.mubr.bf16.mxu0 %v16049_v22  ;;  %5967 = vmatpush1.bf16.msra.mxu1 %v11913_v6 }
 0x850   :  { %5968 = vmatprep.subr.bf16.mxu1 %v11918_v34 }
 0x853   :  { %5969 = vmatpush1.bf16.msra.mxu1 %v11916_v28 }
 0x854   :  { %5970 = vmatprep.subr.bf16.mxu1 %v11923_v35 }
 0x856   :  { %5154 = vmatmul.mubr.bf16.gmra.mrb[248].mxu0 %v14344_v5  ;;  %v11921_v5 = vld [vmem:[#allocation8 + $0x318] ss:$12 sps:$4 sm:$0xff]  }
 0x857   :  { %5163 = vmatprep.mubr.bf16.mxu0 %v16049_v22  ;;  %5971 = vmatpush1.bf16.msra.mxu1 %v11921_v5 }
 0x858   :  { %5972 = vmatprep.subr.bf16.mxu1 %v11928_v14 }
 0x85b   :  { %5973 = vmatpush1.bf16.msra.mxu1 %v11926_v43 }
 0x85c   :  { %5974 = vmatprep.subr.bf16.mxu1 %v11933_v63 }
 0x85e   :  { %5164 = vmatmul.mubr.bf16.gmra.mrb[252].mxu0 %v14342_v46  ;;  %v11929_v46 = vld [vmem:[#allocation8 + $0x338] ss:$12 sps:$4 sm:$0xff]  }
 0x85f   :  { %10299 = vmatprep.subr.bf16.mxu0 %v11929_v46  ;;  %5975 = vmatpush1.bf16.msra.mxu1 %v11931_v59 }
 0x860   :  { %10300 = vmatpush3.bf16.msra.mxu0 %v11930_v15  ;;  %5976 = vmatprep.subr.bf16.mxu1 %v11938_v60 }
 0x861   :  { %10301 = vmatprep.subr.bf16.mxu0 %v11934_v58 }
 0x863   :  { %5977 = vmatpush1.bf16.msra.mxu1 %v11936_v54 }
 0x864   :  { %10302 = vmatpush3.bf16.msra.mxu0 %v11935_v10  ;;  %5978 = vmatprep.subr.bf16.mxu1 %v11943_v8 }
 0x865   :  { %10303 = vmatprep.subr.bf16.mxu0 %v11939_v53 }
 0x867   :  { %5979 = vmatpush1.bf16.msra.mxu1 %v11941_v24 }
 0x868   :  { %10304 = vmatpush3.bf16.msra.mxu0 %v11940_v26  ;;  %5980 = vmatprep.subr.bf16.mxu1 %v11948_v48 }
 0x869   :  { %10305 = vmatprep.subr.bf16.mxu0 %v11944_v49 }
 0x86b   :  { %5981 = vmatpush1.bf16.msra.mxu1 %v11946_v45 }
 0x86c   :  { %10306 = vmatpush3.bf16.msra.mxu0 %v11945_v1  ;;  %5982 = vmatprep.subr.bf16.mxu1 %v11953_v51 }
 0x86d   :  { %10307 = vmatprep.subr.bf16.mxu0 %v11949_v41 }
 0x86f   :  { %5983 = vmatpush1.bf16.msra.mxu1 %v11951_v3 }
 0x870   :  { %10308 = vmatpush3.bf16.msra.mxu0 %v11950_v27  ;;  %6065 = vmatprep.subr.bf16.mxu1 %v11958_v11 }
 0x871   :  { %10309 = vmatprep.subr.bf16.mxu0 %v11954_v29  ;;  %v9603_v29 = vld [vmem:[%s15526_s10 + $0x3] sm:$0x7] }
 0x874   :  { %10310 = vmatpush3.bf16.msra.mxu0 %v11955_v25 }
 0x875   :  { %10872 = vmatprep.subr.bf16.mxu0 %v14435_v33 }
 0x8b9   :  { %v10231_v37 = vpop.f32.mrb[224].mxu1 }
 0x8ba   :  { %v10232_v13 = vpop.f32.mrb[225].mxu1 }
 0x8bb   :  { %v10233_v4 = vadd.f32 %v10232_v13, %v10231_v37  ;;  %v10234_v32 = vpop.f32.mrb[226].mxu1  ;;  %v4535_v13 = vunpack.c.l.bf16 %v9603_v29 }
 0x8bc   :  { %v10235_v40 = vpop.f32.mrb[227].mxu1 }
 0x8bd   :  { %v14438_v12 = vadd.f32 %v10235_v40, %v10234_v32  ;;  %v16301_v40 = vld [vmem:[#allocation20_spill] sm:$0xff] }
 0x8c1   :  { %v10237_v55 = vpop.f32.mrb[228].mxu1 }
 0x8c2   :  { %v10238_v6 = vpop.f32.mrb[229].mxu1 }
 0x8c3   :  { %v10239_v50 = vadd.f32 %v10238_v6, %v10237_v55  ;;  %v10240_v34 = vpop.f32.mrb[230].mxu1  ;;  %v4548_v55 = vrot.slane %v4535_v13, %v16301_v40 }
 0x8c4   :  { %v10241_v47 = vpop.f32.mrb[231].mxu1 }
 0x8c5   :  { %v10242_v28 = vadd.f32 %v10241_v47, %v10240_v34  ;;  %v16302_v34 = vld [vmem:[#allocation19_spill] sm:$0xff] }
 0x8c6   :  { %v4540_v47 = vrot.slane %v4535_v13, %v16302_v34 }
 0x8c9   :  { %v10243_v39 = vpop.f32.mrb[232].mxu1 }
 0x8ca   :  { %v10244_v5 = vpop.f32.mrb[233].mxu1 }
 0x8cb   :  { %v14440_v35 = vadd.f32 %v10244_v5, %v10243_v39  ;;  %v10246_v56 = vpop.f32.mrb[234].mxu1 }
 0x8cc   :  { %v10247_v30 = vpop.f32.mrb[235].mxu1 }
 0x8cd   :  { %v14442_v14 = vadd.f32 %v10247_v30, %v10246_v56  ;;  %v16303_v56 = vld [vmem:[#allocation21_spill] sm:$0xff] }
 0x8ce   :  { %v4544_v30 = vrot.slane %v4535_v13, %v16303_v56 }
 0x8d1   :  { %v10249_v46 = vpop.f32.mrb[236].mxu1 }
 0x8d2   :  { %v10250_v43 = vpop.f32.mrb[237].mxu1 }
 0x8d3   :  { %v14444_v15 = vadd.f32 %v10250_v43, %v10249_v46  ;;  %v10252_v59 = vpop.f32.mrb[238].mxu1 }
 0x8d4   :  { %v10253_v63 = vpop.f32.mrb[239].mxu1 }
 0x8d5   :  { %v14446_v58 = vadd.f32 %v10253_v63, %v10252_v59  ;;  %v14471_v59 = vrot.slane %v4548_v55, %v16302_v34  ;;  %v14474_v63 = vrot.slane %v4540_v47, %v16302_v34 }
 0x8d9   :  { %v10255_v10 = vpop.f32.mrb[240].mxu1 }
 0x8da   :  { %v10256_v60 = vpop.f32.mrb[241].mxu1 }
 0x8db   :  { %v14448_v53 = vadd.f32 %v10256_v60, %v10255_v10  ;;  %v10258_v54 = vpop.f32.mrb[242].mxu1  ;;  %v14477_v10 = vrot.slane %v4544_v30, %v16302_v34  ;;  %v5217_v60 = vadd.f32 %v10239_v50, %v14471_v59 }
 0x8dc   :  { %v10259_v26 = vpop.f32.mrb[243].mxu1 }
 0x8dd   :  { %v14450_v24 = vadd.f32 %v10259_v26, %v10258_v54 }
 0x8e1   :  { %v10261_v8 = vpop.f32.mrb[244].mxu1 }
 0x8e2   :  { %v10262_v49 = vpop.f32.mrb[245].mxu1 }
 0x8e3   :  { %v14452_v1 = vadd.f32 %v10262_v49, %v10261_v8  ;;  %v10264_v48 = vpop.f32.mrb[246].mxu1  ;;  %v5209_v8 = vadd.f32 %v10233_v4, %v14471_v59 }
 0x8e4   :  { %v10265_v41 = vpop.f32.mrb[247].mxu1 }
 0x8e5   :  { %v14454_v45 = vadd.f32 %v10265_v41, %v10264_v48 }
 0x8e9   :  { %v10267_v27 = vpop.f32.mrb[248].mxu1 }
 0x8ea   :  { %v10268_v51 = vpop.f32.mrb[249].mxu1 }
 0x8eb   :  { %v14459_v3 = vadd.f32 %v10268_v51, %v10267_v27  ;;  %v10270_v25 = vpop.f32.mrb[250].mxu1  ;;  %v5220_v51 = vadd.f32 %v10242_v28, %v14471_v59 }
 0x8ec   :  { %v10271_v11 = vpop.f32.mrb[251].mxu1 }
 0x8ed   :  { %v14461_v37 = vadd.f32 %v10271_v11, %v10270_v25 }
 0x8f1   :  { %v10273_v32 = vpop.f32.mrb[252].mxu1 }
 0x8f2   :  { %v10274_v6 = vpop.f32.mrb[253].mxu1 }
 0x8f3   :  { %v14465_v39 = vadd.f32 %v10274_v6, %v10273_v32  ;;  %v10276_v5 = vpop.f32.mrb[254].mxu1  ;;  %v5212_v32 = vadd.f32 %v14438_v12, %v14471_v59  ;;  %v5233_v12 = vadd.f32 %v14444_v15, %v14471_v59 }
 0x8f4   :  { %v10277_v46 = vpop.f32.mrb[255].mxu1 }
 0x8f5   :  { %v14468_v43 = vadd.f32 %v10277_v46, %v10276_v5 }
 0x8f9   :  { %v5095_v54 = vpop.f32.mrb[224].mxu0  ;;  %v10858_v26 = vpop.f32.mrb[0].mxu1 }
 0x8fa   :  { %v11187_v49 = vadd.f32 %v5095_v54, %v14474_v63  ;;  %v5314_v48 = vadd.f32 %v10858_v26, %v5217_v60  ;;  %v5097_v41 = vpop.f32.mrb[225].mxu0  ;;  %v5305_v27 = vpop.f32.mrb[1].mxu1 }
 0x8fb   :  { %v11188_v29 = vadd.f32 %v5097_v41, %v14477_v10  ;;  %v5306_v25 = vadd.f32 %v5305_v27, %v5209_v8  ;;  %v5099_v11 = vpop.f32.mrb[226].mxu0  ;;  %v10859_v13 = vpop.f32.mrb[2].mxu1 }
 0x8fc   :  { %v11189_v50 = vadd.f32 %v5099_v11, %v14474_v63  ;;  %v5317_v55 = vadd.f32 %v10859_v13, %v5220_v51  ;;  %v5101_v6 = vpop.f32.mrb[227].mxu0  ;;  %v5308_v4 = vpop.f32.mrb[3].mxu1  ;;  %v5368_v30 = vmax.f32 %v11187_v49, 0.0  ;;  %v5376_v46 = vmax.f32 %v5314_v48, 0.0  ;;  %v11956_v48 = vld [vmem:[#allocation8 + $0x3c0] ss:$12 sps:$4 sm:$0xff]  }
 0x8fd   :  { %v11190_v47 = vadd.f32 %v5101_v6, %v14477_v10  ;;  %v5309_v5 = vadd.f32 %v5308_v4, %v5212_v32  ;;  %v5369_v54 = vmax.f32 %v11188_v29, 0.0  ;;  %v5370_v26 = vmax.f32 %v5306_v25, 0.0  ;;  %v11961_v4 = vld [vmem:[#allocation8 + $0x3dc] ss:$12 sps:$4 sm:$0xff]  }
 0x8fe   :  { %v5371_v60 = vmax.f32 %v11189_v50, 0.0  ;;  %v5379_v28 = vmax.f32 %v5317_v55, 0.0  ;;  %v5225_v49 = vadd.f32 %v14440_v35, %v14471_v59  ;;  %v5236_v55 = vadd.f32 %v14446_v58, %v14471_v59 }
 0x8ff   :  { %v5372_v8 = vmax.f32 %v11190_v47, 0.0  ;;  %v5373_v41 = vmax.f32 %v5309_v5, 0.0  ;;  %v11972_v47 = vld [vmem:[#allocation8 + $0x3e0] ss:$12 sps:$4 sm:$0xff]   ;;  %v5228_v35 = vadd.f32 %v14442_v14, %v14471_v59  ;;  %v11973_v14 = vld [vmem:[#allocation8 + $0x3f8] ss:$12 sps:$4 sm:$0xff]  }
 0x900   :  { %v5416_v27 = vpack.c.bf16 %v5371_v60, %v5368_v30  ;;  %v14488_v20 = vpack.c.bf16 %v5379_v28, %v5376_v46 }
 0x901   :  { %v5417_v51 = vpack.c.bf16 %v5372_v8, %v5369_v54  ;;  %v14492_v11 = vpack.c.bf16 %v5373_v41, %v5370_v26  ;;  %v5105_v13 = vpop.f32.mrb[228].mxu0  ;;  %v10862_v6 = vpop.f32.mrb[4].mxu1  ;;  %v11959_v41 = vld [vmem:[#allocation8 + $0x3d8] ss:$12 sps:$4 sm:$0xff]  }
 0x902   :  { %v11191_v29 = vadd.f32 %v5105_v13, %v14474_v63  ;;  %v5330_v25 = vadd.f32 %v10862_v6, %v5233_v12  ;;  %v5107_v32 = vpop.f32.mrb[229].mxu0  ;;  %v5321_v50 = vpop.f32.mrb[5].mxu1  ;;  %v11964_v12 = vld [vmem:[#allocation8 + $0x3f4] ss:$12 sps:$4 sm:$0xff]  }
 0x903   :  { %v11192_v15 = vadd.f32 %v5107_v32, %v14477_v10  ;;  %v5322_v5 = vadd.f32 %v5321_v50, %v5225_v49  ;;  %v5109_v30 = vpop.f32.mrb[230].mxu0  ;;  %v10863_v46 = vpop.f32.mrb[6].mxu1  ;;  %5984 = vmatprep.mubr.bf16.mxu1 %v5417_v51  ;;  %6210 = vmatprep.mubr.bf16.mxu0 %v5417_v51 }
 0x904   :  { %v11193_v60 = vadd.f32 %v5109_v30, %v14474_v63  ;;  %v5333_v28 = vadd.f32 %v10863_v46, %v5236_v55  ;;  %v5111_v54 = vpop.f32.mrb[231].mxu0  ;;  %v5324_v26 = vpop.f32.mrb[7].mxu1  ;;  %5985 = vmatmul.mubr.bf16.vlgmr.msra.gmra.mrb[16].mxu1 %v5416_v27  ;;  %6211 = vmatmul.mubr.bf16.vlgmr.msra.gmra.mrb[0].mxu0 %v5416_v27  ;;  %v5374_v13 = vmax.f32 %v11191_v29, 0.0  ;;  %v5388_v51 = vmax.f32 %v5330_v25, 0.0 }
 0x905   :  { %v11194_v58 = vadd.f32 %v5111_v54, %v14477_v10  ;;  %v5325_v8 = vadd.f32 %v5324_v26, %v5228_v35  ;;  %6066 = vmatpush1.bf16.msra.mxu1 %v11956_v48  ;;  %10873 = vmatpush3.bf16.msra.mxu0 %v14435_v33  ;;  %v5375_v32 = vmax.f32 %v11192_v15, 0.0  ;;  %v5382_v50 = vmax.f32 %v5322_v5, 0.0 }
 0x906   :  { %v5377_v6 = vmax.f32 %v11193_v60, 0.0  ;;  %v5391_v49 = vmax.f32 %v5333_v28, 0.0  ;;  %6067 = vmatprep.subr.bf16.mxu1 %v11961_v4  ;;  %10874 = vmatprep.subr.bf16.mxu0 %v11972_v47  ;;  %v5249_v48 = vadd.f32 %v14452_v1, %v14471_v59  ;;  %v5241_v25 = vadd.f32 %v14448_v53, %v14471_v59  ;;  %v11962_v4 = vld [vmem:[#allocation8 + $0x3f0] ss:$12 sps:$4 sm:$0xff]   ;;  %v11967_v1 = vld [vmem:[#allocation8 + $0x40c] ss:$12 sps:$4 sm:$0xff]  }
 0x907   :  { %v5378_v55 = vmax.f32 %v11194_v58, 0.0  ;;  %v5385_v30 = vmax.f32 %v5325_v8, 0.0  ;;  %v5252_v26 = vadd.f32 %v14454_v45, %v14471_v59  ;;  %v11977_v58 = vld [vmem:[#allocation8 + $0x410] ss:$12 sps:$4 sm:$0xff]  }
 0x908   :  { %v5419_v27 = vpack.c.bf16 %v5377_v6, %v5374_v13  ;;  %v14505_v46 = vpack.c.bf16 %v5391_v49, %v5388_v51 }
 0x909   :  { %v5420_v35 = vpack.c.bf16 %v5378_v55, %v5375_v32  ;;  %v14509_v54 = vpack.c.bf16 %v5385_v30, %v5382_v50  ;;  %v5115_v33 = vpop.f32.mrb[232].mxu0  ;;  %v10866_v29 = vpop.f32.mrb[8].mxu1  ;;  %6068 = vmatpush1.bf16.msra.mxu1 %v11959_v41  ;;  %10875 = vmatpush3.bf16.msra.mxu0 %v11972_v47  ;;  %v5244_v47 = vadd.f32 %v14450_v24, %v14471_v59  ;;  %v11965_v50 = vld [vmem:[#allocation8 + $0x408] ss:$12 sps:$4 sm:$0xff]   ;;  %v11971_v55 = vld [vmem:[#allocation8 + $0x424] ss:$12 sps:$4 sm:$0xff]  }
 0x90a   :  { %v11195_v15 = vadd.f32 %v5115_v33, %v14474_v63  ;;  %v5346_v5 = vadd.f32 %v10866_v29, %v5249_v48  ;;  %v5117_v60 = vpop.f32.mrb[233].mxu0  ;;  %v5337_v28 = vpop.f32.mrb[9].mxu1  ;;  %6069 = vmatprep.subr.bf16.mxu1 %v11964_v12  ;;  %10876 = vmatprep.subr.bf16.mxu0 %v11973_v14  ;;  %v11978_v24 = vld [vmem:[#allocation8 + $0x428] ss:$12 sps:$4 sm:$0xff]  }
 0x90b   :  { %v11196_v8 = vadd.f32 %v5117_v60, %v14477_v10  ;;  %v5338_v13 = vadd.f32 %v5337_v28, %v5241_v25  ;;  %v5119_v51 = vpop.f32.mrb[234].mxu0  ;;  %v10867_v53 = vpop.f32.mrb[10].mxu1  ;;  %5994 = vmatprep.mubr.bf16.mxu1 %v5420_v35  ;;  %6218 = vmatprep.mubr.bf16.mxu0 %v5420_v35 }
 0x90c   :  { %v11197_v41 = vadd.f32 %v5119_v51, %v14474_v63  ;;  %v5349_v6 = vadd.f32 %v10867_v53, %v5252_v26  ;;  %v5121_v49 = vpop.f32.mrb[235].mxu0  ;;  %v5340_v32 = vpop.f32.mrb[11].mxu1  ;;  %5995 = vmatmul.mubr.bf16.gmra.mrb[20].mxu1 %v5419_v27  ;;  %6219 = vmatmul.mubr.bf16.gmra.mrb[4].mxu0 %v5419_v27  ;;  %v5380_v30 = vmax.f32 %v11195_v15, 0.0  ;;  %v5400_v48 = vmax.f32 %v5346_v5, 0.0 }
 0x90d   :  { %v11198_v45 = vadd.f32 %v5121_v49, %v14477_v10  ;;  %v5341_v12 = vadd.f32 %v5340_v32, %v5244_v47  ;;  %6070 = vmatpush1.bf16.msra.mxu1 %v11962_v4  ;;  %10877 = vmatpush3.bf16.msra.mxu0 %v11973_v14  ;;  %v5381_v29 = vmax.f32 %v11196_v8, 0.0  ;;  %v5394_v25 = vmax.f32 %v5338_v13, 0.0  ;;  %v11982_v49 = vld [vmem:[#allocation8 + $0x440] ss:$12 sps:$4 sm:$0xff]  }
 0x90e   :  { %v5383_v35 = vmax.f32 %v11197_v41, 0.0  ;;  %v5403_v33 = vmax.f32 %v5349_v6, 0.0  ;;  %6071 = vmatprep.subr.bf16.mxu1 %v11967_v1  ;;  %10878 = vmatprep.subr.bf16.mxu0 %v11977_v58  ;;  %v5265_v4 = vadd.f32 %v14465_v39, %v14471_v59  ;;  %v5257_v5 = vadd.f32 %v14459_v3, %v14471_v59  ;;  %v11969_v1 = vld [vmem:[#allocation8 + $0x420] ss:$12 sps:$4 sm:$0xff]   ;;  %v11976_v39 = vld [vmem:[#allocation8 + $0x43c] ss:$12 sps:$4 sm:$0xff]  }
 0x90f   :  { %v5384_v60 = vmax.f32 %v11198_v45, 0.0  ;;  %v5397_v28 = vmax.f32 %v5341_v12, 0.0  ;;  %v5268_v6 = vadd.f32 %v14468_v43, %v14471_v59 }
 0x910   :  { %v5422_v26 = vpack.c.bf16 %v5383_v35, %v5380_v30  ;;  %v14521_v27 = vpack.c.bf16 %v5403_v33, %v5400_v48  ;;  %v11974_v33 = vld [vmem:[#allocation8 + $0x438] ss:$12 sps:$4 sm:$0xff]  }
 0x911   :  { %v5423_v51 = vpack.c.bf16 %v5384_v60, %v5381_v29  ;;  %v14525_v53 = vpack.c.bf16 %v5397_v28, %v5394_v25  ;;  %v5125_v14 = vpop.f32.mrb[236].mxu0  ;;  %v10870_v15 = vpop.f32.mrb[12].mxu1  ;;  %6072 = vmatpush1.bf16.msra.mxu1 %v11965_v50  ;;  %10879 = vmatpush3.bf16.msra.mxu0 %v11977_v58  ;;  %v5260_v58 = vadd.f32 %v14461_v37, %v14471_v59  ;;  %v11981_v29 = vld [vmem:[#allocation8 + $0x454] ss:$12 sps:$4 sm:$0xff]   ;;  %v11983_v37 = vld [vmem:[#allocation8 + $0x458] ss:$12 sps:$4 sm:$0xff]  }
 0x912   :  { %v11199_v8 = vadd.f32 %v5125_v14, %v14474_v63  ;;  %v5362_v13 = vadd.f32 %v10870_v15, %v5265_v4  ;;  %v5127_v47 = vpop.f32.mrb[237].mxu0  ;;  %v5353_v41 = vpop.f32.mrb[13].mxu1  ;;  %6073 = vmatprep.subr.bf16.mxu1 %v11971_v55  ;;  %10880 = vmatprep.subr.bf16.mxu0 %v11978_v24 }
 0x913   :  { %v11200_v32 = vadd.f32 %v5127_v47, %v14477_v10  ;;  %v5354_v45 = vadd.f32 %v5353_v41, %v5257_v5  ;;  %v5129_v12 = vpop.f32.mrb[238].mxu0  ;;  %v10871_v3 = vpop.f32.mrb[14].mxu1  ;;  %6004 = vmatprep.mubr.bf16.mxu1 %v5423_v51  ;;  %6226 = vmatprep.mubr.bf16.mxu0 %v5423_v51 }
 0x914   :  { %v11201_v50 = vadd.f32 %v5129_v12, %v14474_v63  ;;  %v5365_v30 = vadd.f32 %v10871_v3, %v5268_v6  ;;  %v5131_v48 = vpop.f32.mrb[239].mxu0  ;;  %v5356_v35 = vpop.f32.mrb[15].mxu1  ;;  %6005 = vmatmul.mubr.bf16.gmra.mrb[24].mxu1 %v5422_v26  ;;  %6227 = vmatmul.mubr.bf16.gmra.mrb[8].mxu0 %v5422_v26  ;;  %v5386_v25 = vmax.f32 %v11199_v8, 0.0  ;;  %v5412_v60 = vmax.f32 %v5362_v13, 0.0  ;;  %v11986_v6 = vld [vmem:[#allocation8 + $0x46c] ss:$12 sps:$4 sm:$0xff]  }
 0x915   :  { %v11202_v43 = vadd.f32 %v5131_v48, %v14477_v10  ;;  %v5357_v55 = vadd.f32 %v5356_v35, %v5260_v58  ;;  %6074 = vmatpush1.bf16.msra.mxu1 %v11969_v1  ;;  %10881 = vmatpush3.bf16.msra.mxu0 %v11978_v24  ;;  %v5387_v59 = vmax.f32 %v11200_v32, 0.0  ;;  %v5406_v51 = vmax.f32 %v5354_v45, 0.0  ;;  %v11979_v24 = vld [vmem:[#allocation8 + $0x450] ss:$12 sps:$4 sm:$0xff]  }
 0x916   :  { %v5389_v28 = vmax.f32 %v11201_v50, 0.0  ;;  %v5415_v4 = vmax.f32 %v5365_v30, 0.0  ;;  %6075 = vmatprep.subr.bf16.mxu1 %v11976_v39  ;;  %10882 = vmatprep.subr.bf16.mxu0 %v11982_v49  ;;  %v11987_v39 = vld [vmem:[#allocation8 + $0x470] ss:$12 sps:$4 sm:$0xff]  }
 0x917   :  { %v5390_v14 = vmax.f32 %v11202_v43, 0.0  ;;  %v5409_v15 = vmax.f32 %v5357_v55, 0.0 }
 0x918   :  { %v5425_v5 = vpack.c.bf16 %v5389_v28, %v5386_v25  ;;  %v14537_v26 = vpack.c.bf16 %v5415_v4, %v5412_v60 }
 0x919   :  { %v5426_v47 = vpack.c.bf16 %v5390_v14, %v5387_v59  ;;  %v14539_v41 = vpack.c.bf16 %v5409_v15, %v5406_v51  ;;  %v5135_v1 = vpop.f32.mrb[240].mxu0  ;;  %6076 = vmatpush1.bf16.msra.mxu1 %v11974_v33  ;;  %10883 = vmatpush3.bf16.msra.mxu0 %v11982_v49  ;;  %v11984_v49 = vld [vmem:[#allocation8 + $0x468] ss:$12 sps:$4 sm:$0xff]  }
 0x91a   :  { %v11203_v8 = vadd.f32 %v5135_v1, %v14474_v63  ;;  %v5137_v13 = vpop.f32.mrb[241].mxu0  ;;  %6077 = vmatprep.subr.bf16.mxu1 %v11981_v29  ;;  %10884 = vmatprep.subr.bf16.mxu0 %v11983_v37 }
 0x91b   :  { %v11204_v32 = vadd.f32 %v5137_v13, %v14477_v10  ;;  %v5139_v45 = vpop.f32.mrb[242].mxu0  ;;  %6014 = vmatprep.mubr.bf16.mxu1 %v5426_v47  ;;  %6234 = vmatprep.mubr.bf16.mxu0 %v5426_v47 }
 0x91c   :  { %v11205_v12 = vadd.f32 %v5139_v45, %v14474_v63  ;;  %v5141_v3 = vpop.f32.mrb[243].mxu0  ;;  %6015 = vmatmul.mubr.bf16.gmra.mrb[28].mxu1 %v5425_v5  ;;  %6235 = vmatmul.mubr.bf16.gmra.mrb[12].mxu0 %v5425_v5  ;;  %v5392_v50 = vmax.f32 %v11203_v8, 0.0 }
 0x91d   :  { %v11206_v58 = vadd.f32 %v5141_v3, %v14477_v10  ;;  %6078 = vmatpush1.bf16.msra.mxu1 %v11979_v24  ;;  %10885 = vmatpush3.bf16.msra.mxu0 %v11983_v37  ;;  %v5393_v48 = vmax.f32 %v11204_v32, 0.0 }
 0x91e   :  { %v5395_v30 = vmax.f32 %v11205_v12, 0.0  ;;  %6079 = vmatprep.subr.bf16.mxu1 %v11986_v6  ;;  %10886 = vmatprep.subr.bf16.mxu0 %v11987_v39 }
 0x91f   :  { %v5396_v35 = vmax.f32 %v11206_v58, 0.0 }
 0x920   :  { %v5428_v43 = vpack.c.bf16 %v5395_v30, %v5392_v50 }
 0x921   :  { %v5429_v55 = vpack.c.bf16 %v5396_v35, %v5393_v48  ;;  %v5145_v33 = vpop.f32.mrb[244].mxu0  ;;  %6080 = vmatpush1.bf16.msra.mxu1 %v11984_v49  ;;  %10887 = vmatpush3.bf16.msra.mxu0 %v11987_v39 }
 0x922   :  { %v11207_v29 = vadd.f32 %v5145_v33, %v14474_v63  ;;  %v5147_v25 = vpop.f32.mrb[245].mxu0 }
 0x923   :  { %v11208_v60 = vadd.f32 %v5147_v25, %v14477_v10  ;;  %v5149_v28 = vpop.f32.mrb[246].mxu0  ;;  %6024 = vmatprep.mubr.bf16.mxu1 %v5429_v55  ;;  %6242 = vmatprep.mubr.bf16.mxu0 %v5429_v55 }
 0x924   :  { %v11209_v4 = vadd.f32 %v5149_v28, %v14474_v63  ;;  %v5151_v37 = vpop.f32.mrb[247].mxu0  ;;  %6025 = vmatmul.mubr.bf16.gmra.mrb[32].mxu1 %v5428_v43  ;;  %6243 = vmatmul.mubr.bf16.gmra.mrb[16].mxu0 %v5428_v43  ;;  %v5398_v51 = vmax.f32 %v11207_v29, 0.0 }
 0x925   :  { %v11210_v59 = vadd.f32 %v5151_v37, %v14477_v10  ;;  %v5399_v15 = vmax.f32 %v11208_v60, 0.0 }
 0x926   :  { %v5401_v14 = vmax.f32 %v11209_v4, 0.0 }
 0x927   :  { %v5402_v5 = vmax.f32 %v11210_v59, 0.0 }
 0x928   :  { %v5431_v47 = vpack.c.bf16 %v5401_v14, %v5398_v51 }
 0x929   :  { %v5432_v1 = vpack.c.bf16 %v5402_v5, %v5399_v15  ;;  %v5155_v24 = vpop.f32.mrb[248].mxu0 }
 0x92a   :  { %v11211_v8 = vadd.f32 %v5155_v24, %v14474_v63  ;;  %v5157_v13 = vpop.f32.mrb[249].mxu0 }
 0x92b   :  { %v11212_v6 = vadd.f32 %v5157_v13, %v14477_v10  ;;  %v5159_v39 = vpop.f32.mrb[250].mxu0  ;;  %6034 = vmatprep.mubr.bf16.mxu1 %v5432_v1  ;;  %6250 = vmatprep.mubr.bf16.mxu0 %v5432_v1 }
 0x92c   :  { %v11213_v32 = vadd.f32 %v5159_v39, %v14474_v63  ;;  %v5161_v45 = vpop.f32.mrb[251].mxu0  ;;  %6035 = vmatmul.mubr.bf16.gmra.mrb[36].mxu1 %v5431_v47  ;;  %6251 = vmatmul.mubr.bf16.gmra.mrb[20].mxu0 %v5431_v47  ;;  %v5404_v3 = vmax.f32 %v11211_v8, 0.0 }
 0x92d   :  { %v11214_v12 = vadd.f32 %v5161_v45, %v14477_v10  ;;  %v5405_v49 = vmax.f32 %v11212_v6, 0.0 }
 0x92e   :  { %v5407_v58 = vmax.f32 %v11213_v32, 0.0 }
 0x92f   :  { %v5408_v50 = vmax.f32 %v11214_v12, 0.0 }
 0x930   :  { %v5434_v30 = vpack.c.bf16 %v5407_v58, %v5404_v3 }
 0x931   :  { %v5435_v48 = vpack.c.bf16 %v5408_v50, %v5405_v49  ;;  %v5165_v35 = vpop.f32.mrb[252].mxu0 }
 0x932   :  { %v11215_v43 = vadd.f32 %v5165_v35, %v14474_v63  ;;  %v5167_v55 = vpop.f32.mrb[253].mxu0 }
 0x933   :  { %v11216_v33 = vadd.f32 %v5167_v55, %v14477_v10  ;;  %v5169_v29 = vpop.f32.mrb[254].mxu0  ;;  %6044 = vmatprep.mubr.bf16.mxu1 %v5435_v48  ;;  %6258 = vmatprep.mubr.bf16.mxu0 %v5435_v48 }
 0x934   :  { %v11217_v25 = vadd.f32 %v5169_v29, %v14474_v63  ;;  %v5171_v60 = vpop.f32.mrb[255].mxu0  ;;  %6045 = vmatmul.mubr.bf16.gmra.mrb[40].mxu1 %v5434_v30  ;;  %6259 = vmatmul.mubr.bf16.gmra.mrb[24].mxu0 %v5434_v30  ;;  %v5410_v4 = vmax.f32 %v11215_v43, 0.0 }
 0x935   :  { %v11218_v28 = vadd.f32 %v5171_v60, %v14477_v10  ;;  %v5411_v59 = vmax.f32 %v11216_v33, 0.0 }
 0x936   :  { %v5413_v37 = vmax.f32 %v11217_v25, 0.0 }
 0x937   :  { %v5414_v51 = vmax.f32 %v11218_v28, 0.0 }
 0x938   :  { %v5437_v14 = vpack.c.bf16 %v5413_v37, %v5410_v4 }
 0x939   :  { %v5438_v15 = vpack.c.bf16 %v5414_v51, %v5411_v59 }
 0x93b   :  { %6054 = vmatprep.mubr.bf16.mxu1 %v5438_v15  ;;  %6266 = vmatprep.mubr.bf16.mxu0 %v5438_v15 }
 0x93c   :  { %6055 = vmatmul.mubr.bf16.gmra.mrb[44].mxu1 %v5437_v14  ;;  %6267 = vmatmul.mubr.bf16.gmra.mrb[28].mxu0 %v5437_v14  ;;  %v9676_v14 = vld [vmem:[%s15528_s12 + $0x3] sm:$0x7] }
 0x93d   :  { %10888 = vmatprep.mubr.bf16.mxu0 %v14492_v11  ;;  %6097 = vmatprep.mubr.bf16.mxu1 %v16049_v22 }
 0x944   :  { %6098 = vmatmul.mubr.bf16.vlgmr.msra.gmra.mrb[16].mxu1 %v14492_v11  ;;  %10889 = vmatmul.mubr.bf16.vlgmr.msra.gmra.mrb[32].mxu0 %v14488_v20 }
 0x945   :  { %10892 = vmatprep.mubr.bf16.mxu0 %v14509_v54  ;;  %6107 = vmatprep.mubr.bf16.mxu1 %v16049_v22 }
 0x94c   :  { %6108 = vmatmul.mubr.bf16.gmra.mrb[20].mxu1 %v14488_v20  ;;  %10893 = vmatmul.mubr.bf16.gmra.mrb[36].mxu0 %v14505_v46  ;;  %v16339_v20 = vld [vmem:[#allocation84_spill] sm:$0xff] }
 0x94d   :  { %10896 = vmatprep.mubr.bf16.mxu0 %v14525_v53  ;;  %6117 = vmatprep.mubr.bf16.mxu1 %v16049_v22 }
 0x954   :  { %6118 = vmatmul.mubr.bf16.gmra.mrb[24].mxu1 %v14509_v54  ;;  %10897 = vmatmul.mubr.bf16.gmra.mrb[40].mxu0 %v14521_v27 }
 0x955   :  { %10900 = vmatprep.mubr.bf16.mxu0 %v14539_v41  ;;  %6127 = vmatprep.mubr.bf16.mxu1 %v16049_v22 }
 0x95c   :  { %6128 = vmatmul.mubr.bf16.gmra.mrb[28].mxu1 %v14505_v46  ;;  %10901 = vmatmul.mubr.bf16.gmra.mrb[44].mxu0 %v14537_v26 }
 0x95d   :  { %6137 = vmatprep.mubr.bf16.mxu1 %v16049_v22  ;;  %6476 = vmatprep.mubr.bf16.mxu0 %v16049_v22 }
 0x964   :  { %6138 = vmatmul.mubr.bf16.gmra.mrb[32].mxu1 %v14525_v53 }
 0x965   :  { %6147 = vmatprep.mubr.bf16.mxu1 %v16049_v22 }
 0x96c   :  { %6148 = vmatmul.mubr.bf16.gmra.mrb[36].mxu1 %v14521_v27 }
 0x96d   :  { %6157 = vmatprep.mubr.bf16.mxu1 %v16049_v22 }
 0x974   :  { %6158 = vmatmul.mubr.bf16.gmra.mrb[40].mxu1 %v14539_v41 }
 0x975   :  { %6167 = vmatprep.mubr.bf16.mxu1 %v16049_v22 }
 0x97c   :  { %6168 = vmatmul.mubr.bf16.gmra.mrb[44].mxu1 %v14537_v26 }
 0x97d   :  { %10920 = vmatprep.mubr.msk.bf16.mxu1 %vm12621_vm2, %v15938_v57 }
 0x9d7   :  { %v10311_v63 = vpop.f32.mrb[0].mxu0 }
 0x9d8   :  { %v10312_v10 = vpop.f32.mrb[1].mxu0 }
 0x9d9   :  { %v10313_v11 = vadd.f32 %v10312_v10, %v10311_v63  ;;  %v10314_v46 = vpop.f32.mrb[2].mxu0 }
 0x9da   :  { %v10315_v54 = vpop.f32.mrb[3].mxu0 }
 0x9db   :  { %v14585_v53 = vadd.f32 %v10315_v54, %v10314_v46  ;;  %v5539_v54 = vunpack.c.l.bf16 %v9676_v14 }
 0x9df   :  { %v10317_v27 = vpop.f32.mrb[4].mxu0 }
 0x9e0   :  { %v10318_v5 = vpop.f32.mrb[5].mxu0 }
 0x9e1   :  { %v10319_v47 = vadd.f32 %v10318_v5, %v10317_v27  ;;  %v10320_v1 = vpop.f32.mrb[6].mxu0  ;;  %v5552_v5 = vrot.slane %v5539_v54, %v16301_v40 }
 0x9e2   :  { %v10321_v41 = vpop.f32.mrb[7].mxu0 }
 0x9e3   :  { %v10322_v24 = vadd.f32 %v10321_v41, %v10320_v1 }
 0x9e7   :  { %v10323_v8 = vpop.f32.mrb[8].mxu0 }
 0x9e8   :  { %v10324_v13 = vpop.f32.mrb[9].mxu0 }
 0x9e9   :  { %v14587_v26 = vadd.f32 %v10324_v13, %v10323_v8  ;;  %v10326_v6 = vpop.f32.mrb[10].mxu0  ;;  %v5548_v13 = vrot.slane %v5539_v54, %v16303_v56 }
 0x9ea   :  { %v10327_v39 = vpop.f32.mrb[11].mxu0 }
 0x9eb   :  { %v14589_v32 = vadd.f32 %v10327_v39, %v10326_v6  ;;  %v5544_v39 = vrot.slane %v5539_v54, %v16302_v34 }
 0x9ef   :  { %v10329_v45 = vpop.f32.mrb[12].mxu0 }
 0x9f0   :  { %v10330_v12 = vpop.f32.mrb[13].mxu0 }
 0x9f1   :  { %v14591_v3 = vadd.f32 %v10330_v12, %v10329_v45  ;;  %v10332_v58 = vpop.f32.mrb[14].mxu0  ;;  %v14618_v12 = vrot.slane %v5552_v5, %v16302_v34 }
 0x9f2   :  { %v10333_v49 = vpop.f32.mrb[15].mxu0 }
 0x9f3   :  { %v14593_v50 = vadd.f32 %v10333_v49, %v10332_v58  ;;  %v14621_v58 = vrot.slane %v5548_v13, %v16302_v34  ;;  %v14624_v49 = vrot.slane %v5544_v39, %v16302_v34 }
 0x9f7   :  { %v10335_v30 = vpop.f32.mrb[16].mxu0 }
 0x9f8   :  { %v10336_v48 = vpop.f32.mrb[17].mxu0 }
 0x9f9   :  { %v14595_v35 = vadd.f32 %v10336_v48, %v10335_v30  ;;  %v10338_v43 = vpop.f32.mrb[18].mxu0  ;;  %v6221_v30 = vadd.f32 %v10319_v47, %v14618_v12  ;;  %v6216_v47 = vadd.f32 %v14585_v53, %v14618_v12 }
 0x9fa   :  { %v10339_v55 = vpop.f32.mrb[19].mxu0 }
 0x9fb   :  { %v14597_v33 = vadd.f32 %v10339_v55, %v10338_v43  ;;  %v6213_v55 = vadd.f32 %v10313_v11, %v14618_v12 }
 0x9ff   :  { %v10341_v29 = vpop.f32.mrb[20].mxu0 }
 0xa00   :  { %v10342_v25 = vpop.f32.mrb[21].mxu0 }
 0xa01   :  { %v14599_v60 = vadd.f32 %v10342_v25, %v10341_v29  ;;  %v10344_v28 = vpop.f32.mrb[22].mxu0 }
 0xa02   :  { %v10345_v4 = vpop.f32.mrb[23].mxu0 }
 0xa03   :  { %v14601_v37 = vadd.f32 %v10345_v4, %v10344_v28  ;;  %v6224_v4 = vadd.f32 %v10322_v24, %v14618_v12 }
 0xa07   :  { %v10347_v59 = vpop.f32.mrb[24].mxu0 }
 0xa08   :  { %v10348_v51 = vpop.f32.mrb[25].mxu0 }
 0xa09   :  { %v14606_v15 = vadd.f32 %v10348_v51, %v10347_v59  ;;  %v10350_v63 = vpop.f32.mrb[26].mxu0 }
 0xa0a   :  { %v10351_v10 = vpop.f32.mrb[27].mxu0 }
 0xa0b   :  { %v14608_v46 = vadd.f32 %v10351_v10, %v10350_v63 }
 0xa0f   :  { %v10353_v27 = vpop.f32.mrb[28].mxu0 }
 0xa10   :  { %v10354_v1 = vpop.f32.mrb[29].mxu0 }
 0xa11   :  { %v14611_v41 = vadd.f32 %v10354_v1, %v10353_v27  ;;  %v10356_v8 = vpop.f32.mrb[30].mxu0 }
 0xa12   :  { %v10357_v6 = vpop.f32.mrb[31].mxu0 }
 0xa13   :  { %v14615_v45 = vadd.f32 %v10357_v6, %v10356_v8 }
 0xa17   :  { %v6099_v48 = vpop.f32.mrb[16].mxu1  ;;  %v10890_v43 = vpop.f32.mrb[32].mxu0 }
 0xa18   :  { %v14628_v29 = vadd.f32 %v10890_v43, %v6221_v30  ;;  %v6101_v25 = vpop.f32.mrb[17].mxu1  ;;  %v6309_v28 = vpop.f32.mrb[33].mxu0  ;;  %v14639_v10 = vadd.f32 %v6099_v48, %v14624_v49  ;;  %v6237_v43 = vadd.f32 %v14591_v3, %v14618_v12 }
 0xa19   :  { %v14632_v59 = vadd.f32 %v6101_v25, %v14621_v58  ;;  %v14634_v51 = vadd.f32 %v6309_v28, %v6213_v55  ;;  %v6103_v14 = vpop.f32.mrb[18].mxu1  ;;  %v10891_v63 = vpop.f32.mrb[34].mxu0 }
 0xa1a   :  { %v14642_v11 = vadd.f32 %v6103_v14, %v14624_v49  ;;  %v14644_v54 = vadd.f32 %v10891_v63, %v6224_v4  ;;  %v6105_v27 = vpop.f32.mrb[19].mxu1  ;;  %v6312_v24 = vpop.f32.mrb[35].mxu0  ;;  %v15824_v48 = vmax.f32 %v14639_v10, 0.0  ;;  %v15827_v55 = vmax.f32 %v14628_v29, 0.0 }
 0xa1b   :  { %v14647_v5 = vadd.f32 %v6105_v27, %v14621_v58  ;;  %v14649_v1 = vadd.f32 %v6312_v24, %v6216_v47  ;;  %v15820_v8 = vmax.f32 %v14632_v59, 0.0  ;;  %v15822_v53 = vmax.f32 %v14634_v51, 0.0 }
 0xa1c   :  { %v15823_v13 = vmax.f32 %v14642_v11, 0.0  ;;  %v15826_v6 = vmax.f32 %v14644_v54, 0.0  ;;  %v6229_v63 = vadd.f32 %v14587_v26, %v14618_v12 }
 0xa1d   :  { %v15819_v39 = vmax.f32 %v14647_v5, 0.0  ;;  %v15821_v30 = vmax.f32 %v14649_v1, 0.0 }
 0xa1e   :  { %v6420_v3 = vpack.c.bf16 %v15823_v13, %v15824_v48  ;;  %v6425_v26 = vpack.c.bf16 %v15826_v6, %v15827_v55 }
 0xa1f   :  { %v6421_v25 = vpack.c.bf16 %v15819_v39, %v15820_v8  ;;  %v6422_v28 = vpack.c.bf16 %v15821_v30, %v15822_v53  ;;  %v6109_v4 = vpop.f32.mrb[20].mxu1  ;;  %v10894_v14 = vpop.f32.mrb[36].mxu0  ;;  %v6240_v39 = vadd.f32 %v14593_v50, %v14618_v12  ;;  %v6232_v8 = vadd.f32 %v14589_v32, %v14618_v12 }
 0xa20   :  { %v14675_v47 = vadd.f32 %v10894_v14, %v6237_v43  ;;  %v6111_v27 = vpop.f32.mrb[21].mxu1  ;;  %v6325_v24 = vpop.f32.mrb[37].mxu0  ;;  %v14691_v13 = vadd.f32 %v6109_v4, %v14624_v49 }
 0xa21   :  { %v14686_v30 = vadd.f32 %v6111_v27, %v14621_v58  ;;  %v14688_v53 = vadd.f32 %v6325_v24, %v6229_v63  ;;  %v6113_v43 = vpop.f32.mrb[22].mxu1  ;;  %v10895_v14 = vpop.f32.mrb[38].mxu0  ;;  %6444 = vmatprep.subr.bf16.mxu0 %v6421_v25  ;;  %10904 = vmatprep.subr.bf16.mxu1 %v6422_v28 }
 0xa22   :  { %v14694_v50 = vadd.f32 %v6113_v43, %v14624_v49  ;;  %v14696_v32 = vadd.f32 %v10895_v14, %v6240_v39  ;;  %v6115_v48 = vpop.f32.mrb[23].mxu1  ;;  %v6328_v56 = vpop.f32.mrb[39].mxu0  ;;  %6445 = vmatpush1.bf16.msra.mxu0 %v6420_v3  ;;  %10905 = vmatpush3.bf16.msra.mxu1 %v6422_v28  ;;  %v15836_v28 = vmax.f32 %v14691_v13, 0.0 }
 0xa23   :  { %16305 = vst [vmem:[#allocation31_spill] sm:$0xff] %v14686_v30  ;;  %v14699_v27 = vadd.f32 %v6115_v48, %v14621_v58  ;;  %v14701_v63 = vadd.f32 %v6328_v56, %v6232_v8  ;;  %10906 = vmatprep.subr.bf16.mxu1 %v6425_v26  ;;  %v15830_v25 = vmax.f32 %v14686_v30, 0.0  ;;  %v15832_v24 = vmax.f32 %v14688_v53, 0.0 }
 0xa24   :  { %v15835_v4 = vmax.f32 %v14694_v50, 0.0  ;;  %v6253_v56 = vadd.f32 %v14599_v60, %v14618_v12 }
 0xa25   :  { %16306 = vst [vmem:[#allocation36_spill] sm:$0xff] %v14699_v27  ;;  %v15829_v39 = vmax.f32 %v14699_v27, 0.0  ;;  %v15831_v14 = vmax.f32 %v14701_v63, 0.0 }
 0xa26   :  { %10907 = vmatpush3.bf16.msra.mxu1 %v6425_v26  ;;  %v6245_v26 = vadd.f32 %v14595_v35, %v14618_v12  ;;  %v6423_v60 = vpack.c.bf16 %v15835_v4, %v15836_v28 }
 0xa27   :  { %v6424_v48 = vpack.c.bf16 %v15829_v39, %v15830_v25  ;;  %v6428_v3 = vpack.c.bf16 %v15831_v14, %v15832_v24  ;;  %v6119_v6 = vpop.f32.mrb[24].mxu1  ;;  %v10898_v55 = vpop.f32.mrb[40].mxu0  ;;  %v6256_v39 = vadd.f32 %v14601_v37, %v14618_v12  ;;  %v6248_v25 = vadd.f32 %v14597_v33, %v14618_v12 }
 0xa28   :  { %v14727_v43 = vadd.f32 %v10898_v55, %v6253_v56  ;;  %v6121_v8 = vpop.f32.mrb[25].mxu1  ;;  %v6341_v34 = vpop.f32.mrb[41].mxu0  ;;  %v16307_v14 = vmax.f32 %v14675_v47, 0.0  ;;  %v16308_v24 = vmax.f32 %v14696_v32, 0.0  ;;  %v14743_v4 = vadd.f32 %v6119_v6, %v14624_v49 }
 0xa29   :  { %v14738_v40 = vadd.f32 %v6121_v8, %v14621_v58  ;;  %v14740_v27 = vadd.f32 %v6341_v34, %v6245_v26  ;;  %v6123_v55 = vpop.f32.mrb[26].mxu1  ;;  %v10899_v56 = vpop.f32.mrb[42].mxu0  ;;  %6446 = vmatprep.subr.bf16.mxu0 %v6424_v48  ;;  %10908 = vmatprep.subr.bf16.mxu1 %v6428_v3 }
 0xa2a   :  { %v6431_v35 = vpack.c.bf16 %v16308_v24, %v16307_v14  ;;  %16310 = vst [vmem:[#allocation42_spill] sm:$0xff] %v14743_v4  ;;  %v14746_v37 = vadd.f32 %v6123_v55, %v14624_v49  ;;  %v14748_v33 = vadd.f32 %v10899_v56, %v6256_v39  ;;  %v6125_v28 = vpop.f32.mrb[27].mxu1  ;;  %v6344_v30 = vpop.f32.mrb[43].mxu0  ;;  %6447 = vmatpush1.bf16.msra.mxu0 %v6423_v60 }
 0xa2b   :  { %16309 = vst [vmem:[#allocation41_spill] sm:$0xff] %v14738_v40  ;;  %10909 = vmatpush3.bf16.msra.mxu1 %v6428_v3  ;;  %v14751_v24 = vadd.f32 %v6125_v28, %v14621_v58  ;;  %v14753_v34 = vadd.f32 %v6344_v30, %v6248_v25  ;;  %v15840_v14 = vmax.f32 %v14738_v40, 0.0  ;;  %v15842_v8 = vmax.f32 %v14740_v27, 0.0 }
 0xa2c   :  { %16311 = vst [vmem:[#allocation39_spill] sm:$0xff] %v14746_v37  ;;  %10910 = vmatprep.subr.bf16.mxu1 %v6431_v35  ;;  %v15845_v6 = vmax.f32 %v14746_v37, 0.0  ;;  %v15846_v3 = vmax.f32 %v14743_v4, 0.0  ;;  %v6269_v30 = vadd.f32 %v14611_v41, %v14618_v12 }
 0xa2d   :  { %16312 = vst [vmem:[#allocation44_spill] sm:$0xff] %v14751_v24  ;;  %v15839_v39 = vmax.f32 %v14751_v24, 0.0  ;;  %v15841_v26 = vmax.f32 %v14753_v34, 0.0 }
 0xa2e   :  { %v6426_v41 = vpack.c.bf16 %v15845_v6, %v15846_v3 }
 0xa2f   :  { %10911 = vmatpush3.bf16.msra.mxu1 %v6431_v35  ;;  %v6427_v28 = vpack.c.bf16 %v15839_v39, %v15840_v14  ;;  %v6434_v60 = vpack.c.bf16 %v15841_v26, %v15842_v8  ;;  %v6129_v55 = vpop.f32.mrb[28].mxu1  ;;  %v10902_v56 = vpop.f32.mrb[44].mxu0  ;;  %v6261_v35 = vadd.f32 %v14606_v15, %v14618_v12  ;;  %v6272_v39 = vadd.f32 %v14615_v45, %v14618_v12 }
 0xa30   :  { %v14779_v48 = vadd.f32 %v10902_v56, %v6269_v30  ;;  %v6131_v25 = vpop.f32.mrb[29].mxu1  ;;  %v6357_v24 = vpop.f32.mrb[45].mxu0  ;;  %v6264_v14 = vadd.f32 %v14608_v46, %v14618_v12  ;;  %v16313_v26 = vmax.f32 %v14727_v43, 0.0  ;;  %v16314_v8 = vmax.f32 %v14748_v33, 0.0 }
 0xa31   :  { %v14790_v40 = vadd.f32 %v6131_v25, %v14621_v58  ;;  %v14792_v37 = vadd.f32 %v6357_v24, %v6261_v35  ;;  %v6133_v30 = vpop.f32.mrb[30].mxu1  ;;  %v10903_v56 = vpop.f32.mrb[46].mxu0  ;;  %6448 = vmatprep.subr.bf16.mxu0 %v6427_v28  ;;  %10912 = vmatprep.subr.bf16.mxu1 %v6434_v60  ;;  %v14795_v6 = vadd.f32 %v6129_v55, %v14624_v49 }
 0xa32   :  { %v6437_v15 = vpack.c.bf16 %v16314_v8, %v16313_v26  ;;  %v14798_v45 = vadd.f32 %v6133_v30, %v14624_v49  ;;  %v14800_v46 = vadd.f32 %v10903_v56, %v6272_v39  ;;  %v6135_v12 = vpop.f32.mrb[31].mxu1  ;;  %v6360_v3 = vpop.f32.mrb[47].mxu0  ;;  %6449 = vmatpush1.bf16.msra.mxu0 %v6426_v41  ;;  %v15855_v41 = vmax.f32 %v14779_v48, 0.0 }
 0xa33   :  { %16315 = vst [vmem:[#allocation49_spill] sm:$0xff] %v14790_v40  ;;  %16316 = vst [vmem:[#allocation50_spill] sm:$0xff] %v14795_v6  ;;  %10913 = vmatpush3.bf16.msra.mxu1 %v6434_v60  ;;  %v14803_v8 = vadd.f32 %v6135_v12, %v14621_v58  ;;  %v14805_v24 = vadd.f32 %v6360_v3, %v6264_v14  ;;  %v15849_v26 = vmax.f32 %v14790_v40, 0.0  ;;  %v15851_v28 = vmax.f32 %v14792_v37, 0.0 }
 0xa34   :  { %16317 = vst [vmem:[#allocation47_spill] sm:$0xff] %v14798_v45  ;;  %10914 = vmatprep.subr.bf16.mxu1 %v6437_v15  ;;  %v15852_v25 = vmax.f32 %v14798_v45, 0.0  ;;  %v15854_v55 = vmax.f32 %v14800_v46, 0.0  ;;  %v15853_v60 = vmax.f32 %v14795_v6, 0.0 }
 0xa35   :  { %16318 = vst [vmem:[#allocation52_spill] sm:$0xff] %v14803_v8  ;;  %v15848_v39 = vmax.f32 %v14803_v8, 0.0  ;;  %v15850_v35 = vmax.f32 %v14805_v24, 0.0 }
 0xa36   :  { %v6429_v56 = vpack.c.bf16 %v15852_v25, %v15853_v60 }
 0xa37   :  { %10915 = vmatpush3.bf16.msra.mxu1 %v6437_v15  ;;  %v6430_v14 = vpack.c.bf16 %v15848_v39, %v15849_v26  ;;  %v6440_v3 = vpack.c.bf16 %v15850_v35, %v15851_v28  ;;  %v6139_v30 = vpop.f32.mrb[32].mxu1  ;;  %v6443_v15 = vpack.c.bf16 %v15854_v55, %v15855_v41 }
 0xa38   :  { %v6141_v12 = vpop.f32.mrb[33].mxu1  ;;  %v14835_v26 = vadd.f32 %v6139_v30, %v14624_v49 }
 0xa39   :  { %v14832_v8 = vadd.f32 %v6141_v12, %v14621_v58  ;;  %v6143_v39 = vpop.f32.mrb[34].mxu1  ;;  %6450 = vmatprep.subr.bf16.mxu0 %v6430_v14  ;;  %10916 = vmatprep.subr.bf16.mxu1 %v6440_v3 }
 0xa3a   :  { %16320 = vst [vmem:[#allocation56_spill] sm:$0xff] %v14835_v26  ;;  %v14838_v35 = vadd.f32 %v6143_v39, %v14624_v49  ;;  %v6145_v28 = vpop.f32.mrb[35].mxu1  ;;  %6451 = vmatpush1.bf16.msra.mxu0 %v6429_v56  ;;  %v15860_v55 = vmax.f32 %v14835_v26, 0.0 }
 0xa3b   :  { %16319 = vst [vmem:[#allocation55_spill] sm:$0xff] %v14832_v8  ;;  %10917 = vmatpush3.bf16.msra.mxu1 %v6440_v3  ;;  %v14841_v25 = vadd.f32 %v6145_v28, %v14621_v58  ;;  %v15858_v12 = vmax.f32 %v14832_v8, 0.0 }
 0xa3c   :  { %16321 = vst [vmem:[#allocation54_spill] sm:$0xff] %v14838_v35  ;;  %10918 = vmatprep.subr.bf16.mxu1 %v6443_v15  ;;  %v15859_v60 = vmax.f32 %v14838_v35, 0.0 }
 0xa3d   :  { %16322 = vst [vmem:[#allocation57_spill] sm:$0xff] %v14841_v25  ;;  %v15857_v14 = vmax.f32 %v14841_v25, 0.0 }
 0xa3e   :  { %v6432_v28 = vpack.c.bf16 %v15859_v60, %v15860_v55 }
 0xa3f   :  { %10919 = vmatpush3.bf16.msra.mxu1 %v6443_v15  ;;  %v6433_v39 = vpack.c.bf16 %v15857_v14, %v15858_v12  ;;  %v6149_v30 = vpop.f32.mrb[36].mxu1 }
 0xa40   :  { %v6151_v3 = vpop.f32.mrb[37].mxu1  ;;  %v14862_v15 = vadd.f32 %v6149_v30, %v14624_v49 }
 0xa41   :  { %v14856_v56 = vadd.f32 %v6151_v3, %v14621_v58  ;;  %v6153_v41 = vpop.f32.mrb[38].mxu1  ;;  %6452 = vmatprep.subr.bf16.mxu0 %v6433_v39 }
 0xa42   :  { %10921 = vmatmul.mubr.msk.bf16.vlgmr.msra.gmra.mrb[48].mxu1 %vm12890_vm7, %v15938_v57  ;;  %16325 = vst [vmem:[#allocation62_spill] sm:$0xff] %v14862_v15  ;;  %v14865_v14 = vadd.f32 %v6153_v41, %v14624_v49  ;;  %v6155_v12 = vpop.f32.mrb[39].mxu1  ;;  %6453 = vmatpush1.bf16.msra.mxu0 %v6432_v28  ;;  %v15870_v30 = vmax.f32 %v14862_v15, 0.0 }
 0xa43   :  { %16323 = vst [vmem:[#allocation61_spill] sm:$0xff] %v14856_v56  ;;  %10924 = vmatprep.mubr.msk.bf16.mxu1 %vm12898_vm8, %v15938_v57  ;;  %v14871_v3 = vadd.f32 %v6155_v12, %v14621_v58  ;;  %v15868_v55 = vmax.f32 %v14856_v56, 0.0 }
 0xa44   :  { %16326 = vst [vmem:[#allocation60_spill] sm:$0xff] %v14865_v14  ;;  %v15869_v39 = vmax.f32 %v14865_v14, 0.0 }
 0xa45   :  { %16328 = vst [vmem:[#allocation63_spill] sm:$0xff] %v14871_v3  ;;  %v15867_v25 = vmax.f32 %v14871_v3, 0.0 }
 0xa46   :  { %v6435_v12 = vpack.c.bf16 %v15869_v39, %v15870_v30 }
 0xa47   :  { %v6436_v41 = vpack.c.bf16 %v15867_v25, %v15868_v55  ;;  %v6159_v28 = vpop.f32.mrb[40].mxu1 }
 0xa48   :  { %v6161_v8 = vpop.f32.mrb[41].mxu1  ;;  %v14892_v56 = vadd.f32 %v6159_v28, %v14624_v49 }
 0xa49   :  { %v14886_v35 = vadd.f32 %v6161_v8, %v14621_v58  ;;  %v6163_v26 = vpop.f32.mrb[42].mxu1  ;;  %6454 = vmatprep.subr.bf16.mxu0 %v6436_v41 }
 0xa4a   :  { %10925 = vmatmul.mubr.msk.bf16.gmra.mrb[52].mxu1 %vm12942_vm13, %v15938_v57  ;;  %v14895_v25 = vadd.f32 %v6163_v26, %v14624_v49  ;;  %v6165_v55 = vpop.f32.mrb[43].mxu1  ;;  %6455 = vmatpush1.bf16.msra.mxu0 %v6435_v12  ;;  %v15880_v28 = vmax.f32 %v14892_v56, 0.0 }
 0xa4b   :  { %16329 = vst [vmem:[#allocation67_spill] sm:$0xff] %v14886_v35  ;;  %10928 = vmatprep.mubr.msk.bf16.mxu1 %vm12950_vm14, %v15938_v57  ;;  %v14901_v8 = vadd.f32 %v6165_v55, %v14621_v58  ;;  %v15878_v30 = vmax.f32 %v14886_v35, 0.0 }
 0xa4c   :  { %v15879_v41 = vmax.f32 %v14895_v25, 0.0 }
 0xa4d   :  { %16332 = vst [vmem:[#allocation68_spill] sm:$0xff] %v14901_v8  ;;  %v15877_v3 = vmax.f32 %v14901_v8, 0.0 }
 0xa4e   :  { %v6438_v55 = vpack.c.bf16 %v15879_v41, %v15880_v28 }
 0xa4f   :  { %v6439_v26 = vpack.c.bf16 %v15877_v3, %v15878_v30  ;;  %v6169_v12 = vpop.f32.mrb[44].mxu1 }
 0xa50   :  { %v6171_v14 = vpop.f32.mrb[45].mxu1  ;;  %v14922_v35 = vadd.f32 %v6169_v12, %v14624_v49 }
 0xa51   :  { %v14916_v15 = vadd.f32 %v6171_v14, %v14621_v58  ;;  %v6173_v6 = vpop.f32.mrb[46].mxu1  ;;  %6456 = vmatprep.subr.bf16.mxu0 %v6439_v26 }
 0xa52   :  { %10929 = vmatmul.mubr.msk.bf16.gmra.mrb[56].mxu1 %vm16185_vm3, %v15938_v57  ;;  %v14925_v3 = vadd.f32 %v6173_v6, %v14624_v49  ;;  %v6175_v30 = vpop.f32.mrb[47].mxu1  ;;  %6457 = vmatpush1.bf16.msra.mxu0 %v6438_v55  ;;  %v15885_v12 = vmax.f32 %v14922_v35, 0.0 }
 0xa53   :  { %16333 = vst [vmem:[#allocation66_spill] sm:$0xff] %v14916_v15  ;;  %10932 = vmatprep.mubr.msk.bf16.mxu1 %vm16188_vm12, %v15938_v57  ;;  %v14931_v14 = vadd.f32 %v6175_v30, %v14621_v58  ;;  %v15883_v28 = vmax.f32 %v14916_v15, 0.0 }
 0xa54   :  { %16335 = vst [vmem:[#allocation69_spill] sm:$0xff] %v14925_v3  ;;  %v15884_v26 = vmax.f32 %v14925_v3, 0.0 }
 0xa55   :  { %16337 = vst [vmem:[#allocation73_spill] sm:$0xff] %v14931_v14  ;;  %v15882_v8 = vmax.f32 %v14931_v14, 0.0 }
 0xa56   :  { %v6441_v6 = vpack.c.bf16 %v15884_v26, %v15885_v12 }
 0xa57   :  { %v6442_v49 = vpack.c.bf16 %v15882_v8, %v15883_v28 }
 0xa59   :  { %6458 = vmatprep.subr.bf16.mxu0 %v6442_v49 }
 0xa5a   :  { %10933 = vmatmul.mubr.msk.bf16.gmra.mrb[60].mxu1 %vm16191_vm0, %v15938_v57  ;;  %6459 = vmatpush1.bf16.msra.mxu0 %v6441_v6 }
 0xa5b   :  { %6758 = vmatprep.mubr.bf16.mxu1 %v16049_v22 }
 0xa5d   :  { %9750 = vmatmul.mubr.msk.bf16.vlgmr.msra.gmra.mrb[48].mxu0 %vm12621_vm2, %v15938_v57  ;;  %vm12332_vm2 = vmmov 0  }
 0xa5e   :  { %6486 = vmatprep.mubr.bf16.mxu0 %v16049_v22 }
 0xa65   :  { %9752 = vmatmul.mubr.msk.bf16.gmra.mrb[52].mxu0 %vm12890_vm7, %v15938_v57 }
 0xa66   :  { %6496 = vmatprep.mubr.bf16.mxu0 %v16049_v22 }
 0xa6d   :  { %9754 = vmatmul.mubr.msk.bf16.gmra.mrb[56].mxu0 %vm12898_vm8, %v15938_v57 }
 0xa6e   :  { %6506 = vmatprep.mubr.bf16.mxu0 %v16049_v22 }
 0xa75   :  { %9756 = vmatmul.mubr.msk.bf16.gmra.mrb[60].mxu0 %vm12942_vm13, %v15938_v57 }
 0xa76   :  { %6516 = vmatprep.mubr.bf16.mxu0 %v16049_v22 }
 0xa7d   :  { %9758 = vmatmul.mubr.msk.bf16.gmra.mrb[64].mxu0 %vm12950_vm14, %v15938_v57 }
 0xa7e   :  { %6526 = vmatprep.mubr.bf16.mxu0 %v16049_v22 }
 0xa85   :  { %9760 = vmatmul.mubr.msk.bf16.gmra.mrb[68].mxu0 %vm16185_vm3, %v15938_v57 }
 0xa86   :  { %6536 = vmatprep.mubr.bf16.mxu0 %v16049_v22 }
 0xa8d   :  { %9762 = vmatmul.mubr.msk.bf16.gmra.mrb[72].mxu0 %vm16188_vm12, %v15938_v57 }
 0xa8e   :  { %6546 = vmatprep.mubr.bf16.mxu0 %v16049_v22 }
 0xa95   :  { %9764 = vmatmul.mubr.msk.bf16.gmra.mrb[76].mxu0 %vm16191_vm0, %v15938_v57 }
 0xa96   :  { %10952 = vmatprep.mubr.msk.bf16.mxu0 %vm13138_vm15, %v15938_v57 }
 0xb15   :  { %v10922_v40 = vpop.f32.mrb[48].mxu1 }
 0xb16   :  { %v6600_v4 = vadd.f32 %v10922_v40, %v16339_v20  ;;  %v6591_v45 = vpop.f32.mrb[49].mxu1  ;;  %v16340_v40 = vld [vmem:[#allocation86_spill] sm:$0xff] }
 0xb17   :  { %v6592_v60 = vadd.f32 %v6591_v45, %v13159_v44  ;;  %v10923_v39 = vpop.f32.mrb[50].mxu1 }
 0xb18   :  { %v6603_v30 = vadd.f32 %v10923_v39, %v16193_v36  ;;  %v6594_v41 = vpop.f32.mrb[51].mxu1  ;;  %v6662_v49 = vmax.f32 %v6600_v4, 0.0 }
 0xb19   :  { %v6595_v55 = vadd.f32 %v6594_v41, %v13166_v21  ;;  %v6656_v58 = vmax.f32 %v6592_v60, 0.0 }
 0xb1a   :  { %v6665_v6 = vmax.f32 %v6603_v30, 0.0 }
 0xb1b   :  { %v6659_v8 = vmax.f32 %v6595_v55, 0.0  ;;  %v16342_v55 = vld [vmem:[#allocation88_spill] sm:$0xff] }
 0xb1c   :  { %v6707_v28 = vpack.c.bf16 %v6665_v6, %v6662_v49 }
 0xb1d   :  { %v6704_v26 = vpack.c.bf16 %v6659_v8, %v6656_v58  ;;  %v10926_v12 = vpop.f32.mrb[52].mxu1 }
 0xb1e   :  { %v6616_v14 = vadd.f32 %v10926_v12, %v13172_v62  ;;  %v6607_v15 = vpop.f32.mrb[53].mxu1  ;;  %v16341_v12 = vld [vmem:[#allocation87_spill] sm:$0xff] }
 0xb1f   :  { %v6608_v20 = vadd.f32 %v6607_v15, %v16340_v40  ;;  %v10927_v3 = vpop.f32.mrb[54].mxu1  ;;  %10936 = vmatprep.subr.bf16.mxu0 %v6704_v26 }
 0xb20   :  { %v6619_v44 = vadd.f32 %v10927_v3, %v13178_v9  ;;  %v6610_v36 = vpop.f32.mrb[55].mxu1  ;;  %10937 = vmatpush3.bf16.msra.mxu0 %v6704_v26  ;;  %v6674_v4 = vmax.f32 %v6616_v14, 0.0  ;;  %v16343_v9 = vld [vmem:[#allocation89_spill] sm:$0xff] }
 0xb21   :  { %v6611_v21 = vadd.f32 %v6610_v36, %v13182_v19  ;;  %10938 = vmatprep.subr.bf16.mxu0 %v6707_v28  ;;  %v6668_v60 = vmax.f32 %v6608_v20, 0.0  ;;  %v16344_v19 = vld [vmem:[#allocation90_spill] sm:$0xff] }
 0xb22   :  { %v6677_v45 = vmax.f32 %v6619_v44, 0.0 }
 0xb23   :  { %v6671_v39 = vmax.f32 %v6611_v21, 0.0 }
 0xb24   :  { %v6713_v8 = vpack.c.bf16 %v6677_v45, %v6674_v4  ;;  %10939 = vmatpush3.bf16.msra.mxu0 %v6707_v28  ;;  %v16345_v4 = vld [vmem:[#allocation91_spill] sm:$0xff] }
 0xb25   :  { %v6710_v30 = vpack.c.bf16 %v6671_v39, %v6668_v60  ;;  %v10930_v62 = vpop.f32.mrb[56].mxu1  ;;  %v16346_v39 = vld [vmem:[#allocation92_spill] sm:$0xff] }
 0xb26   :  { %v6632_v41 = vadd.f32 %v10930_v62, %v16341_v12  ;;  %v6623_v15 = vpop.f32.mrb[57].mxu1 }
 0xb27   :  { %v6624_v49 = vadd.f32 %v6623_v15, %v16342_v55  ;;  %v10931_v6 = vpop.f32.mrb[58].mxu1  ;;  %10940 = vmatprep.subr.bf16.mxu0 %v6710_v30  ;;  %v16347_v15 = vld [vmem:[#allocation94_spill] sm:$0xff] }
 0xb28   :  { %v6635_v3 = vadd.f32 %v10931_v6, %v16343_v9  ;;  %v6626_v26 = vpop.f32.mrb[59].mxu1  ;;  %10941 = vmatpush3.bf16.msra.mxu0 %v6710_v30  ;;  %v6686_v58 = vmax.f32 %v6632_v41, 0.0  ;;  %v16348_v6 = vld [vmem:[#allocation96_spill] sm:$0xff] }
 0xb29   :  { %v6627_v14 = vadd.f32 %v6626_v26, %v16344_v19  ;;  %10942 = vmatprep.subr.bf16.mxu0 %v6713_v8  ;;  %v6680_v20 = vmax.f32 %v6624_v49, 0.0 }
 0xb2a   :  { %v6689_v40 = vmax.f32 %v6635_v3, 0.0 }
 0xb2b   :  { %v6683_v28 = vmax.f32 %v6627_v14, 0.0 }
 0xb2c   :  { %v6719_v44 = vpack.c.bf16 %v6689_v40, %v6686_v58  ;;  %10943 = vmatpush3.bf16.msra.mxu0 %v6713_v8  ;;  %v16349_v8 = vld [vmem:[#allocation93_spill] sm:$0xff]  ;;  %v16350_v40 = vld [vmem:[#allocation95_spill] sm:$0xff] }
 0xb2d   :  { %v6716_v36 = vpack.c.bf16 %v6683_v28, %v6680_v20  ;;  %v10934_v21 = vpop.f32.mrb[60].mxu1 }
 0xb2e   :  { %v6648_v45 = vadd.f32 %v10934_v21, %v16345_v4  ;;  %v6639_v60 = vpop.f32.mrb[61].mxu1  ;;  %v16351_v4 = vld [vmem:[#allocation97_spill] sm:$0xff] }
 0xb2f   :  { %v6640_v62 = vadd.f32 %v6639_v60, %v16346_v39  ;;  %v10935_v12 = vpop.f32.mrb[62].mxu1  ;;  %10944 = vmatprep.subr.bf16.mxu0 %v6716_v36 }
 0xb30   :  { %v6651_v30 = vadd.f32 %v10935_v12, %v16347_v15  ;;  %v6642_v55 = vpop.f32.mrb[63].mxu1  ;;  %10945 = vmatpush3.bf16.msra.mxu0 %v6716_v36  ;;  %v6478_v9 = vpop.f32.mrb[48].mxu0  ;;  %v6698_v49 = vmax.f32 %v6648_v45, 0.0  ;;  %v16352_v12 = vld [vmem:[#allocation98_spill] sm:$0xff] }
 0xb31   :  { %v6643_v41 = vadd.f32 %v6642_v55, %v16348_v6  ;;  %10946 = vmatprep.subr.bf16.mxu0 %v6719_v44  ;;  %v6479_v26 = vadd.f32 %v6478_v9, %v16349_v8  ;;  %v6480_v19 = vpop.f32.mrb[49].mxu0  ;;  %v6692_v14 = vmax.f32 %v6640_v62, 0.0  ;;  %v16353_v8 = vld [vmem:[#allocation99_spill] sm:$0xff] }
 0xb32   :  { %v6701_v3 = vmax.f32 %v6651_v30, 0.0  ;;  %v6481_v20 = vadd.f32 %v6480_v19, %v16350_v40  ;;  %v6482_v28 = vpop.f32.mrb[50].mxu0 }
 0xb33   :  { %v6695_v58 = vmax.f32 %v6643_v41, 0.0  ;;  %v6483_v60 = vadd.f32 %v6482_v28, %v16351_v4  ;;  %v6484_v39 = vpop.f32.mrb[51].mxu0  ;;  %v6654_v55 = vmax.f32 %v6479_v26, 0.0  ;;  %v16356_v26 = vld [vmem:[#allocation103_spill] sm:$0xff] }
 0xb34   :  { %v6725_v21 = vpack.c.bf16 %v6701_v3, %v6698_v49  ;;  %10947 = vmatpush3.bf16.msra.mxu0 %v6719_v44  ;;  %v6485_v15 = vadd.f32 %v6484_v39, %v16352_v12  ;;  %v6655_v45 = vmax.f32 %v6481_v20, 0.0  ;;  %v16354_v3 = vld [vmem:[#allocation101_spill] sm:$0xff]  ;;  %v16355_v44 = vld [vmem:[#allocation102_spill] sm:$0xff] }
 0xb35   :  { %v6722_v36 = vpack.c.bf16 %v6695_v58, %v6692_v14  ;;  %v6657_v6 = vmax.f32 %v6483_v60, 0.0 }
 0xb36   :  { %v6658_v30 = vmax.f32 %v6485_v15, 0.0 }
 0xb37   :  { %10948 = vmatprep.subr.bf16.mxu0 %v6722_v36  ;;  %v6702_v9 = vpack.c.bf16 %v6657_v6, %v6654_v55  ;;  %v16357_v6 = vld [vmem:[#allocation105_spill] sm:$0xff] }
 0xb38   :  { %10949 = vmatpush3.bf16.msra.mxu0 %v6722_v36  ;;  %v6703_v62 = vpack.c.bf16 %v6658_v30, %v6655_v45  ;;  %v6488_v41 = vpop.f32.mrb[52].mxu0  ;;  %v16358_v30 = vld [vmem:[#allocation107_spill] sm:$0xff] }
 0xb39   :  { %10950 = vmatprep.subr.bf16.mxu0 %v6725_v21  ;;  %v6489_v19 = vadd.f32 %v6488_v41, %v16353_v8  ;;  %v6490_v49 = vpop.f32.mrb[53].mxu0  ;;  %v16359_v41 = vld [vmem:[#allocation108_spill] sm:$0xff] }
 0xb3a   :  { %v6491_v40 = vadd.f32 %v6490_v49, %v16354_v3  ;;  %v6492_v28 = vpop.f32.mrb[54].mxu0  ;;  %6726 = vmatprep.subr.bf16.mxu1 %v6703_v62  ;;  %v16360_v49 = vld [vmem:[#allocation109_spill] sm:$0xff] }
 0xb3b   :  { %v6493_v14 = vadd.f32 %v6492_v28, %v16355_v44  ;;  %v6494_v58 = vpop.f32.mrb[55].mxu0  ;;  %6727 = vmatpush1.bf16.msra.mxu1 %v6702_v9  ;;  %v6660_v4 = vmax.f32 %v6489_v19, 0.0 }
 0xb3c   :  { %10951 = vmatpush3.bf16.msra.mxu0 %v6725_v21  ;;  %v6495_v20 = vadd.f32 %v6494_v58, %v16356_v26  ;;  %v6661_v39 = vmax.f32 %v6491_v40, 0.0 }
 0xb3d   :  { %v6663_v60 = vmax.f32 %v6493_v14, 0.0  ;;  %10407 = vmatprep.subr.bf16.mxu0 %v12015_v61 }
 0xb3e   :  { %v6664_v36 = vmax.f32 %v6495_v20, 0.0 }
 0xb3f   :  { %10953 = vmatmul.mubr.msk.bf16.vlgmr.msra.gmra.mrb[80].mxu0 %vm13286_vm9, %v15938_v57  ;;  %v6705_v12 = vpack.c.bf16 %v6663_v60, %v6660_v4  ;;  %v16361_v4 = vld [vmem:[#allocation111_spill] sm:$0xff] }
 0xb40   :  { %10956 = vmatprep.mubr.msk.bf16.mxu0 %vm13295_vm11, %v15938_v57  ;;  %v6706_v15 = vpack.c.bf16 %v6664_v36, %v6661_v39  ;;  %v6498_v55 = vpop.f32.mrb[56].mxu0  ;;  %v16362_v36 = vld [vmem:[#allocation113_spill] sm:$0xff] }
 0xb41   :  { %v6499_v45 = vadd.f32 %v6498_v55, %v16357_v6  ;;  %v6500_v21 = vpop.f32.mrb[57].mxu0  ;;  %v16363_v55 = vld [vmem:[#allocation114_spill] sm:$0xff] }
 0xb42   :  { %v6501_v9 = vadd.f32 %v6500_v21, %v16358_v30  ;;  %v6502_v62 = vpop.f32.mrb[58].mxu0  ;;  %6728 = vmatprep.subr.bf16.mxu1 %v6706_v15  ;;  %v16364_v21 = vld [vmem:[#allocation115_spill] sm:$0xff] }
 0xb43   :  { %v6503_v8 = vadd.f32 %v6502_v62, %v16359_v41  ;;  %v6504_v19 = vpop.f32.mrb[59].mxu0  ;;  %6729 = vmatpush1.bf16.msra.mxu1 %v6705_v12  ;;  %v6666_v40 = vmax.f32 %v6499_v45, 0.0 }
 0xb44   :  { %v6505_v3 = vadd.f32 %v6504_v19, %v16360_v49  ;;  %v6667_v44 = vmax.f32 %v6501_v9, 0.0 }
 0xb45   :  { %v6669_v28 = vmax.f32 %v6503_v8, 0.0 }
 0xb46   :  { %v6670_v14 = vmax.f32 %v6505_v3, 0.0 }
 0xb47   :  { %10957 = vmatmul.mubr.msk.bf16.gmra.mrb[84].mxu0 %vm13328_vm6, %v15938_v57  ;;  %v6708_v58 = vpack.c.bf16 %v6669_v28, %v6666_v40  ;;  %v16365_v40 = vld [vmem:[#allocation118_spill] sm:$0xff] }
 0xb48   :  { %10960 = vmatprep.mubr.msk.bf16.mxu0 %vm13337_vm10, %v15938_v57  ;;  %v6709_v26 = vpack.c.bf16 %v6670_v14, %v6667_v44  ;;  %v6508_v20 = vpop.f32.mrb[60].mxu0  ;;  %v16366_v14 = vld [vmem:[#allocation119_spill] sm:$0xff] }
 0xb49   :  { %v6509_v60 = vadd.f32 %v6508_v20, %v16361_v4  ;;  %v6510_v39 = vpop.f32.mrb[61].mxu0  ;;  %v16367_v20 = vld [vmem:[#allocation120_spill] sm:$0xff] }
 0xb4a   :  { %v6511_v12 = vadd.f32 %v6510_v39, %v16362_v36  ;;  %v6512_v15 = vpop.f32.mrb[62].mxu0  ;;  %6730 = vmatprep.subr.bf16.mxu1 %v6709_v26  ;;  %v16368_v39 = vld [vmem:[#allocation121_spill] sm:$0xff] }
 0xb4b   :  { %v6513_v6 = vadd.f32 %v6512_v15, %v16363_v55  ;;  %v6514_v45 = vpop.f32.mrb[63].mxu0  ;;  %6731 = vmatpush1.bf16.msra.mxu1 %v6708_v58  ;;  %v6672_v9 = vmax.f32 %v6509_v60, 0.0 }
 0xb4c   :  { %v6515_v30 = vadd.f32 %v6514_v45, %v16364_v21  ;;  %v6673_v41 = vmax.f32 %v6511_v12, 0.0 }
 0xb4d   :  { %v6675_v62 = vmax.f32 %v6513_v6, 0.0 }
 0xb4e   :  { %v6676_v8 = vmax.f32 %v6515_v30, 0.0 }
 0xb4f   :  { %10961 = vmatmul.mubr.msk.bf16.gmra.mrb[88].mxu0 %vm13370_vm5, %v15938_v57  ;;  %v6711_v19 = vpack.c.bf16 %v6675_v62, %v6672_v9  ;;  %v16369_v9 = vld [vmem:[#allocation123_spill] sm:$0xff] }
 0xb50   :  { %10964 = vmatprep.mubr.msk.bf16.mxu0 %vm13375_vm4, %v15938_v57  ;;  %v6712_v49 = vpack.c.bf16 %v6676_v8, %v6673_v41  ;;  %v6518_v3 = vpop.f32.mrb[64].mxu0  ;;  %v16370_v8 = vld [vmem:[#allocation124_spill] sm:$0xff] }
 0xb51   :  { %v6519_v28 = vadd.f32 %v6518_v3, %v16365_v40  ;;  %v6520_v44 = vpop.f32.mrb[65].mxu0 }
 0xb52   :  { %v6521_v58 = vadd.f32 %v6520_v44, %v16366_v14  ;;  %v6522_v26 = vpop.f32.mrb[66].mxu0  ;;  %6732 = vmatprep.subr.bf16.mxu1 %v6712_v49  ;;  %v16372_v44 = vld [vmem:[#allocation126_spill] sm:$0xff] }
 0xb53   :  { %v6523_v4 = vadd.f32 %v6522_v26, %v16367_v20  ;;  %v6524_v60 = vpop.f32.mrb[67].mxu0  ;;  %6733 = vmatpush1.bf16.msra.mxu1 %v6711_v19  ;;  %v6678_v12 = vmax.f32 %v6519_v28, 0.0  ;;  %v16371_v19 = vld [vmem:[#allocation125_spill] sm:$0xff] }
 0xb54   :  { %v6525_v36 = vadd.f32 %v6524_v60, %v16368_v39  ;;  %v6679_v55 = vmax.f32 %v6521_v58, 0.0 }
 0xb55   :  { %v6681_v15 = vmax.f32 %v6523_v4, 0.0 }
 0xb56   :  { %v6682_v6 = vmax.f32 %v6525_v36, 0.0 }
 0xb57   :  { %10965 = vmatmul.mubr.msk.bf16.gmra.mrb[92].mxu0 %vm13408_vm1, %v15938_v57  ;;  %v6714_v45 = vpack.c.bf16 %v6681_v15, %v6678_v12  ;;  %v16373_v12 = vld [vmem:[#allocation127_spill] sm:$0xff] }
 0xb58   :  { %v6715_v21 = vpack.c.bf16 %v6682_v6, %v6679_v55  ;;  %v6528_v30 = vpop.f32.mrb[68].mxu0  ;;  %v16374_v6 = vld [vmem:[#allocation128_spill] sm:$0xff] }
 0xb59   :  { %v6529_v62 = vadd.f32 %v6528_v30, %v16369_v9  ;;  %v6530_v41 = vpop.f32.mrb[69].mxu0 }
 0xb5a   :  { %v6531_v49 = vadd.f32 %v6530_v41, %v16370_v8  ;;  %v6532_v3 = vpop.f32.mrb[70].mxu0  ;;  %6734 = vmatprep.subr.bf16.mxu1 %v6715_v21  ;;  %v16375_v21 = vld [vmem:[#allocation77_spill] sm:$0xff] }
 0xb5b   :  { %v6533_v40 = vadd.f32 %v6532_v3, %v16371_v19  ;;  %v6534_v28 = vpop.f32.mrb[71].mxu0  ;;  %6735 = vmatpush1.bf16.msra.mxu1 %v6714_v45  ;;  %v6684_v58 = vmax.f32 %v6529_v62, 0.0 }
 0xb5c   :  { %v6535_v14 = vadd.f32 %v6534_v28, %v16372_v44  ;;  %v6685_v20 = vmax.f32 %v6531_v49, 0.0 }
 0xb5d   :  { %v6687_v26 = vmax.f32 %v6533_v40, 0.0 }
 0xb5e   :  { %v6688_v4 = vmax.f32 %v6535_v14, 0.0 }
 0xb5f   :  { %v6717_v60 = vpack.c.bf16 %v6687_v26, %v6684_v58 }
 0xb60   :  { %v6718_v39 = vpack.c.bf16 %v6688_v4, %v6685_v20  ;;  %v6538_v36 = vpop.f32.mrb[72].mxu0 }
 0xb61   :  { %v6539_v15 = vadd.f32 %v6538_v36, %v16373_v12  ;;  %v6540_v55 = vpop.f32.mrb[73].mxu0 }
 0xb62   :  { %v6541_v30 = vadd.f32 %v6540_v55, %v16374_v6  ;;  %v6542_v9 = vpop.f32.mrb[74].mxu0  ;;  %6736 = vmatprep.subr.bf16.mxu1 %v6718_v39 }
 0xb63   :  { %v6543_v41 = vadd.f32 %v6542_v9, %v16375_v21  ;;  %v6544_v8 = vpop.f32.mrb[75].mxu0  ;;  %6737 = vmatpush1.bf16.msra.mxu1 %v6717_v60  ;;  %v6690_v62 = vmax.f32 %v6539_v15, 0.0  ;;  %v16376_v60 = vld [vmem:[#allocation82_spill] sm:$0xff]  ;;  %v11997_v9 = vld [vmem:[#allocation7 + $0x4c8] ss:$12 sps:$4 sm:$0xff]  }
 0xb64   :  { %v6545_v45 = vadd.f32 %v6544_v8, %v16225_v31  ;;  %v6691_v49 = vmax.f32 %v6541_v30, 0.0  ;;  %v12000_v21 = vld [vmem:[#allocation7 + $0x4e0] ss:$12 sps:$4 sm:$0xff]   ;;  %v12003_v8 = vld [vmem:[#allocation7 + $0x4f8] ss:$12 sps:$4 sm:$0xff]  }
 0xb65   :  { %v6693_v3 = vmax.f32 %v6543_v41, 0.0  ;;  %v12005_v41 = vld [vmem:[#allocation7 + $0x4fc] ss:$12 sps:$4 sm:$0xff]  }
 0xb66   :  { %v6694_v19 = vmax.f32 %v6545_v45, 0.0  ;;  %v12006_v45 = vld [vmem:[#allocation7 + $0x510] ss:$12 sps:$4 sm:$0xff]  }
 0xb67   :  { %v6720_v40 = vpack.c.bf16 %v6693_v3, %v6690_v62  ;;  %v12011_v62 = vld [vmem:[#allocation7 + $0x52c] ss:$12 sps:$4 sm:$0xff]   ;;  %v12009_v3 = vld [vmem:[#allocation7 + $0x528] ss:$12 sps:$4 sm:$0xff]  }
 0xb68   :  { %v6721_v28 = vpack.c.bf16 %v6694_v19, %v6691_v49  ;;  %v6548_v44 = vpop.f32.mrb[76].mxu0  ;;  %v12012_v49 = vld [vmem:[#allocation7 + $0x540] ss:$12 sps:$4 sm:$0xff]   ;;  %v12014_v19 = vld [vmem:[#allocation7 + $0x544] ss:$12 sps:$4 sm:$0xff]  }
 0xb69   :  { %v6549_v14 = vadd.f32 %v6548_v44, %v16226_v52  ;;  %v6550_v58 = vpop.f32.mrb[77].mxu0  ;;  %v11991_v52 = vld [vmem:[#allocation7 + $0x498] ss:$12 sps:$4 sm:$0xff]   ;;  %v12020_v44 = vld [vmem:[#allocation7 + $0x560] ss:$12 sps:$4 sm:$0xff]  }
 0xb6a   :  { %v6551_v26 = vadd.f32 %v6550_v58, %v16227_v7  ;;  %v6552_v20 = vpop.f32.mrb[78].mxu0  ;;  %6738 = vmatprep.subr.bf16.mxu1 %v6721_v28  ;;  %v11988_v7 = vld [vmem:[#allocation7 + $0x480] ss:$12 sps:$4 sm:$0xff]   ;;  %v12019_v28 = vld [vmem:[#allocation7 + $0x55c] ss:$12 sps:$4 sm:$0xff]  }
 0xb6b   :  { %v6553_v4 = vadd.f32 %v6552_v20, %v16228_v18  ;;  %v6554_v39 = vpop.f32.mrb[79].mxu0  ;;  %6739 = vmatpush1.bf16.msra.mxu1 %v6720_v40  ;;  %v6696_v36 = vmax.f32 %v6549_v14, 0.0  ;;  %v11994_v18 = vld [vmem:[#allocation7 + $0x4b0] ss:$12 sps:$4 sm:$0xff]   ;;  %v12016_v40 = vld [vmem:[#allocation7 + $0x488] ss:$12 sps:$4 sm:$0xff]  }
 0xb6c   :  { %v6555_v31 = vadd.f32 %v6554_v39, %v16376_v60  ;;  %v6697_v15 = vmax.f32 %v6551_v26, 0.0  ;;  %10408 = vmatpush3.bf16.msra.mxu0 %v12016_v40  ;;  %v12021_v14 = vld [vmem:[#allocation7 + $0x4a0] ss:$12 sps:$4 sm:$0xff]   ;;  %v12017_v58 = vld [vmem:[#allocation7 + $0x558] ss:$12 sps:$4 sm:$0xff]  }
 0xb6d   :  { %v6699_v12 = vmax.f32 %v6553_v4, 0.0  ;;  %10409 = vmatprep.subr.bf16.mxu0 %v12020_v44  ;;  %v12025_v26 = vld [vmem:[#allocation7 + $0x578] ss:$12 sps:$4 sm:$0xff]   ;;  %v12024_v20 = vld [vmem:[#allocation7 + $0x574] ss:$12 sps:$4 sm:$0xff]  }
 0xb6e   :  { %v6700_v55 = vmax.f32 %v6555_v31, 0.0  ;;  %v12030_v4 = vld [vmem:[#allocation7 + $0x590] ss:$12 sps:$4 sm:$0xff]   ;;  %v12029_v39 = vld [vmem:[#allocation7 + $0x58c] ss:$12 sps:$4 sm:$0xff]  }
 0xb6f   :  { %v6723_v6 = vpack.c.bf16 %v6699_v12, %v6696_v36  ;;  %v12031_v60 = vld [vmem:[#allocation7 + $0x4d0] ss:$12 sps:$4 sm:$0xff]   ;;  %v12027_v31 = vld [vmem:[#allocation7 + $0x588] ss:$12 sps:$4 sm:$0xff]  }
 0xb70   :  { %v6724_v30 = vpack.c.bf16 %v6700_v55, %v6697_v15  ;;  %10410 = vmatpush3.bf16.msra.mxu0 %v12021_v14  ;;  %v12035_v36 = vld [vmem:[#allocation7 + $0x5a8] ss:$12 sps:$4 sm:$0xff]   ;;  %v12034_v12 = vld [vmem:[#allocation7 + $0x5a4] ss:$12 sps:$4 sm:$0xff]   ;;  %v12032_v55 = vld [vmem:[#allocation7 + $0x5a0] ss:$12 sps:$4 sm:$0xff]  }
 0xb71   :  { %10411 = vmatprep.subr.bf16.mxu0 %v12025_v26  ;;  %v12036_v15 = vld [vmem:[#allocation7 + $0x4e8] ss:$12 sps:$4 sm:$0xff]   ;;  %v16380_v14 = vmax.f32 %v14649_v1, 0.0  ;;  %v16384_v1 = vmax.f32 %v14701_v63, 0.0  ;;  %v16388_v63 = vmax.f32 %v14753_v34, 0.0  ;;  %v16392_v34 = vmax.f32 %v14805_v24, 0.0 }
 0xb72   :  { %6740 = vmatprep.subr.bf16.mxu1 %v6724_v30  ;;  %v12039_v30 = vld [vmem:[#allocation7 + $0x5bc] ss:$12 sps:$4 sm:$0xff]   ;;  %v16396_v24 = vmax.f32 %v14647_v5, 0.0 }
 0xb73   :  { %6741 = vmatpush1.bf16.msra.mxu1 %v6723_v6  ;;  %v12040_v6 = vld [vmem:[#allocation7 + $0x5c0] ss:$12 sps:$4 sm:$0xff]  }
 0xb74   :  { %7520 = vmatprep.subr.bf16.mxu1 %v11990_v38  ;;  %v12041_v38 = vld [vmem:[#allocation7 + $0x500] ss:$12 sps:$4 sm:$0xff]  }
 0xb76   :  { %9782 = vmatmul.mubr.msk.bf16.vlgmr.msra.gmra.mrb[64].mxu1 %vm13138_vm15, %v15938_v57 }
 0xb77   :  { %6768 = vmatprep.mubr.bf16.mxu1 %v16049_v22  ;;  %7521 = vmatpush1.bf16.msra.mxu1 %v11988_v7  ;;  %v12037_v7 = vld [vmem:[#allocation7 + $0x5b8] ss:$12 sps:$4 sm:$0xff]  }
 0xb78   :  { %7522 = vmatprep.subr.bf16.mxu1 %v11993_v0  ;;  %v12044_v0 = vld [vmem:[#allocation7 + $0x5d4] ss:$12 sps:$4 sm:$0xff]  }
 0xb7b   :  { %7523 = vmatpush1.bf16.msra.mxu1 %v11991_v52  ;;  %v12045_v52 = vld [vmem:[#allocation7 + $0x5d8] ss:$12 sps:$4 sm:$0xff]  }
 0xb7c   :  { %7524 = vmatprep.subr.bf16.mxu1 %v11996_v17  ;;  %v12042_v17 = vld [vmem:[#allocation7 + $0x5d0] ss:$12 sps:$4 sm:$0xff]  }
 0xb7e   :  { %9784 = vmatmul.mubr.msk.bf16.gmra.mrb[68].mxu1 %vm13286_vm9, %v15938_v57 }
 0xb7f   :  { %6778 = vmatprep.mubr.bf16.mxu1 %v16049_v22  ;;  %7525 = vmatpush1.bf16.msra.mxu1 %v11994_v18  ;;  %v12046_v18 = vld [vmem:[#allocation7 + $0x518] ss:$12 sps:$4 sm:$0xff]  }
 0xb80   :  { %7526 = vmatprep.subr.bf16.mxu1 %v11999_v42  ;;  %v12049_v42 = vld [vmem:[#allocation7 + $0x5ec] ss:$12 sps:$4 sm:$0xff]  }
 0xb83   :  { %7527 = vmatpush1.bf16.msra.mxu1 %v11997_v9  ;;  %v12050_v9 = vld [vmem:[#allocation7 + $0x5f0] ss:$12 sps:$4 sm:$0xff]  }
 0xb84   :  { %7528 = vmatprep.subr.bf16.mxu1 %v12002_v2  ;;  %v12047_v2 = vld [vmem:[#allocation7 + $0x5e8] ss:$12 sps:$4 sm:$0xff]  }
 0xb86   :  { %9786 = vmatmul.mubr.msk.bf16.gmra.mrb[72].mxu1 %vm13295_vm11, %v15938_v57 }
 0xb87   :  { %6788 = vmatprep.mubr.bf16.mxu1 %v16049_v22  ;;  %7529 = vmatpush1.bf16.msra.mxu1 %v12000_v21  ;;  %v12051_v21 = vld [vmem:[#allocation7 + $0x530] ss:$12 sps:$4 sm:$0xff]  }
 0xb88   :  { %7530 = vmatprep.subr.bf16.mxu1 %v12005_v41  ;;  %v12054_v41 = vld [vmem:[#allocation7 + $0x604] ss:$12 sps:$4 sm:$0xff]  }
 0xb8b   :  { %7531 = vmatpush1.bf16.msra.mxu1 %v12003_v8  ;;  %v15083_v8 = vld [vmem:[#allocation7 + $0x608] ss:$12 sps:$4 sm:$0xff]  }
 0xb8c   :  { %7532 = vmatprep.subr.bf16.mxu1 %v12008_v16 }
 0xb8e   :  { %9788 = vmatmul.mubr.msk.bf16.gmra.mrb[76].mxu1 %vm13328_vm6, %v15938_v57 }
 0xb8f   :  { %6798 = vmatprep.mubr.bf16.mxu1 %v16049_v22  ;;  %7533 = vmatpush1.bf16.msra.mxu1 %v12006_v45 }
 0xb90   :  { %7534 = vmatprep.subr.bf16.mxu1 %v12011_v62 }
 0xb93   :  { %7535 = vmatpush1.bf16.msra.mxu1 %v12009_v3  ;;  %v16377_v3 = vmax.f32 %v14628_v29, 0.0  ;;  %v16381_v29 = vmax.f32 %v14675_v47, 0.0  ;;  %v16385_v47 = vmax.f32 %v14727_v43, 0.0  ;;  %v16389_v43 = vmax.f32 %v14779_v48, 0.0 }
 0xb94   :  { %7536 = vmatprep.subr.bf16.mxu1 %v12014_v19  ;;  %v16378_v19 = vmax.f32 %v14644_v54, 0.0  ;;  %v16382_v54 = vmax.f32 %v14696_v32, 0.0  ;;  %v16386_v32 = vmax.f32 %v14748_v33, 0.0  ;;  %v16390_v33 = vmax.f32 %v14800_v46, 0.0 }
 0xb95   :  { %v16393_v48 = vmax.f32 %v14639_v10, 0.0  ;;  %v16394_v46 = vmax.f32 %v14642_v11, 0.0 }
 0xb96   :  { %9790 = vmatmul.mubr.msk.bf16.gmra.mrb[80].mxu1 %vm13337_vm10, %v15938_v57 }
 0xb97   :  { %6808 = vmatprep.mubr.bf16.mxu1 %v16049_v22  ;;  %7537 = vmatpush1.bf16.msra.mxu1 %v12012_v49 }
 0xb98   :  { %7538 = vmatprep.subr.bf16.mxu1 %v12019_v28  ;;  %v16379_v28 = vmax.f32 %v14634_v51, 0.0  ;;  %v16383_v51 = vmax.f32 %v14688_v53, 0.0  ;;  %v16387_v53 = vmax.f32 %v14740_v27, 0.0  ;;  %v16391_v27 = vmax.f32 %v14792_v37, 0.0 }
 0xb99   :  { %v16395_v37 = vmax.f32 %v14632_v59, 0.0  ;;  %v16397_v59 = vmax.f32 %v14691_v13, 0.0  ;;  %v12063_v13 = vld [vmem:[#allocation7 + $0x64c] ss:$12 sps:$4 sm:$0xff]  }
 0xb9b   :  { %7539 = vmatpush1.bf16.msra.mxu1 %v12017_v58 }
 0xb9c   :  { %7540 = vmatprep.subr.bf16.mxu1 %v12024_v20 }
 0xb9e   :  { %9792 = vmatmul.mubr.msk.bf16.gmra.mrb[84].mxu1 %vm13370_vm5, %v15938_v57 }
 0xb9f   :  { %6818 = vmatprep.mubr.bf16.mxu1 %v16049_v22  ;;  %7541 = vmatpush1.bf16.msra.mxu1 %v12022_v23 }
 0xba0   :  { %7542 = vmatprep.subr.bf16.mxu1 %v12029_v39 }
 0xba3   :  { %7543 = vmatpush1.bf16.msra.mxu1 %v12027_v31 }
 0xba4   :  { %7544 = vmatprep.subr.bf16.mxu1 %v12034_v12 }
 0xba6   :  { %9794 = vmatmul.mubr.msk.bf16.gmra.mrb[88].mxu1 %vm13375_vm4, %v15938_v57 }
 0xba7   :  { %6828 = vmatprep.mubr.bf16.mxu1 %v16049_v22  ;;  %7545 = vmatpush1.bf16.msra.mxu1 %v12032_v55 }
 0xba8   :  { %7546 = vmatprep.subr.bf16.mxu1 %v12039_v30 }
 0xbab   :  { %7547 = vmatpush1.bf16.msra.mxu1 %v12037_v7 }
 0xbac   :  { %7548 = vmatprep.subr.bf16.mxu1 %v12044_v0 }
 0xbae   :  { %9796 = vmatmul.mubr.msk.bf16.gmra.mrb[92].mxu1 %vm13408_vm1, %v15938_v57  ;;  %v12026_v57 = vld [vmem:[#allocation7 + $0x4b8] ss:$12 sps:$4 sm:$0xff]  }
 0xbaf   :  { %10412 = vmatpush3.bf16.msra.mxu0 %v12026_v57  ;;  %7549 = vmatpush1.bf16.msra.mxu1 %v12042_v17 }
 0xbb0   :  { %10413 = vmatprep.subr.bf16.mxu0 %v12030_v4  ;;  %7550 = vmatprep.subr.bf16.mxu1 %v12049_v42 }
 0xbb3   :  { %10414 = vmatpush3.bf16.msra.mxu0 %v12031_v60  ;;  %7551 = vmatpush1.bf16.msra.mxu1 %v12047_v2 }
 0xbb4   :  { %10415 = vmatprep.subr.bf16.mxu0 %v12035_v36  ;;  %7633 = vmatprep.subr.bf16.mxu1 %v12054_v41 }
 0xbb7   :  { %10416 = vmatpush3.bf16.msra.mxu0 %v12036_v15 }
 0xbb8   :  { %10417 = vmatprep.subr.bf16.mxu0 %v12040_v6 }
 0xbbb   :  { %10418 = vmatpush3.bf16.msra.mxu0 %v12041_v38 }
 0xbbc   :  { %10419 = vmatprep.subr.bf16.mxu0 %v12045_v52 }
 0xbbf   :  { %10420 = vmatpush3.bf16.msra.mxu0 %v12046_v18 }
 0xbc0   :  { %10421 = vmatprep.subr.bf16.mxu0 %v12050_v9 }
 0xbc3   :  { %10422 = vmatpush3.bf16.msra.mxu0 %v12051_v21 }
 0xbc4   :  { %10968 = vmatprep.subr.bf16.mxu0 %v15083_v8 }
 0xc12   :  { %v10954_v16 = vpop.f32.mrb[80].mxu0 }
 0xc13   :  { %v6873_v45 = vpop.f32.mrb[81].mxu0  ;;  %v6944_v49 = vadd.f32 %v10954_v16, %v16377_v3 }
 0xc14   :  { %v10955_v62 = vpop.f32.mrb[82].mxu0  ;;  %v6938_v44 = vadd.f32 %v6873_v45, %v16379_v28 }
 0xc15   :  { %v6947_v61 = vadd.f32 %v10955_v62, %v16378_v19  ;;  %v6876_v40 = vpop.f32.mrb[83].mxu0 }
 0xc16   :  { %v6941_v58 = vadd.f32 %v6876_v40, %v16380_v14 }
 0xc17   :  { %v15094_v26 = vpack.c.bf16 %v6947_v61, %v6944_v49 }
 0xc18   :  { %v15096_v20 = vpack.c.bf16 %v6941_v58, %v6938_v44 }
 0xc1a   :  { %v10958_v57 = vpop.f32.mrb[84].mxu0 }
 0xc1b   :  { %v6889_v23 = vpop.f32.mrb[85].mxu0  ;;  %v6956_v39 = vadd.f32 %v10958_v57, %v16381_v29 }
 0xc1c   :  { %v10959_v4 = vpop.f32.mrb[86].mxu0  ;;  %v6950_v36 = vadd.f32 %v6889_v23, %v16383_v51 }
 0xc1d   :  { %v6959_v60 = vadd.f32 %v10959_v4, %v16382_v54  ;;  %v6892_v31 = vpop.f32.mrb[87].mxu0  ;;  %v12052_v54 = vld [vmem:[#allocation7 + $0x600] ss:$12 sps:$4 sm:$0xff]  }
 0xc1e   :  { %v6953_v12 = vadd.f32 %v6892_v31, %v16384_v1  ;;  %v12068_v31 = vld [vmem:[#allocation7 + $0x620] ss:$12 sps:$4 sm:$0xff]   ;;  %v16398_v1 = vmax.f32 %v14694_v50, 0.0  ;;  %v12073_v50 = vld [vmem:[#allocation7 + $0x650] ss:$12 sps:$4 sm:$0xff]  }
 0xc1f   :  { %v15106_v15 = vpack.c.bf16 %v6959_v60, %v6956_v39  ;;  %v12057_v60 = vld [vmem:[#allocation7 + $0x61c] ss:$12 sps:$4 sm:$0xff]  }
 0xc20   :  { %v15108_v55 = vpack.c.bf16 %v6953_v12, %v6950_v36  ;;  %v12055_v36 = vld [vmem:[#allocation7 + $0x618] ss:$12 sps:$4 sm:$0xff]  }
 0xc22   :  { %v10962_v6 = vpop.f32.mrb[88].mxu0 }
 0xc23   :  { %v6905_v30 = vpop.f32.mrb[89].mxu0  ;;  %v6968_v7 = vadd.f32 %v10962_v6, %v16385_v47  ;;  %v16399_v47 = vld [vmem:[#allocation31_spill] sm:$0xff] }
 0xc24   :  { %v10963_v38 = vpop.f32.mrb[90].mxu0  ;;  %v6962_v17 = vadd.f32 %v6905_v30, %v16387_v53  ;;  %v12060_v30 = vld [vmem:[#allocation7 + $0x634] ss:$12 sps:$4 sm:$0xff]  }
 0xc25   :  { %v6971_v0 = vadd.f32 %v10963_v38, %v16386_v32  ;;  %v6908_v52 = vpop.f32.mrb[91].mxu0  ;;  %v12069_v38 = vld [vmem:[#allocation7 + $0x638] ss:$12 sps:$4 sm:$0xff]  }
 0xc26   :  { %v6965_v18 = vadd.f32 %v6908_v52, %v16388_v63 }
 0xc27   :  { %v15118_v42 = vpack.c.bf16 %v6971_v0, %v6968_v7  ;;  %v16400_v7 = vmax.f32 %v16399_v47, 0.0  ;;  %v16401_v0 = vld [vmem:[#allocation36_spill] sm:$0xff] }
 0xc28   :  { %v15120_v9 = vpack.c.bf16 %v6965_v18, %v6962_v17  ;;  %v16402_v52 = vmax.f32 %v16401_v0, 0.0 }
 0xc2a   :  { %v10966_v2 = vpop.f32.mrb[92].mxu0 }
 0xc2b   :  { %v6921_v21 = vpop.f32.mrb[93].mxu0  ;;  %v6980_v16 = vadd.f32 %v10966_v2, %v16389_v43  ;;  %v16403_v43 = vld [vmem:[#allocation42_spill] sm:$0xff] }
 0xc2c   :  { %v10967_v41 = vpop.f32.mrb[94].mxu0  ;;  %v6974_v3 = vadd.f32 %v6921_v21, %v16391_v27 }
 0xc2d   :  { %v6983_v45 = vadd.f32 %v10967_v41, %v16390_v33  ;;  %v6924_v62 = vpop.f32.mrb[95].mxu0  ;;  %v12061_v41 = vld [vmem:[#allocation7 + $0x648] ss:$12 sps:$4 sm:$0xff]  }
 0xc2e   :  { %v6977_v49 = vadd.f32 %v6924_v62, %v16392_v34  ;;  %v12067_v34 = vld [vmem:[#allocation7 + $0x664] ss:$12 sps:$4 sm:$0xff]  }
 0xc2f   :  { %v15130_v19 = vpack.c.bf16 %v6983_v45, %v6980_v16  ;;  %v16404_v16 = vmax.f32 %v16403_v43, 0.0  ;;  %v16405_v45 = vld [vmem:[#allocation39_spill] sm:$0xff] }
 0xc30   :  { %v15132_v61 = vpack.c.bf16 %v6977_v49, %v6974_v3  ;;  %v16406_v62 = vmax.f32 %v16405_v45, 0.0  ;;  %v12074_v49 = vld [vmem:[#allocation7 + $0x668] ss:$12 sps:$4 sm:$0xff]   ;;  %v16423_v45 = vld [vmem:[#allocation55_spill] sm:$0xff] }
 0xc49   :  { %v6760_v40 = vpop.f32.mrb[64].mxu1 }
 0xc4a   :  { %v6762_v28 = vpop.f32.mrb[65].mxu1  ;;  %v6936_v14 = vadd.f32 %v6760_v40, %v16393_v48  ;;  %v16407_v40 = vld [vmem:[#allocation41_spill] sm:$0xff]  ;;  %v16409_v48 = vld [vmem:[#allocation44_spill] sm:$0xff] }
 0xc4b   :  { %v6764_v44 = vpop.f32.mrb[66].mxu1  ;;  %v6937_v23 = vadd.f32 %v6762_v28, %v16395_v37  ;;  %v16408_v28 = vmax.f32 %v16407_v40, 0.0  ;;  %v12065_v37 = vld [vmem:[#allocation7 + $0x660] ss:$12 sps:$4 sm:$0xff]  }
 0xc4c   :  { %v6939_v58 = vadd.f32 %v6764_v44, %v16394_v46  ;;  %v6766_v57 = vpop.f32.mrb[67].mxu1 }
 0xc4d   :  { %v6940_v4 = vadd.f32 %v6766_v57, %v16396_v24  ;;  %v12078_v24 = vld [vmem:[#allocation7 + $0x680] ss:$12 sps:$4 sm:$0xff]  }
 0xc4e   :  { %v6984_v29 = vpack.c.bf16 %v6939_v58, %v6936_v14  ;;  %v16410_v14 = vmax.f32 %v16409_v48, 0.0 }
 0xc4f   :  { %v6985_v39 = vpack.c.bf16 %v6940_v4, %v6937_v23  ;;  %v12072_v23 = vld [vmem:[#allocation7 + $0x67c] ss:$12 sps:$4 sm:$0xff]  }
 0xc51   :  { %v6770_v51 = vpop.f32.mrb[68].mxu1  ;;  %7552 = vmatprep.mubr.bf16.mxu1 %v6985_v39  ;;  %7778 = vmatprep.mubr.bf16.mxu0 %v6985_v39 }
 0xc52   :  { %v6772_v10 = vpop.f32.mrb[69].mxu1  ;;  %7553 = vmatmul.mubr.bf16.vlgmr.msra.gmra.mrb[96].mxu1 %v6984_v29  ;;  %7779 = vmatmul.mubr.bf16.vlgmr.msra.gmra.mrb[96].mxu0 %v6984_v29  ;;  %v6942_v5 = vadd.f32 %v6770_v51, %v16397_v59 }
 0xc53   :  { %v6774_v11 = vpop.f32.mrb[70].mxu1  ;;  %7634 = vmatpush1.bf16.msra.mxu1 %v12052_v54  ;;  %10969 = vmatpush3.bf16.msra.mxu0 %v15083_v8  ;;  %v6943_v32 = vadd.f32 %v6772_v10, %v16400_v7  ;;  %v12058_v8 = vld [vmem:[#allocation7 + $0x630] ss:$12 sps:$4 sm:$0xff]   ;;  %v12070_v54 = vld [vmem:[#allocation7 + $0x678] ss:$12 sps:$4 sm:$0xff]  }
 0xc54   :  { %v6945_v12 = vadd.f32 %v6774_v11, %v16398_v1  ;;  %v6776_v6 = vpop.f32.mrb[71].mxu1  ;;  %7635 = vmatprep.subr.bf16.mxu1 %v12057_v60  ;;  %10970 = vmatprep.subr.bf16.mxu0 %v12068_v31  ;;  %v16411_v60 = vld [vmem:[#allocation50_spill] sm:$0xff]  ;;  %v16413_v10 = vld [vmem:[#allocation47_spill] sm:$0xff] }
 0xc55   :  { %v6946_v53 = vadd.f32 %v6776_v6, %v16402_v52  ;;  %v16414_v11 = vmax.f32 %v16413_v10, 0.0  ;;  %v12079_v1 = vld [vmem:[#allocation7 + $0x698] ss:$12 sps:$4 sm:$0xff]   ;;  %v12075_v52 = vld [vmem:[#allocation7 + $0x690] ss:$12 sps:$4 sm:$0xff]  }
 0xc56   :  { %v6987_v17 = vpack.c.bf16 %v6945_v12, %v6942_v5  ;;  %v12077_v5 = vld [vmem:[#allocation7 + $0x694] ss:$12 sps:$4 sm:$0xff]  }
 0xc57   :  { %v6988_v63 = vpack.c.bf16 %v6946_v53, %v6943_v32  ;;  %7636 = vmatpush1.bf16.msra.mxu1 %v12055_v36  ;;  %10971 = vmatpush3.bf16.msra.mxu0 %v12068_v31  ;;  %v16412_v31 = vmax.f32 %v16411_v60, 0.0  ;;  %v16415_v12 = vld [vmem:[#allocation49_spill] sm:$0xff]  ;;  %v12082_v53 = vld [vmem:[#allocation7 + $0x6ac] ss:$12 sps:$4 sm:$0xff]   ;;  %v16433_v60 = vld [vmem:[#allocation63_spill] sm:$0xff] }
 0xc58   :  { %7637 = vmatprep.subr.bf16.mxu1 %v12060_v30  ;;  %10972 = vmatprep.subr.bf16.mxu0 %v12069_v38  ;;  %v16416_v6 = vmax.f32 %v16415_v12, 0.0 }
 0xc59   :  { %v6780_v18 = vpop.f32.mrb[72].mxu1  ;;  %7562 = vmatprep.mubr.bf16.mxu1 %v6988_v63  ;;  %7786 = vmatprep.mubr.bf16.mxu0 %v6988_v63 }
 0xc5a   :  { %v6782_v2 = vpop.f32.mrb[73].mxu1  ;;  %7563 = vmatmul.mubr.bf16.gmra.mrb[100].mxu1 %v6987_v17  ;;  %7787 = vmatmul.mubr.bf16.gmra.mrb[100].mxu0 %v6987_v17  ;;  %v6948_v33 = vadd.f32 %v6780_v18, %v16404_v16  ;;  %v12083_v17 = vld [vmem:[#allocation7 + $0x6b0] ss:$12 sps:$4 sm:$0xff]   ;;  %v16419_v18 = vld [vmem:[#allocation56_spill] sm:$0xff] }
 0xc5b   :  { %v6784_v21 = vpop.f32.mrb[74].mxu1  ;;  %7638 = vmatpush1.bf16.msra.mxu1 %v12058_v8  ;;  %10973 = vmatpush3.bf16.msra.mxu0 %v12069_v38  ;;  %v6949_v44 = vadd.f32 %v6782_v2, %v16408_v28  ;;  %v16417_v38 = vld [vmem:[#allocation52_spill] sm:$0xff]  ;;  %v16420_v2 = vmax.f32 %v16419_v18, 0.0  ;;  %v16442_v18 = vld [vmem:[#allocation69_spill] sm:$0xff] }
 0xc5c   :  { %v6951_v27 = vadd.f32 %v6784_v21, %v16406_v62  ;;  %v6786_v3 = vpop.f32.mrb[75].mxu1  ;;  %7639 = vmatprep.subr.bf16.mxu1 %v12063_v13  ;;  %10974 = vmatprep.subr.bf16.mxu0 %v12073_v50  ;;  %v16418_v47 = vmax.f32 %v16417_v38, 0.0  ;;  %v16424_v62 = vmax.f32 %v16423_v45, 0.0  ;;  %v16446_v45 = vld [vmem:[#allocation73_spill] sm:$0xff] }
 0xc5d   :  { %v6952_v46 = vadd.f32 %v6786_v3, %v16410_v14  ;;  %v16425_v3 = vld [vmem:[#allocation57_spill] sm:$0xff] }
 0xc5e   :  { %v6990_v58 = vpack.c.bf16 %v6951_v27, %v6948_v33 }
 0xc5f   :  { %v6991_v57 = vpack.c.bf16 %v6952_v46, %v6949_v44  ;;  %7640 = vmatpush1.bf16.msra.mxu1 %v12061_v41  ;;  %10975 = vmatpush3.bf16.msra.mxu0 %v12073_v50  ;;  %v12080_v50 = vld [vmem:[#allocation7 + $0x6a8] ss:$12 sps:$4 sm:$0xff]   ;;  %v16421_v41 = vld [vmem:[#allocation54_spill] sm:$0xff] }
 0xc60   :  { %7641 = vmatprep.subr.bf16.mxu1 %v12067_v34  ;;  %10976 = vmatprep.subr.bf16.mxu0 %v12074_v49  ;;  %v16422_v43 = vmax.f32 %v16421_v41, 0.0  ;;  %v16426_v34 = vmax.f32 %v16425_v3, 0.0  ;;  %v16427_v46 = vld [vmem:[#allocation62_spill] sm:$0xff] }
 0xc61   :  { %v6790_v4 = vpop.f32.mrb[76].mxu1  ;;  %7572 = vmatprep.mubr.bf16.mxu1 %v6991_v57  ;;  %7794 = vmatprep.mubr.bf16.mxu0 %v6991_v57 }
 0xc62   :  { %v6792_v29 = vpop.f32.mrb[77].mxu1  ;;  %7573 = vmatmul.mubr.bf16.gmra.mrb[104].mxu1 %v6990_v58  ;;  %7795 = vmatmul.mubr.bf16.gmra.mrb[104].mxu0 %v6990_v58  ;;  %v6954_v51 = vadd.f32 %v6790_v4, %v16412_v31  ;;  %v16428_v58 = vmax.f32 %v16427_v46, 0.0  ;;  %v16434_v31 = vmax.f32 %v16433_v60, 0.0  ;;  %v12104_v46 = vld [vmem:[#allocation8 + $0x514] ss:$12 sps:$4 sm:$0xff]  }
 0xc63   :  { %v6794_v39 = vpop.f32.mrb[78].mxu1  ;;  %7642 = vmatpush1.bf16.msra.mxu1 %v12065_v37  ;;  %10977 = vmatpush3.bf16.msra.mxu0 %v12074_v49  ;;  %v6955_v30 = vadd.f32 %v6792_v29, %v16416_v6  ;;  %v16429_v37 = vld [vmem:[#allocation60_spill] sm:$0xff]  ;;  %v16431_v29 = vld [vmem:[#allocation61_spill] sm:$0xff]  ;;  %v16436_v6 = vmax.f32 %v14895_v25, 0.0 }
 0xc64   :  { %v6957_v36 = vadd.f32 %v6794_v39, %v16414_v11  ;;  %v6796_v59 = vpop.f32.mrb[79].mxu1  ;;  %7643 = vmatprep.subr.bf16.mxu1 %v12072_v23  ;;  %10978 = vmatprep.subr.bf16.mxu0 %v12078_v24  ;;  %v16430_v23 = vmax.f32 %v16429_v37, 0.0  ;;  %v16432_v39 = vmax.f32 %v16431_v29, 0.0  ;;  %v12110_v37 = vld [vmem:[#allocation8 + $0x544] ss:$12 sps:$4 sm:$0xff]  }
 0xc65   :  { %v6958_v7 = vadd.f32 %v6796_v59, %v16418_v47  ;;  %v16437_v47 = vld [vmem:[#allocation67_spill] sm:$0xff]  ;;  %v12115_v29 = vld [vmem:[#allocation8 + $0x55c] ss:$12 sps:$4 sm:$0xff]  }
 0xc66   :  { %v6993_v32 = vpack.c.bf16 %v6957_v36, %v6954_v51  ;;  %v12120_v60 = vld [vmem:[#allocation8 + $0x574] ss:$12 sps:$4 sm:$0xff]  }
 0xc67   :  { %v6994_v0 = vpack.c.bf16 %v6958_v7, %v6955_v30  ;;  %7644 = vmatpush1.bf16.msra.mxu1 %v12070_v54  ;;  %10979 = vmatpush3.bf16.msra.mxu0 %v12078_v24  ;;  %v16438_v7 = vmax.f32 %v16437_v47, 0.0  ;;  %v12136_v47 = vld [vmem:[#allocation8 + $0x5c0] ss:$12 sps:$4 sm:$0xff]  }
 0xc68   :  { %7645 = vmatprep.subr.bf16.mxu1 %v12077_v5  ;;  %10980 = vmatprep.subr.bf16.mxu0 %v12079_v1 }
 0xc69   :  { %v6800_v63 = vpop.f32.mrb[80].mxu1  ;;  %7582 = vmatprep.mubr.bf16.mxu1 %v6994_v0  ;;  %7802 = vmatprep.mubr.bf16.mxu0 %v6994_v0  ;;  %v16439_v0 = vld [vmem:[#allocation68_spill] sm:$0xff] }
 0xc6a   :  { %v6802_v8 = vpop.f32.mrb[81].mxu1  ;;  %7583 = vmatmul.mubr.bf16.gmra.mrb[108].mxu1 %v6993_v32  ;;  %7803 = vmatmul.mubr.bf16.gmra.mrb[108].mxu0 %v6993_v32  ;;  %v6960_v21 = vadd.f32 %v6800_v63, %v16420_v2  ;;  %v16443_v2 = vmax.f32 %v16442_v18, 0.0 }
 0xc6b   :  { %v6804_v13 = vpop.f32.mrb[82].mxu1  ;;  %7646 = vmatpush1.bf16.msra.mxu1 %v12075_v52  ;;  %10981 = vmatpush3.bf16.msra.mxu0 %v12079_v1  ;;  %v6961_v27 = vadd.f32 %v6802_v8, %v16424_v62  ;;  %v16435_v1 = vmax.f32 %v14892_v56, 0.0  ;;  %v16440_v52 = vmax.f32 %v16439_v0, 0.0  ;;  %v16447_v62 = vmax.f32 %v16446_v45, 0.0  ;;  %v12141_v0 = vld [vmem:[#allocation8 + $0x5d8] ss:$12 sps:$4 sm:$0xff]  }
 0xc6c   :  { %v6963_v16 = vadd.f32 %v6804_v13, %v16422_v43  ;;  %v6806_v33 = vpop.f32.mrb[83].mxu1  ;;  %7647 = vmatprep.subr.bf16.mxu1 %v12082_v53  ;;  %10982 = vmatprep.subr.bf16.mxu0 %v12083_v17  ;;  %v16444_v43 = vld [vmem:[#allocation66_spill] sm:$0xff] }
 0xc6d   :  { %v6964_v49 = vadd.f32 %v6806_v33, %v16426_v34 }
 0xc6e   :  { %v6996_v40 = vpack.c.bf16 %v6963_v16, %v6960_v21  ;;  %v16445_v16 = vmax.f32 %v16444_v43, 0.0 }
 0xc6f   :  { %v6997_v28 = vpack.c.bf16 %v6964_v49, %v6961_v27  ;;  %7648 = vmatpush1.bf16.msra.mxu1 %v12080_v50  ;;  %10983 = vmatpush3.bf16.msra.mxu0 %v12083_v17  ;;  %v16441_v50 = vmax.f32 %v14922_v35, 0.0  ;;  %v12086_v35 = vld [vmem:[#allocation8 + $0x484] ss:$12 sps:$4 sm:$0xff]   ;;  %v12089_v49 = vld [vmem:[#allocation8 + $0x49c] ss:$12 sps:$4 sm:$0xff]  }
 0xc70   :  { %8524 = vmatprep.subr.bf16.mxu0 %v12086_v35 }
 0xc71   :  { %v6810_v44 = vpop.f32.mrb[84].mxu1  ;;  %7592 = vmatprep.mubr.bf16.mxu1 %v6997_v28  ;;  %7810 = vmatprep.mubr.bf16.mxu0 %v6997_v28  ;;  %v12095_v28 = vld [vmem:[#allocation8 + $0x4cc] ss:$12 sps:$4 sm:$0xff]  }
 0xc72   :  { %v6812_v48 = vpop.f32.mrb[85].mxu1  ;;  %7593 = vmatmul.mubr.bf16.gmra.mrb[112].mxu1 %v6996_v40  ;;  %7811 = vmatmul.mubr.bf16.gmra.mrb[112].mxu0 %v6996_v40  ;;  %v6966_v57 = vadd.f32 %v6810_v44, %v16428_v58  ;;  %v12090_v40 = vld [vmem:[#allocation8 + $0x4b0] ss:$12 sps:$4 sm:$0xff]  }
 0xc73   :  { %v6814_v14 = vpop.f32.mrb[86].mxu1  ;;  %v6967_v54 = vadd.f32 %v6812_v48, %v16432_v39  ;;  %v12098_v44 = vld [vmem:[#allocation8 + $0x4e4] ss:$12 sps:$4 sm:$0xff]   ;;  %v12096_v48 = vld [vmem:[#allocation8 + $0x4e0] ss:$12 sps:$4 sm:$0xff]  }
 0xc74   :  { %v6969_v24 = vadd.f32 %v6814_v14, %v16430_v23  ;;  %v6816_v4 = vpop.f32.mrb[87].mxu1  ;;  %v12101_v14 = vld [vmem:[#allocation8 + $0x4fc] ss:$12 sps:$4 sm:$0xff]   ;;  %v12116_v39 = vld [vmem:[#allocation8 + $0x560] ss:$12 sps:$4 sm:$0xff]  }
 0xc75   :  { %v6970_v51 = vadd.f32 %v6816_v4, %v16434_v31  ;;  %v12102_v58 = vld [vmem:[#allocation8 + $0x510] ss:$12 sps:$4 sm:$0xff]   ;;  %v12111_v23 = vld [vmem:[#allocation8 + $0x548] ss:$12 sps:$4 sm:$0xff]  }
 0xc76   :  { %v6999_v10 = vpack.c.bf16 %v6969_v24, %v6966_v57  ;;  %v12107_v57 = vld [vmem:[#allocation8 + $0x52c] ss:$12 sps:$4 sm:$0xff]   ;;  %v12112_v4 = vld [vmem:[#allocation8 + $0x488] ss:$12 sps:$4 sm:$0xff]   ;;  %10487 = vmatprep.subr.bf16.mxu1 %v12111_v23  ;;  %v12118_v31 = vld [vmem:[#allocation8 + $0x570] ss:$12 sps:$4 sm:$0xff]  }
 0xc77   :  { %v7000_v11 = vpack.c.bf16 %v6970_v51, %v6967_v54  ;;  %v12108_v24 = vld [vmem:[#allocation8 + $0x540] ss:$12 sps:$4 sm:$0xff]   ;;  %v12122_v51 = vld [vmem:[#allocation8 + $0x4b8] ss:$12 sps:$4 sm:$0xff]  }
 0xc78   :  { %v12117_v54 = vld [vmem:[#allocation8 + $0x4a0] ss:$12 sps:$4 sm:$0xff]  }
 0xc79   :  { %v6820_v36 = vpop.f32.mrb[88].mxu1  ;;  %7602 = vmatprep.mubr.bf16.mxu1 %v7000_v11  ;;  %7818 = vmatprep.mubr.bf16.mxu0 %v7000_v11  ;;  %v12125_v11 = vld [vmem:[#allocation8 + $0x58c] ss:$12 sps:$4 sm:$0xff]  }
 0xc7a   :  { %v6822_v59 = vpop.f32.mrb[89].mxu1  ;;  %7603 = vmatmul.mubr.bf16.gmra.mrb[116].mxu1 %v6999_v10  ;;  %7819 = vmatmul.mubr.bf16.gmra.mrb[116].mxu0 %v6999_v10  ;;  %v6972_v12 = vadd.f32 %v6820_v36, %v16435_v1  ;;  %v12123_v10 = vld [vmem:[#allocation8 + $0x588] ss:$12 sps:$4 sm:$0xff]   ;;  %v12126_v36 = vld [vmem:[#allocation8 + $0x590] ss:$12 sps:$4 sm:$0xff]  }
 0xc7b   :  { %v6824_v5 = vpop.f32.mrb[90].mxu1  ;;  %v6973_v32 = vadd.f32 %v6822_v59, %v16438_v7  ;;  %v12127_v59 = vld [vmem:[#allocation8 + $0x4d0] ss:$12 sps:$4 sm:$0xff]   ;;  %v12131_v1 = vld [vmem:[#allocation8 + $0x5a8] ss:$12 sps:$4 sm:$0xff]  }
 0xc7c   :  { %v6975_v30 = vadd.f32 %v6824_v5, %v16436_v6  ;;  %v6826_v38 = vpop.f32.mrb[91].mxu1  ;;  %v12130_v5 = vld [vmem:[#allocation8 + $0x5a4] ss:$12 sps:$4 sm:$0xff]   ;;  %v12132_v6 = vld [vmem:[#allocation8 + $0x4e8] ss:$12 sps:$4 sm:$0xff]  }
 0xc7d   :  { %v6976_v53 = vadd.f32 %v6826_v38, %v16440_v52  ;;  %v12135_v38 = vld [vmem:[#allocation8 + $0x5bc] ss:$12 sps:$4 sm:$0xff]   ;;  %v12137_v7 = vld [vmem:[#allocation8 + $0x500] ss:$12 sps:$4 sm:$0xff]  }
 0xc7e   :  { %v7002_v17 = vpack.c.bf16 %v6975_v30, %v6972_v12  ;;  %v12128_v12 = vld [vmem:[#allocation8 + $0x5a0] ss:$12 sps:$4 sm:$0xff]   ;;  %v12133_v30 = vld [vmem:[#allocation8 + $0x5b8] ss:$12 sps:$4 sm:$0xff]   ;;  %v12138_v52 = vld [vmem:[#allocation8 + $0x5d0] ss:$12 sps:$4 sm:$0xff]  }
 0xc7f   :  { %v7003_v63 = vpack.c.bf16 %v6976_v53, %v6973_v32  ;;  %v12140_v32 = vld [vmem:[#allocation8 + $0x5d4] ss:$12 sps:$4 sm:$0xff]   ;;  %v12142_v53 = vld [vmem:[#allocation8 + $0x518] ss:$12 sps:$4 sm:$0xff]  }
 0xc81   :  { %v6830_v8 = vpop.f32.mrb[92].mxu1  ;;  %7612 = vmatprep.mubr.bf16.mxu1 %v7003_v63  ;;  %7826 = vmatprep.mubr.bf16.mxu0 %v7003_v63  ;;  %v12146_v63 = vld [vmem:[#allocation8 + $0x5f0] ss:$12 sps:$4 sm:$0xff]  }
 0xc82   :  { %v6832_v13 = vpop.f32.mrb[93].mxu1  ;;  %7613 = vmatmul.mubr.bf16.gmra.mrb[120].mxu1 %v7002_v17  ;;  %7827 = vmatmul.mubr.bf16.gmra.mrb[120].mxu0 %v7002_v17  ;;  %v6978_v25 = vadd.f32 %v6830_v8, %v16441_v50  ;;  %v12145_v17 = vld [vmem:[#allocation8 + $0x5ec] ss:$12 sps:$4 sm:$0xff]   ;;  %v12143_v8 = vld [vmem:[#allocation8 + $0x5e8] ss:$12 sps:$4 sm:$0xff]  }
 0xc83   :  { %v6834_v56 = vpop.f32.mrb[94].mxu1  ;;  %v6979_v33 = vadd.f32 %v6832_v13, %v16445_v16  ;;  %v12147_v13 = vld [vmem:[#allocation8 + $0x530] ss:$12 sps:$4 sm:$0xff]   ;;  %v15223_v50 = vld [vmem:[#allocation8 + $0x608] ss:$12 sps:$4 sm:$0xff]  }
 0xc84   :  { %v6981_v21 = vadd.f32 %v6834_v56, %v16443_v2  ;;  %v6836_v41 = vpop.f32.mrb[95].mxu1  ;;  %v12150_v56 = vld [vmem:[#allocation8 + $0x604] ss:$12 sps:$4 sm:$0xff]  }
 0xc85   :  { %v6982_v27 = vadd.f32 %v6836_v41, %v16447_v62 }
 0xc86   :  { %v7005_v3 = vpack.c.bf16 %v6981_v21, %v6978_v25 }
 0xc87   :  { %v7006_v34 = vpack.c.bf16 %v6982_v27, %v6979_v33 }
 0xc89   :  { %7622 = vmatprep.mubr.bf16.mxu1 %v7006_v34  ;;  %7834 = vmatprep.mubr.bf16.mxu0 %v7006_v34 }
 0xc8a   :  { %7623 = vmatmul.mubr.bf16.gmra.mrb[124].mxu1 %v7005_v3  ;;  %7835 = vmatmul.mubr.bf16.gmra.mrb[124].mxu0 %v7005_v3 }
 0xc8b   :  { %10984 = vmatprep.mubr.bf16.mxu0 %v15096_v20  ;;  %7665 = vmatprep.mubr.bf16.mxu1 %v16049_v22 }
 0xc92   :  { %7666 = vmatmul.mubr.bf16.vlgmr.msra.gmra.mrb[96].mxu1 %v15096_v20  ;;  %10985 = vmatmul.mubr.bf16.vlgmr.msra.gmra.mrb[128].mxu0 %v15094_v26  ;;  %v12087_v20 = vld [vmem:[#allocation8 + $0x498] ss:$12 sps:$4 sm:$0xff]  }
 0xc93   :  { %10988 = vmatprep.mubr.bf16.mxu0 %v15108_v55  ;;  %7675 = vmatprep.mubr.bf16.mxu1 %v16049_v22 }
 0xc94   :  { %10488 = vmatpush3.bf16.msra.mxu1 %v12112_v4 }
 0xc95   :  { %10489 = vmatprep.subr.bf16.mxu1 %v12116_v39 }
 0xc98   :  { %10490 = vmatpush3.bf16.msra.mxu1 %v12117_v54 }
 0xc9a   :  { %7676 = vmatmul.mubr.bf16.gmra.mrb[100].mxu1 %v15094_v26  ;;  %10989 = vmatmul.mubr.bf16.gmra.mrb[132].mxu0 %v15106_v15  ;;  %v12084_v26 = vld [vmem:[#allocation8 + $0x480] ss:$12 sps:$4 sm:$0xff]  }
 0xc9b   :  { %10992 = vmatprep.mubr.bf16.mxu0 %v15120_v9  ;;  %7685 = vmatprep.mubr.bf16.mxu1 %v16049_v22 }
 0xc9c   :  { %8525 = vmatpush1.bf16.msra.mxu0 %v12084_v26 }
 0xc9d   :  { %8526 = vmatprep.subr.bf16.mxu0 %v12089_v49 }
 0xca0   :  { %8527 = vmatpush1.bf16.msra.mxu0 %v12087_v20 }
 0xca2   :  { %7686 = vmatmul.mubr.bf16.gmra.mrb[104].mxu1 %v15108_v55  ;;  %10993 = vmatmul.mubr.bf16.gmra.mrb[136].mxu0 %v15118_v42  ;;  %v12092_v55 = vld [vmem:[#allocation8 + $0x4b4] ss:$12 sps:$4 sm:$0xff]  }
 0xca3   :  { %10996 = vmatprep.mubr.bf16.mxu0 %v15132_v61  ;;  %7695 = vmatprep.mubr.bf16.mxu1 %v16049_v22 }
 0xca4   :  { %8528 = vmatprep.subr.bf16.mxu0 %v12092_v55 }
 0xca5   :  { %8529 = vmatpush1.bf16.msra.mxu0 %v12090_v40 }
 0xca6   :  { %8530 = vmatprep.subr.bf16.mxu0 %v12095_v28 }
 0xcaa   :  { %7696 = vmatmul.mubr.bf16.gmra.mrb[108].mxu1 %v15106_v15  ;;  %10997 = vmatmul.mubr.bf16.gmra.mrb[140].mxu0 %v15130_v19  ;;  %v12093_v15 = vld [vmem:[#allocation8 + $0x4c8] ss:$12 sps:$4 sm:$0xff]  }
 0xcab   :  { %7705 = vmatprep.mubr.bf16.mxu1 %v16049_v22  ;;  %8531 = vmatpush1.bf16.msra.mxu0 %v12093_v15 }
 0xcac   :  { %8532 = vmatprep.subr.bf16.mxu0 %v12098_v44 }
 0xcaf   :  { %8533 = vmatpush1.bf16.msra.mxu0 %v12096_v48 }
 0xcb0   :  { %8534 = vmatprep.subr.bf16.mxu0 %v12101_v14 }
 0xcb2   :  { %7706 = vmatmul.mubr.bf16.gmra.mrb[112].mxu1 %v15120_v9  ;;  %v12099_v9 = vld [vmem:[#allocation8 + $0x4f8] ss:$12 sps:$4 sm:$0xff]  }
 0xcb3   :  { %7715 = vmatprep.mubr.bf16.mxu1 %v16049_v22  ;;  %8535 = vmatpush1.bf16.msra.mxu0 %v12099_v9 }
 0xcb4   :  { %8536 = vmatprep.subr.bf16.mxu0 %v12104_v46 }
 0xcb7   :  { %8537 = vmatpush1.bf16.msra.mxu0 %v12102_v58 }
 0xcb8   :  { %8538 = vmatprep.subr.bf16.mxu0 %v12107_v57 }
 0xcba   :  { %7716 = vmatmul.mubr.bf16.gmra.mrb[116].mxu1 %v15118_v42  ;;  %v12105_v42 = vld [vmem:[#allocation8 + $0x528] ss:$12 sps:$4 sm:$0xff]  }
 0xcbb   :  { %7725 = vmatprep.mubr.bf16.mxu1 %v16049_v22  ;;  %8539 = vmatpush1.bf16.msra.mxu0 %v12105_v42 }
 0xcbc   :  { %8540 = vmatprep.subr.bf16.mxu0 %v12110_v37 }
 0xcbf   :  { %8541 = vmatpush1.bf16.msra.mxu0 %v12108_v24 }
 0xcc0   :  { %8542 = vmatprep.subr.bf16.mxu0 %v12115_v29 }
 0xcc2   :  { %7726 = vmatmul.mubr.bf16.gmra.mrb[120].mxu1 %v15132_v61  ;;  %v12113_v61 = vld [vmem:[#allocation8 + $0x558] ss:$12 sps:$4 sm:$0xff]  }
 0xcc3   :  { %7735 = vmatprep.mubr.bf16.mxu1 %v16049_v22  ;;  %8543 = vmatpush1.bf16.msra.mxu0 %v12113_v61 }
 0xcc4   :  { %8544 = vmatprep.subr.bf16.mxu0 %v12120_v60 }
 0xcc7   :  { %8545 = vmatpush1.bf16.msra.mxu0 %v12118_v31 }
 0xcc8   :  { %8546 = vmatprep.subr.bf16.mxu0 %v12125_v11 }
 0xcca   :  { %7736 = vmatmul.mubr.bf16.gmra.mrb[124].mxu1 %v15130_v19  ;;  %v12121_v19 = vld [vmem:[#allocation8 + $0x578] ss:$12 sps:$4 sm:$0xff]  }
 0xccb   :  { %10491 = vmatprep.subr.bf16.mxu1 %v12121_v19  ;;  %8547 = vmatpush1.bf16.msra.mxu0 %v12123_v10  ;;  %v9813_v19 = vld [vmem:[%s15526_s10 + $0x6] sm:$0x7] }
 0xccc   :  { %10492 = vmatpush3.bf16.msra.mxu1 %v12122_v51  ;;  %8548 = vmatprep.subr.bf16.mxu0 %v12130_v5  ;;  %v16448_v5 = vld [vmem:[#allocation20_spill] sm:$0xff] }
 0xccd   :  { %10493 = vmatprep.subr.bf16.mxu1 %v12126_v36  ;;  %v7107_v36 = vunpack.c.l.bf16 %v9813_v19 }
 0xccf   :  { %8549 = vmatpush1.bf16.msra.mxu0 %v12128_v12 }
 0xcd0   :  { %10494 = vmatpush3.bf16.msra.mxu1 %v12127_v59  ;;  %8550 = vmatprep.subr.bf16.mxu0 %v12135_v38 }
 0xcd1   :  { %10495 = vmatprep.subr.bf16.mxu1 %v12131_v1  ;;  %v7120_v1 = vrot.slane %v7107_v36, %v16448_v5 }
 0xcd3   :  { %8551 = vmatpush1.bf16.msra.mxu0 %v12133_v30 }
 0xcd4   :  { %10496 = vmatpush3.bf16.msra.mxu1 %v12132_v6  ;;  %8552 = vmatprep.subr.bf16.mxu0 %v12140_v32  ;;  %v16449_v6 = vld [vmem:[#allocation19_spill] sm:$0xff] }
 0xcd5   :  { %10497 = vmatprep.subr.bf16.mxu1 %v12136_v47  ;;  %v7112_v30 = vrot.slane %v7107_v36, %v16449_v6 }
 0xcd7   :  { %8553 = vmatpush1.bf16.msra.mxu0 %v12138_v52 }
 0xcd8   :  { %10498 = vmatpush3.bf16.msra.mxu1 %v12137_v7  ;;  %8554 = vmatprep.subr.bf16.mxu0 %v12145_v17  ;;  %v16450_v7 = vld [vmem:[#allocation21_spill] sm:$0xff]  ;;  %v15262_v17 = vrot.slane %v7112_v30, %v16449_v6 }
 0xcd9   :  { %10499 = vmatprep.subr.bf16.mxu1 %v12141_v0  ;;  %v7116_v32 = vrot.slane %v7107_v36, %v16450_v7  ;;  %v12148_v36 = vld [vmem:[#allocation8 + $0x600] ss:$12 sps:$4 sm:$0xff]  }
 0xcdb   :  { %8555 = vmatpush1.bf16.msra.mxu0 %v12143_v8 }
 0xcdc   :  { %10500 = vmatpush3.bf16.msra.mxu1 %v12142_v53  ;;  %8637 = vmatprep.subr.bf16.mxu0 %v12150_v56  ;;  %v15259_v53 = vrot.slane %v7120_v1, %v16449_v6 }
 0xcdd   :  { %10501 = vmatprep.subr.bf16.mxu1 %v12146_v63  ;;  %v15265_v63 = vrot.slane %v7116_v32, %v16449_v6  ;;  %v12153_v32 = vld [vmem:[#allocation8 + $0x61c] ss:$12 sps:$4 sm:$0xff]  }
 0xce0   :  { %10502 = vmatpush3.bf16.msra.mxu1 %v12147_v13 }
 0xce1   :  { %11000 = vmatprep.subr.bf16.mxu1 %v15223_v50 }
 0xd25   :  { %v10423_v25 = vpop.f32.mrb[96].mxu0 }
 0xd26   :  { %v10424_v18 = vpop.f32.mrb[97].mxu0 }
 0xd27   :  { %v10425_v2 = vadd.f32 %v10424_v18, %v10423_v25  ;;  %v10426_v21 = vpop.f32.mrb[98].mxu0 }
 0xd28   :  { %v10427_v41 = vpop.f32.mrb[99].mxu0 }
 0xd29   :  { %v15226_v43 = vadd.f32 %v10427_v41, %v10426_v21  ;;  %v7781_v25 = vadd.f32 %v10425_v2, %v15259_v53 }
 0xd2d   :  { %v10429_v16 = vpop.f32.mrb[100].mxu0 }
 0xd2e   :  { %v10430_v33 = vpop.f32.mrb[101].mxu0 }
 0xd2f   :  { %v10431_v45 = vadd.f32 %v10430_v33, %v10429_v16  ;;  %v10432_v62 = vpop.f32.mrb[102].mxu0 }
 0xd30   :  { %v10433_v27 = vpop.f32.mrb[103].mxu0 }
 0xd31   :  { %v10434_v3 = vadd.f32 %v10433_v27, %v10432_v62  ;;  %v7789_v8 = vadd.f32 %v10431_v45, %v15259_v53 }
 0xd33   :  { %v7792_v33 = vadd.f32 %v10434_v3, %v15259_v53 }
 0xd35   :  { %v10435_v34 = vpop.f32.mrb[104].mxu0 }
 0xd36   :  { %v10436_v35 = vpop.f32.mrb[105].mxu0 }
 0xd37   :  { %v15228_v26 = vadd.f32 %v10436_v35, %v10435_v34  ;;  %v10438_v20 = vpop.f32.mrb[106].mxu0 }
 0xd38   :  { %v10439_v49 = vpop.f32.mrb[107].mxu0 }
 0xd39   :  { %v15230_v55 = vadd.f32 %v10439_v49, %v10438_v20  ;;  %v7784_v20 = vadd.f32 %v15226_v43, %v15259_v53 }
 0xd3d   :  { %v10441_v40 = vpop.f32.mrb[108].mxu0 }
 0xd3e   :  { %v10442_v15 = vpop.f32.mrb[109].mxu0 }
 0xd3f   :  { %v15232_v28 = vadd.f32 %v10442_v15, %v10441_v40  ;;  %v10444_v44 = vpop.f32.mrb[110].mxu0 }
 0xd40   :  { %v10445_v48 = vpop.f32.mrb[111].mxu0 }
 0xd41   :  { %v15234_v9 = vadd.f32 %v10445_v48, %v10444_v44  ;;  %v7805_v43 = vadd.f32 %v15232_v28, %v15259_v53 }
 0xd45   :  { %v10447_v14 = vpop.f32.mrb[112].mxu0 }
 0xd46   :  { %v10448_v46 = vpop.f32.mrb[113].mxu0 }
 0xd47   :  { %v15236_v58 = vadd.f32 %v10448_v46, %v10447_v14  ;;  %v10450_v42 = vpop.f32.mrb[114].mxu0 }
 0xd48   :  { %v10451_v57 = vpop.f32.mrb[115].mxu0 }
 0xd49   :  { %v15238_v37 = vadd.f32 %v10451_v57, %v10450_v42 }
 0xd4d   :  { %v10453_v23 = vpop.f32.mrb[116].mxu0 }
 0xd4e   :  { %v10454_v24 = vpop.f32.mrb[117].mxu0 }
 0xd4f   :  { %v15240_v4 = vadd.f32 %v10454_v24, %v10453_v23  ;;  %v10456_v61 = vpop.f32.mrb[118].mxu0 }
 0xd50   :  { %v10457_v29 = vpop.f32.mrb[119].mxu0 }
 0xd51   :  { %v15242_v39 = vadd.f32 %v10457_v29, %v10456_v61 }
 0xd55   :  { %v10459_v54 = vpop.f32.mrb[120].mxu0 }
 0xd56   :  { %v10460_v60 = vpop.f32.mrb[121].mxu0 }
 0xd57   :  { %v15247_v31 = vadd.f32 %v10460_v60, %v10459_v54  ;;  %v10462_v51 = vpop.f32.mrb[122].mxu0 }
 0xd58   :  { %v10463_v10 = vpop.f32.mrb[123].mxu0 }
 0xd59   :  { %v15249_v11 = vadd.f32 %v10463_v10, %v10462_v51  ;;  %v7797_v10 = vadd.f32 %v15228_v26, %v15259_v53  ;;  %v7800_v26 = vadd.f32 %v15230_v55, %v15259_v53  ;;  %v12165_v55 = vld [vmem:[#allocation8 + $0x638] ss:$12 sps:$4 sm:$0xff]  }
 0xd5d   :  { %v10465_v59 = vpop.f32.mrb[124].mxu0 }
 0xd5e   :  { %v10466_v12 = vpop.f32.mrb[125].mxu0 }
 0xd5f   :  { %v15253_v38 = vadd.f32 %v10466_v12, %v10465_v59  ;;  %v10468_v47 = vpop.f32.mrb[126].mxu0 }
 0xd60   :  { %v10469_v0 = vpop.f32.mrb[127].mxu0 }
 0xd61   :  { %v15256_v52 = vadd.f32 %v10469_v0, %v10468_v47  ;;  %v7808_v47 = vadd.f32 %v15234_v9, %v15259_v53  ;;  %v12164_v0 = vld [vmem:[#allocation8 + $0x620] ss:$12 sps:$4 sm:$0xff]  }
 0xd65   :  { %v7667_v13 = vpop.f32.mrb[96].mxu1  ;;  %v10986_v56 = vpop.f32.mrb[128].mxu0 }
 0xd66   :  { %v11251_v18 = vadd.f32 %v7667_v13, %v15262_v17  ;;  %v7886_v21 = vadd.f32 %v10986_v56, %v7789_v8  ;;  %v7669_v41 = vpop.f32.mrb[97].mxu1  ;;  %v7877_v16 = vpop.f32.mrb[129].mxu0 }
 0xd67   :  { %v11252_v62 = vadd.f32 %v7669_v41, %v15265_v63  ;;  %v7878_v27 = vadd.f32 %v7877_v16, %v7781_v25  ;;  %v7671_v34 = vpop.f32.mrb[98].mxu1  ;;  %v10987_v35 = vpop.f32.mrb[130].mxu0 }
 0xd68   :  { %v11253_v45 = vadd.f32 %v7671_v34, %v15262_v17  ;;  %v7889_v49 = vadd.f32 %v10987_v35, %v7792_v33  ;;  %v7673_v40 = vpop.f32.mrb[99].mxu1  ;;  %v7880_v2 = vpop.f32.mrb[131].mxu0  ;;  %v7940_v48 = vmax.f32 %v11251_v18, 0.0  ;;  %v7948_v14 = vmax.f32 %v7886_v21, 0.0  ;;  %v12151_v33 = vld [vmem:[#allocation8 + $0x618] ss:$12 sps:$4 sm:$0xff]  }
 0xd69   :  { %v11254_v15 = vadd.f32 %v7673_v40, %v15265_v63  ;;  %v7881_v44 = vadd.f32 %v7880_v2, %v7784_v20  ;;  %v7941_v42 = vmax.f32 %v11252_v62, 0.0  ;;  %v7942_v57 = vmax.f32 %v7878_v27, 0.0  ;;  %v12156_v62 = vld [vmem:[#allocation8 + $0x634] ss:$12 sps:$4 sm:$0xff]  }
 0xd6a   :  { %v7943_v46 = vmax.f32 %v11253_v45, 0.0  ;;  %v7951_v3 = vmax.f32 %v7889_v49, 0.0 }
 0xd6b   :  { %v7944_v23 = vmax.f32 %v11254_v15, 0.0  ;;  %v7945_v24 = vmax.f32 %v7881_v44, 0.0 }
 0xd6c   :  { %v7988_v61 = vpack.c.bf16 %v7943_v46, %v7940_v48  ;;  %v15276_v29 = vpack.c.bf16 %v7951_v3, %v7948_v14  ;;  %v7821_v48 = vadd.f32 %v15240_v4, %v15259_v53  ;;  %v12159_v4 = vld [vmem:[#allocation8 + $0x64c] ss:$12 sps:$4 sm:$0xff]  }
 0xd6d   :  { %v7989_v54 = vpack.c.bf16 %v7944_v23, %v7941_v42  ;;  %v15280_v60 = vpack.c.bf16 %v7945_v24, %v7942_v57  ;;  %v7677_v19 = vpop.f32.mrb[100].mxu1  ;;  %v10990_v51 = vpop.f32.mrb[132].mxu0  ;;  %v7813_v42 = vadd.f32 %v15236_v58, %v15259_v53  ;;  %v12154_v57 = vld [vmem:[#allocation8 + $0x630] ss:$12 sps:$4 sm:$0xff]  }
 0xd6e   :  { %v11255_v59 = vadd.f32 %v7677_v19, %v15262_v17  ;;  %v7902_v1 = vadd.f32 %v10990_v51, %v7805_v43  ;;  %v7679_v12 = vpop.f32.mrb[101].mxu1  ;;  %v7893_v30 = vpop.f32.mrb[133].mxu0  ;;  %v12169_v19 = vld [vmem:[#allocation8 + $0x650] ss:$12 sps:$4 sm:$0xff]  }
 0xd6f   :  { %v11256_v28 = vadd.f32 %v7679_v12, %v15265_v63  ;;  %v7894_v8 = vadd.f32 %v7893_v30, %v7797_v10  ;;  %v7681_v13 = vpop.f32.mrb[102].mxu1  ;;  %v10991_v56 = vpop.f32.mrb[134].mxu0  ;;  %8556 = vmatprep.mubr.bf16.mxu0 %v7989_v54  ;;  %8782 = vmatprep.mubr.bf16.mxu1 %v7989_v54  ;;  %v7824_v54 = vadd.f32 %v15242_v39, %v15259_v53 }
 0xd70   :  { %v11257_v25 = vadd.f32 %v7681_v13, %v15262_v17  ;;  %v7905_v18 = vadd.f32 %v10991_v56, %v7808_v47  ;;  %v7683_v21 = vpop.f32.mrb[103].mxu1  ;;  %v7896_v41 = vpop.f32.mrb[135].mxu0  ;;  %8557 = vmatmul.mubr.bf16.vlgmr.msra.gmra.mrb[144].mxu0 %v7988_v61  ;;  %8783 = vmatmul.mubr.bf16.vlgmr.msra.gmra.mrb[128].mxu1 %v7988_v61  ;;  %v7946_v27 = vmax.f32 %v11255_v59, 0.0  ;;  %v7960_v34 = vmax.f32 %v7902_v1, 0.0 }
 0xd71   :  { %v11258_v9 = vadd.f32 %v7683_v21, %v15265_v63  ;;  %v7897_v16 = vadd.f32 %v7896_v41, %v7800_v26  ;;  %8638 = vmatpush1.bf16.msra.mxu0 %v12148_v36  ;;  %11001 = vmatpush3.bf16.msra.mxu1 %v15223_v50  ;;  %v7947_v45 = vmax.f32 %v11256_v28, 0.0  ;;  %v7954_v49 = vmax.f32 %v7894_v8, 0.0  ;;  %v12163_v28 = vld [vmem:[#allocation8 + $0x664] ss:$12 sps:$4 sm:$0xff]  }
 0xd72   :  { %v7949_v35 = vmax.f32 %v11257_v25, 0.0  ;;  %v7963_v20 = vmax.f32 %v7905_v18, 0.0  ;;  %8639 = vmatprep.subr.bf16.mxu0 %v12153_v32  ;;  %11002 = vmatprep.subr.bf16.mxu1 %v12164_v0  ;;  %v7816_v59 = vadd.f32 %v15238_v37, %v15259_v53  ;;  %v12170_v37 = vld [vmem:[#allocation8 + $0x668] ss:$12 sps:$4 sm:$0xff]  }
 0xd73   :  { %v7950_v40 = vmax.f32 %v11258_v9, 0.0  ;;  %v7957_v2 = vmax.f32 %v7897_v16, 0.0 }
 0xd74   :  { %v7991_v15 = vpack.c.bf16 %v7949_v35, %v7946_v27  ;;  %v15293_v44 = vpack.c.bf16 %v7963_v20, %v7960_v34  ;;  %v7829_v20 = vadd.f32 %v15247_v31, %v15259_v53 }
 0xd75   :  { %v7992_v14 = vpack.c.bf16 %v7950_v40, %v7947_v45  ;;  %v15297_v46 = vpack.c.bf16 %v7957_v2, %v7954_v49  ;;  %v7687_v50 = vpop.f32.mrb[104].mxu1  ;;  %v10994_v3 = vpop.f32.mrb[136].mxu0  ;;  %8640 = vmatpush1.bf16.msra.mxu0 %v12151_v33  ;;  %11003 = vmatpush3.bf16.msra.mxu1 %v12164_v0  ;;  %v12157_v0 = vld [vmem:[#allocation8 + $0x648] ss:$12 sps:$4 sm:$0xff]   ;;  %v7837_v33 = vadd.f32 %v15253_v38, %v15259_v53 }
 0xd76   :  { %v11259_v23 = vadd.f32 %v7687_v50, %v15262_v17  ;;  %v7918_v24 = vadd.f32 %v10994_v3, %v7821_v48  ;;  %v7689_v61 = vpop.f32.mrb[105].mxu1  ;;  %v7909_v43 = vpop.f32.mrb[137].mxu0  ;;  %8641 = vmatprep.subr.bf16.mxu0 %v12156_v62  ;;  %11004 = vmatprep.subr.bf16.mxu1 %v12165_v55  ;;  %v12168_v38 = vld [vmem:[#allocation8 + $0x67c] ss:$12 sps:$4 sm:$0xff]   ;;  %v12174_v48 = vld [vmem:[#allocation8 + $0x680] ss:$12 sps:$4 sm:$0xff]  }
 0xd77   :  { %v11260_v51 = vadd.f32 %v7689_v61, %v15265_v63  ;;  %v7910_v10 = vadd.f32 %v7909_v43, %v7813_v42  ;;  %v7691_v36 = vpop.f32.mrb[106].mxu1  ;;  %v10995_v58 = vpop.f32.mrb[138].mxu0  ;;  %8566 = vmatprep.mubr.bf16.mxu0 %v7992_v14  ;;  %8790 = vmatprep.mubr.bf16.mxu1 %v7992_v14  ;;  %v7832_v42 = vadd.f32 %v15249_v11, %v15259_v53  ;;  %v12175_v11 = vld [vmem:[#allocation8 + $0x698] ss:$12 sps:$4 sm:$0xff]  }
 0xd78   :  { %v11261_v1 = vadd.f32 %v7691_v36, %v15262_v17  ;;  %v7921_v12 = vadd.f32 %v10995_v58, %v7824_v54  ;;  %v7693_v30 = vpop.f32.mrb[107].mxu1  ;;  %v7912_v47 = vpop.f32.mrb[139].mxu0  ;;  %8567 = vmatmul.mubr.bf16.gmra.mrb[148].mxu0 %v7991_v15  ;;  %8791 = vmatmul.mubr.bf16.gmra.mrb[132].mxu1 %v7991_v15  ;;  %v7952_v8 = vmax.f32 %v11259_v23, 0.0  ;;  %v7972_v13 = vmax.f32 %v7918_v24, 0.0  ;;  %v12166_v54 = vld [vmem:[#allocation8 + $0x678] ss:$12 sps:$4 sm:$0xff]  }
 0xd79   :  { %v11262_v39 = vadd.f32 %v7693_v30, %v15265_v63  ;;  %v7913_v32 = vadd.f32 %v7912_v47, %v7816_v59  ;;  %8642 = vmatpush1.bf16.msra.mxu0 %v12154_v57  ;;  %11005 = vmatpush3.bf16.msra.mxu1 %v12165_v55  ;;  %v7953_v25 = vmax.f32 %v11260_v51, 0.0  ;;  %v7966_v18 = vmax.f32 %v7910_v10, 0.0  ;;  %v12161_v55 = vld [vmem:[#allocation8 + $0x660] ss:$12 sps:$4 sm:$0xff]  }
 0xd7a   :  { %v7955_v56 = vmax.f32 %v11261_v1, 0.0  ;;  %v7975_v26 = vmax.f32 %v7921_v12, 0.0  ;;  %8643 = vmatprep.subr.bf16.mxu0 %v12159_v4  ;;  %11006 = vmatprep.subr.bf16.mxu1 %v12169_v19  ;;  %v7840_v15 = vadd.f32 %v15256_v52, %v15259_v53  ;;  %v12173_v4 = vld [vmem:[#allocation8 + $0x694] ss:$12 sps:$4 sm:$0xff]  }
 0xd7b   :  { %v7956_v21 = vmax.f32 %v11262_v39, 0.0  ;;  %v7969_v41 = vmax.f32 %v7913_v32, 0.0 }
 0xd7c   :  { %v7994_v9 = vpack.c.bf16 %v7955_v56, %v7952_v8  ;;  %v15309_v16 = vpack.c.bf16 %v7975_v26, %v7972_v13  ;;  %v12178_v13 = vld [vmem:[#allocation8 + $0x6ac] ss:$12 sps:$4 sm:$0xff]   ;;  %v12179_v56 = vld [vmem:[#allocation8 + $0x6b0] ss:$12 sps:$4 sm:$0xff]  }
 0xd7d   :  { %v7995_v62 = vpack.c.bf16 %v7956_v21, %v7953_v25  ;;  %v15313_v27 = vpack.c.bf16 %v7969_v41, %v7966_v18  ;;  %v7697_v34 = vpop.f32.mrb[108].mxu1  ;;  %v10998_v35 = vpop.f32.mrb[140].mxu0  ;;  %8644 = vmatpush1.bf16.msra.mxu0 %v12157_v0  ;;  %11007 = vmatpush3.bf16.msra.mxu1 %v12169_v19  ;;  %v12171_v0 = vld [vmem:[#allocation8 + $0x690] ss:$12 sps:$4 sm:$0xff]   ;;  %v12176_v41 = vld [vmem:[#allocation8 + $0x6a8] ss:$12 sps:$4 sm:$0xff]  }
 0xd7e   :  { %v11263_v45 = vadd.f32 %v7697_v34, %v15262_v17  ;;  %v7934_v49 = vadd.f32 %v10998_v35, %v7837_v33  ;;  %v7699_v40 = vpop.f32.mrb[109].mxu1  ;;  %v7925_v2 = vpop.f32.mrb[141].mxu0  ;;  %8645 = vmatprep.subr.bf16.mxu0 %v12163_v28  ;;  %11008 = vmatprep.subr.bf16.mxu1 %v12170_v37 }
 0xd7f   :  { %v11264_v14 = vadd.f32 %v7699_v40, %v15265_v63  ;;  %v7926_v50 = vadd.f32 %v7925_v2, %v7829_v20  ;;  %v7701_v3 = vpop.f32.mrb[110].mxu1  ;;  %v10999_v31 = vpop.f32.mrb[142].mxu0  ;;  %8576 = vmatprep.mubr.bf16.mxu0 %v7995_v62  ;;  %8798 = vmatprep.mubr.bf16.mxu1 %v7995_v62 }
 0xd80   :  { %v11265_v57 = vadd.f32 %v7701_v3, %v15262_v17  ;;  %v7937_v23 = vadd.f32 %v10999_v31, %v7840_v15  ;;  %v7703_v24 = vpop.f32.mrb[111].mxu1  ;;  %v7928_v61 = vpop.f32.mrb[143].mxu0  ;;  %8577 = vmatmul.mubr.bf16.gmra.mrb[152].mxu0 %v7994_v9  ;;  %8799 = vmatmul.mubr.bf16.gmra.mrb[136].mxu1 %v7994_v9  ;;  %v7958_v19 = vmax.f32 %v11263_v45, 0.0  ;;  %v7984_v51 = vmax.f32 %v7934_v49, 0.0 }
 0xd81   :  { %v11266_v52 = vadd.f32 %v7703_v24, %v15265_v63  ;;  %v7929_v43 = vadd.f32 %v7928_v61, %v7832_v42  ;;  %8646 = vmatpush1.bf16.msra.mxu0 %v12161_v55  ;;  %11009 = vmatpush3.bf16.msra.mxu1 %v12170_v37  ;;  %v7959_v53 = vmax.f32 %v11264_v14, 0.0  ;;  %v7978_v58 = vmax.f32 %v7926_v50, 0.0 }
 0xd82   :  { %v7961_v10 = vmax.f32 %v11265_v57, 0.0  ;;  %v7987_v36 = vmax.f32 %v7937_v23, 0.0  ;;  %8647 = vmatprep.subr.bf16.mxu0 %v12168_v38  ;;  %11010 = vmatprep.subr.bf16.mxu1 %v12174_v48 }
 0xd83   :  { %v7962_v59 = vmax.f32 %v11266_v52, 0.0  ;;  %v7981_v1 = vmax.f32 %v7929_v43, 0.0 }
 0xd84   :  { %v7997_v12 = vpack.c.bf16 %v7961_v10, %v7958_v19  ;;  %v15325_v30 = vpack.c.bf16 %v7987_v36, %v7984_v51 }
 0xd85   :  { %v7998_v47 = vpack.c.bf16 %v7962_v59, %v7959_v53  ;;  %v15327_v39 = vpack.c.bf16 %v7981_v1, %v7978_v58  ;;  %v7707_v32 = vpop.f32.mrb[112].mxu1  ;;  %8648 = vmatpush1.bf16.msra.mxu0 %v12166_v54  ;;  %11011 = vmatpush3.bf16.msra.mxu1 %v12174_v48 }
 0xd86   :  { %v11267_v28 = vadd.f32 %v7707_v32, %v15262_v17  ;;  %v7709_v8 = vpop.f32.mrb[113].mxu1  ;;  %8649 = vmatprep.subr.bf16.mxu0 %v12173_v4  ;;  %11012 = vmatprep.subr.bf16.mxu1 %v12175_v11 }
 0xd87   :  { %v11268_v26 = vadd.f32 %v7709_v8, %v15265_v63  ;;  %v7711_v37 = vpop.f32.mrb[114].mxu1  ;;  %8586 = vmatprep.mubr.bf16.mxu0 %v7998_v47  ;;  %8806 = vmatprep.mubr.bf16.mxu1 %v7998_v47 }
 0xd88   :  { %v11269_v25 = vadd.f32 %v7711_v37, %v15262_v17  ;;  %v7713_v18 = vpop.f32.mrb[115].mxu1  ;;  %8587 = vmatmul.mubr.bf16.gmra.mrb[156].mxu0 %v7997_v12  ;;  %8807 = vmatmul.mubr.bf16.gmra.mrb[140].mxu1 %v7997_v12  ;;  %v7964_v9 = vmax.f32 %v11267_v28, 0.0 }
 0xd89   :  { %v11270_v21 = vadd.f32 %v7713_v18, %v15265_v63  ;;  %8650 = vmatpush1.bf16.msra.mxu0 %v12171_v0  ;;  %11013 = vmatpush3.bf16.msra.mxu1 %v12175_v11  ;;  %v7965_v62 = vmax.f32 %v11268_v26, 0.0 }
 0xd8a   :  { %v7967_v33 = vmax.f32 %v11269_v25, 0.0  ;;  %8651 = vmatprep.subr.bf16.mxu0 %v12178_v13  ;;  %11014 = vmatprep.subr.bf16.mxu1 %v12179_v56 }
 0xd8b   :  { %v7968_v34 = vmax.f32 %v11270_v21, 0.0 }
 0xd8c   :  { %v8000_v35 = vpack.c.bf16 %v7967_v33, %v7964_v9 }
 0xd8d   :  { %v8001_v20 = vpack.c.bf16 %v7968_v34, %v7965_v62  ;;  %v7717_v55 = vpop.f32.mrb[116].mxu1  ;;  %8652 = vmatpush1.bf16.msra.mxu0 %v12176_v41  ;;  %11015 = vmatpush3.bf16.msra.mxu1 %v12179_v56 }
 0xd8e   :  { %v11271_v45 = vadd.f32 %v7717_v55, %v15262_v17  ;;  %v7719_v49 = vpop.f32.mrb[117].mxu1 }
 0xd8f   :  { %v11272_v40 = vadd.f32 %v7719_v49, %v15265_v63  ;;  %v7721_v2 = vpop.f32.mrb[118].mxu1  ;;  %8596 = vmatprep.mubr.bf16.mxu0 %v8001_v20  ;;  %8814 = vmatprep.mubr.bf16.mxu1 %v8001_v20 }
 0xd90   :  { %v11273_v15 = vadd.f32 %v7721_v2, %v15262_v17  ;;  %v7723_v38 = vpop.f32.mrb[119].mxu1  ;;  %8597 = vmatmul.mubr.bf16.gmra.mrb[160].mxu0 %v8000_v35  ;;  %8815 = vmatmul.mubr.bf16.gmra.mrb[144].mxu1 %v8000_v35  ;;  %v7970_v14 = vmax.f32 %v11271_v45, 0.0 }
 0xd91   :  { %v11274_v48 = vadd.f32 %v7723_v38, %v15265_v63  ;;  %v7971_v3 = vmax.f32 %v11272_v40, 0.0 }
 0xd92   :  { %v7973_v50 = vmax.f32 %v11273_v15, 0.0 }
 0xd93   :  { %v7974_v31 = vmax.f32 %v11274_v48, 0.0 }
 0xd94   :  { %v8003_v42 = vpack.c.bf16 %v7973_v50, %v7970_v14 }
 0xd95   :  { %v8004_v57 = vpack.c.bf16 %v7974_v31, %v7971_v3  ;;  %v7727_v23 = vpop.f32.mrb[120].mxu1 }
 0xd96   :  { %v11275_v24 = vadd.f32 %v7727_v23, %v15262_v17  ;;  %v7729_v61 = vpop.f32.mrb[121].mxu1 }
 0xd97   :  { %v11276_v52 = vadd.f32 %v7729_v61, %v15265_v63  ;;  %v7731_v43 = vpop.f32.mrb[122].mxu1  ;;  %8606 = vmatprep.mubr.bf16.mxu0 %v8004_v57  ;;  %8822 = vmatprep.mubr.bf16.mxu1 %v8004_v57 }
 0xd98   :  { %v11277_v54 = vadd.f32 %v7731_v43, %v15262_v17  ;;  %v7733_v4 = vpop.f32.mrb[123].mxu1  ;;  %8607 = vmatmul.mubr.bf16.gmra.mrb[164].mxu0 %v8003_v42  ;;  %8823 = vmatmul.mubr.bf16.gmra.mrb[148].mxu1 %v8003_v42  ;;  %v7976_v51 = vmax.f32 %v11275_v24, 0.0 }
 0xd99   :  { %v11278_v19 = vadd.f32 %v7733_v4, %v15265_v63  ;;  %v7977_v36 = vmax.f32 %v11276_v52, 0.0 }
 0xd9a   :  { %v7979_v10 = vmax.f32 %v11277_v54, 0.0 }
 0xd9b   :  { %v7980_v11 = vmax.f32 %v11278_v19, 0.0  ;;  %v9886_v19 = vld [vmem:[%s15528_s12 + $0x6] sm:$0x7] }
 0xd9c   :  { %v8006_v53 = vpack.c.bf16 %v7979_v10, %v7976_v51 }
 0xd9d   :  { %v8007_v58 = vpack.c.bf16 %v7980_v11, %v7977_v36  ;;  %v7737_v59 = vpop.f32.mrb[124].mxu1 }
 0xd9e   :  { %v11279_v1 = vadd.f32 %v7737_v59, %v15262_v17  ;;  %v7739_v12 = vpop.f32.mrb[125].mxu1 }
 0xd9f   :  { %v11280_v47 = vadd.f32 %v7739_v12, %v15265_v63  ;;  %v7741_v32 = vpop.f32.mrb[126].mxu1  ;;  %8616 = vmatprep.mubr.bf16.mxu0 %v8007_v58  ;;  %8830 = vmatprep.mubr.bf16.mxu1 %v8007_v58 }
 0xda0   :  { %v11281_v0 = vadd.f32 %v7741_v32, %v15262_v17  ;;  %v7743_v28 = vpop.f32.mrb[127].mxu1  ;;  %8617 = vmatmul.mubr.bf16.gmra.mrb[168].mxu0 %v8006_v53  ;;  %8831 = vmatmul.mubr.bf16.gmra.mrb[152].mxu1 %v8006_v53  ;;  %v7982_v13 = vmax.f32 %v11279_v1, 0.0  ;;  %v12330_v17 = vmov 0.0|0.0   ;;  %v8111_v53 = vunpack.c.l.bf16 %v9886_v19 }
 0xda1   :  { %v11282_v8 = vadd.f32 %v7743_v28, %v15265_v63  ;;  %v7983_v26 = vmax.f32 %v11280_v47, 0.0  ;;  %11099 = vmatprep.subr.bf16.mxu0 %v12330_v17 }
 0xda2   :  { %v7985_v56 = vmax.f32 %v11281_v0, 0.0  ;;  %v8124_v59 = vrot.slane %v8111_v53, %v16448_v5  ;;  %v8116_v12 = vrot.slane %v8111_v53, %v16449_v6  ;;  %v8120_v0 = vrot.slane %v8111_v53, %v16450_v7 }
 0xda3   :  { %v7986_v37 = vmax.f32 %v11282_v8, 0.0 }
 0xda4   :  { %v8009_v25 = vpack.c.bf16 %v7985_v56, %v7982_v13  ;;  %v15405_v13 = vrot.slane %v8124_v59, %v16449_v6  ;;  %v15408_v56 = vrot.slane %v8116_v12, %v16449_v6 }
 0xda5   :  { %v8010_v18 = vpack.c.bf16 %v7986_v37, %v7983_v26  ;;  %v15411_v26 = vrot.slane %v8120_v0, %v16449_v6 }
 0xda7   :  { %8626 = vmatprep.mubr.bf16.mxu0 %v8010_v18  ;;  %8838 = vmatprep.mubr.bf16.mxu1 %v8010_v18 }
 0xda8   :  { %8627 = vmatmul.mubr.bf16.gmra.mrb[172].mxu0 %v8009_v25  ;;  %8839 = vmatmul.mubr.bf16.gmra.mrb[156].mxu1 %v8009_v25 }
 0xda9   :  { %11016 = vmatprep.mubr.bf16.mxu1 %v15280_v60  ;;  %8669 = vmatprep.mubr.bf16.mxu0 %v16049_v22 }
 0xdb0   :  { %8670 = vmatmul.mubr.bf16.vlgmr.msra.gmra.mrb[144].mxu0 %v15280_v60  ;;  %11017 = vmatmul.mubr.bf16.vlgmr.msra.gmra.mrb[160].mxu1 %v15276_v29 }
 0xdb1   :  { %11020 = vmatprep.mubr.bf16.mxu1 %v15297_v46  ;;  %8679 = vmatprep.mubr.bf16.mxu0 %v16049_v22 }
 0xdb8   :  { %8680 = vmatmul.mubr.bf16.gmra.mrb[148].mxu0 %v15276_v29  ;;  %11021 = vmatmul.mubr.bf16.gmra.mrb[164].mxu1 %v15293_v44 }
 0xdb9   :  { %11024 = vmatprep.mubr.bf16.mxu1 %v15313_v27  ;;  %8689 = vmatprep.mubr.bf16.mxu0 %v16049_v22 }
 0xdc0   :  { %8690 = vmatmul.mubr.bf16.gmra.mrb[152].mxu0 %v15297_v46  ;;  %11025 = vmatmul.mubr.bf16.gmra.mrb[168].mxu1 %v15309_v16  ;;  %v12331_v46 = vmov 0.0  }
 0xdc1   :  { %11028 = vmatprep.mubr.bf16.mxu1 %v15327_v39  ;;  %8699 = vmatprep.mubr.bf16.mxu0 %v16049_v22  ;;  %9165 = vst [vmem:[#allocation10 + $0x60] sm:$0xff] %v12331_v46  ;;  %9166 = vst [vmem:[#allocation10 + $0x68] sm:$0xff] %v12331_v46 }
 0xdc2   :  { %9167 = vst [vmem:[#allocation10 + $0x70] sm:$0xff] %v12331_v46  ;;  %9168 = vst [vmem:[#allocation10 + $0x78] sm:$0xff] %v12331_v46 }
 0xdc3   :  { %9169 = vst [vmem:[#allocation10 + $0x80] sm:$0xff] %v12331_v46  ;;  %9170 = vst [vmem:[#allocation10 + $0x88] sm:$0xff] %v12331_v46 }
 0xdc4   :  { %9171 = vst [vmem:[#allocation10 + $0x90] sm:$0xff] %v12331_v46  ;;  %9172 = vst [vmem:[#allocation10 + $0x98] sm:$0xff] %v12331_v46 }
 0xdc5   :  { %9173 = vst [vmem:[#allocation10 + $0xa0] sm:$0xff] %v12331_v46  ;;  %9174 = vst [vmem:[#allocation10 + $0xa8] sm:$0xff] %v12331_v46 }
 0xdc6   :  { %9175 = vst [vmem:[#allocation10 + $0xb0] sm:$0xff] %v12331_v46  ;;  %9176 = vst [vmem:[#allocation10 + $0xb8] sm:$0xff] %v12331_v46 }
 0xdc7   :  { %9177 = vst [vmem:[#allocation10 + $0xc0] sm:$0xff] %v12331_v46  ;;  %9178 = vst [vmem:[#allocation10 + $0xc8] sm:$0xff] %v12331_v46 }
 0xdc8   :  { %8700 = vmatmul.mubr.bf16.gmra.mrb[156].mxu0 %v15293_v44  ;;  %11029 = vmatmul.mubr.bf16.gmra.mrb[172].mxu1 %v15325_v30  ;;  %9179 = vst [vmem:[#allocation10 + $0xd0] sm:$0xff] %v12331_v46  ;;  %9180 = vst [vmem:[#allocation10 + $0xd8] sm:$0xff] %v12331_v46 }
 0xdc9   :  { %8709 = vmatprep.mubr.bf16.mxu0 %v16049_v22  ;;  %9009 = vmatprep.mubr.f32.mxu1 %v12331_v46  ;;  %9181 = vst [vmem:[#allocation10 + $0xe0] sm:$0xff] %v12331_v46  ;;  %9182 = vst [vmem:[#allocation10 + $0xe8] sm:$0xff] %v12331_v46 }
 0xdca   :  { %9183 = vst [vmem:[#allocation10 + $0xf0] sm:$0xff] %v12331_v46  ;;  %9184 = vst [vmem:[#allocation10 + $0xf8] sm:$0xff] %v12331_v46 }
 0xdcb   :  { %9185 = vst [vmem:[#allocation10 + $0x100] sm:$0xff] %v12331_v46  ;;  %9186 = vst [vmem:[#allocation10 + $0x108] sm:$0xff] %v12331_v46 }
 0xdcc   :  { %9187 = vst [vmem:[#allocation10 + $0x110] sm:$0xff] %v12331_v46  ;;  %9188 = vst [vmem:[#allocation10 + $0x118] sm:$0xff] %v12331_v46 }
 0xdcd   :  { %9189 = vst [vmem:[#allocation10 + $0x120] sm:$0xff] %v12331_v46  ;;  %9190 = vst [vmem:[#allocation10 + $0x128] sm:$0xff] %v12331_v46 }
 0xdce   :  { %9191 = vst [vmem:[#allocation10 + $0x130] sm:$0xff] %v12331_v46  ;;  %9192 = vst [vmem:[#allocation10 + $0x138] sm:$0xff] %v12331_v46 }
 0xdcf   :  { %9193 = vst [vmem:[#allocation10 + $0x140] sm:$0xff] %v12331_v46  ;;  %9194 = vst [vmem:[#allocation10 + $0x148] sm:$0xff] %v12331_v46 }
 0xdd0   :  { %8710 = vmatmul.mubr.bf16.gmra.mrb[160].mxu0 %v15313_v27  ;;  %9195 = vst [vmem:[#allocation10 + $0x150] sm:$0xff] %v12331_v46  ;;  %9196 = vst [vmem:[#allocation10 + $0x158] sm:$0xff] %v12331_v46 }
 0xdd1   :  { %8719 = vmatprep.mubr.bf16.mxu0 %v16049_v22  ;;  %9197 = vst [vmem:[#allocation10 + $0x160] sm:$0xff] %v12331_v46  ;;  %9198 = vst [vmem:[#allocation10 + $0x168] sm:$0xff] %v12331_v46 }
 0xdd2   :  { %9199 = vst [vmem:[#allocation10 + $0x170] sm:$0xff] %v12331_v46  ;;  %9200 = vst [vmem:[#allocation10 + $0x178] sm:$0xff] %v12331_v46 }
 0xdd8   :  { %8720 = vmatmul.mubr.bf16.gmra.mrb[164].mxu0 %v15309_v16 }
 0xdd9   :  { %8729 = vmatprep.mubr.bf16.mxu0 %v16049_v22 }
 0xde0   :  { %8730 = vmatmul.mubr.bf16.gmra.mrb[168].mxu0 %v15327_v39 }
 0xde1   :  { %8739 = vmatprep.mubr.bf16.mxu0 %v16049_v22 }
 0xde8   :  { %8740 = vmatmul.mubr.bf16.gmra.mrb[172].mxu0 %v15325_v30 }
 0xde9   :  { %11064 = vmatprep.mubr.msk.f32.mxu0 %vm12332_vm2, %v12331_v46 }
 0xe43   :  { %v10503_v63 = vpop.f32.mrb[128].mxu1 }
 0xe44   :  { %v10504_v29 = vpop.f32.mrb[129].mxu1 }
 0xe45   :  { %v15370_v60 = vadd.f32 %v10504_v29, %v10503_v63  ;;  %v10506_v44 = vpop.f32.mrb[130].mxu1 }
 0xe46   :  { %v10507_v22 = vpop.f32.mrb[131].mxu1 }
 0xe47   :  { %v15372_v16 = vadd.f32 %v10507_v22, %v10506_v44  ;;  %v8785_v18 = vadd.f32 %v15370_v60, %v15405_v13 }
 0xe4b   :  { %v10509_v27 = vpop.f32.mrb[132].mxu1 }
 0xe4c   :  { %v10510_v30 = vpop.f32.mrb[133].mxu1 }
 0xe4d   :  { %v10511_v39 = vadd.f32 %v10510_v30, %v10509_v27  ;;  %v10512_v21 = vpop.f32.mrb[134].mxu1 }
 0xe4e   :  { %v10513_v41 = vpop.f32.mrb[135].mxu1 }
 0xe4f   :  { %v10514_v9 = vadd.f32 %v10513_v41, %v10512_v21  ;;  %v8793_v5 = vadd.f32 %v10511_v39, %v15405_v13  ;;  %v16451_v21 = vld [vmem:[#allocation100_spill] sm:$0xff]  ;;  %v8788_v39 = vadd.f32 %v15372_v16, %v15405_v13 }
 0xe50   :  { %vm9092_vm7 = vcmp.lt.s32.totalorder %v16451_v21, 25 }
 0xe51   :  { %v8796_v46 = vadd.f32 %v10514_v9, %v15405_v13 }
 0xe53   :  { %v10515_v33 = vpop.f32.mrb[136].mxu1 }
 0xe54   :  { %v10516_v62 = vpop.f32.mrb[137].mxu1 }
 0xe55   :  { %v15374_v34 = vadd.f32 %v10516_v62, %v10515_v33  ;;  %v10518_v35 = vpop.f32.mrb[138].mxu1 }
 0xe56   :  { %v10519_v20 = vpop.f32.mrb[139].mxu1 }
 0xe57   :  { %v15376_v55 = vadd.f32 %v10519_v20, %v10518_v35 }
 0xe5b   :  { %v10521_v45 = vpop.f32.mrb[140].mxu1 }
 0xe5c   :  { %v10522_v49 = vpop.f32.mrb[141].mxu1 }
 0xe5d   :  { %v15378_v40 = vadd.f32 %v10522_v49, %v10521_v45  ;;  %v10524_v2 = vpop.f32.mrb[142].mxu1 }
 0xe5e   :  { %v10525_v15 = vpop.f32.mrb[143].mxu1 }
 0xe5f   :  { %v15380_v38 = vadd.f32 %v10525_v15, %v10524_v2  ;;  %v8809_v15 = vadd.f32 %v15378_v40, %v15405_v13 }
 0xe63   :  { %v10527_v48 = vpop.f32.mrb[144].mxu1 }
 0xe64   :  { %v10528_v14 = vpop.f32.mrb[145].mxu1 }
 0xe65   :  { %v15382_v50 = vadd.f32 %v10528_v14, %v10527_v48  ;;  %v10530_v3 = vpop.f32.mrb[146].mxu1 }
 0xe66   :  { %v10531_v31 = vpop.f32.mrb[147].mxu1 }
 0xe67   :  { %v15384_v42 = vadd.f32 %v10531_v31, %v10530_v3  ;;  %v8801_v3 = vadd.f32 %v15374_v34, %v15405_v13 }
 0xe6b   :  { %v10533_v57 = vpop.f32.mrb[148].mxu1 }
 0xe6c   :  { %v10534_v23 = vpop.f32.mrb[149].mxu1 }
 0xe6d   :  { %v15386_v24 = vadd.f32 %v10534_v23, %v10533_v57  ;;  %v10536_v61 = vpop.f32.mrb[150].mxu1 }
 0xe6e   :  { %v10537_v52 = vpop.f32.mrb[151].mxu1 }
 0xe6f   :  { %v15388_v43 = vadd.f32 %v10537_v52, %v10536_v61  ;;  %v8812_v52 = vadd.f32 %v15380_v38, %v15405_v13 }
 0xe73   :  { %v10539_v54 = vpop.f32.mrb[152].mxu1 }
 0xe74   :  { %v10540_v4 = vpop.f32.mrb[153].mxu1 }
 0xe75   :  { %v15393_v51 = vadd.f32 %v10540_v4, %v10539_v54  ;;  %v10542_v10 = vpop.f32.mrb[154].mxu1 }
 0xe76   :  { %v10543_v36 = vpop.f32.mrb[155].mxu1 }
 0xe77   :  { %v15395_v11 = vadd.f32 %v10543_v36, %v10542_v10  ;;  %v8804_v10 = vadd.f32 %v15376_v55, %v15405_v13 }
 0xe7b   :  { %v10545_v58 = vpop.f32.mrb[156].mxu1 }
 0xe7c   :  { %v10546_v1 = vpop.f32.mrb[157].mxu1 }
 0xe7d   :  { %v15399_v47 = vadd.f32 %v10546_v1, %v10545_v58  ;;  %v10548_v32 = vpop.f32.mrb[158].mxu1 }
 0xe7e   :  { %v10549_v28 = vpop.f32.mrb[159].mxu1 }
 0xe7f   :  { %v15402_v8 = vadd.f32 %v10549_v28, %v10548_v32 }
 0xe83   :  { %v8671_v37 = vpop.f32.mrb[144].mxu0  ;;  %v11018_v25 = vpop.f32.mrb[160].mxu1 }
 0xe84   :  { %v11283_v7 = vadd.f32 %v8671_v37, %v15408_v56  ;;  %v8890_v63 = vadd.f32 %v11018_v25, %v8793_v5  ;;  %v8673_v29 = vpop.f32.mrb[145].mxu0  ;;  %v8881_v44 = vpop.f32.mrb[161].mxu1  ;;  %v8825_v5 = vadd.f32 %v15386_v24, %v15405_v13  ;;  %v8820_v24 = vadd.f32 %v15384_v42, %v15405_v13 }
 0xe85   :  { %v11284_v22 = vadd.f32 %v8673_v29, %v15411_v26  ;;  %v8882_v27 = vadd.f32 %v8881_v44, %v8785_v18  ;;  %v8675_v30 = vpop.f32.mrb[146].mxu0  ;;  %v11019_v6 = vpop.f32.mrb[162].mxu1  ;;  %v8817_v18 = vadd.f32 %v15382_v50, %v15405_v13  ;;  %v8828_v44 = vadd.f32 %v15388_v43, %v15405_v13 }
 0xe86   :  { %9153 = vst [vmem:[#allocation10] sm:$0xff] %v11283_v7  ;;  %9161 = vst [vmem:[#allocation10 + $0x40] sm:$0xff] %v8890_v63  ;;  %v11285_v60 = vadd.f32 %v8675_v30, %v15408_v56  ;;  %v8893_v41 = vadd.f32 %v11019_v6, %v8796_v46  ;;  %v8677_v33 = vpop.f32.mrb[147].mxu0  ;;  %v8884_v62 = vpop.f32.mrb[163].mxu1  ;;  %v8841_v42 = vadd.f32 %v15399_v47, %v15405_v13 }
 0xe87   :  { %9154 = vst [vmem:[#allocation10 + $0x8] sm:$0xff] %v11284_v22  ;;  %9155 = vst [vmem:[#allocation10 + $0x10] sm:$0xff] %v8882_v27  ;;  %v11286_v9 = vadd.f32 %v8677_v33, %v15411_v26  ;;  %v8885_v35 = vadd.f32 %v8884_v62, %v8788_v39  ;;  %v8836_v47 = vadd.f32 %v15395_v11, %v15405_v13 }
 0xe88   :  { %v11069_v20 = vpack.c.bf16 %v11285_v60, %v11283_v7  ;;  %9156 = vst [vmem:[#allocation10 + $0x18] sm:$0xff] %v11285_v60  ;;  %v11103_v45 = vpack.c.bf16 %v8893_v41, %v8890_v63  ;;  %v9116_v49 = vsel %vm9092_vm7, %v8893_v41, 0.0 }
 0xe89   :  { %9164 = vst [vmem:[#allocation10 + $0x58] sm:$0xff] %v9116_v49  ;;  %v11067_v16 = vpack.c.bf16 %v11286_v9, %v11284_v22  ;;  %9157 = vst [vmem:[#allocation10 + $0x20] sm:$0xff] %v11286_v9  ;;  %v11100_v2 = vpack.c.bf16 %v8885_v35, %v8882_v27  ;;  %v8833_v49 = vadd.f32 %v15393_v51, %v15405_v13 }
 0xe8a   :  { %9158 = vst [vmem:[#allocation10 + $0x28] sm:$0xff] %v8885_v35 }
 0xe8b   :  { %v8681_v48 = vpop.f32.mrb[148].mxu0  ;;  %v11022_v14 = vpop.f32.mrb[164].mxu1  ;;  %11068 = vmatprep.subr.bf16.mxu1 %v11067_v16  ;;  %11101 = vmatpush3.bf16.msra.mxu0 %v11100_v2 }
 0xe8c   :  { %v11287_v31 = vadd.f32 %v8681_v48, %v15408_v56  ;;  %v8906_v57 = vadd.f32 %v11022_v14, %v8809_v15  ;;  %v8683_v23 = vpop.f32.mrb[149].mxu0  ;;  %v8897_v61 = vpop.f32.mrb[165].mxu1  ;;  %11070 = vmatpush1.bf16.msra.mxu1 %v11069_v20  ;;  %11102 = vmatprep.subr.bf16.mxu0 %v12330_v17  ;;  %v8844_v48 = vadd.f32 %v15402_v8, %v15405_v13 }
 0xe8d   :  { %v11288_v40 = vadd.f32 %v8683_v23, %v15411_v26  ;;  %v8898_v54 = vadd.f32 %v8897_v61, %v8801_v3  ;;  %v8685_v4 = vpop.f32.mrb[150].mxu0  ;;  %v11023_v19 = vpop.f32.mrb[166].mxu1 }
 0xe8e   :  { %9159 = vst [vmem:[#allocation10 + $0x30] sm:$0xff] %v11287_v31  ;;  %v11289_v34 = vadd.f32 %v8685_v4, %v15408_v56  ;;  %v8909_v36 = vadd.f32 %v11023_v19, %v8812_v52  ;;  %v8687_v53 = vpop.f32.mrb[151].mxu0  ;;  %v8900_v58 = vpop.f32.mrb[167].mxu1 }
 0xe8f   :  { %9160 = vst [vmem:[#allocation10 + $0x38] sm:$0xff] %v11288_v40  ;;  %v11290_v59 = vadd.f32 %v8687_v53, %v15411_v26  ;;  %v8901_v38 = vadd.f32 %v8900_v58, %v8804_v10  ;;  %11104 = vmatpush3.bf16.msra.mxu0 %v11103_v45 }
 0xe90   :  { %v11073_v1 = vpack.c.bf16 %v11289_v34, %v11287_v31  ;;  %v9114_v12 = vsel %vm9092_vm7, %v11289_v34, 0.0  ;;  %v11109_v32 = vpack.c.bf16 %v8909_v36, %v8906_v57  ;;  %11105 = vmatprep.subr.bf16.mxu0 %v12330_v17 }
 0xe91   :  { %9162 = vst [vmem:[#allocation10 + $0x48] sm:$0xff] %v9114_v12  ;;  %v11071_v55 = vpack.c.bf16 %v11290_v59, %v11288_v40  ;;  %v9115_v0 = vsel %vm9092_vm7, %v11290_v59, 0.0  ;;  %v11106_v28 = vpack.c.bf16 %v8901_v38, %v8898_v54  ;;  %v8944_v12 = vld [vmem:[%s15518_s2] sm:$0xff]  ;;  %s12333_s2 = smov [#allocation10]  }
 0xe92   :  { %9163 = vst [vmem:[#allocation10 + $0x50] sm:$0xff] %v9115_v0  ;;  %s9206_s29 = sshll.u32 %s12333_s2, 4  ;;  %s9207_s29 = int_to_ptr.vmem [resolvable:$true] %s9206_s29 }
 0xe93   :  { %v8691_v37 = vpop.f32.mrb[152].mxu0  ;;  %v11026_v25 = vpop.f32.mrb[168].mxu1  ;;  %11072 = vmatprep.subr.bf16.mxu1 %v11071_v55  ;;  %11107 = vmatpush3.bf16.msra.mxu0 %v11106_v28  ;;  %s12268_s15 = scalar_lea.vmem %s9207_s29, 6144  ;;  %p12273_p5 = scmp.lt.s32.totalorder %s9207_s29, %s9207_s29 }
 0xe94   :  { %v8922_v7 = vadd.f32 %v11026_v25, %v8825_v5  ;;  %v8693_v63 = vpop.f32.mrb[153].mxu0  ;;  %v8913_v29 = vpop.f32.mrb[169].mxu1  ;;  %11074 = vmatpush1.bf16.msra.mxu1 %v11073_v1  ;;  %11108 = vmatprep.subr.bf16.mxu0 %v12330_v17  ;;  %v11291_v30 = vadd.f32 %v8691_v37, %v15408_v56  ;;  %p12269_p4 = scmp.ne.s32.totalorder %s9207_s29, %s12268_s15  ;;  %p12274_p6 = scmp.lt.s32.totalorder %s12268_s15, %s12268_s15 }
 0xe95   :  { %v8914_v46 = vadd.f32 %v8913_v29, %v8817_v18  ;;  %v8695_v22 = vpop.f32.mrb[154].mxu0  ;;  %v11027_v27 = vpop.f32.mrb[170].mxu1  ;;  %v11292_v60 = vadd.f32 %v8693_v63, %v15411_v26 }
 0xe96   :  { %v11293_v6 = vadd.f32 %v8695_v22, %v15408_v56  ;;  %v8925_v50 = vadd.f32 %v11027_v27, %v8828_v44  ;;  %v8697_v21 = vpop.f32.mrb[155].mxu0  ;;  %v8916_v39 = vpop.f32.mrb[171].mxu1  ;;  %p12275_p7 = por %p12274_p6, %p12273_p5 }
 0xe97   :  { %v11294_v41 = vadd.f32 %v8697_v21, %v15411_v26  ;;  %v8917_v43 = vadd.f32 %v8916_v39, %v8820_v24  ;;  %11110 = vmatpush3.bf16.msra.mxu0 %v11109_v32 }
 0xe98   :  { %v11077_v33 = vpack.c.bf16 %v11293_v6, %v11291_v30  ;;  %v11115_v62 = vpack.c.bf16 %v8925_v50, %v8922_v7  ;;  %11111 = vmatprep.subr.bf16.mxu0 %v12330_v17  ;;  %p12276_p8 = pnand %p12275_p7, %p12269_p4 }
 0xe99   :  { %v11075_v9 = vpack.c.bf16 %v11294_v41, %v11292_v60  ;;  %v11112_v35 = vpack.c.bf16 %v8917_v43, %v8914_v46 }
 0xe9b   :  { %v8701_v20 = vpop.f32.mrb[156].mxu0  ;;  %v11030_v45 = vpop.f32.mrb[172].mxu1  ;;  %11076 = vmatprep.subr.bf16.mxu1 %v11075_v9  ;;  %11113 = vmatpush3.bf16.msra.mxu0 %v11112_v35 }
 0xe9c   :  { %v8938_v16 = vadd.f32 %v11030_v45, %v8841_v42  ;;  %v8703_v2 = vpop.f32.mrb[157].mxu0  ;;  %v8929_v15 = vpop.f32.mrb[173].mxu1  ;;  %11078 = vmatpush1.bf16.msra.mxu1 %v11077_v33  ;;  %11114 = vmatprep.subr.bf16.mxu0 %v12330_v17  ;;  %v11295_v57 = vadd.f32 %v8701_v20, %v15408_v56 }
 0xe9d   :  { %v8930_v14 = vadd.f32 %v8929_v15, %v8833_v49  ;;  %v8705_v3 = vpop.f32.mrb[158].mxu0  ;;  %v11031_v31 = vpop.f32.mrb[174].mxu1  ;;  %v11296_v40 = vadd.f32 %v8703_v2, %v15411_v26 }
 0xe9e   :  { %v11297_v23 = vadd.f32 %v8705_v3, %v15408_v56  ;;  %v8941_v51 = vadd.f32 %v11031_v31, %v8844_v48  ;;  %v8707_v61 = vpop.f32.mrb[159].mxu0  ;;  %v8932_v52 = vpop.f32.mrb[175].mxu1 }
 0xe9f   :  { %v11298_v54 = vadd.f32 %v8707_v61, %v15411_v26  ;;  %v8933_v8 = vadd.f32 %v8932_v52, %v8836_v47  ;;  %11116 = vmatpush3.bf16.msra.mxu0 %v11115_v62 }
 0xea0   :  { %v11081_v4 = vpack.c.bf16 %v11297_v23, %v11295_v57  ;;  %v11121_v19 = vpack.c.bf16 %v8941_v51, %v8938_v16  ;;  %11117 = vmatprep.subr.bf16.mxu0 %v12330_v17 }
 0xea1   :  { %v11079_v10 = vpack.c.bf16 %v11298_v54, %v11296_v40  ;;  %v11118_v34 = vpack.c.bf16 %v8933_v8, %v8930_v14 }
 0xea3   :  { %v8711_v11 = vpop.f32.mrb[160].mxu0  ;;  %11080 = vmatprep.subr.bf16.mxu1 %v11079_v10  ;;  %11119 = vmatpush3.bf16.msra.mxu0 %v11118_v34 }
 0xea4   :  { %v8713_v13 = vpop.f32.mrb[161].mxu0  ;;  %11082 = vmatpush1.bf16.msra.mxu1 %v11081_v4  ;;  %11120 = vmatprep.subr.bf16.mxu0 %v12330_v17  ;;  %v11299_v53 = vadd.f32 %v8711_v11, %v15408_v56 }
 0xea5   :  { %v8715_v36 = vpop.f32.mrb[162].mxu0  ;;  %v11300_v38 = vadd.f32 %v8713_v13, %v15411_v26 }
 0xea6   :  { %v11301_v58 = vadd.f32 %v8715_v36, %v15408_v56  ;;  %v8717_v59 = vpop.f32.mrb[163].mxu0 }
 0xea7   :  { %v11302_v1 = vadd.f32 %v8717_v59, %v15411_v26  ;;  %11122 = vmatpush3.bf16.msra.mxu0 %v11121_v19 }
 0xea8   :  { %v11085_v32 = vpack.c.bf16 %v11301_v58, %v11299_v53 }
 0xea9   :  { %v11083_v55 = vpack.c.bf16 %v11302_v1, %v11300_v38 }
 0xeaa   :  { %11065 = vmatmul.mubr.f32.vlgmr.msra.gmra.mrb[176].mxu0 %v8944_v12 }
 0xeab   :  { %v8721_v0 = vpop.f32.mrb[164].mxu0  ;;  %11084 = vmatprep.subr.bf16.mxu1 %v11083_v55 }
 0xeac   :  { %v8723_v17 = vpop.f32.mrb[165].mxu0  ;;  %11086 = vmatpush1.bf16.msra.mxu1 %v11085_v32  ;;  %v11303_v5 = vadd.f32 %v8721_v0, %v15408_v56 }
 0xead   :  { %v8725_v28 = vpop.f32.mrb[166].mxu0  ;;  %v11304_v18 = vadd.f32 %v8723_v17, %v15411_v26 }
 0xeae   :  { %v11305_v37 = vadd.f32 %v8725_v28, %v15408_v56  ;;  %v8727_v25 = vpop.f32.mrb[167].mxu0 }
 0xeaf   :  { %v11306_v7 = vadd.f32 %v8727_v25, %v15411_v26 }
 0xeb0   :  { %v11089_v63 = vpack.c.bf16 %v11305_v37, %v11303_v5 }
 0xeb1   :  { %v11087_v29 = vpack.c.bf16 %v11306_v7, %v11304_v18 }
 0xeb3   :  { %v8731_v44 = vpop.f32.mrb[168].mxu0  ;;  %11088 = vmatprep.subr.bf16.mxu1 %v11087_v29 }
 0xeb4   :  { %v8733_v46 = vpop.f32.mrb[169].mxu0  ;;  %11090 = vmatpush1.bf16.msra.mxu1 %v11089_v63  ;;  %v11307_v27 = vadd.f32 %v8731_v44, %v15408_v56 }
 0xeb5   :  { %v8735_v22 = vpop.f32.mrb[170].mxu0  ;;  %v11308_v6 = vadd.f32 %v8733_v46, %v15411_v26 }
 0xeb6   :  { %v11309_v24 = vadd.f32 %v8735_v22, %v15408_v56  ;;  %v8737_v30 = vpop.f32.mrb[171].mxu0 }
 0xeb7   :  { %v11310_v50 = vadd.f32 %v8737_v30, %v15411_v26 }
 0xeb8   :  { %v11093_v21 = vpack.c.bf16 %v11309_v24, %v11307_v27 }
 0xeb9   :  { %v11091_v39 = vpack.c.bf16 %v11310_v50, %v11308_v6 }
 0xebb   :  { %v8741_v60 = vpop.f32.mrb[172].mxu0  ;;  %11092 = vmatprep.subr.bf16.mxu1 %v11091_v39 }
 0xebc   :  { %v8743_v41 = vpop.f32.mrb[173].mxu0  ;;  %11094 = vmatpush1.bf16.msra.mxu1 %v11093_v21  ;;  %v11311_v33 = vadd.f32 %v8741_v60, %v15408_v56 }
 0xebd   :  { %v8745_v43 = vpop.f32.mrb[174].mxu0  ;;  %v11312_v35 = vadd.f32 %v8743_v41, %v15411_v26 }
 0xebe   :  { %v11313_v62 = vadd.f32 %v8745_v43, %v15408_v56  ;;  %v8747_v9 = vpop.f32.mrb[175].mxu0 }
 0xebf   :  { %v11314_v42 = vadd.f32 %v8747_v9, %v15411_v26 }
 0xec0   :  { %v11097_v20 = vpack.c.bf16 %v11313_v62, %v11311_v33 }
 0xec1   :  { %v11095_v45 = vpack.c.bf16 %v11314_v42, %v11312_v35 }
 0xec3   :  { %11096 = vmatprep.subr.bf16.mxu1 %v11095_v45 }
 0xec4   :  { %11098 = vmatpush1.bf16.msra.mxu1 %v11097_v20 }
 0xec7   :  { %9010 = vmatmul.mubr.f32.vlgmr.msra.gmra.mrb[176].mxu1 %v8944_v12 }
 0xec8   :  { %12279 = shalt.err (!%p12276_p8)
}
 0xec9   :  { %s12280_s9 = scalar_lea.hbm %s15529_s13, 6144 }
 0xeca   :  { %p12281_p9 = scmp.ne.s32.totalorder %s15529_s13, %s12280_s9  ;;  %p12284_p10 = scmp.lt.u32.totalorder %s12280_s9, %s15529_s13 }
 0xecc   :  { %p12286_p11 = pnand %p12284_p10, %p12281_p9 }
 0xece   :  { %12289 = shalt.err (!%p12286_p11)
}
 0xecf   :  { %s12334_s26 = smov 384   ;;  %s12335_s6 = smov 24  }
 0xed0   :  { %9212 = dma.vmem_to_hbm [thread:$0]  %s9207_s29, 6144, %s15529_s13, [#allocation4], %s12334_s26, %s12334_s26, %s12335_s6  }
 0xed1   :  { %s12336_s20 = smov [#allocation11]  }
 0xed2   :  { %s9219_s1 = sshll.u32 %s12336_s20, 4  ;;  %s9220_s1 = int_to_ptr.vmem [resolvable:$true] %s9219_s1 }
 0xed3   :  { %s12290_s8 = scalar_lea.vmem %s9220_s1, 384  ;;  %p12295_p13 = scmp.lt.s32.totalorder %s9220_s1, %s9220_s1 }
 0xed4   :  { %p12291_p12 = scmp.ne.s32.totalorder %s9220_s1, %s12290_s8  ;;  %p12296_p0 = scmp.lt.s32.totalorder %s12290_s8, %s12290_s8 }
 0xed6   :  { %p12297_p1 = por %p12296_p0, %p12295_p13 }
 0xed8   :  { %p12298_p2 = pnand %p12297_p1, %p12291_p12 }
 0xf7d   :  { %v9082_v56 = vpop.f32.mrb[176].mxu0 }
 0xf7e   :  { %9088 = vst [vmem:[#allocation11 + $0x10] sm:$0xff] %v9082_v56  ;;  %v11066_v26 = vpop.f32.mrb[177].mxu0 }
 0xf9a   :  { %v9011_v49 = vpop.f32.mrb[176].mxu1 }
 0xf9b   :  { %9086 = vst [vmem:[#allocation11] sm:$0xff] %v9011_v49  ;;  %v9013_v16 = vpop.f32.mrb[177].mxu1 }
 0xf9c   :  { %9087 = vst [vmem:[#allocation11 + $0x8] sm:$0xff] %v9013_v16 }
 0xf9d   :  { %12301 = shalt.err (!%p12298_p2)
}
 0xf9e   :  { %s12302_s13 = scalar_lea.hbm %s15530_s14, 384 }
 0xf9f   :  { %p12303_p3 = scmp.ne.s32.totalorder %s15530_s14, %s12302_s13  ;;  %p12306_p4 = scmp.lt.u32.totalorder %s12302_s13, %s15530_s14 }
 0xfa1   :  { %p12308_p5 = pnand %p12306_p4, %p12303_p3 }
 0xfa3   :  { %12311 = shalt.err (!%p12308_p5)
}
 0xfa4   :  { %9222 = dma.vmem_to_hbm [thread:$0]  %s9220_s1, 384, %s15530_s14, [#allocation12]  }
 0xfa5   :  { %12318 = dma.done.wait [#allocation4], 6144  }
 0xfa6   :  { %12319 = vsyncadd [#allocation4], 4294961152 }
 0xfa7   :  { %12320 = dma.done.wait [#allocation12], 384  }
 0xfa8   :  { %12321 = vsyncadd [#allocation12], 4294966912 }
 0xfa9   :  { %9229 = vsyncpa [#allocation3], 1 }
 0xfaa   :  { %9230 = vsyncpa [#allocation6], 1 }
 0xfab   :  { %9231 = vsyncpa [#allocation9], 1 }
 0xfac   :  { %9232 = vsyncpa [#allocation4], 1 }
 0xfad   :  { %9233 = vsyncpa [#allocation12], 1 }

</bundles_post_ra>
